<compile_context>
chip_gen: v6e
topology: v6e:2x2x1
jax: 0.10.0
libtpu: 0.0.40
codegen_flags: <defaults>
</compile_context>

<pallas_src>
import math
from functools import partial

import numpy as np
import jax
import jax.numpy as jnp
from jax import lax
from jax.experimental import pallas as pl
from jax.experimental.pallas import tpu as pltpu


# ----------------------------------------------------------------------------
# The single fused forward kernel
# ----------------------------------------------------------------------------

def _transformer_kernel(
    idx_ref, enc_tab_ref, dec_tab_ref,
    e_wqkv_ref, e_bqkv_ref, e_wo_ref, e_bo_ref, e_ln_ref,
    e_w1_ref, e_b1_ref, e_w2_ref, e_b2_ref,
    d_sa_wqkv_ref, d_sa_bqkv_ref, d_sa_wo_ref, d_sa_bo_ref,
    d_ca_wq_ref, d_ca_bq_ref, d_ca_wkv_ref, d_ca_bkv_ref, d_ca_wo_ref, d_ca_bo_ref,
    d_ln_ref, d_w1_ref, d_b1_ref, d_w2_ref, d_b2_ref,
    out_w_ref, out_b_ref,
    bd_mask_ref, causal_ref, seg_sum_ref, head_masks_ref,
    o_ref,
    *, S, P, E, H, n_enc, n_dec, eps):

    f32, bf16 = jnp.float32, jnp.bfloat16
    dh = E // H
    HS = H * S
    scale = 1.0 / math.sqrt(dh)
    V_TOT = enc_tab_ref.shape[0]

    # bf16 operands, f32 accumulation (single-pass MXU on all generations)
    def mm(a, b):
        return jnp.dot(a.astype(bf16), b.astype(bf16), preferred_element_type=f32)

    def mm_nt(a, b):   # (m,k) x (n,k)^T -> (m,n)
        return lax.dot_general(a.astype(bf16), b.astype(bf16),
                               (((1,), (1,)), ((), ())),
                               preferred_element_type=f32)

    def layer_norm(x, g, b):
        mu = jnp.mean(x, axis=-1, keepdims=True)
        var = jnp.mean(jnp.square(x - mu), axis=-1, keepdims=True)
        return (x - mu) * lax.rsqrt(var + eps) * g + b

    # Host-precomputed constants (tiny VMEM inputs -> no in-kernel iota chains).
    bd_mask = bd_mask_ref[...]       # (HS, 2E) f32 block-diag head mask over [K|V] lanes
    causal_add = causal_ref[...]     # (S, HS) f32 additive causal mask
    seg_sum = seg_sum_ref[...]       # (HS, HS) bf16 per-head segment-sum matrix

    def multihead(q, kv, causal):
        # q: (P*S, E) f32, pre-scaled; kv: (P*S, 2E) f32 with K in [:E], V in [E:].
        # All H heads packed lane-dense into one (S, H*S) score tile per stream.
        # NOTE: kept as a static Python loop (P=5); convert to lax.fori_loop if a
        # bundle dump ever shows spill vld/vst.
        outs = []
        for p in range(P):
            qp = q[p * S:(p + 1) * S, :]
            kvp = kv[p * S:(p + 1) * S, :]
            kvrep = jnp.concatenate([kvp] * H, axis=0) * bd_mask          # (HS, 2E)
            sc = mm_nt(qp, kvrep[:, :E])                                  # (S, HS)
            if causal:
                sc = sc + causal_add
            # Segment softmax is shift-invariant -> one global row max suffices.
            m = jnp.max(sc, axis=-1, keepdims=True)
            e = jnp.exp(sc - m)
            denom = jnp.dot(e.astype(bf16), seg_sum, preferred_element_type=f32)
            pr = e * pl.reciprocal(denom, approx=True)
            outs.append(mm(pr, kvrep[:, E:]))                             # (S, E)
        return jnp.concatenate(outs, axis=0)                              # (P*S, E)

    # ------------------- embeddings via one-hot matmul (in-kernel) -------------------
    onehot = (lax.broadcasted_iota(jnp.int32, (P * S, V_TOT), 1)
              == idx_ref[...]).astype(f32)                                # (P*S, V_TOT)
    x = mm(onehot, enc_tab_ref[...])                                      # encoder embeds
    y = mm(onehot, dec_tab_ref[...])                                      # decoder embeds

    # ------------------------------ encoder stack ------------------------------
    for l in range(n_enc):
        qkv = mm(x, e_wqkv_ref[l]) + e_bqkv_ref[l]                        # (P*S, 3E)
        a = multihead(qkv[:, :E] * scale, qkv[:, E:], causal=False)
        a = mm(a, e_wo_ref[l]) + e_bo_ref[l]
        ln = e_ln_ref[l]                                                  # (4, E)
        x = layer_norm(x + a, ln[0:1, :], ln[1:2, :])
        h = jnp.maximum(mm(x, e_w1_ref[l]) + e_b1_ref[l], 0.0)
        f = mm(h, e_w2_ref[l]) + e_b2_ref[l]
        x = layer_norm(x + f, ln[2:3, :], ln[3:4, :])
    enc_out = x

    # ------------------------------ decoder stack ------------------------------
    # TODO(synk): Decoder source unavailable; causal self-attention + post-LN assumed.
    for l in range(n_dec):
        ln = d_ln_ref[l]                                                  # (6, E)
        qkv = mm(y, d_sa_wqkv_ref[l]) + d_sa_bqkv_ref[l]
        a = multihead(qkv[:, :E] * scale, qkv[:, E:], causal=True)
        a = mm(a, d_sa_wo_ref[l]) + d_sa_bo_ref[l]
        y = layer_norm(y + a, ln[0:1, :], ln[1:2, :])

        # cross-attention: Q only from decoder stream, K|V only from encoder output
        q = mm(y, d_ca_wq_ref[l]) + d_ca_bq_ref[l]                        # (P*S, E)
        kv = mm(enc_out, d_ca_wkv_ref[l]) + d_ca_bkv_ref[l]               # (P*S, 2E)
        c = multihead(q * scale, kv, causal=False)
        c = mm(c, d_ca_wo_ref[l]) + d_ca_bo_ref[l]
        y = layer_norm(y + c, ln[2:3, :], ln[3:4, :])

        h = jnp.maximum(mm(y, d_w1_ref[l]) + d_b1_ref[l], 0.0)
        f = mm(h, d_w2_ref[l]) + d_b2_ref[l]
        y = layer_norm(y + f, ln[4:5, :], ln[5:6, :])

    # ---------------- final linear: repack to (S, P*E) -> one matmul ----------------
    # y_flat[s, p*E + e] = y[p*S + s, e]
    y_flat = jnp.concatenate([y[p * S:(p + 1) * S, :] for p in range(P)], axis=1)
    logits = mm(y_flat, out_w_ref[...]) + out_b_ref[...]                  # (S, OUT_PAD)

    # ---------------- sliced sigmoid / segment-softmax output head ----------------
    hm = head_masks_ref[...]                                              # (4, OUT_PAD)
    seg0, seg1, seg2, sig = hm[0:1, :], hm[1:2, :], hm[2:3, :], hm[3:4, :]
    soft_mask = seg0 + seg1 + seg2
    m = jnp.max(logits, axis=-1, keepdims=True)                           # one row max
    ex = jnp.exp(logits - m)                                              # single exp pass
    d0 = jnp.sum(ex * seg0, axis=-1, keepdims=True)
    d1 = jnp.sum(ex * seg1, axis=-1, keepdims=True)
    d2 = jnp.sum(ex * seg2, axis=-1, keepdims=True)
    denom = seg0 * d0 + seg1 * d1 + seg2 * d2 + (1.0 - soft_mask)         # 1 elsewhere
    soft = ex / denom                                                     # exact division
    o_ref[...] = jnp.where(sig > 0.5, jax.nn.sigmoid(logits), soft)


# ----------------------------------------------------------------------------
# Wrapper: one fused pallas_call (no grid), everything whole-array in VMEM
# ----------------------------------------------------------------------------

def transformer_forward(params, pitch, velocity, program, tempo, drum,
                        *, heads, out_dim, eps=1e-6):
    enc_p, dec_p = params['enc'], params['dec']
    E = enc_p['wqkv'].shape[1]
    n_enc = enc_p['wqkv'].shape[0]
    n_dec = dec_p['sa_wqkv'].shape[0]
    T = pitch.shape[0]
    S = T - 1
    P = 5
    H = heads
    dh = E // H
    HS = H * S
    OUT_PAD = params['out_w'].shape[1]
    OUT = out_dim

    # The PyTorch forward indexes rows [0, T-1) in BOTH the encoder and decoder loops.
    sel = slice(0, S)
    idx_col = jnp.concatenate([
        pitch[sel].astype(jnp.int32),            # rows   0..127 of the stacked table
        velocity[sel].astype(jnp.int32) + 128,   # rows 128..255
        program[sel].astype(jnp.int32) + 256,    # rows 256..383
        tempo[sel].astype(jnp.int32) + 384,      # rows 384..391
        drum[sel].astype(jnp.int32) + 392,       # rows 392..393
    ]).reshape(P * S, 1)

    # Constant masks: numpy at trace time -> baked literals under jit (zero per-call cost).
    r = np.arange(HS)[:, None]
    c2 = np.arange(2 * E)[None, :]
    bd_mask = ((r // S) == ((c2 % E) // dh)).astype(np.float32)            # (HS, 2E)
    qr = np.arange(S)[:, None]
    kc = np.arange(HS)[None, :]
    causal_add = np.where((kc % S) <= qr, 0.0, -1e9).astype(np.float32)    # (S, HS)
    seg_sum = ((np.arange(HS)[:, None] // S)
               == (np.arange(HS)[None, :] // S)).astype(np.float32)        # (HS, HS)
    col = np.arange(OUT_PAD)
    head_masks = np.stack([
        ((col >= 2) & (col < 10)).astype(np.float32),
        ((col >= 10) & (col < 138)).astype(np.float32),
        ((col >= 266) & (col < OUT)).astype(np.float32),
        ((col < 2) | ((col >= 138) & (col < 266))).astype(np.float32),
    ], axis=0)                                                              # (4, OUT_PAD)

    args = (
        idx_col, params['enc_table'], params['dec_table'],
        enc_p['wqkv'], enc_p['bqkv'], enc_p['wo'], enc_p['bo'], enc_p['ln'],
        enc_p['w1'], enc_p['b1'], enc_p['w2'], enc_p['b2'],
        dec_p['sa_wqkv'], dec_p['sa_bqkv'], dec_p['sa_wo'], dec_p['sa_bo'],
        dec_p['ca_wq'], dec_p['ca_bq'], dec_p['ca_wkv'], dec_p['ca_bkv'],
        dec_p['ca_wo'], dec_p['ca_bo'],
        dec_p['ln'], dec_p['w1'], dec_p['b1'], dec_p['w2'], dec_p['b2'],
        params['out_w'], params['out_b'],
        jnp.asarray(bd_mask), jnp.asarray(causal_add),
        jnp.asarray(seg_sum, dtype=jnp.bfloat16), jnp.asarray(head_masks),
    )

    kernel = partial(_transformer_kernel, S=S, P=P, E=E, H=H,
                     n_enc=n_enc, n_dec=n_dec, eps=eps)

    padded = pl.pallas_call(
        kernel,
        out_shape=jax.ShapeDtypeStruct((S, OUT_PAD), jnp.float32),
        in_specs=[pl.BlockSpec(memory_space=pltpu.MemorySpace.VMEM) for _ in args],
        out_specs=pl.BlockSpec(memory_space=pltpu.MemorySpace.VMEM),
    )(*args)
    return padded[:, :OUT]


# ----------------------------------------------------------------------------
# Deterministic parameter init (stacked per-layer arrays, bf16 matmul weights,
# embedding tables stacked into one vocab, out_w pre-padded to 512 lanes)
# ----------------------------------------------------------------------------

def init_params(key, E, H, FF, n_enc, n_dec, OUT, P=5):
    keys = iter(jax.random.split(key, 32))

    def nrm(shape, dtype=jnp.bfloat16, scale=0.02):
        return (scale * jax.random.normal(next(keys), shape, jnp.float32)).astype(dtype)

    def zeros(shape):
        return jnp.zeros(shape, jnp.float32)

    def ln_init(n_layers, n_norms):      # rows alternate [gamma, beta] per LayerNorm
        pat = jnp.array([1.0, 0.0] * n_norms, jnp.float32)
        return jnp.tile(pat[None, :, None], (n_layers, 1, E))

    V_TOT = 128 * 3 + 8 + 2              # stacked [pitch, velocity, program, tempo, drum]
    OUT_PAD = ((OUT + 127) // 128) * 128

    enc = {
        'wqkv': nrm((n_enc, E, 3 * E)), 'bqkv': zeros((n_enc, 1, 3 * E)),
        'wo': nrm((n_enc, E, E)), 'bo': zeros((n_enc, 1, E)),
        'ln': ln_init(n_enc, 2),
        'w1': nrm((n_enc, E, FF)), 'b1': zeros((n_enc, 1, FF)),
        'w2': nrm((n_enc, FF, E)), 'b2': zeros((n_enc, 1, E)),
    }
    dec = {
        'sa_wqkv': nrm((n_dec, E, 3 * E)), 'sa_bqkv': zeros((n_dec, 1, 3 * E)),
        'sa_wo': nrm((n_dec, E, E)), 'sa_bo': zeros((n_dec, 1, E)),
        # cross-attention weights pre-split: Q from decoder stream, K|V from encoder out
        'ca_wq': nrm((n_dec, E, E)), 'ca_bq': zeros((n_dec, 1, E)),
        'ca_wkv': nrm((n_dec, E, 2 * E)), 'ca_bkv': zeros((n_dec, 1, 2 * E)),
        'ca_wo': nrm((n_dec, E, E)), 'ca_bo': zeros((n_dec, 1, E)),
        'ln': ln_init(n_dec, 3),
        'w1': nrm((n_dec, E, FF)), 'b1': zeros((n_dec, 1, FF)),
        'w2': nrm((n_dec, FF, E)), 'b2': zeros((n_dec, 1, E)),
    }
    out_w = jnp.pad(nrm((P * E, OUT), dtype=jnp.float32),
                    ((0, 0), (0, OUT_PAD - OUT))).astype(jnp.bfloat16)
    return {
        'enc_table': nrm((V_TOT, E)), 'dec_table': nrm((V_TOT, E)),
        'enc': enc, 'dec': dec,
        'out_w': out_w, 'out_b': jnp.zeros((1, OUT_PAD), jnp.float32),
    }


# ----------------------------------------------------------------------------
# Demo
# ----------------------------------------------------------------------------

if __name__ == "__main__":
    # Small config consistent with the module structure:
    #   embed_size=32, num_params=5, heads=4, ff_dim=64, 2 enc + 2 dec layers,
    #   output_linear_size = 128*3 + 2 + 8 = 394 (kept exact for the slicing).
    E, H, FF = 32, 4, 64
    N_ENC, N_DEC = 2, 2
    OUT = 128 * 3 + 2 + 8   # 394
    T = 9                   # track length -> sequence length S = 8

    key = jax.random.PRNGKey(0)
    k0, k1, k2, k3, k4, k5 = jax.random.split(key, 6)

    params = init_params(k0, E, H, FF, N_ENC, N_DEC, OUT)

    pitch = jax.random.randint(k1, (T,), 0, 128, jnp.int32)
    velocity = jax.random.randint(k2, (T,), 0, 128, jnp.int32)
    program = jax.random.randint(k3, (T,), 0, 128, jnp.int32)
    tempo = jax.random.randint(k4, (T,), 0, 8, jnp.int32)
    drum = jax.random.randint(k5, (T,), 0, 2, jnp.int32)

    fwd = jax.jit(partial(transformer_forward, heads=H, out_dim=OUT))
    out = jax.block_until_ready(fwd(params, pitch, velocity, program, tempo, drum))

    assert out.shape == (T - 1, OUT), out.shape
    assert bool(jnp.all(jnp.isfinite(out)))
    # sanity: each softmax segment of the output head sums to ~1 per row
    seg_check = jnp.sum(out[:, 2:10], axis=1)
    assert bool(jnp.all(jnp.abs(seg_check - 1.0) < 1e-2)), seg_check
    seg_check2 = jnp.sum(out[:, 266:], axis=1)
    assert bool(jnp.all(jnp.abs(seg_check2 - 1.0) < 1e-2)), seg_check2
    print("KERNEL_OK")
</pallas_src>

<mosaic_0001>
module attributes {stable_mosaic.version = 11 : i64} {
  func.func @_transformer_kernel(%arg0: memref<40x1xi32, #tpu.memory_space<vmem>>, %arg1: memref<394x32xbf16, #tpu.memory_space<vmem>>, %arg2: memref<394x32xbf16, #tpu.memory_space<vmem>>, %arg3: memref<2x32x96xbf16, #tpu.memory_space<vmem>>, %arg4: memref<2x1x96xf32, #tpu.memory_space<vmem>>, %arg5: memref<2x32x32xbf16, #tpu.memory_space<vmem>>, %arg6: memref<2x1x32xf32, #tpu.memory_space<vmem>>, %arg7: memref<2x4x32xf32, #tpu.memory_space<vmem>>, %arg8: memref<2x32x64xbf16, #tpu.memory_space<vmem>>, %arg9: memref<2x1x64xf32, #tpu.memory_space<vmem>>, %arg10: memref<2x64x32xbf16, #tpu.memory_space<vmem>>, %arg11: memref<2x1x32xf32, #tpu.memory_space<vmem>>, %arg12: memref<2x32x96xbf16, #tpu.memory_space<vmem>>, %arg13: memref<2x1x96xf32, #tpu.memory_space<vmem>>, %arg14: memref<2x32x32xbf16, #tpu.memory_space<vmem>>, %arg15: memref<2x1x32xf32, #tpu.memory_space<vmem>>, %arg16: memref<2x32x32xbf16, #tpu.memory_space<vmem>>, %arg17: memref<2x1x32xf32, #tpu.memory_space<vmem>>, %arg18: memref<2x32x64xbf16, #tpu.memory_space<vmem>>, %arg19: memref<2x1x64xf32, #tpu.memory_space<vmem>>, %arg20: memref<2x32x32xbf16, #tpu.memory_space<vmem>>, %arg21: memref<2x1x32xf32, #tpu.memory_space<vmem>>, %arg22: memref<2x6x32xf32, #tpu.memory_space<vmem>>, %arg23: memref<2x32x64xbf16, #tpu.memory_space<vmem>>, %arg24: memref<2x1x64xf32, #tpu.memory_space<vmem>>, %arg25: memref<2x64x32xbf16, #tpu.memory_space<vmem>>, %arg26: memref<2x1x32xf32, #tpu.memory_space<vmem>>, %arg27: memref<160x512xbf16, #tpu.memory_space<vmem>>, %arg28: memref<1x512xf32, #tpu.memory_space<vmem>>, %arg29: memref<32x64xf32, #tpu.memory_space<vmem>>, %arg30: memref<8x32xf32, #tpu.memory_space<vmem>>, %arg31: memref<32x32xbf16, #tpu.memory_space<vmem>>, %arg32: memref<4x512xf32, #tpu.memory_space<vmem>>, %arg33: memref<8x512xf32, #tpu.memory_space<vmem>>) attributes {dimension_semantics = [], scalar_prefetch = 0 : i64, scratch_operands = 0 : i64, tpu.core_type = #tpu.core_type<tc>} {
    %c0 = arith.constant 0 : index
    %c0_0 = arith.constant 0 : index
    %0 = vector.load %arg29[%c0, %c0_0] : memref<32x64xf32, #tpu.memory_space<vmem>>, vector<32x64xf32>
    %c0_1 = arith.constant 0 : index
    %c0_2 = arith.constant 0 : index
    %1 = vector.load %arg30[%c0_1, %c0_2] : memref<8x32xf32, #tpu.memory_space<vmem>>, vector<8x32xf32>
    %c0_3 = arith.constant 0 : index
    %c0_4 = arith.constant 0 : index
    %2 = vector.load %arg31[%c0_3, %c0_4] : memref<32x32xbf16, #tpu.memory_space<vmem>>, vector<32x32xbf16>
    %3 = tpu.iota {dimensions = array<i32: 1>} : vector<40x394xi32>
    %c0_5 = arith.constant 0 : index
    %c0_6 = arith.constant 0 : index
    %4 = vector.load %arg0[%c0_5, %c0_6] : memref<40x1xi32, #tpu.memory_space<vmem>>, vector<40x1xi32>
    %5 = vector.broadcast %4 : vector<40x1xi32> to vector<40x394xi32>
    %6 = arith.cmpi eq, %3, %5 : vector<40x394xi32>
    %7 = arith.extui %6 : vector<40x394xi1> to vector<40x394xi32>
    %8 = arith.sitofp %7 : vector<40x394xi32> to vector<40x394xf32>
    %c0_7 = arith.constant 0 : index
    %c0_8 = arith.constant 0 : index
    %9 = vector.load %arg1[%c0_7, %c0_8] : memref<394x32xbf16, #tpu.memory_space<vmem>>, vector<394x32xbf16>
    %10 = arith.truncf %8 : vector<40x394xf32> to vector<40x394xbf16>
    %cst = arith.constant dense<0.000000e+00> : vector<40x32xf32>
    %11 = tpu.matmul %10, %9, %cst {dimension_numbers = #tpu.dot_dimension_numbers<[1], [0], [0], [1], [0, 0, 1, 1], [], []>} : vector<40x394xbf16>, vector<394x32xbf16>, vector<40x32xf32> -> vector<40x32xf32>
    %c0_9 = arith.constant 0 : index
    %c0_10 = arith.constant 0 : index
    %12 = vector.load %arg2[%c0_9, %c0_10] : memref<394x32xbf16, #tpu.memory_space<vmem>>, vector<394x32xbf16>
    %13 = arith.truncf %8 : vector<40x394xf32> to vector<40x394xbf16>
    %cst_11 = arith.constant dense<0.000000e+00> : vector<40x32xf32>
    %14 = tpu.matmul %13, %12, %cst_11 {dimension_numbers = #tpu.dot_dimension_numbers<[1], [0], [0], [1], [0, 0, 1, 1], [], []>} : vector<40x394xbf16>, vector<394x32xbf16>, vector<40x32xf32> -> vector<40x32xf32>
    %c0_12 = arith.constant 0 : index
    %c0_13 = arith.constant 0 : index
    %c0_14 = arith.constant 0 : index
    %15 = vector.load %arg3[%c0_12, %c0_13, %c0_14] : memref<2x32x96xbf16, #tpu.memory_space<vmem>>, vector<1x32x96xbf16>
    %16 = vector.shape_cast %15 : vector<1x32x96xbf16> to vector<32x96xbf16>
    %17 = arith.truncf %11 : vector<40x32xf32> to vector<40x32xbf16>
    %cst_15 = arith.constant dense<0.000000e+00> : vector<40x96xf32>
    %18 = tpu.matmul %17, %16, %cst_15 {dimension_numbers = #tpu.dot_dimension_numbers<[1], [0], [0], [1], [0, 0, 1, 1], [], []>} : vector<40x32xbf16>, vector<32x96xbf16>, vector<40x96xf32> -> vector<40x96xf32>
    %c0_16 = arith.constant 0 : index
    %c0_17 = arith.constant 0 : index
    %c0_18 = arith.constant 0 : index
    %19 = vector.load %arg4[%c0_16, %c0_17, %c0_18] : memref<2x1x96xf32, #tpu.memory_space<vmem>>, vector<1x1x96xf32>
    %20 = vector.shape_cast %19 : vector<1x1x96xf32> to vector<1x96xf32>
    %21 = vector.broadcast %20 : vector<1x96xf32> to vector<40x96xf32>
    %22 = arith.addf %18, %21 : vector<40x96xf32>
    %23 = vector.extract_strided_slice %22 {offsets = [0, 0], sizes = [40, 32], strides = [1, 1]} : vector<40x96xf32> to vector<40x32xf32>
    %cst_19 = arith.constant 0.353553385 : f32
    %24 = vector.broadcast %cst_19 : f32 to vector<40x32xf32>
    %25 = arith.mulf %23, %24 : vector<40x32xf32>
    %26 = vector.extract_strided_slice %22 {offsets = [0, 32], sizes = [40, 64], strides = [1, 1]} : vector<40x96xf32> to vector<40x64xf32>
    %27 = vector.extract_strided_slice %25 {offsets = [0, 0], sizes = [8, 32], strides = [1, 1]} : vector<40x32xf32> to vector<8x32xf32>
    %28 = vector.extract_strided_slice %26 {offsets = [0, 0], sizes = [8, 64], strides = [1, 1]} : vector<40x64xf32> to vector<8x64xf32>
    %29 = tpu.concatenate %28, %28, %28, %28 in 0 : vector<8x64xf32>, vector<8x64xf32>, vector<8x64xf32>, vector<8x64xf32> -> vector<32x64xf32>
    %30 = arith.mulf %29, %0 : vector<32x64xf32>
    %31 = vector.extract_strided_slice %30 {offsets = [0, 0], sizes = [32, 32], strides = [1, 1]} : vector<32x64xf32> to vector<32x32xf32>
    %32 = arith.truncf %27 : vector<8x32xf32> to vector<8x32xbf16>
    %33 = arith.truncf %31 : vector<32x32xf32> to vector<32x32xbf16>
    %cst_20 = arith.constant dense<0.000000e+00> : vector<8x32xf32>
    %34 = tpu.matmul %32, %33, %cst_20 {dimension_numbers = #tpu.dot_dimension_numbers<[1], [1], [0], [0], [0, 0, 1, 0], [], []>} : vector<8x32xbf16>, vector<32x32xbf16>, vector<8x32xf32> -> vector<8x32xf32>
    %cst_21 = arith.constant dense<0xFF800000> : vector<8xf32>
    %35 = vector.multi_reduction <maximumf>, %34, %cst_21 [1] : vector<8x32xf32> to vector<8xf32>
    %36 = vector.shape_cast %35 : vector<8xf32> to vector<8x1xf32>
    %37 = vector.broadcast %36 : vector<8x1xf32> to vector<8x32xf32>
    %38 = arith.subf %34, %37 : vector<8x32xf32>
    %39 = math.exp %38 : vector<8x32xf32>
    %40 = arith.truncf %39 : vector<8x32xf32> to vector<8x32xbf16>
    %cst_22 = arith.constant dense<0.000000e+00> : vector<8x32xf32>
    %41 = tpu.matmul %40, %2, %cst_22 {dimension_numbers = #tpu.dot_dimension_numbers<[1], [0], [0], [1], [0, 0, 1, 1], [], []>} : vector<8x32xbf16>, vector<32x32xbf16>, vector<8x32xf32> -> vector<8x32xf32>
    %42 = tpu.reciprocal %41 {approx = true} : vector<8x32xf32> -> vector<8x32xf32>
    %43 = arith.mulf %39, %42 : vector<8x32xf32>
    %44 = vector.extract_strided_slice %30 {offsets = [0, 32], sizes = [32, 32], strides = [1, 1]} : vector<32x64xf32> to vector<32x32xf32>
    %45 = arith.truncf %43 : vector<8x32xf32> to vector<8x32xbf16>
    %46 = arith.truncf %44 : vector<32x32xf32> to vector<32x32xbf16>
    %cst_23 = arith.constant dense<0.000000e+00> : vector<8x32xf32>
    %47 = tpu.matmul %45, %46, %cst_23 {dimension_numbers = #tpu.dot_dimension_numbers<[1], [0], [0], [1], [0, 0, 1, 1], [], []>} : vector<8x32xbf16>, vector<32x32xbf16>, vector<8x32xf32> -> vector<8x32xf32>
    %48 = vector.extract_strided_slice %25 {offsets = [8, 0], sizes = [8, 32], strides = [1, 1]} : vector<40x32xf32> to vector<8x32xf32>
    %49 = vector.extract_strided_slice %26 {offsets = [8, 0], sizes = [8, 64], strides = [1, 1]} : vector<40x64xf32> to vector<8x64xf32>
    %50 = tpu.concatenate %49, %49, %49, %49 in 0 : vector<8x64xf32>, vector<8x64xf32>, vector<8x64xf32>, vector<8x64xf32> -> vector<32x64xf32>
    %51 = arith.mulf %50, %0 : vector<32x64xf32>
    %52 = vector.extract_strided_slice %51 {offsets = [0, 0], sizes = [32, 32], strides = [1, 1]} : vector<32x64xf32> to vector<32x32xf32>
    %53 = arith.truncf %48 : vector<8x32xf32> to vector<8x32xbf16>
    %54 = arith.truncf %52 : vector<32x32xf32> to vector<32x32xbf16>
    %cst_24 = arith.constant dense<0.000000e+00> : vector<8x32xf32>
    %55 = tpu.matmul %53, %54, %cst_24 {dimension_numbers = #tpu.dot_dimension_numbers<[1], [1], [0], [0], [0, 0, 1, 0], [], []>} : vector<8x32xbf16>, vector<32x32xbf16>, vector<8x32xf32> -> vector<8x32xf32>
    %cst_25 = arith.constant dense<0xFF800000> : vector<8xf32>
    %56 = vector.multi_reduction <maximumf>, %55, %cst_25 [1] : vector<8x32xf32> to vector<8xf32>
    %57 = vector.shape_cast %56 : vector<8xf32> to vector<8x1xf32>
    %58 = vector.broadcast %57 : vector<8x1xf32> to vector<8x32xf32>
    %59 = arith.subf %55, %58 : vector<8x32xf32>
    %60 = math.exp %59 : vector<8x32xf32>
    %61 = arith.truncf %60 : vector<8x32xf32> to vector<8x32xbf16>
    %cst_26 = arith.constant dense<0.000000e+00> : vector<8x32xf32>
    %62 = tpu.matmul %61, %2, %cst_26 {dimension_numbers = #tpu.dot_dimension_numbers<[1], [0], [0], [1], [0, 0, 1, 1], [], []>} : vector<8x32xbf16>, vector<32x32xbf16>, vector<8x32xf32> -> vector<8x32xf32>
    %63 = tpu.reciprocal %62 {approx = true} : vector<8x32xf32> -> vector<8x32xf32>
    %64 = arith.mulf %60, %63 : vector<8x32xf32>
    %65 = vector.extract_strided_slice %51 {offsets = [0, 32], sizes = [32, 32], strides = [1, 1]} : vector<32x64xf32> to vector<32x32xf32>
    %66 = arith.truncf %64 : vector<8x32xf32> to vector<8x32xbf16>
    %67 = arith.truncf %65 : vector<32x32xf32> to vector<32x32xbf16>
    %cst_27 = arith.constant dense<0.000000e+00> : vector<8x32xf32>
    %68 = tpu.matmul %66, %67, %cst_27 {dimension_numbers = #tpu.dot_dimension_numbers<[1], [0], [0], [1], [0, 0, 1, 1], [], []>} : vector<8x32xbf16>, vector<32x32xbf16>, vector<8x32xf32> -> vector<8x32xf32>
    %69 = vector.extract_strided_slice %25 {offsets = [16, 0], sizes = [8, 32], strides = [1, 1]} : vector<40x32xf32> to vector<8x32xf32>
    %70 = vector.extract_strided_slice %26 {offsets = [16, 0], sizes = [8, 64], strides = [1, 1]} : vector<40x64xf32> to vector<8x64xf32>
    %71 = tpu.concatenate %70, %70, %70, %70 in 0 : vector<8x64xf32>, vector<8x64xf32>, vector<8x64xf32>, vector<8x64xf32> -> vector<32x64xf32>
    %72 = arith.mulf %71, %0 : vector<32x64xf32>
    %73 = vector.extract_strided_slice %72 {offsets = [0, 0], sizes = [32, 32], strides = [1, 1]} : vector<32x64xf32> to vector<32x32xf32>
    %74 = arith.truncf %69 : vector<8x32xf32> to vector<8x32xbf16>
    %75 = arith.truncf %73 : vector<32x32xf32> to vector<32x32xbf16>
    %cst_28 = arith.constant dense<0.000000e+00> : vector<8x32xf32>
    %76 = tpu.matmul %74, %75, %cst_28 {dimension_numbers = #tpu.dot_dimension_numbers<[1], [1], [0], [0], [0, 0, 1, 0], [], []>} : vector<8x32xbf16>, vector<32x32xbf16>, vector<8x32xf32> -> vector<8x32xf32>
    %cst_29 = arith.constant dense<0xFF800000> : vector<8xf32>
    %77 = vector.multi_reduction <maximumf>, %76, %cst_29 [1] : vector<8x32xf32> to vector<8xf32>
    %78 = vector.shape_cast %77 : vector<8xf32> to vector<8x1xf32>
    %79 = vector.broadcast %78 : vector<8x1xf32> to vector<8x32xf32>
    %80 = arith.subf %76, %79 : vector<8x32xf32>
    %81 = math.exp %80 : vector<8x32xf32>
    %82 = arith.truncf %81 : vector<8x32xf32> to vector<8x32xbf16>
    %cst_30 = arith.constant dense<0.000000e+00> : vector<8x32xf32>
    %83 = tpu.matmul %82, %2, %cst_30 {dimension_numbers = #tpu.dot_dimension_numbers<[1], [0], [0], [1], [0, 0, 1, 1], [], []>} : vector<8x32xbf16>, vector<32x32xbf16>, vector<8x32xf32> -> vector<8x32xf32>
    %84 = tpu.reciprocal %83 {approx = true} : vector<8x32xf32> -> vector<8x32xf32>
    %85 = arith.mulf %81, %84 : vector<8x32xf32>
    %86 = vector.extract_strided_slice %72 {offsets = [0, 32], sizes = [32, 32], strides = [1, 1]} : vector<32x64xf32> to vector<32x32xf32>
    %87 = arith.truncf %85 : vector<8x32xf32> to vector<8x32xbf16>
    %88 = arith.truncf %86 : vector<32x32xf32> to vector<32x32xbf16>
    %cst_31 = arith.constant dense<0.000000e+00> : vector<8x32xf32>
    %89 = tpu.matmul %87, %88, %cst_31 {dimension_numbers = #tpu.dot_dimension_numbers<[1], [0], [0], [1], [0, 0, 1, 1], [], []>} : vector<8x32xbf16>, vector<32x32xbf16>, vector<8x32xf32> -> vector<8x32xf32>
    %90 = vector.extract_strided_slice %25 {offsets = [24, 0], sizes = [8, 32], strides = [1, 1]} : vector<40x32xf32> to vector<8x32xf32>
    %91 = vector.extract_strided_slice %26 {offsets = [24, 0], sizes = [8, 64], strides = [1, 1]} : vector<40x64xf32> to vector<8x64xf32>
    %92 = tpu.concatenate %91, %91, %91, %91 in 0 : vector<8x64xf32>, vector<8x64xf32>, vector<8x64xf32>, vector<8x64xf32> -> vector<32x64xf32>
    %93 = arith.mulf %92, %0 : vector<32x64xf32>
    %94 = vector.extract_strided_slice %93 {offsets = [0, 0], sizes = [32, 32], strides = [1, 1]} : vector<32x64xf32> to vector<32x32xf32>
    %95 = arith.truncf %90 : vector<8x32xf32> to vector<8x32xbf16>
    %96 = arith.truncf %94 : vector<32x32xf32> to vector<32x32xbf16>
    %cst_32 = arith.constant dense<0.000000e+00> : vector<8x32xf32>
    %97 = tpu.matmul %95, %96, %cst_32 {dimension_numbers = #tpu.dot_dimension_numbers<[1], [1], [0], [0], [0, 0, 1, 0], [], []>} : vector<8x32xbf16>, vector<32x32xbf16>, vector<8x32xf32> -> vector<8x32xf32>
    %cst_33 = arith.constant dense<0xFF800000> : vector<8xf32>
    %98 = vector.multi_reduction <maximumf>, %97, %cst_33 [1] : vector<8x32xf32> to vector<8xf32>
    %99 = vector.shape_cast %98 : vector<8xf32> to vector<8x1xf32>
    %100 = vector.broadcast %99 : vector<8x1xf32> to vector<8x32xf32>
    %101 = arith.subf %97, %100 : vector<8x32xf32>
    %102 = math.exp %101 : vector<8x32xf32>
    %103 = arith.truncf %102 : vector<8x32xf32> to vector<8x32xbf16>
    %cst_34 = arith.constant dense<0.000000e+00> : vector<8x32xf32>
    %104 = tpu.matmul %103, %2, %cst_34 {dimension_numbers = #tpu.dot_dimension_numbers<[1], [0], [0], [1], [0, 0, 1, 1], [], []>} : vector<8x32xbf16>, vector<32x32xbf16>, vector<8x32xf32> -> vector<8x32xf32>
    %105 = tpu.reciprocal %104 {approx = true} : vector<8x32xf32> -> vector<8x32xf32>
    %106 = arith.mulf %102, %105 : vector<8x32xf32>
    %107 = vector.extract_strided_slice %93 {offsets = [0, 32], sizes = [32, 32], strides = [1, 1]} : vector<32x64xf32> to vector<32x32xf32>
    %108 = arith.truncf %106 : vector<8x32xf32> to vector<8x32xbf16>
    %109 = arith.truncf %107 : vector<32x32xf32> to vector<32x32xbf16>
    %cst_35 = arith.constant dense<0.000000e+00> : vector<8x32xf32>
    %110 = tpu.matmul %108, %109, %cst_35 {dimension_numbers = #tpu.dot_dimension_numbers<[1], [0], [0], [1], [0, 0, 1, 1], [], []>} : vector<8x32xbf16>, vector<32x32xbf16>, vector<8x32xf32> -> vector<8x32xf32>
    %111 = vector.extract_strided_slice %25 {offsets = [32, 0], sizes = [8, 32], strides = [1, 1]} : vector<40x32xf32> to vector<8x32xf32>
    %112 = vector.extract_strided_slice %26 {offsets = [32, 0], sizes = [8, 64], strides = [1, 1]} : vector<40x64xf32> to vector<8x64xf32>
    %113 = tpu.concatenate %112, %112, %112, %112 in 0 : vector<8x64xf32>, vector<8x64xf32>, vector<8x64xf32>, vector<8x64xf32> -> vector<32x64xf32>
    %114 = arith.mulf %113, %0 : vector<32x64xf32>
    %115 = vector.extract_strided_slice %114 {offsets = [0, 0], sizes = [32, 32], strides = [1, 1]} : vector<32x64xf32> to vector<32x32xf32>
    %116 = arith.truncf %111 : vector<8x32xf32> to vector<8x32xbf16>
    %117 = arith.truncf %115 : vector<32x32xf32> to vector<32x32xbf16>
    %cst_36 = arith.constant dense<0.000000e+00> : vector<8x32xf32>
    %118 = tpu.matmul %116, %117, %cst_36 {dimension_numbers = #tpu.dot_dimension_numbers<[1], [1], [0], [0], [0, 0, 1, 0], [], []>} : vector<8x32xbf16>, vector<32x32xbf16>, vector<8x32xf32> -> vector<8x32xf32>
    %cst_37 = arith.constant dense<0xFF800000> : vector<8xf32>
    %119 = vector.multi_reduction <maximumf>, %118, %cst_37 [1] : vector<8x32xf32> to vector<8xf32>
    %120 = vector.shape_cast %119 : vector<8xf32> to vector<8x1xf32>
    %121 = vector.broadcast %120 : vector<8x1xf32> to vector<8x32xf32>
    %122 = arith.subf %118, %121 : vector<8x32xf32>
    %123 = math.exp %122 : vector<8x32xf32>
    %124 = arith.truncf %123 : vector<8x32xf32> to vector<8x32xbf16>
    %cst_38 = arith.constant dense<0.000000e+00> : vector<8x32xf32>
    %125 = tpu.matmul %124, %2, %cst_38 {dimension_numbers = #tpu.dot_dimension_numbers<[1], [0], [0], [1], [0, 0, 1, 1], [], []>} : vector<8x32xbf16>, vector<32x32xbf16>, vector<8x32xf32> -> vector<8x32xf32>
    %126 = tpu.reciprocal %125 {approx = true} : vector<8x32xf32> -> vector<8x32xf32>
    %127 = arith.mulf %123, %126 : vector<8x32xf32>
    %128 = vector.extract_strided_slice %114 {offsets = [0, 32], sizes = [32, 32], strides = [1, 1]} : vector<32x64xf32> to vector<32x32xf32>
    %129 = arith.truncf %127 : vector<8x32xf32> to vector<8x32xbf16>
    %130 = arith.truncf %128 : vector<32x32xf32> to vector<32x32xbf16>
    %cst_39 = arith.constant dense<0.000000e+00> : vector<8x32xf32>
    %131 = tpu.matmul %129, %130, %cst_39 {dimension_numbers = #tpu.dot_dimension_numbers<[1], [0], [0], [1], [0, 0, 1, 1], [], []>} : vector<8x32xbf16>, vector<32x32xbf16>, vector<8x32xf32> -> vector<8x32xf32>
    %132 = tpu.concatenate %47, %68, %89, %110, %131 in 0 : vector<8x32xf32>, vector<8x32xf32>, vector<8x32xf32>, vector<8x32xf32>, vector<8x32xf32> -> vector<40x32xf32>
    %c0_40 = arith.constant 0 : index
    %c0_41 = arith.constant 0 : index
    %c0_42 = arith.constant 0 : index
    %133 = vector.load %arg5[%c0_40, %c0_41, %c0_42] : memref<2x32x32xbf16, #tpu.memory_space<vmem>>, vector<1x32x32xbf16>
    %134 = vector.shape_cast %133 : vector<1x32x32xbf16> to vector<32x32xbf16>
    %135 = arith.truncf %132 : vector<40x32xf32> to vector<40x32xbf16>
    %cst_43 = arith.constant dense<0.000000e+00> : vector<40x32xf32>
    %136 = tpu.matmul %135, %134, %cst_43 {dimension_numbers = #tpu.dot_dimension_numbers<[1], [0], [0], [1], [0, 0, 1, 1], [], []>} : vector<40x32xbf16>, vector<32x32xbf16>, vector<40x32xf32> -> vector<40x32xf32>
    %c0_44 = arith.constant 0 : index
    %c0_45 = arith.constant 0 : index
    %c0_46 = arith.constant 0 : index
    %137 = vector.load %arg6[%c0_44, %c0_45, %c0_46] : memref<2x1x32xf32, #tpu.memory_space<vmem>>, vector<1x1x32xf32>
    %138 = vector.shape_cast %137 : vector<1x1x32xf32> to vector<1x32xf32>
    %139 = vector.broadcast %138 : vector<1x32xf32> to vector<40x32xf32>
    %140 = arith.addf %136, %139 : vector<40x32xf32>
    %c0_47 = arith.constant 0 : index
    %c0_48 = arith.constant 0 : index
    %c0_49 = arith.constant 0 : index
    %141 = vector.load %arg7[%c0_47, %c0_48, %c0_49] : memref<2x4x32xf32, #tpu.memory_space<vmem>>, vector<1x4x32xf32>
    %142 = vector.shape_cast %141 : vector<1x4x32xf32> to vector<4x32xf32>
    %143 = arith.addf %11, %140 : vector<40x32xf32>
    %144 = vector.extract_strided_slice %142 {offsets = [0, 0], sizes = [1, 32], strides = [1, 1]} : vector<4x32xf32> to vector<1x32xf32>
    %145 = vector.extract_strided_slice %142 {offsets = [1, 0], sizes = [1, 32], strides = [1, 1]} : vector<4x32xf32> to vector<1x32xf32>
    %cst_50 = arith.constant dense<0.000000e+00> : vector<40xf32>
    %146 = vector.multi_reduction <add>, %143, %cst_50 [1] : vector<40x32xf32> to vector<40xf32>
    %147 = vector.shape_cast %146 : vector<40xf32> to vector<40x1xf32>
    %cst_51 = arith.constant 3.200000e+01 : f32
    %148 = vector.broadcast %cst_51 : f32 to vector<40x1xf32>
    %149 = arith.divf %147, %148 : vector<40x1xf32>
    %150 = vector.broadcast %149 : vector<40x1xf32> to vector<40x32xf32>
    %151 = arith.subf %143, %150 : vector<40x32xf32>
    %152 = arith.mulf %151, %151 : vector<40x32xf32>
    %cst_52 = arith.constant dense<0.000000e+00> : vector<40xf32>
    %153 = vector.multi_reduction <add>, %152, %cst_52 [1] : vector<40x32xf32> to vector<40xf32>
    %154 = vector.shape_cast %153 : vector<40xf32> to vector<40x1xf32>
    %cst_53 = arith.constant 3.200000e+01 : f32
    %155 = vector.broadcast %cst_53 : f32 to vector<40x1xf32>
    %156 = arith.divf %154, %155 : vector<40x1xf32>
    %157 = vector.broadcast %149 : vector<40x1xf32> to vector<40x32xf32>
    %158 = arith.subf %143, %157 : vector<40x32xf32>
    %cst_54 = arith.constant 9.99999997E-7 : f32
    %159 = vector.broadcast %cst_54 : f32 to vector<40x1xf32>
    %160 = arith.addf %156, %159 : vector<40x1xf32>
    %161 = math.rsqrt %160 : vector<40x1xf32>
    %162 = vector.broadcast %161 : vector<40x1xf32> to vector<40x32xf32>
    %163 = arith.mulf %158, %162 : vector<40x32xf32>
    %164 = vector.broadcast %144 : vector<1x32xf32> to vector<40x32xf32>
    %165 = arith.mulf %163, %164 : vector<40x32xf32>
    %166 = vector.broadcast %145 : vector<1x32xf32> to vector<40x32xf32>
    %167 = arith.addf %165, %166 : vector<40x32xf32>
    %c0_55 = arith.constant 0 : index
    %c0_56 = arith.constant 0 : index
    %c0_57 = arith.constant 0 : index
    %168 = vector.load %arg8[%c0_55, %c0_56, %c0_57] : memref<2x32x64xbf16, #tpu.memory_space<vmem>>, vector<1x32x64xbf16>
    %169 = vector.shape_cast %168 : vector<1x32x64xbf16> to vector<32x64xbf16>
    %170 = arith.truncf %167 : vector<40x32xf32> to vector<40x32xbf16>
    %cst_58 = arith.constant dense<0.000000e+00> : vector<40x64xf32>
    %171 = tpu.matmul %170, %169, %cst_58 {dimension_numbers = #tpu.dot_dimension_numbers<[1], [0], [0], [1], [0, 0, 1, 1], [], []>} : vector<40x32xbf16>, vector<32x64xbf16>, vector<40x64xf32> -> vector<40x64xf32>
    %c0_59 = arith.constant 0 : index
    %c0_60 = arith.constant 0 : index
    %c0_61 = arith.constant 0 : index
    %172 = vector.load %arg9[%c0_59, %c0_60, %c0_61] : memref<2x1x64xf32, #tpu.memory_space<vmem>>, vector<1x1x64xf32>
    %173 = vector.shape_cast %172 : vector<1x1x64xf32> to vector<1x64xf32>
    %174 = vector.broadcast %173 : vector<1x64xf32> to vector<40x64xf32>
    %175 = arith.addf %171, %174 : vector<40x64xf32>
    %cst_62 = arith.constant 0.000000e+00 : f32
    %176 = vector.broadcast %cst_62 : f32 to vector<40x64xf32>
    %177 = arith.maximumf %175, %176 : vector<40x64xf32>
    %c0_63 = arith.constant 0 : index
    %c0_64 = arith.constant 0 : index
    %c0_65 = arith.constant 0 : index
    %178 = vector.load %arg10[%c0_63, %c0_64, %c0_65] : memref<2x64x32xbf16, #tpu.memory_space<vmem>>, vector<1x64x32xbf16>
    %179 = vector.shape_cast %178 : vector<1x64x32xbf16> to vector<64x32xbf16>
    %180 = arith.truncf %177 : vector<40x64xf32> to vector<40x64xbf16>
    %cst_66 = arith.constant dense<0.000000e+00> : vector<40x32xf32>
    %181 = tpu.matmul %180, %179, %cst_66 {dimension_numbers = #tpu.dot_dimension_numbers<[1], [0], [0], [1], [0, 0, 1, 1], [], []>} : vector<40x64xbf16>, vector<64x32xbf16>, vector<40x32xf32> -> vector<40x32xf32>
    %c0_67 = arith.constant 0 : index
    %c0_68 = arith.constant 0 : index
    %c0_69 = arith.constant 0 : index
    %182 = vector.load %arg11[%c0_67, %c0_68, %c0_69] : memref<2x1x32xf32, #tpu.memory_space<vmem>>, vector<1x1x32xf32>
    %183 = vector.shape_cast %182 : vector<1x1x32xf32> to vector<1x32xf32>
    %184 = vector.broadcast %183 : vector<1x32xf32> to vector<40x32xf32>
    %185 = arith.addf %181, %184 : vector<40x32xf32>
    %186 = arith.addf %167, %185 : vector<40x32xf32>
    %187 = vector.extract_strided_slice %142 {offsets = [2, 0], sizes = [1, 32], strides = [1, 1]} : vector<4x32xf32> to vector<1x32xf32>
    %188 = vector.extract_strided_slice %142 {offsets = [3, 0], sizes = [1, 32], strides = [1, 1]} : vector<4x32xf32> to vector<1x32xf32>
    %cst_70 = arith.constant dense<0.000000e+00> : vector<40xf32>
    %189 = vector.multi_reduction <add>, %186, %cst_70 [1] : vector<40x32xf32> to vector<40xf32>
    %190 = vector.shape_cast %189 : vector<40xf32> to vector<40x1xf32>
    %cst_71 = arith.constant 3.200000e+01 : f32
    %191 = vector.broadcast %cst_71 : f32 to vector<40x1xf32>
    %192 = arith.divf %190, %191 : vector<40x1xf32>
    %193 = vector.broadcast %192 : vector<40x1xf32> to vector<40x32xf32>
    %194 = arith.subf %186, %193 : vector<40x32xf32>
    %195 = arith.mulf %194, %194 : vector<40x32xf32>
    %cst_72 = arith.constant dense<0.000000e+00> : vector<40xf32>
    %196 = vector.multi_reduction <add>, %195, %cst_72 [1] : vector<40x32xf32> to vector<40xf32>
    %197 = vector.shape_cast %196 : vector<40xf32> to vector<40x1xf32>
    %cst_73 = arith.constant 3.200000e+01 : f32
    %198 = vector.broadcast %cst_73 : f32 to vector<40x1xf32>
    %199 = arith.divf %197, %198 : vector<40x1xf32>
    %200 = vector.broadcast %192 : vector<40x1xf32> to vector<40x32xf32>
    %201 = arith.subf %186, %200 : vector<40x32xf32>
    %cst_74 = arith.constant 9.99999997E-7 : f32
    %202 = vector.broadcast %cst_74 : f32 to vector<40x1xf32>
    %203 = arith.addf %199, %202 : vector<40x1xf32>
    %204 = math.rsqrt %203 : vector<40x1xf32>
    %205 = vector.broadcast %204 : vector<40x1xf32> to vector<40x32xf32>
    %206 = arith.mulf %201, %205 : vector<40x32xf32>
    %207 = vector.broadcast %187 : vector<1x32xf32> to vector<40x32xf32>
    %208 = arith.mulf %206, %207 : vector<40x32xf32>
    %209 = vector.broadcast %188 : vector<1x32xf32> to vector<40x32xf32>
    %210 = arith.addf %208, %209 : vector<40x32xf32>
    %c1 = arith.constant 1 : index
    %c0_75 = arith.constant 0 : index
    %c0_76 = arith.constant 0 : index
    %211 = vector.load %arg3[%c1, %c0_75, %c0_76] : memref<2x32x96xbf16, #tpu.memory_space<vmem>>, vector<1x32x96xbf16>
    %212 = vector.shape_cast %211 : vector<1x32x96xbf16> to vector<32x96xbf16>
    %213 = arith.truncf %210 : vector<40x32xf32> to vector<40x32xbf16>
    %cst_77 = arith.constant dense<0.000000e+00> : vector<40x96xf32>
    %214 = tpu.matmul %213, %212, %cst_77 {dimension_numbers = #tpu.dot_dimension_numbers<[1], [0], [0], [1], [0, 0, 1, 1], [], []>} : vector<40x32xbf16>, vector<32x96xbf16>, vector<40x96xf32> -> vector<40x96xf32>
    %c1_78 = arith.constant 1 : index
    %c0_79 = arith.constant 0 : index
    %c0_80 = arith.constant 0 : index
    %215 = vector.load %arg4[%c1_78, %c0_79, %c0_80] : memref<2x1x96xf32, #tpu.memory_space<vmem>>, vector<1x1x96xf32>
    %216 = vector.shape_cast %215 : vector<1x1x96xf32> to vector<1x96xf32>
    %217 = vector.broadcast %216 : vector<1x96xf32> to vector<40x96xf32>
    %218 = arith.addf %214, %217 : vector<40x96xf32>
    %219 = vector.extract_strided_slice %218 {offsets = [0, 0], sizes = [40, 32], strides = [1, 1]} : vector<40x96xf32> to vector<40x32xf32>
    %cst_81 = arith.constant 0.353553385 : f32
    %220 = vector.broadcast %cst_81 : f32 to vector<40x32xf32>
    %221 = arith.mulf %219, %220 : vector<40x32xf32>
    %222 = vector.extract_strided_slice %218 {offsets = [0, 32], sizes = [40, 64], strides = [1, 1]} : vector<40x96xf32> to vector<40x64xf32>
    %223 = vector.extract_strided_slice %221 {offsets = [0, 0], sizes = [8, 32], strides = [1, 1]} : vector<40x32xf32> to vector<8x32xf32>
    %224 = vector.extract_strided_slice %222 {offsets = [0, 0], sizes = [8, 64], strides = [1, 1]} : vector<40x64xf32> to vector<8x64xf32>
    %225 = tpu.concatenate %224, %224, %224, %224 in 0 : vector<8x64xf32>, vector<8x64xf32>, vector<8x64xf32>, vector<8x64xf32> -> vector<32x64xf32>
    %226 = arith.mulf %225, %0 : vector<32x64xf32>
    %227 = vector.extract_strided_slice %226 {offsets = [0, 0], sizes = [32, 32], strides = [1, 1]} : vector<32x64xf32> to vector<32x32xf32>
    %228 = arith.truncf %223 : vector<8x32xf32> to vector<8x32xbf16>
    %229 = arith.truncf %227 : vector<32x32xf32> to vector<32x32xbf16>
    %cst_82 = arith.constant dense<0.000000e+00> : vector<8x32xf32>
    %230 = tpu.matmul %228, %229, %cst_82 {dimension_numbers = #tpu.dot_dimension_numbers<[1], [1], [0], [0], [0, 0, 1, 0], [], []>} : vector<8x32xbf16>, vector<32x32xbf16>, vector<8x32xf32> -> vector<8x32xf32>
    %cst_83 = arith.constant dense<0xFF800000> : vector<8xf32>
    %231 = vector.multi_reduction <maximumf>, %230, %cst_83 [1] : vector<8x32xf32> to vector<8xf32>
    %232 = vector.shape_cast %231 : vector<8xf32> to vector<8x1xf32>
    %233 = vector.broadcast %232 : vector<8x1xf32> to vector<8x32xf32>
    %234 = arith.subf %230, %233 : vector<8x32xf32>
    %235 = math.exp %234 : vector<8x32xf32>
    %236 = arith.truncf %235 : vector<8x32xf32> to vector<8x32xbf16>
    %cst_84 = arith.constant dense<0.000000e+00> : vector<8x32xf32>
    %237 = tpu.matmul %236, %2, %cst_84 {dimension_numbers = #tpu.dot_dimension_numbers<[1], [0], [0], [1], [0, 0, 1, 1], [], []>} : vector<8x32xbf16>, vector<32x32xbf16>, vector<8x32xf32> -> vector<8x32xf32>
    %238 = tpu.reciprocal %237 {approx = true} : vector<8x32xf32> -> vector<8x32xf32>
    %239 = arith.mulf %235, %238 : vector<8x32xf32>
    %240 = vector.extract_strided_slice %226 {offsets = [0, 32], sizes = [32, 32], strides = [1, 1]} : vector<32x64xf32> to vector<32x32xf32>
    %241 = arith.truncf %239 : vector<8x32xf32> to vector<8x32xbf16>
    %242 = arith.truncf %240 : vector<32x32xf32> to vector<32x32xbf16>
    %cst_85 = arith.constant dense<0.000000e+00> : vector<8x32xf32>
    %243 = tpu.matmul %241, %242, %cst_85 {dimension_numbers = #tpu.dot_dimension_numbers<[1], [0], [0], [1], [0, 0, 1, 1], [], []>} : vector<8x32xbf16>, vector<32x32xbf16>, vector<8x32xf32> -> vector<8x32xf32>
    %244 = vector.extract_strided_slice %221 {offsets = [8, 0], sizes = [8, 32], strides = [1, 1]} : vector<40x32xf32> to vector<8x32xf32>
    %245 = vector.extract_strided_slice %222 {offsets = [8, 0], sizes = [8, 64], strides = [1, 1]} : vector<40x64xf32> to vector<8x64xf32>
    %246 = tpu.concatenate %245, %245, %245, %245 in 0 : vector<8x64xf32>, vector<8x64xf32>, vector<8x64xf32>, vector<8x64xf32> -> vector<32x64xf32>
    %247 = arith.mulf %246, %0 : vector<32x64xf32>
    %248 = vector.extract_strided_slice %247 {offsets = [0, 0], sizes = [32, 32], strides = [1, 1]} : vector<32x64xf32> to vector<32x32xf32>
    %249 = arith.truncf %244 : vector<8x32xf32> to vector<8x32xbf16>
    %250 = arith.truncf %248 : vector<32x32xf32> to vector<32x32xbf16>
    %cst_86 = arith.constant dense<0.000000e+00> : vector<8x32xf32>
    %251 = tpu.matmul %249, %250, %cst_86 {dimension_numbers = #tpu.dot_dimension_numbers<[1], [1], [0], [0], [0, 0, 1, 0], [], []>} : vector<8x32xbf16>, vector<32x32xbf16>, vector<8x32xf32> -> vector<8x32xf32>
    %cst_87 = arith.constant dense<0xFF800000> : vector<8xf32>
    %252 = vector.multi_reduction <maximumf>, %251, %cst_87 [1] : vector<8x32xf32> to vector<8xf32>
    %253 = vector.shape_cast %252 : vector<8xf32> to vector<8x1xf32>
    %254 = vector.broadcast %253 : vector<8x1xf32> to vector<8x32xf32>
    %255 = arith.subf %251, %254 : vector<8x32xf32>
    %256 = math.exp %255 : vector<8x32xf32>
    %257 = arith.truncf %256 : vector<8x32xf32> to vector<8x32xbf16>
    %cst_88 = arith.constant dense<0.000000e+00> : vector<8x32xf32>
    %258 = tpu.matmul %257, %2, %cst_88 {dimension_numbers = #tpu.dot_dimension_numbers<[1], [0], [0], [1], [0, 0, 1, 1], [], []>} : vector<8x32xbf16>, vector<32x32xbf16>, vector<8x32xf32> -> vector<8x32xf32>
    %259 = tpu.reciprocal %258 {approx = true} : vector<8x32xf32> -> vector<8x32xf32>
    %260 = arith.mulf %256, %259 : vector<8x32xf32>
    %261 = vector.extract_strided_slice %247 {offsets = [0, 32], sizes = [32, 32], strides = [1, 1]} : vector<32x64xf32> to vector<32x32xf32>
    %262 = arith.truncf %260 : vector<8x32xf32> to vector<8x32xbf16>
    %263 = arith.truncf %261 : vector<32x32xf32> to vector<32x32xbf16>
    %cst_89 = arith.constant dense<0.000000e+00> : vector<8x32xf32>
    %264 = tpu.matmul %262, %263, %cst_89 {dimension_numbers = #tpu.dot_dimension_numbers<[1], [0], [0], [1], [0, 0, 1, 1], [], []>} : vector<8x32xbf16>, vector<32x32xbf16>, vector<8x32xf32> -> vector<8x32xf32>
    %265 = vector.extract_strided_slice %221 {offsets = [16, 0], sizes = [8, 32], strides = [1, 1]} : vector<40x32xf32> to vector<8x32xf32>
    %266 = vector.extract_strided_slice %222 {offsets = [16, 0], sizes = [8, 64], strides = [1, 1]} : vector<40x64xf32> to vector<8x64xf32>
    %267 = tpu.concatenate %266, %266, %266, %266 in 0 : vector<8x64xf32>, vector<8x64xf32>, vector<8x64xf32>, vector<8x64xf32> -> vector<32x64xf32>
    %268 = arith.mulf %267, %0 : vector<32x64xf32>
    %269 = vector.extract_strided_slice %268 {offsets = [0, 0], sizes = [32, 32], strides = [1, 1]} : vector<32x64xf32> to vector<32x32xf32>
    %270 = arith.truncf %265 : vector<8x32xf32> to vector<8x32xbf16>
    %271 = arith.truncf %269 : vector<32x32xf32> to vector<32x32xbf16>
    %cst_90 = arith.constant dense<0.000000e+00> : vector<8x32xf32>
    %272 = tpu.matmul %270, %271, %cst_90 {dimension_numbers = #tpu.dot_dimension_numbers<[1], [1], [0], [0], [0, 0, 1, 0], [], []>} : vector<8x32xbf16>, vector<32x32xbf16>, vector<8x32xf32> -> vector<8x32xf32>
    %cst_91 = arith.constant dense<0xFF800000> : vector<8xf32>
    %273 = vector.multi_reduction <maximumf>, %272, %cst_91 [1] : vector<8x32xf32> to vector<8xf32>
    %274 = vector.shape_cast %273 : vector<8xf32> to vector<8x1xf32>
    %275 = vector.broadcast %274 : vector<8x1xf32> to vector<8x32xf32>
    %276 = arith.subf %272, %275 : vector<8x32xf32>
    %277 = math.exp %276 : vector<8x32xf32>
    %278 = arith.truncf %277 : vector<8x32xf32> to vector<8x32xbf16>
    %cst_92 = arith.constant dense<0.000000e+00> : vector<8x32xf32>
    %279 = tpu.matmul %278, %2, %cst_92 {dimension_numbers = #tpu.dot_dimension_numbers<[1], [0], [0], [1], [0, 0, 1, 1], [], []>} : vector<8x32xbf16>, vector<32x32xbf16>, vector<8x32xf32> -> vector<8x32xf32>
    %280 = tpu.reciprocal %279 {approx = true} : vector<8x32xf32> -> vector<8x32xf32>
    %281 = arith.mulf %277, %280 : vector<8x32xf32>
    %282 = vector.extract_strided_slice %268 {offsets = [0, 32], sizes = [32, 32], strides = [1, 1]} : vector<32x64xf32> to vector<32x32xf32>
    %283 = arith.truncf %281 : vector<8x32xf32> to vector<8x32xbf16>
    %284 = arith.truncf %282 : vector<32x32xf32> to vector<32x32xbf16>
    %cst_93 = arith.constant dense<0.000000e+00> : vector<8x32xf32>
    %285 = tpu.matmul %283, %284, %cst_93 {dimension_numbers = #tpu.dot_dimension_numbers<[1], [0], [0], [1], [0, 0, 1, 1], [], []>} : vector<8x32xbf16>, vector<32x32xbf16>, vector<8x32xf32> -> vector<8x32xf32>
    %286 = vector.extract_strided_slice %221 {offsets = [24, 0], sizes = [8, 32], strides = [1, 1]} : vector<40x32xf32> to vector<8x32xf32>
    %287 = vector.extract_strided_slice %222 {offsets = [24, 0], sizes = [8, 64], strides = [1, 1]} : vector<40x64xf32> to vector<8x64xf32>
    %288 = tpu.concatenate %287, %287, %287, %287 in 0 : vector<8x64xf32>, vector<8x64xf32>, vector<8x64xf32>, vector<8x64xf32> -> vector<32x64xf32>
    %289 = arith.mulf %288, %0 : vector<32x64xf32>
    %290 = vector.extract_strided_slice %289 {offsets = [0, 0], sizes = [32, 32], strides = [1, 1]} : vector<32x64xf32> to vector<32x32xf32>
    %291 = arith.truncf %286 : vector<8x32xf32> to vector<8x32xbf16>
    %292 = arith.truncf %290 : vector<32x32xf32> to vector<32x32xbf16>
    %cst_94 = arith.constant dense<0.000000e+00> : vector<8x32xf32>
    %293 = tpu.matmul %291, %292, %cst_94 {dimension_numbers = #tpu.dot_dimension_numbers<[1], [1], [0], [0], [0, 0, 1, 0], [], []>} : vector<8x32xbf16>, vector<32x32xbf16>, vector<8x32xf32> -> vector<8x32xf32>
    %cst_95 = arith.constant dense<0xFF800000> : vector<8xf32>
    %294 = vector.multi_reduction <maximumf>, %293, %cst_95 [1] : vector<8x32xf32> to vector<8xf32>
    %295 = vector.shape_cast %294 : vector<8xf32> to vector<8x1xf32>
    %296 = vector.broadcast %295 : vector<8x1xf32> to vector<8x32xf32>
    %297 = arith.subf %293, %296 : vector<8x32xf32>
    %298 = math.exp %297 : vector<8x32xf32>
    %299 = arith.truncf %298 : vector<8x32xf32> to vector<8x32xbf16>
    %cst_96 = arith.constant dense<0.000000e+00> : vector<8x32xf32>
    %300 = tpu.matmul %299, %2, %cst_96 {dimension_numbers = #tpu.dot_dimension_numbers<[1], [0], [0], [1], [0, 0, 1, 1], [], []>} : vector<8x32xbf16>, vector<32x32xbf16>, vector<8x32xf32> -> vector<8x32xf32>
    %301 = tpu.reciprocal %300 {approx = true} : vector<8x32xf32> -> vector<8x32xf32>
    %302 = arith.mulf %298, %301 : vector<8x32xf32>
    %303 = vector.extract_strided_slice %289 {offsets = [0, 32], sizes = [32, 32], strides = [1, 1]} : vector<32x64xf32> to vector<32x32xf32>
    %304 = arith.truncf %302 : vector<8x32xf32> to vector<8x32xbf16>
    %305 = arith.truncf %303 : vector<32x32xf32> to vector<32x32xbf16>
    %cst_97 = arith.constant dense<0.000000e+00> : vector<8x32xf32>
    %306 = tpu.matmul %304, %305, %cst_97 {dimension_numbers = #tpu.dot_dimension_numbers<[1], [0], [0], [1], [0, 0, 1, 1], [], []>} : vector<8x32xbf16>, vector<32x32xbf16>, vector<8x32xf32> -> vector<8x32xf32>
    %307 = vector.extract_strided_slice %221 {offsets = [32, 0], sizes = [8, 32], strides = [1, 1]} : vector<40x32xf32> to vector<8x32xf32>
    %308 = vector.extract_strided_slice %222 {offsets = [32, 0], sizes = [8, 64], strides = [1, 1]} : vector<40x64xf32> to vector<8x64xf32>
    %309 = tpu.concatenate %308, %308, %308, %308 in 0 : vector<8x64xf32>, vector<8x64xf32>, vector<8x64xf32>, vector<8x64xf32> -> vector<32x64xf32>
    %310 = arith.mulf %309, %0 : vector<32x64xf32>
    %311 = vector.extract_strided_slice %310 {offsets = [0, 0], sizes = [32, 32], strides = [1, 1]} : vector<32x64xf32> to vector<32x32xf32>
    %312 = arith.truncf %307 : vector<8x32xf32> to vector<8x32xbf16>
    %313 = arith.truncf %311 : vector<32x32xf32> to vector<32x32xbf16>
    %cst_98 = arith.constant dense<0.000000e+00> : vector<8x32xf32>
    %314 = tpu.matmul %312, %313, %cst_98 {dimension_numbers = #tpu.dot_dimension_numbers<[1], [1], [0], [0], [0, 0, 1, 0], [], []>} : vector<8x32xbf16>, vector<32x32xbf16>, vector<8x32xf32> -> vector<8x32xf32>
    %cst_99 = arith.constant dense<0xFF800000> : vector<8xf32>
    %315 = vector.multi_reduction <maximumf>, %314, %cst_99 [1] : vector<8x32xf32> to vector<8xf32>
    %316 = vector.shape_cast %315 : vector<8xf32> to vector<8x1xf32>
    %317 = vector.broadcast %316 : vector<8x1xf32> to vector<8x32xf32>
    %318 = arith.subf %314, %317 : vector<8x32xf32>
    %319 = math.exp %318 : vector<8x32xf32>
    %320 = arith.truncf %319 : vector<8x32xf32> to vector<8x32xbf16>
    %cst_100 = arith.constant dense<0.000000e+00> : vector<8x32xf32>
    %321 = tpu.matmul %320, %2, %cst_100 {dimension_numbers = #tpu.dot_dimension_numbers<[1], [0], [0], [1], [0, 0, 1, 1], [], []>} : vector<8x32xbf16>, vector<32x32xbf16>, vector<8x32xf32> -> vector<8x32xf32>
    %322 = tpu.reciprocal %321 {approx = true} : vector<8x32xf32> -> vector<8x32xf32>
    %323 = arith.mulf %319, %322 : vector<8x32xf32>
    %324 = vector.extract_strided_slice %310 {offsets = [0, 32], sizes = [32, 32], strides = [1, 1]} : vector<32x64xf32> to vector<32x32xf32>
    %325 = arith.truncf %323 : vector<8x32xf32> to vector<8x32xbf16>
    %326 = arith.truncf %324 : vector<32x32xf32> to vector<32x32xbf16>
    %cst_101 = arith.constant dense<0.000000e+00> : vector<8x32xf32>
    %327 = tpu.matmul %325, %326, %cst_101 {dimension_numbers = #tpu.dot_dimension_numbers<[1], [0], [0], [1], [0, 0, 1, 1], [], []>} : vector<8x32xbf16>, vector<32x32xbf16>, vector<8x32xf32> -> vector<8x32xf32>
    %328 = tpu.concatenate %243, %264, %285, %306, %327 in 0 : vector<8x32xf32>, vector<8x32xf32>, vector<8x32xf32>, vector<8x32xf32>, vector<8x32xf32> -> vector<40x32xf32>
    %c1_102 = arith.constant 1 : index
    %c0_103 = arith.constant 0 : index
    %c0_104 = arith.constant 0 : index
    %329 = vector.load %arg5[%c1_102, %c0_103, %c0_104] : memref<2x32x32xbf16, #tpu.memory_space<vmem>>, vector<1x32x32xbf16>
    %330 = vector.shape_cast %329 : vector<1x32x32xbf16> to vector<32x32xbf16>
    %331 = arith.truncf %328 : vector<40x32xf32> to vector<40x32xbf16>
    %cst_105 = arith.constant dense<0.000000e+00> : vector<40x32xf32>
    %332 = tpu.matmul %331, %330, %cst_105 {dimension_numbers = #tpu.dot_dimension_numbers<[1], [0], [0], [1], [0, 0, 1, 1], [], []>} : vector<40x32xbf16>, vector<32x32xbf16>, vector<40x32xf32> -> vector<40x32xf32>
    %c1_106 = arith.constant 1 : index
    %c0_107 = arith.constant 0 : index
    %c0_108 = arith.constant 0 : index
    %333 = vector.load %arg6[%c1_106, %c0_107, %c0_108] : memref<2x1x32xf32, #tpu.memory_space<vmem>>, vector<1x1x32xf32>
    %334 = vector.shape_cast %333 : vector<1x1x32xf32> to vector<1x32xf32>
    %335 = vector.broadcast %334 : vector<1x32xf32> to vector<40x32xf32>
    %336 = arith.addf %332, %335 : vector<40x32xf32>
    %c1_109 = arith.constant 1 : index
    %c0_110 = arith.constant 0 : index
    %c0_111 = arith.constant 0 : index
    %337 = vector.load %arg7[%c1_109, %c0_110, %c0_111] : memref<2x4x32xf32, #tpu.memory_space<vmem>>, vector<1x4x32xf32>
    %338 = vector.shape_cast %337 : vector<1x4x32xf32> to vector<4x32xf32>
    %339 = arith.addf %210, %336 : vector<40x32xf32>
    %340 = vector.extract_strided_slice %338 {offsets = [0, 0], sizes = [1, 32], strides = [1, 1]} : vector<4x32xf32> to vector<1x32xf32>
    %341 = vector.extract_strided_slice %338 {offsets = [1, 0], sizes = [1, 32], strides = [1, 1]} : vector<4x32xf32> to vector<1x32xf32>
    %cst_112 = arith.constant dense<0.000000e+00> : vector<40xf32>
    %342 = vector.multi_reduction <add>, %339, %cst_112 [1] : vector<40x32xf32> to vector<40xf32>
    %343 = vector.shape_cast %342 : vector<40xf32> to vector<40x1xf32>
    %cst_113 = arith.constant 3.200000e+01 : f32
    %344 = vector.broadcast %cst_113 : f32 to vector<40x1xf32>
    %345 = arith.divf %343, %344 : vector<40x1xf32>
    %346 = vector.broadcast %345 : vector<40x1xf32> to vector<40x32xf32>
    %347 = arith.subf %339, %346 : vector<40x32xf32>
    %348 = arith.mulf %347, %347 : vector<40x32xf32>
    %cst_114 = arith.constant dense<0.000000e+00> : vector<40xf32>
    %349 = vector.multi_reduction <add>, %348, %cst_114 [1] : vector<40x32xf32> to vector<40xf32>
    %350 = vector.shape_cast %349 : vector<40xf32> to vector<40x1xf32>
    %cst_115 = arith.constant 3.200000e+01 : f32
    %351 = vector.broadcast %cst_115 : f32 to vector<40x1xf32>
    %352 = arith.divf %350, %351 : vector<40x1xf32>
    %353 = vector.broadcast %345 : vector<40x1xf32> to vector<40x32xf32>
    %354 = arith.subf %339, %353 : vector<40x32xf32>
    %cst_116 = arith.constant 9.99999997E-7 : f32
    %355 = vector.broadcast %cst_116 : f32 to vector<40x1xf32>
    %356 = arith.addf %352, %355 : vector<40x1xf32>
    %357 = math.rsqrt %356 : vector<40x1xf32>
    %358 = vector.broadcast %357 : vector<40x1xf32> to vector<40x32xf32>
    %359 = arith.mulf %354, %358 : vector<40x32xf32>
    %360 = vector.broadcast %340 : vector<1x32xf32> to vector<40x32xf32>
    %361 = arith.mulf %359, %360 : vector<40x32xf32>
    %362 = vector.broadcast %341 : vector<1x32xf32> to vector<40x32xf32>
    %363 = arith.addf %361, %362 : vector<40x32xf32>
    %c1_117 = arith.constant 1 : index
    %c0_118 = arith.constant 0 : index
    %c0_119 = arith.constant 0 : index
    %364 = vector.load %arg8[%c1_117, %c0_118, %c0_119] : memref<2x32x64xbf16, #tpu.memory_space<vmem>>, vector<1x32x64xbf16>
    %365 = vector.shape_cast %364 : vector<1x32x64xbf16> to vector<32x64xbf16>
    %366 = arith.truncf %363 : vector<40x32xf32> to vector<40x32xbf16>
    %cst_120 = arith.constant dense<0.000000e+00> : vector<40x64xf32>
    %367 = tpu.matmul %366, %365, %cst_120 {dimension_numbers = #tpu.dot_dimension_numbers<[1], [0], [0], [1], [0, 0, 1, 1], [], []>} : vector<40x32xbf16>, vector<32x64xbf16>, vector<40x64xf32> -> vector<40x64xf32>
    %c1_121 = arith.constant 1 : index
    %c0_122 = arith.constant 0 : index
    %c0_123 = arith.constant 0 : index
    %368 = vector.load %arg9[%c1_121, %c0_122, %c0_123] : memref<2x1x64xf32, #tpu.memory_space<vmem>>, vector<1x1x64xf32>
    %369 = vector.shape_cast %368 : vector<1x1x64xf32> to vector<1x64xf32>
    %370 = vector.broadcast %369 : vector<1x64xf32> to vector<40x64xf32>
    %371 = arith.addf %367, %370 : vector<40x64xf32>
    %cst_124 = arith.constant 0.000000e+00 : f32
    %372 = vector.broadcast %cst_124 : f32 to vector<40x64xf32>
    %373 = arith.maximumf %371, %372 : vector<40x64xf32>
    %c1_125 = arith.constant 1 : index
    %c0_126 = arith.constant 0 : index
    %c0_127 = arith.constant 0 : index
    %374 = vector.load %arg10[%c1_125, %c0_126, %c0_127] : memref<2x64x32xbf16, #tpu.memory_space<vmem>>, vector<1x64x32xbf16>
    %375 = vector.shape_cast %374 : vector<1x64x32xbf16> to vector<64x32xbf16>
    %376 = arith.truncf %373 : vector<40x64xf32> to vector<40x64xbf16>
    %cst_128 = arith.constant dense<0.000000e+00> : vector<40x32xf32>
    %377 = tpu.matmul %376, %375, %cst_128 {dimension_numbers = #tpu.dot_dimension_numbers<[1], [0], [0], [1], [0, 0, 1, 1], [], []>} : vector<40x64xbf16>, vector<64x32xbf16>, vector<40x32xf32> -> vector<40x32xf32>
    %c1_129 = arith.constant 1 : index
    %c0_130 = arith.constant 0 : index
    %c0_131 = arith.constant 0 : index
    %378 = vector.load %arg11[%c1_129, %c0_130, %c0_131] : memref<2x1x32xf32, #tpu.memory_space<vmem>>, vector<1x1x32xf32>
    %379 = vector.shape_cast %378 : vector<1x1x32xf32> to vector<1x32xf32>
    %380 = vector.broadcast %379 : vector<1x32xf32> to vector<40x32xf32>
    %381 = arith.addf %377, %380 : vector<40x32xf32>
    %382 = arith.addf %363, %381 : vector<40x32xf32>
    %383 = vector.extract_strided_slice %338 {offsets = [2, 0], sizes = [1, 32], strides = [1, 1]} : vector<4x32xf32> to vector<1x32xf32>
    %384 = vector.extract_strided_slice %338 {offsets = [3, 0], sizes = [1, 32], strides = [1, 1]} : vector<4x32xf32> to vector<1x32xf32>
    %cst_132 = arith.constant dense<0.000000e+00> : vector<40xf32>
    %385 = vector.multi_reduction <add>, %382, %cst_132 [1] : vector<40x32xf32> to vector<40xf32>
    %386 = vector.shape_cast %385 : vector<40xf32> to vector<40x1xf32>
    %cst_133 = arith.constant 3.200000e+01 : f32
    %387 = vector.broadcast %cst_133 : f32 to vector<40x1xf32>
    %388 = arith.divf %386, %387 : vector<40x1xf32>
    %389 = vector.broadcast %388 : vector<40x1xf32> to vector<40x32xf32>
    %390 = arith.subf %382, %389 : vector<40x32xf32>
    %391 = arith.mulf %390, %390 : vector<40x32xf32>
    %cst_134 = arith.constant dense<0.000000e+00> : vector<40xf32>
    %392 = vector.multi_reduction <add>, %391, %cst_134 [1] : vector<40x32xf32> to vector<40xf32>
    %393 = vector.shape_cast %392 : vector<40xf32> to vector<40x1xf32>
    %cst_135 = arith.constant 3.200000e+01 : f32
    %394 = vector.broadcast %cst_135 : f32 to vector<40x1xf32>
    %395 = arith.divf %393, %394 : vector<40x1xf32>
    %396 = vector.broadcast %388 : vector<40x1xf32> to vector<40x32xf32>
    %397 = arith.subf %382, %396 : vector<40x32xf32>
    %cst_136 = arith.constant 9.99999997E-7 : f32
    %398 = vector.broadcast %cst_136 : f32 to vector<40x1xf32>
    %399 = arith.addf %395, %398 : vector<40x1xf32>
    %400 = math.rsqrt %399 : vector<40x1xf32>
    %401 = vector.broadcast %400 : vector<40x1xf32> to vector<40x32xf32>
    %402 = arith.mulf %397, %401 : vector<40x32xf32>
    %403 = vector.broadcast %383 : vector<1x32xf32> to vector<40x32xf32>
    %404 = arith.mulf %402, %403 : vector<40x32xf32>
    %405 = vector.broadcast %384 : vector<1x32xf32> to vector<40x32xf32>
    %406 = arith.addf %404, %405 : vector<40x32xf32>
    %c0_137 = arith.constant 0 : index
    %c0_138 = arith.constant 0 : index
    %c0_139 = arith.constant 0 : index
    %407 = vector.load %arg22[%c0_137, %c0_138, %c0_139] : memref<2x6x32xf32, #tpu.memory_space<vmem>>, vector<1x6x32xf32>
    %408 = vector.shape_cast %407 : vector<1x6x32xf32> to vector<6x32xf32>
    %c0_140 = arith.constant 0 : index
    %c0_141 = arith.constant 0 : index
    %c0_142 = arith.constant 0 : index
    %409 = vector.load %arg12[%c0_140, %c0_141, %c0_142] : memref<2x32x96xbf16, #tpu.memory_space<vmem>>, vector<1x32x96xbf16>
    %410 = vector.shape_cast %409 : vector<1x32x96xbf16> to vector<32x96xbf16>
    %411 = arith.truncf %14 : vector<40x32xf32> to vector<40x32xbf16>
    %cst_143 = arith.constant dense<0.000000e+00> : vector<40x96xf32>
    %412 = tpu.matmul %411, %410, %cst_143 {dimension_numbers = #tpu.dot_dimension_numbers<[1], [0], [0], [1], [0, 0, 1, 1], [], []>} : vector<40x32xbf16>, vector<32x96xbf16>, vector<40x96xf32> -> vector<40x96xf32>
    %c0_144 = arith.constant 0 : index
    %c0_145 = arith.constant 0 : index
    %c0_146 = arith.constant 0 : index
    %413 = vector.load %arg13[%c0_144, %c0_145, %c0_146] : memref<2x1x96xf32, #tpu.memory_space<vmem>>, vector<1x1x96xf32>
    %414 = vector.shape_cast %413 : vector<1x1x96xf32> to vector<1x96xf32>
    %415 = vector.broadcast %414 : vector<1x96xf32> to vector<40x96xf32>
    %416 = arith.addf %412, %415 : vector<40x96xf32>
    %417 = vector.extract_strided_slice %416 {offsets = [0, 0], sizes = [40, 32], strides = [1, 1]} : vector<40x96xf32> to vector<40x32xf32>
    %cst_147 = arith.constant 0.353553385 : f32
    %418 = vector.broadcast %cst_147 : f32 to vector<40x32xf32>
    %419 = arith.mulf %417, %418 : vector<40x32xf32>
    %420 = vector.extract_strided_slice %416 {offsets = [0, 32], sizes = [40, 64], strides = [1, 1]} : vector<40x96xf32> to vector<40x64xf32>
    %421 = vector.extract_strided_slice %419 {offsets = [0, 0], sizes = [8, 32], strides = [1, 1]} : vector<40x32xf32> to vector<8x32xf32>
    %422 = vector.extract_strided_slice %420 {offsets = [0, 0], sizes = [8, 64], strides = [1, 1]} : vector<40x64xf32> to vector<8x64xf32>
    %423 = tpu.concatenate %422, %422, %422, %422 in 0 : vector<8x64xf32>, vector<8x64xf32>, vector<8x64xf32>, vector<8x64xf32> -> vector<32x64xf32>
    %424 = arith.mulf %423, %0 : vector<32x64xf32>
    %425 = vector.extract_strided_slice %424 {offsets = [0, 0], sizes = [32, 32], strides = [1, 1]} : vector<32x64xf32> to vector<32x32xf32>
    %426 = arith.truncf %421 : vector<8x32xf32> to vector<8x32xbf16>
    %427 = arith.truncf %425 : vector<32x32xf32> to vector<32x32xbf16>
    %cst_148 = arith.constant dense<0.000000e+00> : vector<8x32xf32>
    %428 = tpu.matmul %426, %427, %cst_148 {dimension_numbers = #tpu.dot_dimension_numbers<[1], [1], [0], [0], [0, 0, 1, 0], [], []>} : vector<8x32xbf16>, vector<32x32xbf16>, vector<8x32xf32> -> vector<8x32xf32>
    %429 = arith.addf %428, %1 : vector<8x32xf32>
    %cst_149 = arith.constant dense<0xFF800000> : vector<8xf32>
    %430 = vector.multi_reduction <maximumf>, %429, %cst_149 [1] : vector<8x32xf32> to vector<8xf32>
    %431 = vector.shape_cast %430 : vector<8xf32> to vector<8x1xf32>
    %432 = vector.broadcast %431 : vector<8x1xf32> to vector<8x32xf32>
    %433 = arith.subf %429, %432 : vector<8x32xf32>
    %434 = math.exp %433 : vector<8x32xf32>
    %435 = arith.truncf %434 : vector<8x32xf32> to vector<8x32xbf16>
    %cst_150 = arith.constant dense<0.000000e+00> : vector<8x32xf32>
    %436 = tpu.matmul %435, %2, %cst_150 {dimension_numbers = #tpu.dot_dimension_numbers<[1], [0], [0], [1], [0, 0, 1, 1], [], []>} : vector<8x32xbf16>, vector<32x32xbf16>, vector<8x32xf32> -> vector<8x32xf32>
    %437 = tpu.reciprocal %436 {approx = true} : vector<8x32xf32> -> vector<8x32xf32>
    %438 = arith.mulf %434, %437 : vector<8x32xf32>
    %439 = vector.extract_strided_slice %424 {offsets = [0, 32], sizes = [32, 32], strides = [1, 1]} : vector<32x64xf32> to vector<32x32xf32>
    %440 = arith.truncf %438 : vector<8x32xf32> to vector<8x32xbf16>
    %441 = arith.truncf %439 : vector<32x32xf32> to vector<32x32xbf16>
    %cst_151 = arith.constant dense<0.000000e+00> : vector<8x32xf32>
    %442 = tpu.matmul %440, %441, %cst_151 {dimension_numbers = #tpu.dot_dimension_numbers<[1], [0], [0], [1], [0, 0, 1, 1], [], []>} : vector<8x32xbf16>, vector<32x32xbf16>, vector<8x32xf32> -> vector<8x32xf32>
    %443 = vector.extract_strided_slice %419 {offsets = [8, 0], sizes = [8, 32], strides = [1, 1]} : vector<40x32xf32> to vector<8x32xf32>
    %444 = vector.extract_strided_slice %420 {offsets = [8, 0], sizes = [8, 64], strides = [1, 1]} : vector<40x64xf32> to vector<8x64xf32>
    %445 = tpu.concatenate %444, %444, %444, %444 in 0 : vector<8x64xf32>, vector<8x64xf32>, vector<8x64xf32>, vector<8x64xf32> -> vector<32x64xf32>
    %446 = arith.mulf %445, %0 : vector<32x64xf32>
    %447 = vector.extract_strided_slice %446 {offsets = [0, 0], sizes = [32, 32], strides = [1, 1]} : vector<32x64xf32> to vector<32x32xf32>
    %448 = arith.truncf %443 : vector<8x32xf32> to vector<8x32xbf16>
    %449 = arith.truncf %447 : vector<32x32xf32> to vector<32x32xbf16>
    %cst_152 = arith.constant dense<0.000000e+00> : vector<8x32xf32>
    %450 = tpu.matmul %448, %449, %cst_152 {dimension_numbers = #tpu.dot_dimension_numbers<[1], [1], [0], [0], [0, 0, 1, 0], [], []>} : vector<8x32xbf16>, vector<32x32xbf16>, vector<8x32xf32> -> vector<8x32xf32>
    %451 = arith.addf %450, %1 : vector<8x32xf32>
    %cst_153 = arith.constant dense<0xFF800000> : vector<8xf32>
    %452 = vector.multi_reduction <maximumf>, %451, %cst_153 [1] : vector<8x32xf32> to vector<8xf32>
    %453 = vector.shape_cast %452 : vector<8xf32> to vector<8x1xf32>
    %454 = vector.broadcast %453 : vector<8x1xf32> to vector<8x32xf32>
    %455 = arith.subf %451, %454 : vector<8x32xf32>
    %456 = math.exp %455 : vector<8x32xf32>
    %457 = arith.truncf %456 : vector<8x32xf32> to vector<8x32xbf16>
    %cst_154 = arith.constant dense<0.000000e+00> : vector<8x32xf32>
    %458 = tpu.matmul %457, %2, %cst_154 {dimension_numbers = #tpu.dot_dimension_numbers<[1], [0], [0], [1], [0, 0, 1, 1], [], []>} : vector<8x32xbf16>, vector<32x32xbf16>, vector<8x32xf32> -> vector<8x32xf32>
    %459 = tpu.reciprocal %458 {approx = true} : vector<8x32xf32> -> vector<8x32xf32>
    %460 = arith.mulf %456, %459 : vector<8x32xf32>
    %461 = vector.extract_strided_slice %446 {offsets = [0, 32], sizes = [32, 32], strides = [1, 1]} : vector<32x64xf32> to vector<32x32xf32>
    %462 = arith.truncf %460 : vector<8x32xf32> to vector<8x32xbf16>
    %463 = arith.truncf %461 : vector<32x32xf32> to vector<32x32xbf16>
    %cst_155 = arith.constant dense<0.000000e+00> : vector<8x32xf32>
    %464 = tpu.matmul %462, %463, %cst_155 {dimension_numbers = #tpu.dot_dimension_numbers<[1], [0], [0], [1], [0, 0, 1, 1], [], []>} : vector<8x32xbf16>, vector<32x32xbf16>, vector<8x32xf32> -> vector<8x32xf32>
    %465 = vector.extract_strided_slice %419 {offsets = [16, 0], sizes = [8, 32], strides = [1, 1]} : vector<40x32xf32> to vector<8x32xf32>
    %466 = vector.extract_strided_slice %420 {offsets = [16, 0], sizes = [8, 64], strides = [1, 1]} : vector<40x64xf32> to vector<8x64xf32>
    %467 = tpu.concatenate %466, %466, %466, %466 in 0 : vector<8x64xf32>, vector<8x64xf32>, vector<8x64xf32>, vector<8x64xf32> -> vector<32x64xf32>
    %468 = arith.mulf %467, %0 : vector<32x64xf32>
    %469 = vector.extract_strided_slice %468 {offsets = [0, 0], sizes = [32, 32], strides = [1, 1]} : vector<32x64xf32> to vector<32x32xf32>
    %470 = arith.truncf %465 : vector<8x32xf32> to vector<8x32xbf16>
    %471 = arith.truncf %469 : vector<32x32xf32> to vector<32x32xbf16>
    %cst_156 = arith.constant dense<0.000000e+00> : vector<8x32xf32>
    %472 = tpu.matmul %470, %471, %cst_156 {dimension_numbers = #tpu.dot_dimension_numbers<[1], [1], [0], [0], [0, 0, 1, 0], [], []>} : vector<8x32xbf16>, vector<32x32xbf16>, vector<8x32xf32> -> vector<8x32xf32>
    %473 = arith.addf %472, %1 : vector<8x32xf32>
    %cst_157 = arith.constant dense<0xFF800000> : vector<8xf32>
    %474 = vector.multi_reduction <maximumf>, %473, %cst_157 [1] : vector<8x32xf32> to vector<8xf32>
    %475 = vector.shape_cast %474 : vector<8xf32> to vector<8x1xf32>
    %476 = vector.broadcast %475 : vector<8x1xf32> to vector<8x32xf32>
    %477 = arith.subf %473, %476 : vector<8x32xf32>
    %478 = math.exp %477 : vector<8x32xf32>
    %479 = arith.truncf %478 : vector<8x32xf32> to vector<8x32xbf16>
    %cst_158 = arith.constant dense<0.000000e+00> : vector<8x32xf32>
    %480 = tpu.matmul %479, %2, %cst_158 {dimension_numbers = #tpu.dot_dimension_numbers<[1], [0], [0], [1], [0, 0, 1, 1], [], []>} : vector<8x32xbf16>, vector<32x32xbf16>, vector<8x32xf32> -> vector<8x32xf32>
    %481 = tpu.reciprocal %480 {approx = true} : vector<8x32xf32> -> vector<8x32xf32>
    %482 = arith.mulf %478, %481 : vector<8x32xf32>
    %483 = vector.extract_strided_slice %468 {offsets = [0, 32], sizes = [32, 32], strides = [1, 1]} : vector<32x64xf32> to vector<32x32xf32>
    %484 = arith.truncf %482 : vector<8x32xf32> to vector<8x32xbf16>
    %485 = arith.truncf %483 : vector<32x32xf32> to vector<32x32xbf16>
    %cst_159 = arith.constant dense<0.000000e+00> : vector<8x32xf32>
    %486 = tpu.matmul %484, %485, %cst_159 {dimension_numbers = #tpu.dot_dimension_numbers<[1], [0], [0], [1], [0, 0, 1, 1], [], []>} : vector<8x32xbf16>, vector<32x32xbf16>, vector<8x32xf32> -> vector<8x32xf32>
    %487 = vector.extract_strided_slice %419 {offsets = [24, 0], sizes = [8, 32], strides = [1, 1]} : vector<40x32xf32> to vector<8x32xf32>
    %488 = vector.extract_strided_slice %420 {offsets = [24, 0], sizes = [8, 64], strides = [1, 1]} : vector<40x64xf32> to vector<8x64xf32>
    %489 = tpu.concatenate %488, %488, %488, %488 in 0 : vector<8x64xf32>, vector<8x64xf32>, vector<8x64xf32>, vector<8x64xf32> -> vector<32x64xf32>
    %490 = arith.mulf %489, %0 : vector<32x64xf32>
    %491 = vector.extract_strided_slice %490 {offsets = [0, 0], sizes = [32, 32], strides = [1, 1]} : vector<32x64xf32> to vector<32x32xf32>
    %492 = arith.truncf %487 : vector<8x32xf32> to vector<8x32xbf16>
    %493 = arith.truncf %491 : vector<32x32xf32> to vector<32x32xbf16>
    %cst_160 = arith.constant dense<0.000000e+00> : vector<8x32xf32>
    %494 = tpu.matmul %492, %493, %cst_160 {dimension_numbers = #tpu.dot_dimension_numbers<[1], [1], [0], [0], [0, 0, 1, 0], [], []>} : vector<8x32xbf16>, vector<32x32xbf16>, vector<8x32xf32> -> vector<8x32xf32>
    %495 = arith.addf %494, %1 : vector<8x32xf32>
    %cst_161 = arith.constant dense<0xFF800000> : vector<8xf32>
    %496 = vector.multi_reduction <maximumf>, %495, %cst_161 [1] : vector<8x32xf32> to vector<8xf32>
    %497 = vector.shape_cast %496 : vector<8xf32> to vector<8x1xf32>
    %498 = vector.broadcast %497 : vector<8x1xf32> to vector<8x32xf32>
    %499 = arith.subf %495, %498 : vector<8x32xf32>
    %500 = math.exp %499 : vector<8x32xf32>
    %501 = arith.truncf %500 : vector<8x32xf32> to vector<8x32xbf16>
    %cst_162 = arith.constant dense<0.000000e+00> : vector<8x32xf32>
    %502 = tpu.matmul %501, %2, %cst_162 {dimension_numbers = #tpu.dot_dimension_numbers<[1], [0], [0], [1], [0, 0, 1, 1], [], []>} : vector<8x32xbf16>, vector<32x32xbf16>, vector<8x32xf32> -> vector<8x32xf32>
    %503 = tpu.reciprocal %502 {approx = true} : vector<8x32xf32> -> vector<8x32xf32>
    %504 = arith.mulf %500, %503 : vector<8x32xf32>
    %505 = vector.extract_strided_slice %490 {offsets = [0, 32], sizes = [32, 32], strides = [1, 1]} : vector<32x64xf32> to vector<32x32xf32>
    %506 = arith.truncf %504 : vector<8x32xf32> to vector<8x32xbf16>
    %507 = arith.truncf %505 : vector<32x32xf32> to vector<32x32xbf16>
    %cst_163 = arith.constant dense<0.000000e+00> : vector<8x32xf32>
    %508 = tpu.matmul %506, %507, %cst_163 {dimension_numbers = #tpu.dot_dimension_numbers<[1], [0], [0], [1], [0, 0, 1, 1], [], []>} : vector<8x32xbf16>, vector<32x32xbf16>, vector<8x32xf32> -> vector<8x32xf32>
    %509 = vector.extract_strided_slice %419 {offsets = [32, 0], sizes = [8, 32], strides = [1, 1]} : vector<40x32xf32> to vector<8x32xf32>
    %510 = vector.extract_strided_slice %420 {offsets = [32, 0], sizes = [8, 64], strides = [1, 1]} : vector<40x64xf32> to vector<8x64xf32>
    %511 = tpu.concatenate %510, %510, %510, %510 in 0 : vector<8x64xf32>, vector<8x64xf32>, vector<8x64xf32>, vector<8x64xf32> -> vector<32x64xf32>
    %512 = arith.mulf %511, %0 : vector<32x64xf32>
    %513 = vector.extract_strided_slice %512 {offsets = [0, 0], sizes = [32, 32], strides = [1, 1]} : vector<32x64xf32> to vector<32x32xf32>
    %514 = arith.truncf %509 : vector<8x32xf32> to vector<8x32xbf16>
    %515 = arith.truncf %513 : vector<32x32xf32> to vector<32x32xbf16>
    %cst_164 = arith.constant dense<0.000000e+00> : vector<8x32xf32>
    %516 = tpu.matmul %514, %515, %cst_164 {dimension_numbers = #tpu.dot_dimension_numbers<[1], [1], [0], [0], [0, 0, 1, 0], [], []>} : vector<8x32xbf16>, vector<32x32xbf16>, vector<8x32xf32> -> vector<8x32xf32>
    %517 = arith.addf %516, %1 : vector<8x32xf32>
    %cst_165 = arith.constant dense<0xFF800000> : vector<8xf32>
    %518 = vector.multi_reduction <maximumf>, %517, %cst_165 [1] : vector<8x32xf32> to vector<8xf32>
    %519 = vector.shape_cast %518 : vector<8xf32> to vector<8x1xf32>
    %520 = vector.broadcast %519 : vector<8x1xf32> to vector<8x32xf32>
    %521 = arith.subf %517, %520 : vector<8x32xf32>
    %522 = math.exp %521 : vector<8x32xf32>
    %523 = arith.truncf %522 : vector<8x32xf32> to vector<8x32xbf16>
    %cst_166 = arith.constant dense<0.000000e+00> : vector<8x32xf32>
    %524 = tpu.matmul %523, %2, %cst_166 {dimension_numbers = #tpu.dot_dimension_numbers<[1], [0], [0], [1], [0, 0, 1, 1], [], []>} : vector<8x32xbf16>, vector<32x32xbf16>, vector<8x32xf32> -> vector<8x32xf32>
    %525 = tpu.reciprocal %524 {approx = true} : vector<8x32xf32> -> vector<8x32xf32>
    %526 = arith.mulf %522, %525 : vector<8x32xf32>
    %527 = vector.extract_strided_slice %512 {offsets = [0, 32], sizes = [32, 32], strides = [1, 1]} : vector<32x64xf32> to vector<32x32xf32>
    %528 = arith.truncf %526 : vector<8x32xf32> to vector<8x32xbf16>
    %529 = arith.truncf %527 : vector<32x32xf32> to vector<32x32xbf16>
    %cst_167 = arith.constant dense<0.000000e+00> : vector<8x32xf32>
    %530 = tpu.matmul %528, %529, %cst_167 {dimension_numbers = #tpu.dot_dimension_numbers<[1], [0], [0], [1], [0, 0, 1, 1], [], []>} : vector<8x32xbf16>, vector<32x32xbf16>, vector<8x32xf32> -> vector<8x32xf32>
    %531 = tpu.concatenate %442, %464, %486, %508, %530 in 0 : vector<8x32xf32>, vector<8x32xf32>, vector<8x32xf32>, vector<8x32xf32>, vector<8x32xf32> -> vector<40x32xf32>
    %c0_168 = arith.constant 0 : index
    %c0_169 = arith.constant 0 : index
    %c0_170 = arith.constant 0 : index
    %532 = vector.load %arg14[%c0_168, %c0_169, %c0_170] : memref<2x32x32xbf16, #tpu.memory_space<vmem>>, vector<1x32x32xbf16>
    %533 = vector.shape_cast %532 : vector<1x32x32xbf16> to vector<32x32xbf16>
    %534 = arith.truncf %531 : vector<40x32xf32> to vector<40x32xbf16>
    %cst_171 = arith.constant dense<0.000000e+00> : vector<40x32xf32>
    %535 = tpu.matmul %534, %533, %cst_171 {dimension_numbers = #tpu.dot_dimension_numbers<[1], [0], [0], [1], [0, 0, 1, 1], [], []>} : vector<40x32xbf16>, vector<32x32xbf16>, vector<40x32xf32> -> vector<40x32xf32>
    %c0_172 = arith.constant 0 : index
    %c0_173 = arith.constant 0 : index
    %c0_174 = arith.constant 0 : index
    %536 = vector.load %arg15[%c0_172, %c0_173, %c0_174] : memref<2x1x32xf32, #tpu.memory_space<vmem>>, vector<1x1x32xf32>
    %537 = vector.shape_cast %536 : vector<1x1x32xf32> to vector<1x32xf32>
    %538 = vector.broadcast %537 : vector<1x32xf32> to vector<40x32xf32>
    %539 = arith.addf %535, %538 : vector<40x32xf32>
    %540 = arith.addf %14, %539 : vector<40x32xf32>
    %541 = vector.extract_strided_slice %408 {offsets = [0, 0], sizes = [1, 32], strides = [1, 1]} : vector<6x32xf32> to vector<1x32xf32>
    %542 = vector.extract_strided_slice %408 {offsets = [1, 0], sizes = [1, 32], strides = [1, 1]} : vector<6x32xf32> to vector<1x32xf32>
    %cst_175 = arith.constant dense<0.000000e+00> : vector<40xf32>
    %543 = vector.multi_reduction <add>, %540, %cst_175 [1] : vector<40x32xf32> to vector<40xf32>
    %544 = vector.shape_cast %543 : vector<40xf32> to vector<40x1xf32>
    %cst_176 = arith.constant 3.200000e+01 : f32
    %545 = vector.broadcast %cst_176 : f32 to vector<40x1xf32>
    %546 = arith.divf %544, %545 : vector<40x1xf32>
    %547 = vector.broadcast %546 : vector<40x1xf32> to vector<40x32xf32>
    %548 = arith.subf %540, %547 : vector<40x32xf32>
    %549 = arith.mulf %548, %548 : vector<40x32xf32>
    %cst_177 = arith.constant dense<0.000000e+00> : vector<40xf32>
    %550 = vector.multi_reduction <add>, %549, %cst_177 [1] : vector<40x32xf32> to vector<40xf32>
    %551 = vector.shape_cast %550 : vector<40xf32> to vector<40x1xf32>
    %cst_178 = arith.constant 3.200000e+01 : f32
    %552 = vector.broadcast %cst_178 : f32 to vector<40x1xf32>
    %553 = arith.divf %551, %552 : vector<40x1xf32>
    %554 = vector.broadcast %546 : vector<40x1xf32> to vector<40x32xf32>
    %555 = arith.subf %540, %554 : vector<40x32xf32>
    %cst_179 = arith.constant 9.99999997E-7 : f32
    %556 = vector.broadcast %cst_179 : f32 to vector<40x1xf32>
    %557 = arith.addf %553, %556 : vector<40x1xf32>
    %558 = math.rsqrt %557 : vector<40x1xf32>
    %559 = vector.broadcast %558 : vector<40x1xf32> to vector<40x32xf32>
    %560 = arith.mulf %555, %559 : vector<40x32xf32>
    %561 = vector.broadcast %541 : vector<1x32xf32> to vector<40x32xf32>
    %562 = arith.mulf %560, %561 : vector<40x32xf32>
    %563 = vector.broadcast %542 : vector<1x32xf32> to vector<40x32xf32>
    %564 = arith.addf %562, %563 : vector<40x32xf32>
    %c0_180 = arith.constant 0 : index
    %c0_181 = arith.constant 0 : index
    %c0_182 = arith.constant 0 : index
    %565 = vector.load %arg16[%c0_180, %c0_181, %c0_182] : memref<2x32x32xbf16, #tpu.memory_space<vmem>>, vector<1x32x32xbf16>
    %566 = vector.shape_cast %565 : vector<1x32x32xbf16> to vector<32x32xbf16>
    %567 = arith.truncf %564 : vector<40x32xf32> to vector<40x32xbf16>
    %cst_183 = arith.constant dense<0.000000e+00> : vector<40x32xf32>
    %568 = tpu.matmul %567, %566, %cst_183 {dimension_numbers = #tpu.dot_dimension_numbers<[1], [0], [0], [1], [0, 0, 1, 1], [], []>} : vector<40x32xbf16>, vector<32x32xbf16>, vector<40x32xf32> -> vector<40x32xf32>
    %c0_184 = arith.constant 0 : index
    %c0_185 = arith.constant 0 : index
    %c0_186 = arith.constant 0 : index
    %569 = vector.load %arg17[%c0_184, %c0_185, %c0_186] : memref<2x1x32xf32, #tpu.memory_space<vmem>>, vector<1x1x32xf32>
    %570 = vector.shape_cast %569 : vector<1x1x32xf32> to vector<1x32xf32>
    %571 = vector.broadcast %570 : vector<1x32xf32> to vector<40x32xf32>
    %572 = arith.addf %568, %571 : vector<40x32xf32>
    %c0_187 = arith.constant 0 : index
    %c0_188 = arith.constant 0 : index
    %c0_189 = arith.constant 0 : index
    %573 = vector.load %arg18[%c0_187, %c0_188, %c0_189] : memref<2x32x64xbf16, #tpu.memory_space<vmem>>, vector<1x32x64xbf16>
    %574 = vector.shape_cast %573 : vector<1x32x64xbf16> to vector<32x64xbf16>
    %575 = arith.truncf %406 : vector<40x32xf32> to vector<40x32xbf16>
    %cst_190 = arith.constant dense<0.000000e+00> : vector<40x64xf32>
    %576 = tpu.matmul %575, %574, %cst_190 {dimension_numbers = #tpu.dot_dimension_numbers<[1], [0], [0], [1], [0, 0, 1, 1], [], []>} : vector<40x32xbf16>, vector<32x64xbf16>, vector<40x64xf32> -> vector<40x64xf32>
    %c0_191 = arith.constant 0 : index
    %c0_192 = arith.constant 0 : index
    %c0_193 = arith.constant 0 : index
    %577 = vector.load %arg19[%c0_191, %c0_192, %c0_193] : memref<2x1x64xf32, #tpu.memory_space<vmem>>, vector<1x1x64xf32>
    %578 = vector.shape_cast %577 : vector<1x1x64xf32> to vector<1x64xf32>
    %579 = vector.broadcast %578 : vector<1x64xf32> to vector<40x64xf32>
    %580 = arith.addf %576, %579 : vector<40x64xf32>
    %cst_194 = arith.constant 0.353553385 : f32
    %581 = vector.broadcast %cst_194 : f32 to vector<40x32xf32>
    %582 = arith.mulf %572, %581 : vector<40x32xf32>
    %583 = vector.extract_strided_slice %582 {offsets = [0, 0], sizes = [8, 32], strides = [1, 1]} : vector<40x32xf32> to vector<8x32xf32>
    %584 = vector.extract_strided_slice %580 {offsets = [0, 0], sizes = [8, 64], strides = [1, 1]} : vector<40x64xf32> to vector<8x64xf32>
    %585 = tpu.concatenate %584, %584, %584, %584 in 0 : vector<8x64xf32>, vector<8x64xf32>, vector<8x64xf32>, vector<8x64xf32> -> vector<32x64xf32>
    %586 = arith.mulf %585, %0 : vector<32x64xf32>
    %587 = vector.extract_strided_slice %586 {offsets = [0, 0], sizes = [32, 32], strides = [1, 1]} : vector<32x64xf32> to vector<32x32xf32>
    %588 = arith.truncf %583 : vector<8x32xf32> to vector<8x32xbf16>
    %589 = arith.truncf %587 : vector<32x32xf32> to vector<32x32xbf16>
    %cst_195 = arith.constant dense<0.000000e+00> : vector<8x32xf32>
    %590 = tpu.matmul %588, %589, %cst_195 {dimension_numbers = #tpu.dot_dimension_numbers<[1], [1], [0], [0], [0, 0, 1, 0], [], []>} : vector<8x32xbf16>, vector<32x32xbf16>, vector<8x32xf32> -> vector<8x32xf32>
    %cst_196 = arith.constant dense<0xFF800000> : vector<8xf32>
    %591 = vector.multi_reduction <maximumf>, %590, %cst_196 [1] : vector<8x32xf32> to vector<8xf32>
    %592 = vector.shape_cast %591 : vector<8xf32> to vector<8x1xf32>
    %593 = vector.broadcast %592 : vector<8x1xf32> to vector<8x32xf32>
    %594 = arith.subf %590, %593 : vector<8x32xf32>
    %595 = math.exp %594 : vector<8x32xf32>
    %596 = arith.truncf %595 : vector<8x32xf32> to vector<8x32xbf16>
    %cst_197 = arith.constant dense<0.000000e+00> : vector<8x32xf32>
    %597 = tpu.matmul %596, %2, %cst_197 {dimension_numbers = #tpu.dot_dimension_numbers<[1], [0], [0], [1], [0, 0, 1, 1], [], []>} : vector<8x32xbf16>, vector<32x32xbf16>, vector<8x32xf32> -> vector<8x32xf32>
    %598 = tpu.reciprocal %597 {approx = true} : vector<8x32xf32> -> vector<8x32xf32>
    %599 = arith.mulf %595, %598 : vector<8x32xf32>
    %600 = vector.extract_strided_slice %586 {offsets = [0, 32], sizes = [32, 32], strides = [1, 1]} : vector<32x64xf32> to vector<32x32xf32>
    %601 = arith.truncf %599 : vector<8x32xf32> to vector<8x32xbf16>
    %602 = arith.truncf %600 : vector<32x32xf32> to vector<32x32xbf16>
    %cst_198 = arith.constant dense<0.000000e+00> : vector<8x32xf32>
    %603 = tpu.matmul %601, %602, %cst_198 {dimension_numbers = #tpu.dot_dimension_numbers<[1], [0], [0], [1], [0, 0, 1, 1], [], []>} : vector<8x32xbf16>, vector<32x32xbf16>, vector<8x32xf32> -> vector<8x32xf32>
    %604 = vector.extract_strided_slice %582 {offsets = [8, 0], sizes = [8, 32], strides = [1, 1]} : vector<40x32xf32> to vector<8x32xf32>
    %605 = vector.extract_strided_slice %580 {offsets = [8, 0], sizes = [8, 64], strides = [1, 1]} : vector<40x64xf32> to vector<8x64xf32>
    %606 = tpu.concatenate %605, %605, %605, %605 in 0 : vector<8x64xf32>, vector<8x64xf32>, vector<8x64xf32>, vector<8x64xf32> -> vector<32x64xf32>
    %607 = arith.mulf %606, %0 : vector<32x64xf32>
    %608 = vector.extract_strided_slice %607 {offsets = [0, 0], sizes = [32, 32], strides = [1, 1]} : vector<32x64xf32> to vector<32x32xf32>
    %609 = arith.truncf %604 : vector<8x32xf32> to vector<8x32xbf16>
    %610 = arith.truncf %608 : vector<32x32xf32> to vector<32x32xbf16>
    %cst_199 = arith.constant dense<0.000000e+00> : vector<8x32xf32>
    %611 = tpu.matmul %609, %610, %cst_199 {dimension_numbers = #tpu.dot_dimension_numbers<[1], [1], [0], [0], [0, 0, 1, 0], [], []>} : vector<8x32xbf16>, vector<32x32xbf16>, vector<8x32xf32> -> vector<8x32xf32>
    %cst_200 = arith.constant dense<0xFF800000> : vector<8xf32>
    %612 = vector.multi_reduction <maximumf>, %611, %cst_200 [1] : vector<8x32xf32> to vector<8xf32>
    %613 = vector.shape_cast %612 : vector<8xf32> to vector<8x1xf32>
    %614 = vector.broadcast %613 : vector<8x1xf32> to vector<8x32xf32>
    %615 = arith.subf %611, %614 : vector<8x32xf32>
    %616 = math.exp %615 : vector<8x32xf32>
    %617 = arith.truncf %616 : vector<8x32xf32> to vector<8x32xbf16>
    %cst_201 = arith.constant dense<0.000000e+00> : vector<8x32xf32>
    %618 = tpu.matmul %617, %2, %cst_201 {dimension_numbers = #tpu.dot_dimension_numbers<[1], [0], [0], [1], [0, 0, 1, 1], [], []>} : vector<8x32xbf16>, vector<32x32xbf16>, vector<8x32xf32> -> vector<8x32xf32>
    %619 = tpu.reciprocal %618 {approx = true} : vector<8x32xf32> -> vector<8x32xf32>
    %620 = arith.mulf %616, %619 : vector<8x32xf32>
    %621 = vector.extract_strided_slice %607 {offsets = [0, 32], sizes = [32, 32], strides = [1, 1]} : vector<32x64xf32> to vector<32x32xf32>
    %622 = arith.truncf %620 : vector<8x32xf32> to vector<8x32xbf16>
    %623 = arith.truncf %621 : vector<32x32xf32> to vector<32x32xbf16>
    %cst_202 = arith.constant dense<0.000000e+00> : vector<8x32xf32>
    %624 = tpu.matmul %622, %623, %cst_202 {dimension_numbers = #tpu.dot_dimension_numbers<[1], [0], [0], [1], [0, 0, 1, 1], [], []>} : vector<8x32xbf16>, vector<32x32xbf16>, vector<8x32xf32> -> vector<8x32xf32>
    %625 = vector.extract_strided_slice %582 {offsets = [16, 0], sizes = [8, 32], strides = [1, 1]} : vector<40x32xf32> to vector<8x32xf32>
    %626 = vector.extract_strided_slice %580 {offsets = [16, 0], sizes = [8, 64], strides = [1, 1]} : vector<40x64xf32> to vector<8x64xf32>
    %627 = tpu.concatenate %626, %626, %626, %626 in 0 : vector<8x64xf32>, vector<8x64xf32>, vector<8x64xf32>, vector<8x64xf32> -> vector<32x64xf32>
    %628 = arith.mulf %627, %0 : vector<32x64xf32>
    %629 = vector.extract_strided_slice %628 {offsets = [0, 0], sizes = [32, 32], strides = [1, 1]} : vector<32x64xf32> to vector<32x32xf32>
    %630 = arith.truncf %625 : vector<8x32xf32> to vector<8x32xbf16>
    %631 = arith.truncf %629 : vector<32x32xf32> to vector<32x32xbf16>
    %cst_203 = arith.constant dense<0.000000e+00> : vector<8x32xf32>
    %632 = tpu.matmul %630, %631, %cst_203 {dimension_numbers = #tpu.dot_dimension_numbers<[1], [1], [0], [0], [0, 0, 1, 0], [], []>} : vector<8x32xbf16>, vector<32x32xbf16>, vector<8x32xf32> -> vector<8x32xf32>
    %cst_204 = arith.constant dense<0xFF800000> : vector<8xf32>
    %633 = vector.multi_reduction <maximumf>, %632, %cst_204 [1] : vector<8x32xf32> to vector<8xf32>
    %634 = vector.shape_cast %633 : vector<8xf32> to vector<8x1xf32>
    %635 = vector.broadcast %634 : vector<8x1xf32> to vector<8x32xf32>
    %636 = arith.subf %632, %635 : vector<8x32xf32>
    %637 = math.exp %636 : vector<8x32xf32>
    %638 = arith.truncf %637 : vector<8x32xf32> to vector<8x32xbf16>
    %cst_205 = arith.constant dense<0.000000e+00> : vector<8x32xf32>
    %639 = tpu.matmul %638, %2, %cst_205 {dimension_numbers = #tpu.dot_dimension_numbers<[1], [0], [0], [1], [0, 0, 1, 1], [], []>} : vector<8x32xbf16>, vector<32x32xbf16>, vector<8x32xf32> -> vector<8x32xf32>
    %640 = tpu.reciprocal %639 {approx = true} : vector<8x32xf32> -> vector<8x32xf32>
    %641 = arith.mulf %637, %640 : vector<8x32xf32>
    %642 = vector.extract_strided_slice %628 {offsets = [0, 32], sizes = [32, 32], strides = [1, 1]} : vector<32x64xf32> to vector<32x32xf32>
    %643 = arith.truncf %641 : vector<8x32xf32> to vector<8x32xbf16>
    %644 = arith.truncf %642 : vector<32x32xf32> to vector<32x32xbf16>
    %cst_206 = arith.constant dense<0.000000e+00> : vector<8x32xf32>
    %645 = tpu.matmul %643, %644, %cst_206 {dimension_numbers = #tpu.dot_dimension_numbers<[1], [0], [0], [1], [0, 0, 1, 1], [], []>} : vector<8x32xbf16>, vector<32x32xbf16>, vector<8x32xf32> -> vector<8x32xf32>
    %646 = vector.extract_strided_slice %582 {offsets = [24, 0], sizes = [8, 32], strides = [1, 1]} : vector<40x32xf32> to vector<8x32xf32>
    %647 = vector.extract_strided_slice %580 {offsets = [24, 0], sizes = [8, 64], strides = [1, 1]} : vector<40x64xf32> to vector<8x64xf32>
    %648 = tpu.concatenate %647, %647, %647, %647 in 0 : vector<8x64xf32>, vector<8x64xf32>, vector<8x64xf32>, vector<8x64xf32> -> vector<32x64xf32>
    %649 = arith.mulf %648, %0 : vector<32x64xf32>
    %650 = vector.extract_strided_slice %649 {offsets = [0, 0], sizes = [32, 32], strides = [1, 1]} : vector<32x64xf32> to vector<32x32xf32>
    %651 = arith.truncf %646 : vector<8x32xf32> to vector<8x32xbf16>
    %652 = arith.truncf %650 : vector<32x32xf32> to vector<32x32xbf16>
    %cst_207 = arith.constant dense<0.000000e+00> : vector<8x32xf32>
    %653 = tpu.matmul %651, %652, %cst_207 {dimension_numbers = #tpu.dot_dimension_numbers<[1], [1], [0], [0], [0, 0, 1, 0], [], []>} : vector<8x32xbf16>, vector<32x32xbf16>, vector<8x32xf32> -> vector<8x32xf32>
    %cst_208 = arith.constant dense<0xFF800000> : vector<8xf32>
    %654 = vector.multi_reduction <maximumf>, %653, %cst_208 [1] : vector<8x32xf32> to vector<8xf32>
    %655 = vector.shape_cast %654 : vector<8xf32> to vector<8x1xf32>
    %656 = vector.broadcast %655 : vector<8x1xf32> to vector<8x32xf32>
    %657 = arith.subf %653, %656 : vector<8x32xf32>
    %658 = math.exp %657 : vector<8x32xf32>
    %659 = arith.truncf %658 : vector<8x32xf32> to vector<8x32xbf16>
    %cst_209 = arith.constant dense<0.000000e+00> : vector<8x32xf32>
    %660 = tpu.matmul %659, %2, %cst_209 {dimension_numbers = #tpu.dot_dimension_numbers<[1], [0], [0], [1], [0, 0, 1, 1], [], []>} : vector<8x32xbf16>, vector<32x32xbf16>, vector<8x32xf32> -> vector<8x32xf32>
    %661 = tpu.reciprocal %660 {approx = true} : vector<8x32xf32> -> vector<8x32xf32>
    %662 = arith.mulf %658, %661 : vector<8x32xf32>
    %663 = vector.extract_strided_slice %649 {offsets = [0, 32], sizes = [32, 32], strides = [1, 1]} : vector<32x64xf32> to vector<32x32xf32>
    %664 = arith.truncf %662 : vector<8x32xf32> to vector<8x32xbf16>
    %665 = arith.truncf %663 : vector<32x32xf32> to vector<32x32xbf16>
    %cst_210 = arith.constant dense<0.000000e+00> : vector<8x32xf32>
    %666 = tpu.matmul %664, %665, %cst_210 {dimension_numbers = #tpu.dot_dimension_numbers<[1], [0], [0], [1], [0, 0, 1, 1], [], []>} : vector<8x32xbf16>, vector<32x32xbf16>, vector<8x32xf32> -> vector<8x32xf32>
    %667 = vector.extract_strided_slice %582 {offsets = [32, 0], sizes = [8, 32], strides = [1, 1]} : vector<40x32xf32> to vector<8x32xf32>
    %668 = vector.extract_strided_slice %580 {offsets = [32, 0], sizes = [8, 64], strides = [1, 1]} : vector<40x64xf32> to vector<8x64xf32>
    %669 = tpu.concatenate %668, %668, %668, %668 in 0 : vector<8x64xf32>, vector<8x64xf32>, vector<8x64xf32>, vector<8x64xf32> -> vector<32x64xf32>
    %670 = arith.mulf %669, %0 : vector<32x64xf32>
    %671 = vector.extract_strided_slice %670 {offsets = [0, 0], sizes = [32, 32], strides = [1, 1]} : vector<32x64xf32> to vector<32x32xf32>
    %672 = arith.truncf %667 : vector<8x32xf32> to vector<8x32xbf16>
    %673 = arith.truncf %671 : vector<32x32xf32> to vector<32x32xbf16>
    %cst_211 = arith.constant dense<0.000000e+00> : vector<8x32xf32>
    %674 = tpu.matmul %672, %673, %cst_211 {dimension_numbers = #tpu.dot_dimension_numbers<[1], [1], [0], [0], [0, 0, 1, 0], [], []>} : vector<8x32xbf16>, vector<32x32xbf16>, vector<8x32xf32> -> vector<8x32xf32>
    %cst_212 = arith.constant dense<0xFF800000> : vector<8xf32>
    %675 = vector.multi_reduction <maximumf>, %674, %cst_212 [1] : vector<8x32xf32> to vector<8xf32>
    %676 = vector.shape_cast %675 : vector<8xf32> to vector<8x1xf32>
    %677 = vector.broadcast %676 : vector<8x1xf32> to vector<8x32xf32>
    %678 = arith.subf %674, %677 : vector<8x32xf32>
    %679 = math.exp %678 : vector<8x32xf32>
    %680 = arith.truncf %679 : vector<8x32xf32> to vector<8x32xbf16>
    %cst_213 = arith.constant dense<0.000000e+00> : vector<8x32xf32>
    %681 = tpu.matmul %680, %2, %cst_213 {dimension_numbers = #tpu.dot_dimension_numbers<[1], [0], [0], [1], [0, 0, 1, 1], [], []>} : vector<8x32xbf16>, vector<32x32xbf16>, vector<8x32xf32> -> vector<8x32xf32>
    %682 = tpu.reciprocal %681 {approx = true} : vector<8x32xf32> -> vector<8x32xf32>
    %683 = arith.mulf %679, %682 : vector<8x32xf32>
    %684 = vector.extract_strided_slice %670 {offsets = [0, 32], sizes = [32, 32], strides = [1, 1]} : vector<32x64xf32> to vector<32x32xf32>
    %685 = arith.truncf %683 : vector<8x32xf32> to vector<8x32xbf16>
    %686 = arith.truncf %684 : vector<32x32xf32> to vector<32x32xbf16>
    %cst_214 = arith.constant dense<0.000000e+00> : vector<8x32xf32>
    %687 = tpu.matmul %685, %686, %cst_214 {dimension_numbers = #tpu.dot_dimension_numbers<[1], [0], [0], [1], [0, 0, 1, 1], [], []>} : vector<8x32xbf16>, vector<32x32xbf16>, vector<8x32xf32> -> vector<8x32xf32>
    %688 = tpu.concatenate %603, %624, %645, %666, %687 in 0 : vector<8x32xf32>, vector<8x32xf32>, vector<8x32xf32>, vector<8x32xf32>, vector<8x32xf32> -> vector<40x32xf32>
    %c0_215 = arith.constant 0 : index
    %c0_216 = arith.constant 0 : index
    %c0_217 = arith.constant 0 : index
    %689 = vector.load %arg20[%c0_215, %c0_216, %c0_217] : memref<2x32x32xbf16, #tpu.memory_space<vmem>>, vector<1x32x32xbf16>
    %690 = vector.shape_cast %689 : vector<1x32x32xbf16> to vector<32x32xbf16>
    %691 = arith.truncf %688 : vector<40x32xf32> to vector<40x32xbf16>
    %cst_218 = arith.constant dense<0.000000e+00> : vector<40x32xf32>
    %692 = tpu.matmul %691, %690, %cst_218 {dimension_numbers = #tpu.dot_dimension_numbers<[1], [0], [0], [1], [0, 0, 1, 1], [], []>} : vector<40x32xbf16>, vector<32x32xbf16>, vector<40x32xf32> -> vector<40x32xf32>
    %c0_219 = arith.constant 0 : index
    %c0_220 = arith.constant 0 : index
    %c0_221 = arith.constant 0 : index
    %693 = vector.load %arg21[%c0_219, %c0_220, %c0_221] : memref<2x1x32xf32, #tpu.memory_space<vmem>>, vector<1x1x32xf32>
    %694 = vector.shape_cast %693 : vector<1x1x32xf32> to vector<1x32xf32>
    %695 = vector.broadcast %694 : vector<1x32xf32> to vector<40x32xf32>
    %696 = arith.addf %692, %695 : vector<40x32xf32>
    %697 = arith.addf %564, %696 : vector<40x32xf32>
    %698 = vector.extract_strided_slice %408 {offsets = [2, 0], sizes = [1, 32], strides = [1, 1]} : vector<6x32xf32> to vector<1x32xf32>
    %699 = vector.extract_strided_slice %408 {offsets = [3, 0], sizes = [1, 32], strides = [1, 1]} : vector<6x32xf32> to vector<1x32xf32>
    %cst_222 = arith.constant dense<0.000000e+00> : vector<40xf32>
    %700 = vector.multi_reduction <add>, %697, %cst_222 [1] : vector<40x32xf32> to vector<40xf32>
    %701 = vector.shape_cast %700 : vector<40xf32> to vector<40x1xf32>
    %cst_223 = arith.constant 3.200000e+01 : f32
    %702 = vector.broadcast %cst_223 : f32 to vector<40x1xf32>
    %703 = arith.divf %701, %702 : vector<40x1xf32>
    %704 = vector.broadcast %703 : vector<40x1xf32> to vector<40x32xf32>
    %705 = arith.subf %697, %704 : vector<40x32xf32>
    %706 = arith.mulf %705, %705 : vector<40x32xf32>
    %cst_224 = arith.constant dense<0.000000e+00> : vector<40xf32>
    %707 = vector.multi_reduction <add>, %706, %cst_224 [1] : vector<40x32xf32> to vector<40xf32>
    %708 = vector.shape_cast %707 : vector<40xf32> to vector<40x1xf32>
    %cst_225 = arith.constant 3.200000e+01 : f32
    %709 = vector.broadcast %cst_225 : f32 to vector<40x1xf32>
    %710 = arith.divf %708, %709 : vector<40x1xf32>
    %711 = vector.broadcast %703 : vector<40x1xf32> to vector<40x32xf32>
    %712 = arith.subf %697, %711 : vector<40x32xf32>
    %cst_226 = arith.constant 9.99999997E-7 : f32
    %713 = vector.broadcast %cst_226 : f32 to vector<40x1xf32>
    %714 = arith.addf %710, %713 : vector<40x1xf32>
    %715 = math.rsqrt %714 : vector<40x1xf32>
    %716 = vector.broadcast %715 : vector<40x1xf32> to vector<40x32xf32>
    %717 = arith.mulf %712, %716 : vector<40x32xf32>
    %718 = vector.broadcast %698 : vector<1x32xf32> to vector<40x32xf32>
    %719 = arith.mulf %717, %718 : vector<40x32xf32>
    %720 = vector.broadcast %699 : vector<1x32xf32> to vector<40x32xf32>
    %721 = arith.addf %719, %720 : vector<40x32xf32>
    %c0_227 = arith.constant 0 : index
    %c0_228 = arith.constant 0 : index
    %c0_229 = arith.constant 0 : index
    %722 = vector.load %arg23[%c0_227, %c0_228, %c0_229] : memref<2x32x64xbf16, #tpu.memory_space<vmem>>, vector<1x32x64xbf16>
    %723 = vector.shape_cast %722 : vector<1x32x64xbf16> to vector<32x64xbf16>
    %724 = arith.truncf %721 : vector<40x32xf32> to vector<40x32xbf16>
    %cst_230 = arith.constant dense<0.000000e+00> : vector<40x64xf32>
    %725 = tpu.matmul %724, %723, %cst_230 {dimension_numbers = #tpu.dot_dimension_numbers<[1], [0], [0], [1], [0, 0, 1, 1], [], []>} : vector<40x32xbf16>, vector<32x64xbf16>, vector<40x64xf32> -> vector<40x64xf32>
    %c0_231 = arith.constant 0 : index
    %c0_232 = arith.constant 0 : index
    %c0_233 = arith.constant 0 : index
    %726 = vector.load %arg24[%c0_231, %c0_232, %c0_233] : memref<2x1x64xf32, #tpu.memory_space<vmem>>, vector<1x1x64xf32>
    %727 = vector.shape_cast %726 : vector<1x1x64xf32> to vector<1x64xf32>
    %728 = vector.broadcast %727 : vector<1x64xf32> to vector<40x64xf32>
    %729 = arith.addf %725, %728 : vector<40x64xf32>
    %cst_234 = arith.constant 0.000000e+00 : f32
    %730 = vector.broadcast %cst_234 : f32 to vector<40x64xf32>
    %731 = arith.maximumf %729, %730 : vector<40x64xf32>
    %c0_235 = arith.constant 0 : index
    %c0_236 = arith.constant 0 : index
    %c0_237 = arith.constant 0 : index
    %732 = vector.load %arg25[%c0_235, %c0_236, %c0_237] : memref<2x64x32xbf16, #tpu.memory_space<vmem>>, vector<1x64x32xbf16>
    %733 = vector.shape_cast %732 : vector<1x64x32xbf16> to vector<64x32xbf16>
    %734 = arith.truncf %731 : vector<40x64xf32> to vector<40x64xbf16>
    %cst_238 = arith.constant dense<0.000000e+00> : vector<40x32xf32>
    %735 = tpu.matmul %734, %733, %cst_238 {dimension_numbers = #tpu.dot_dimension_numbers<[1], [0], [0], [1], [0, 0, 1, 1], [], []>} : vector<40x64xbf16>, vector<64x32xbf16>, vector<40x32xf32> -> vector<40x32xf32>
    %c0_239 = arith.constant 0 : index
    %c0_240 = arith.constant 0 : index
    %c0_241 = arith.constant 0 : index
    %736 = vector.load %arg26[%c0_239, %c0_240, %c0_241] : memref<2x1x32xf32, #tpu.memory_space<vmem>>, vector<1x1x32xf32>
    %737 = vector.shape_cast %736 : vector<1x1x32xf32> to vector<1x32xf32>
    %738 = vector.broadcast %737 : vector<1x32xf32> to vector<40x32xf32>
    %739 = arith.addf %735, %738 : vector<40x32xf32>
    %740 = arith.addf %721, %739 : vector<40x32xf32>
    %741 = vector.extract_strided_slice %408 {offsets = [4, 0], sizes = [1, 32], strides = [1, 1]} : vector<6x32xf32> to vector<1x32xf32>
    %742 = vector.extract_strided_slice %408 {offsets = [5, 0], sizes = [1, 32], strides = [1, 1]} : vector<6x32xf32> to vector<1x32xf32>
    %cst_242 = arith.constant dense<0.000000e+00> : vector<40xf32>
    %743 = vector.multi_reduction <add>, %740, %cst_242 [1] : vector<40x32xf32> to vector<40xf32>
    %744 = vector.shape_cast %743 : vector<40xf32> to vector<40x1xf32>
    %cst_243 = arith.constant 3.200000e+01 : f32
    %745 = vector.broadcast %cst_243 : f32 to vector<40x1xf32>
    %746 = arith.divf %744, %745 : vector<40x1xf32>
    %747 = vector.broadcast %746 : vector<40x1xf32> to vector<40x32xf32>
    %748 = arith.subf %740, %747 : vector<40x32xf32>
    %749 = arith.mulf %748, %748 : vector<40x32xf32>
    %cst_244 = arith.constant dense<0.000000e+00> : vector<40xf32>
    %750 = vector.multi_reduction <add>, %749, %cst_244 [1] : vector<40x32xf32> to vector<40xf32>
    %751 = vector.shape_cast %750 : vector<40xf32> to vector<40x1xf32>
    %cst_245 = arith.constant 3.200000e+01 : f32
    %752 = vector.broadcast %cst_245 : f32 to vector<40x1xf32>
    %753 = arith.divf %751, %752 : vector<40x1xf32>
    %754 = vector.broadcast %746 : vector<40x1xf32> to vector<40x32xf32>
    %755 = arith.subf %740, %754 : vector<40x32xf32>
    %cst_246 = arith.constant 9.99999997E-7 : f32
    %756 = vector.broadcast %cst_246 : f32 to vector<40x1xf32>
    %757 = arith.addf %753, %756 : vector<40x1xf32>
    %758 = math.rsqrt %757 : vector<40x1xf32>
    %759 = vector.broadcast %758 : vector<40x1xf32> to vector<40x32xf32>
    %760 = arith.mulf %755, %759 : vector<40x32xf32>
    %761 = vector.broadcast %741 : vector<1x32xf32> to vector<40x32xf32>
    %762 = arith.mulf %760, %761 : vector<40x32xf32>
    %763 = vector.broadcast %742 : vector<1x32xf32> to vector<40x32xf32>
    %764 = arith.addf %762, %763 : vector<40x32xf32>
    %c1_247 = arith.constant 1 : index
    %c0_248 = arith.constant 0 : index
    %c0_249 = arith.constant 0 : index
    %765 = vector.load %arg22[%c1_247, %c0_248, %c0_249] : memref<2x6x32xf32, #tpu.memory_space<vmem>>, vector<1x6x32xf32>
    %766 = vector.shape_cast %765 : vector<1x6x32xf32> to vector<6x32xf32>
    %c1_250 = arith.constant 1 : index
    %c0_251 = arith.constant 0 : index
    %c0_252 = arith.constant 0 : index
    %767 = vector.load %arg12[%c1_250, %c0_251, %c0_252] : memref<2x32x96xbf16, #tpu.memory_space<vmem>>, vector<1x32x96xbf16>
    %768 = vector.shape_cast %767 : vector<1x32x96xbf16> to vector<32x96xbf16>
    %769 = arith.truncf %764 : vector<40x32xf32> to vector<40x32xbf16>
    %cst_253 = arith.constant dense<0.000000e+00> : vector<40x96xf32>
    %770 = tpu.matmul %769, %768, %cst_253 {dimension_numbers = #tpu.dot_dimension_numbers<[1], [0], [0], [1], [0, 0, 1, 1], [], []>} : vector<40x32xbf16>, vector<32x96xbf16>, vector<40x96xf32> -> vector<40x96xf32>
    %c1_254 = arith.constant 1 : index
    %c0_255 = arith.constant 0 : index
    %c0_256 = arith.constant 0 : index
    %771 = vector.load %arg13[%c1_254, %c0_255, %c0_256] : memref<2x1x96xf32, #tpu.memory_space<vmem>>, vector<1x1x96xf32>
    %772 = vector.shape_cast %771 : vector<1x1x96xf32> to vector<1x96xf32>
    %773 = vector.broadcast %772 : vector<1x96xf32> to vector<40x96xf32>
    %774 = arith.addf %770, %773 : vector<40x96xf32>
    %775 = vector.extract_strided_slice %774 {offsets = [0, 0], sizes = [40, 32], strides = [1, 1]} : vector<40x96xf32> to vector<40x32xf32>
    %cst_257 = arith.constant 0.353553385 : f32
    %776 = vector.broadcast %cst_257 : f32 to vector<40x32xf32>
    %777 = arith.mulf %775, %776 : vector<40x32xf32>
    %778 = vector.extract_strided_slice %774 {offsets = [0, 32], sizes = [40, 64], strides = [1, 1]} : vector<40x96xf32> to vector<40x64xf32>
    %779 = vector.extract_strided_slice %777 {offsets = [0, 0], sizes = [8, 32], strides = [1, 1]} : vector<40x32xf32> to vector<8x32xf32>
    %780 = vector.extract_strided_slice %778 {offsets = [0, 0], sizes = [8, 64], strides = [1, 1]} : vector<40x64xf32> to vector<8x64xf32>
    %781 = tpu.concatenate %780, %780, %780, %780 in 0 : vector<8x64xf32>, vector<8x64xf32>, vector<8x64xf32>, vector<8x64xf32> -> vector<32x64xf32>
    %782 = arith.mulf %781, %0 : vector<32x64xf32>
    %783 = vector.extract_strided_slice %782 {offsets = [0, 0], sizes = [32, 32], strides = [1, 1]} : vector<32x64xf32> to vector<32x32xf32>
    %784 = arith.truncf %779 : vector<8x32xf32> to vector<8x32xbf16>
    %785 = arith.truncf %783 : vector<32x32xf32> to vector<32x32xbf16>
    %cst_258 = arith.constant dense<0.000000e+00> : vector<8x32xf32>
    %786 = tpu.matmul %784, %785, %cst_258 {dimension_numbers = #tpu.dot_dimension_numbers<[1], [1], [0], [0], [0, 0, 1, 0], [], []>} : vector<8x32xbf16>, vector<32x32xbf16>, vector<8x32xf32> -> vector<8x32xf32>
    %787 = arith.addf %786, %1 : vector<8x32xf32>
    %cst_259 = arith.constant dense<0xFF800000> : vector<8xf32>
    %788 = vector.multi_reduction <maximumf>, %787, %cst_259 [1] : vector<8x32xf32> to vector<8xf32>
    %789 = vector.shape_cast %788 : vector<8xf32> to vector<8x1xf32>
    %790 = vector.broadcast %789 : vector<8x1xf32> to vector<8x32xf32>
    %791 = arith.subf %787, %790 : vector<8x32xf32>
    %792 = math.exp %791 : vector<8x32xf32>
    %793 = arith.truncf %792 : vector<8x32xf32> to vector<8x32xbf16>
    %cst_260 = arith.constant dense<0.000000e+00> : vector<8x32xf32>
    %794 = tpu.matmul %793, %2, %cst_260 {dimension_numbers = #tpu.dot_dimension_numbers<[1], [0], [0], [1], [0, 0, 1, 1], [], []>} : vector<8x32xbf16>, vector<32x32xbf16>, vector<8x32xf32> -> vector<8x32xf32>
    %795 = tpu.reciprocal %794 {approx = true} : vector<8x32xf32> -> vector<8x32xf32>
    %796 = arith.mulf %792, %795 : vector<8x32xf32>
    %797 = vector.extract_strided_slice %782 {offsets = [0, 32], sizes = [32, 32], strides = [1, 1]} : vector<32x64xf32> to vector<32x32xf32>
    %798 = arith.truncf %796 : vector<8x32xf32> to vector<8x32xbf16>
    %799 = arith.truncf %797 : vector<32x32xf32> to vector<32x32xbf16>
    %cst_261 = arith.constant dense<0.000000e+00> : vector<8x32xf32>
    %800 = tpu.matmul %798, %799, %cst_261 {dimension_numbers = #tpu.dot_dimension_numbers<[1], [0], [0], [1], [0, 0, 1, 1], [], []>} : vector<8x32xbf16>, vector<32x32xbf16>, vector<8x32xf32> -> vector<8x32xf32>
    %801 = vector.extract_strided_slice %777 {offsets = [8, 0], sizes = [8, 32], strides = [1, 1]} : vector<40x32xf32> to vector<8x32xf32>
    %802 = vector.extract_strided_slice %778 {offsets = [8, 0], sizes = [8, 64], strides = [1, 1]} : vector<40x64xf32> to vector<8x64xf32>
    %803 = tpu.concatenate %802, %802, %802, %802 in 0 : vector<8x64xf32>, vector<8x64xf32>, vector<8x64xf32>, vector<8x64xf32> -> vector<32x64xf32>
    %804 = arith.mulf %803, %0 : vector<32x64xf32>
    %805 = vector.extract_strided_slice %804 {offsets = [0, 0], sizes = [32, 32], strides = [1, 1]} : vector<32x64xf32> to vector<32x32xf32>
    %806 = arith.truncf %801 : vector<8x32xf32> to vector<8x32xbf16>
    %807 = arith.truncf %805 : vector<32x32xf32> to vector<32x32xbf16>
    %cst_262 = arith.constant dense<0.000000e+00> : vector<8x32xf32>
    %808 = tpu.matmul %806, %807, %cst_262 {dimension_numbers = #tpu.dot_dimension_numbers<[1], [1], [0], [0], [0, 0, 1, 0], [], []>} : vector<8x32xbf16>, vector<32x32xbf16>, vector<8x32xf32> -> vector<8x32xf32>
    %809 = arith.addf %808, %1 : vector<8x32xf32>
    %cst_263 = arith.constant dense<0xFF800000> : vector<8xf32>
    %810 = vector.multi_reduction <maximumf>, %809, %cst_263 [1] : vector<8x32xf32> to vector<8xf32>
    %811 = vector.shape_cast %810 : vector<8xf32> to vector<8x1xf32>
    %812 = vector.broadcast %811 : vector<8x1xf32> to vector<8x32xf32>
    %813 = arith.subf %809, %812 : vector<8x32xf32>
    %814 = math.exp %813 : vector<8x32xf32>
    %815 = arith.truncf %814 : vector<8x32xf32> to vector<8x32xbf16>
    %cst_264 = arith.constant dense<0.000000e+00> : vector<8x32xf32>
    %816 = tpu.matmul %815, %2, %cst_264 {dimension_numbers = #tpu.dot_dimension_numbers<[1], [0], [0], [1], [0, 0, 1, 1], [], []>} : vector<8x32xbf16>, vector<32x32xbf16>, vector<8x32xf32> -> vector<8x32xf32>
    %817 = tpu.reciprocal %816 {approx = true} : vector<8x32xf32> -> vector<8x32xf32>
    %818 = arith.mulf %814, %817 : vector<8x32xf32>
    %819 = vector.extract_strided_slice %804 {offsets = [0, 32], sizes = [32, 32], strides = [1, 1]} : vector<32x64xf32> to vector<32x32xf32>
    %820 = arith.truncf %818 : vector<8x32xf32> to vector<8x32xbf16>
    %821 = arith.truncf %819 : vector<32x32xf32> to vector<32x32xbf16>
    %cst_265 = arith.constant dense<0.000000e+00> : vector<8x32xf32>
    %822 = tpu.matmul %820, %821, %cst_265 {dimension_numbers = #tpu.dot_dimension_numbers<[1], [0], [0], [1], [0, 0, 1, 1], [], []>} : vector<8x32xbf16>, vector<32x32xbf16>, vector<8x32xf32> -> vector<8x32xf32>
    %823 = vector.extract_strided_slice %777 {offsets = [16, 0], sizes = [8, 32], strides = [1, 1]} : vector<40x32xf32> to vector<8x32xf32>
    %824 = vector.extract_strided_slice %778 {offsets = [16, 0], sizes = [8, 64], strides = [1, 1]} : vector<40x64xf32> to vector<8x64xf32>
    %825 = tpu.concatenate %824, %824, %824, %824 in 0 : vector<8x64xf32>, vector<8x64xf32>, vector<8x64xf32>, vector<8x64xf32> -> vector<32x64xf32>
    %826 = arith.mulf %825, %0 : vector<32x64xf32>
    %827 = vector.extract_strided_slice %826 {offsets = [0, 0], sizes = [32, 32], strides = [1, 1]} : vector<32x64xf32> to vector<32x32xf32>
    %828 = arith.truncf %823 : vector<8x32xf32> to vector<8x32xbf16>
    %829 = arith.truncf %827 : vector<32x32xf32> to vector<32x32xbf16>
    %cst_266 = arith.constant dense<0.000000e+00> : vector<8x32xf32>
    %830 = tpu.matmul %828, %829, %cst_266 {dimension_numbers = #tpu.dot_dimension_numbers<[1], [1], [0], [0], [0, 0, 1, 0], [], []>} : vector<8x32xbf16>, vector<32x32xbf16>, vector<8x32xf32> -> vector<8x32xf32>
    %831 = arith.addf %830, %1 : vector<8x32xf32>
    %cst_267 = arith.constant dense<0xFF800000> : vector<8xf32>
    %832 = vector.multi_reduction <maximumf>, %831, %cst_267 [1] : vector<8x32xf32> to vector<8xf32>
    %833 = vector.shape_cast %832 : vector<8xf32> to vector<8x1xf32>
    %834 = vector.broadcast %833 : vector<8x1xf32> to vector<8x32xf32>
    %835 = arith.subf %831, %834 : vector<8x32xf32>
    %836 = math.exp %835 : vector<8x32xf32>
    %837 = arith.truncf %836 : vector<8x32xf32> to vector<8x32xbf16>
    %cst_268 = arith.constant dense<0.000000e+00> : vector<8x32xf32>
    %838 = tpu.matmul %837, %2, %cst_268 {dimension_numbers = #tpu.dot_dimension_numbers<[1], [0], [0], [1], [0, 0, 1, 1], [], []>} : vector<8x32xbf16>, vector<32x32xbf16>, vector<8x32xf32> -> vector<8x32xf32>
    %839 = tpu.reciprocal %838 {approx = true} : vector<8x32xf32> -> vector<8x32xf32>
    %840 = arith.mulf %836, %839 : vector<8x32xf32>
    %841 = vector.extract_strided_slice %826 {offsets = [0, 32], sizes = [32, 32], strides = [1, 1]} : vector<32x64xf32> to vector<32x32xf32>
    %842 = arith.truncf %840 : vector<8x32xf32> to vector<8x32xbf16>
    %843 = arith.truncf %841 : vector<32x32xf32> to vector<32x32xbf16>
    %cst_269 = arith.constant dense<0.000000e+00> : vector<8x32xf32>
    %844 = tpu.matmul %842, %843, %cst_269 {dimension_numbers = #tpu.dot_dimension_numbers<[1], [0], [0], [1], [0, 0, 1, 1], [], []>} : vector<8x32xbf16>, vector<32x32xbf16>, vector<8x32xf32> -> vector<8x32xf32>
    %845 = vector.extract_strided_slice %777 {offsets = [24, 0], sizes = [8, 32], strides = [1, 1]} : vector<40x32xf32> to vector<8x32xf32>
    %846 = vector.extract_strided_slice %778 {offsets = [24, 0], sizes = [8, 64], strides = [1, 1]} : vector<40x64xf32> to vector<8x64xf32>
    %847 = tpu.concatenate %846, %846, %846, %846 in 0 : vector<8x64xf32>, vector<8x64xf32>, vector<8x64xf32>, vector<8x64xf32> -> vector<32x64xf32>
    %848 = arith.mulf %847, %0 : vector<32x64xf32>
    %849 = vector.extract_strided_slice %848 {offsets = [0, 0], sizes = [32, 32], strides = [1, 1]} : vector<32x64xf32> to vector<32x32xf32>
    %850 = arith.truncf %845 : vector<8x32xf32> to vector<8x32xbf16>
    %851 = arith.truncf %849 : vector<32x32xf32> to vector<32x32xbf16>
    %cst_270 = arith.constant dense<0.000000e+00> : vector<8x32xf32>
    %852 = tpu.matmul %850, %851, %cst_270 {dimension_numbers = #tpu.dot_dimension_numbers<[1], [1], [0], [0], [0, 0, 1, 0], [], []>} : vector<8x32xbf16>, vector<32x32xbf16>, vector<8x32xf32> -> vector<8x32xf32>
    %853 = arith.addf %852, %1 : vector<8x32xf32>
    %cst_271 = arith.constant dense<0xFF800000> : vector<8xf32>
    %854 = vector.multi_reduction <maximumf>, %853, %cst_271 [1] : vector<8x32xf32> to vector<8xf32>
    %855 = vector.shape_cast %854 : vector<8xf32> to vector<8x1xf32>
    %856 = vector.broadcast %855 : vector<8x1xf32> to vector<8x32xf32>
    %857 = arith.subf %853, %856 : vector<8x32xf32>
    %858 = math.exp %857 : vector<8x32xf32>
    %859 = arith.truncf %858 : vector<8x32xf32> to vector<8x32xbf16>
    %cst_272 = arith.constant dense<0.000000e+00> : vector<8x32xf32>
    %860 = tpu.matmul %859, %2, %cst_272 {dimension_numbers = #tpu.dot_dimension_numbers<[1], [0], [0], [1], [0, 0, 1, 1], [], []>} : vector<8x32xbf16>, vector<32x32xbf16>, vector<8x32xf32> -> vector<8x32xf32>
    %861 = tpu.reciprocal %860 {approx = true} : vector<8x32xf32> -> vector<8x32xf32>
    %862 = arith.mulf %858, %861 : vector<8x32xf32>
    %863 = vector.extract_strided_slice %848 {offsets = [0, 32], sizes = [32, 32], strides = [1, 1]} : vector<32x64xf32> to vector<32x32xf32>
    %864 = arith.truncf %862 : vector<8x32xf32> to vector<8x32xbf16>
    %865 = arith.truncf %863 : vector<32x32xf32> to vector<32x32xbf16>
    %cst_273 = arith.constant dense<0.000000e+00> : vector<8x32xf32>
    %866 = tpu.matmul %864, %865, %cst_273 {dimension_numbers = #tpu.dot_dimension_numbers<[1], [0], [0], [1], [0, 0, 1, 1], [], []>} : vector<8x32xbf16>, vector<32x32xbf16>, vector<8x32xf32> -> vector<8x32xf32>
    %867 = vector.extract_strided_slice %777 {offsets = [32, 0], sizes = [8, 32], strides = [1, 1]} : vector<40x32xf32> to vector<8x32xf32>
    %868 = vector.extract_strided_slice %778 {offsets = [32, 0], sizes = [8, 64], strides = [1, 1]} : vector<40x64xf32> to vector<8x64xf32>
    %869 = tpu.concatenate %868, %868, %868, %868 in 0 : vector<8x64xf32>, vector<8x64xf32>, vector<8x64xf32>, vector<8x64xf32> -> vector<32x64xf32>
    %870 = arith.mulf %869, %0 : vector<32x64xf32>
    %871 = vector.extract_strided_slice %870 {offsets = [0, 0], sizes = [32, 32], strides = [1, 1]} : vector<32x64xf32> to vector<32x32xf32>
    %872 = arith.truncf %867 : vector<8x32xf32> to vector<8x32xbf16>
    %873 = arith.truncf %871 : vector<32x32xf32> to vector<32x32xbf16>
    %cst_274 = arith.constant dense<0.000000e+00> : vector<8x32xf32>
    %874 = tpu.matmul %872, %873, %cst_274 {dimension_numbers = #tpu.dot_dimension_numbers<[1], [1], [0], [0], [0, 0, 1, 0], [], []>} : vector<8x32xbf16>, vector<32x32xbf16>, vector<8x32xf32> -> vector<8x32xf32>
    %875 = arith.addf %874, %1 : vector<8x32xf32>
    %cst_275 = arith.constant dense<0xFF800000> : vector<8xf32>
    %876 = vector.multi_reduction <maximumf>, %875, %cst_275 [1] : vector<8x32xf32> to vector<8xf32>
    %877 = vector.shape_cast %876 : vector<8xf32> to vector<8x1xf32>
    %878 = vector.broadcast %877 : vector<8x1xf32> to vector<8x32xf32>
    %879 = arith.subf %875, %878 : vector<8x32xf32>
    %880 = math.exp %879 : vector<8x32xf32>
    %881 = arith.truncf %880 : vector<8x32xf32> to vector<8x32xbf16>
    %cst_276 = arith.constant dense<0.000000e+00> : vector<8x32xf32>
    %882 = tpu.matmul %881, %2, %cst_276 {dimension_numbers = #tpu.dot_dimension_numbers<[1], [0], [0], [1], [0, 0, 1, 1], [], []>} : vector<8x32xbf16>, vector<32x32xbf16>, vector<8x32xf32> -> vector<8x32xf32>
    %883 = tpu.reciprocal %882 {approx = true} : vector<8x32xf32> -> vector<8x32xf32>
    %884 = arith.mulf %880, %883 : vector<8x32xf32>
    %885 = vector.extract_strided_slice %870 {offsets = [0, 32], sizes = [32, 32], strides = [1, 1]} : vector<32x64xf32> to vector<32x32xf32>
    %886 = arith.truncf %884 : vector<8x32xf32> to vector<8x32xbf16>
    %887 = arith.truncf %885 : vector<32x32xf32> to vector<32x32xbf16>
    %cst_277 = arith.constant dense<0.000000e+00> : vector<8x32xf32>
    %888 = tpu.matmul %886, %887, %cst_277 {dimension_numbers = #tpu.dot_dimension_numbers<[1], [0], [0], [1], [0, 0, 1, 1], [], []>} : vector<8x32xbf16>, vector<32x32xbf16>, vector<8x32xf32> -> vector<8x32xf32>
    %889 = tpu.concatenate %800, %822, %844, %866, %888 in 0 : vector<8x32xf32>, vector<8x32xf32>, vector<8x32xf32>, vector<8x32xf32>, vector<8x32xf32> -> vector<40x32xf32>
    %c1_278 = arith.constant 1 : index
    %c0_279 = arith.constant 0 : index
    %c0_280 = arith.constant 0 : index
    %890 = vector.load %arg14[%c1_278, %c0_279, %c0_280] : memref<2x32x32xbf16, #tpu.memory_space<vmem>>, vector<1x32x32xbf16>
    %891 = vector.shape_cast %890 : vector<1x32x32xbf16> to vector<32x32xbf16>
    %892 = arith.truncf %889 : vector<40x32xf32> to vector<40x32xbf16>
    %cst_281 = arith.constant dense<0.000000e+00> : vector<40x32xf32>
    %893 = tpu.matmul %892, %891, %cst_281 {dimension_numbers = #tpu.dot_dimension_numbers<[1], [0], [0], [1], [0, 0, 1, 1], [], []>} : vector<40x32xbf16>, vector<32x32xbf16>, vector<40x32xf32> -> vector<40x32xf32>
    %c1_282 = arith.constant 1 : index
    %c0_283 = arith.constant 0 : index
    %c0_284 = arith.constant 0 : index
    %894 = vector.load %arg15[%c1_282, %c0_283, %c0_284] : memref<2x1x32xf32, #tpu.memory_space<vmem>>, vector<1x1x32xf32>
    %895 = vector.shape_cast %894 : vector<1x1x32xf32> to vector<1x32xf32>
    %896 = vector.broadcast %895 : vector<1x32xf32> to vector<40x32xf32>
    %897 = arith.addf %893, %896 : vector<40x32xf32>
    %898 = arith.addf %764, %897 : vector<40x32xf32>
    %899 = vector.extract_strided_slice %766 {offsets = [0, 0], sizes = [1, 32], strides = [1, 1]} : vector<6x32xf32> to vector<1x32xf32>
    %900 = vector.extract_strided_slice %766 {offsets = [1, 0], sizes = [1, 32], strides = [1, 1]} : vector<6x32xf32> to vector<1x32xf32>
    %cst_285 = arith.constant dense<0.000000e+00> : vector<40xf32>
    %901 = vector.multi_reduction <add>, %898, %cst_285 [1] : vector<40x32xf32> to vector<40xf32>
    %902 = vector.shape_cast %901 : vector<40xf32> to vector<40x1xf32>
    %cst_286 = arith.constant 3.200000e+01 : f32
    %903 = vector.broadcast %cst_286 : f32 to vector<40x1xf32>
    %904 = arith.divf %902, %903 : vector<40x1xf32>
    %905 = vector.broadcast %904 : vector<40x1xf32> to vector<40x32xf32>
    %906 = arith.subf %898, %905 : vector<40x32xf32>
    %907 = arith.mulf %906, %906 : vector<40x32xf32>
    %cst_287 = arith.constant dense<0.000000e+00> : vector<40xf32>
    %908 = vector.multi_reduction <add>, %907, %cst_287 [1] : vector<40x32xf32> to vector<40xf32>
    %909 = vector.shape_cast %908 : vector<40xf32> to vector<40x1xf32>
    %cst_288 = arith.constant 3.200000e+01 : f32
    %910 = vector.broadcast %cst_288 : f32 to vector<40x1xf32>
    %911 = arith.divf %909, %910 : vector<40x1xf32>
    %912 = vector.broadcast %904 : vector<40x1xf32> to vector<40x32xf32>
    %913 = arith.subf %898, %912 : vector<40x32xf32>
    %cst_289 = arith.constant 9.99999997E-7 : f32
    %914 = vector.broadcast %cst_289 : f32 to vector<40x1xf32>
    %915 = arith.addf %911, %914 : vector<40x1xf32>
    %916 = math.rsqrt %915 : vector<40x1xf32>
    %917 = vector.broadcast %916 : vector<40x1xf32> to vector<40x32xf32>
    %918 = arith.mulf %913, %917 : vector<40x32xf32>
    %919 = vector.broadcast %899 : vector<1x32xf32> to vector<40x32xf32>
    %920 = arith.mulf %918, %919 : vector<40x32xf32>
    %921 = vector.broadcast %900 : vector<1x32xf32> to vector<40x32xf32>
    %922 = arith.addf %920, %921 : vector<40x32xf32>
    %c1_290 = arith.constant 1 : index
    %c0_291 = arith.constant 0 : index
    %c0_292 = arith.constant 0 : index
    %923 = vector.load %arg16[%c1_290, %c0_291, %c0_292] : memref<2x32x32xbf16, #tpu.memory_space<vmem>>, vector<1x32x32xbf16>
    %924 = vector.shape_cast %923 : vector<1x32x32xbf16> to vector<32x32xbf16>
    %925 = arith.truncf %922 : vector<40x32xf32> to vector<40x32xbf16>
    %cst_293 = arith.constant dense<0.000000e+00> : vector<40x32xf32>
    %926 = tpu.matmul %925, %924, %cst_293 {dimension_numbers = #tpu.dot_dimension_numbers<[1], [0], [0], [1], [0, 0, 1, 1], [], []>} : vector<40x32xbf16>, vector<32x32xbf16>, vector<40x32xf32> -> vector<40x32xf32>
    %c1_294 = arith.constant 1 : index
    %c0_295 = arith.constant 0 : index
    %c0_296 = arith.constant 0 : index
    %927 = vector.load %arg17[%c1_294, %c0_295, %c0_296] : memref<2x1x32xf32, #tpu.memory_space<vmem>>, vector<1x1x32xf32>
    %928 = vector.shape_cast %927 : vector<1x1x32xf32> to vector<1x32xf32>
    %929 = vector.broadcast %928 : vector<1x32xf32> to vector<40x32xf32>
    %930 = arith.addf %926, %929 : vector<40x32xf32>
    %c1_297 = arith.constant 1 : index
    %c0_298 = arith.constant 0 : index
    %c0_299 = arith.constant 0 : index
    %931 = vector.load %arg18[%c1_297, %c0_298, %c0_299] : memref<2x32x64xbf16, #tpu.memory_space<vmem>>, vector<1x32x64xbf16>
    %932 = vector.shape_cast %931 : vector<1x32x64xbf16> to vector<32x64xbf16>
    %933 = arith.truncf %406 : vector<40x32xf32> to vector<40x32xbf16>
    %cst_300 = arith.constant dense<0.000000e+00> : vector<40x64xf32>
    %934 = tpu.matmul %933, %932, %cst_300 {dimension_numbers = #tpu.dot_dimension_numbers<[1], [0], [0], [1], [0, 0, 1, 1], [], []>} : vector<40x32xbf16>, vector<32x64xbf16>, vector<40x64xf32> -> vector<40x64xf32>
    %c1_301 = arith.constant 1 : index
    %c0_302 = arith.constant 0 : index
    %c0_303 = arith.constant 0 : index
    %935 = vector.load %arg19[%c1_301, %c0_302, %c0_303] : memref<2x1x64xf32, #tpu.memory_space<vmem>>, vector<1x1x64xf32>
    %936 = vector.shape_cast %935 : vector<1x1x64xf32> to vector<1x64xf32>
    %937 = vector.broadcast %936 : vector<1x64xf32> to vector<40x64xf32>
    %938 = arith.addf %934, %937 : vector<40x64xf32>
    %cst_304 = arith.constant 0.353553385 : f32
    %939 = vector.broadcast %cst_304 : f32 to vector<40x32xf32>
    %940 = arith.mulf %930, %939 : vector<40x32xf32>
    %941 = vector.extract_strided_slice %940 {offsets = [0, 0], sizes = [8, 32], strides = [1, 1]} : vector<40x32xf32> to vector<8x32xf32>
    %942 = vector.extract_strided_slice %938 {offsets = [0, 0], sizes = [8, 64], strides = [1, 1]} : vector<40x64xf32> to vector<8x64xf32>
    %943 = tpu.concatenate %942, %942, %942, %942 in 0 : vector<8x64xf32>, vector<8x64xf32>, vector<8x64xf32>, vector<8x64xf32> -> vector<32x64xf32>
    %944 = arith.mulf %943, %0 : vector<32x64xf32>
    %945 = vector.extract_strided_slice %944 {offsets = [0, 0], sizes = [32, 32], strides = [1, 1]} : vector<32x64xf32> to vector<32x32xf32>
    %946 = arith.truncf %941 : vector<8x32xf32> to vector<8x32xbf16>
    %947 = arith.truncf %945 : vector<32x32xf32> to vector<32x32xbf16>
    %cst_305 = arith.constant dense<0.000000e+00> : vector<8x32xf32>
    %948 = tpu.matmul %946, %947, %cst_305 {dimension_numbers = #tpu.dot_dimension_numbers<[1], [1], [0], [0], [0, 0, 1, 0], [], []>} : vector<8x32xbf16>, vector<32x32xbf16>, vector<8x32xf32> -> vector<8x32xf32>
    %cst_306 = arith.constant dense<0xFF800000> : vector<8xf32>
    %949 = vector.multi_reduction <maximumf>, %948, %cst_306 [1] : vector<8x32xf32> to vector<8xf32>
    %950 = vector.shape_cast %949 : vector<8xf32> to vector<8x1xf32>
    %951 = vector.broadcast %950 : vector<8x1xf32> to vector<8x32xf32>
    %952 = arith.subf %948, %951 : vector<8x32xf32>
    %953 = math.exp %952 : vector<8x32xf32>
    %954 = arith.truncf %953 : vector<8x32xf32> to vector<8x32xbf16>
    %cst_307 = arith.constant dense<0.000000e+00> : vector<8x32xf32>
    %955 = tpu.matmul %954, %2, %cst_307 {dimension_numbers = #tpu.dot_dimension_numbers<[1], [0], [0], [1], [0, 0, 1, 1], [], []>} : vector<8x32xbf16>, vector<32x32xbf16>, vector<8x32xf32> -> vector<8x32xf32>
    %956 = tpu.reciprocal %955 {approx = true} : vector<8x32xf32> -> vector<8x32xf32>
    %957 = arith.mulf %953, %956 : vector<8x32xf32>
    %958 = vector.extract_strided_slice %944 {offsets = [0, 32], sizes = [32, 32], strides = [1, 1]} : vector<32x64xf32> to vector<32x32xf32>
    %959 = arith.truncf %957 : vector<8x32xf32> to vector<8x32xbf16>
    %960 = arith.truncf %958 : vector<32x32xf32> to vector<32x32xbf16>
    %cst_308 = arith.constant dense<0.000000e+00> : vector<8x32xf32>
    %961 = tpu.matmul %959, %960, %cst_308 {dimension_numbers = #tpu.dot_dimension_numbers<[1], [0], [0], [1], [0, 0, 1, 1], [], []>} : vector<8x32xbf16>, vector<32x32xbf16>, vector<8x32xf32> -> vector<8x32xf32>
    %962 = vector.extract_strided_slice %940 {offsets = [8, 0], sizes = [8, 32], strides = [1, 1]} : vector<40x32xf32> to vector<8x32xf32>
    %963 = vector.extract_strided_slice %938 {offsets = [8, 0], sizes = [8, 64], strides = [1, 1]} : vector<40x64xf32> to vector<8x64xf32>
    %964 = tpu.concatenate %963, %963, %963, %963 in 0 : vector<8x64xf32>, vector<8x64xf32>, vector<8x64xf32>, vector<8x64xf32> -> vector<32x64xf32>
    %965 = arith.mulf %964, %0 : vector<32x64xf32>
    %966 = vector.extract_strided_slice %965 {offsets = [0, 0], sizes = [32, 32], strides = [1, 1]} : vector<32x64xf32> to vector<32x32xf32>
    %967 = arith.truncf %962 : vector<8x32xf32> to vector<8x32xbf16>
    %968 = arith.truncf %966 : vector<32x32xf32> to vector<32x32xbf16>
    %cst_309 = arith.constant dense<0.000000e+00> : vector<8x32xf32>
    %969 = tpu.matmul %967, %968, %cst_309 {dimension_numbers = #tpu.dot_dimension_numbers<[1], [1], [0], [0], [0, 0, 1, 0], [], []>} : vector<8x32xbf16>, vector<32x32xbf16>, vector<8x32xf32> -> vector<8x32xf32>
    %cst_310 = arith.constant dense<0xFF800000> : vector<8xf32>
    %970 = vector.multi_reduction <maximumf>, %969, %cst_310 [1] : vector<8x32xf32> to vector<8xf32>
    %971 = vector.shape_cast %970 : vector<8xf32> to vector<8x1xf32>
    %972 = vector.broadcast %971 : vector<8x1xf32> to vector<8x32xf32>
    %973 = arith.subf %969, %972 : vector<8x32xf32>
    %974 = math.exp %973 : vector<8x32xf32>
    %975 = arith.truncf %974 : vector<8x32xf32> to vector<8x32xbf16>
    %cst_311 = arith.constant dense<0.000000e+00> : vector<8x32xf32>
    %976 = tpu.matmul %975, %2, %cst_311 {dimension_numbers = #tpu.dot_dimension_numbers<[1], [0], [0], [1], [0, 0, 1, 1], [], []>} : vector<8x32xbf16>, vector<32x32xbf16>, vector<8x32xf32> -> vector<8x32xf32>
    %977 = tpu.reciprocal %976 {approx = true} : vector<8x32xf32> -> vector<8x32xf32>
    %978 = arith.mulf %974, %977 : vector<8x32xf32>
    %979 = vector.extract_strided_slice %965 {offsets = [0, 32], sizes = [32, 32], strides = [1, 1]} : vector<32x64xf32> to vector<32x32xf32>
    %980 = arith.truncf %978 : vector<8x32xf32> to vector<8x32xbf16>
    %981 = arith.truncf %979 : vector<32x32xf32> to vector<32x32xbf16>
    %cst_312 = arith.constant dense<0.000000e+00> : vector<8x32xf32>
    %982 = tpu.matmul %980, %981, %cst_312 {dimension_numbers = #tpu.dot_dimension_numbers<[1], [0], [0], [1], [0, 0, 1, 1], [], []>} : vector<8x32xbf16>, vector<32x32xbf16>, vector<8x32xf32> -> vector<8x32xf32>
    %983 = vector.extract_strided_slice %940 {offsets = [16, 0], sizes = [8, 32], strides = [1, 1]} : vector<40x32xf32> to vector<8x32xf32>
    %984 = vector.extract_strided_slice %938 {offsets = [16, 0], sizes = [8, 64], strides = [1, 1]} : vector<40x64xf32> to vector<8x64xf32>
    %985 = tpu.concatenate %984, %984, %984, %984 in 0 : vector<8x64xf32>, vector<8x64xf32>, vector<8x64xf32>, vector<8x64xf32> -> vector<32x64xf32>
    %986 = arith.mulf %985, %0 : vector<32x64xf32>
    %987 = vector.extract_strided_slice %986 {offsets = [0, 0], sizes = [32, 32], strides = [1, 1]} : vector<32x64xf32> to vector<32x32xf32>
    %988 = arith.truncf %983 : vector<8x32xf32> to vector<8x32xbf16>
    %989 = arith.truncf %987 : vector<32x32xf32> to vector<32x32xbf16>
    %cst_313 = arith.constant dense<0.000000e+00> : vector<8x32xf32>
    %990 = tpu.matmul %988, %989, %cst_313 {dimension_numbers = #tpu.dot_dimension_numbers<[1], [1], [0], [0], [0, 0, 1, 0], [], []>} : vector<8x32xbf16>, vector<32x32xbf16>, vector<8x32xf32> -> vector<8x32xf32>
    %cst_314 = arith.constant dense<0xFF800000> : vector<8xf32>
    %991 = vector.multi_reduction <maximumf>, %990, %cst_314 [1] : vector<8x32xf32> to vector<8xf32>
    %992 = vector.shape_cast %991 : vector<8xf32> to vector<8x1xf32>
    %993 = vector.broadcast %992 : vector<8x1xf32> to vector<8x32xf32>
    %994 = arith.subf %990, %993 : vector<8x32xf32>
    %995 = math.exp %994 : vector<8x32xf32>
    %996 = arith.truncf %995 : vector<8x32xf32> to vector<8x32xbf16>
    %cst_315 = arith.constant dense<0.000000e+00> : vector<8x32xf32>
    %997 = tpu.matmul %996, %2, %cst_315 {dimension_numbers = #tpu.dot_dimension_numbers<[1], [0], [0], [1], [0, 0, 1, 1], [], []>} : vector<8x32xbf16>, vector<32x32xbf16>, vector<8x32xf32> -> vector<8x32xf32>
    %998 = tpu.reciprocal %997 {approx = true} : vector<8x32xf32> -> vector<8x32xf32>
    %999 = arith.mulf %995, %998 : vector<8x32xf32>
    %1000 = vector.extract_strided_slice %986 {offsets = [0, 32], sizes = [32, 32], strides = [1, 1]} : vector<32x64xf32> to vector<32x32xf32>
    %1001 = arith.truncf %999 : vector<8x32xf32> to vector<8x32xbf16>
    %1002 = arith.truncf %1000 : vector<32x32xf32> to vector<32x32xbf16>
    %cst_316 = arith.constant dense<0.000000e+00> : vector<8x32xf32>
    %1003 = tpu.matmul %1001, %1002, %cst_316 {dimension_numbers = #tpu.dot_dimension_numbers<[1], [0], [0], [1], [0, 0, 1, 1], [], []>} : vector<8x32xbf16>, vector<32x32xbf16>, vector<8x32xf32> -> vector<8x32xf32>
    %1004 = vector.extract_strided_slice %940 {offsets = [24, 0], sizes = [8, 32], strides = [1, 1]} : vector<40x32xf32> to vector<8x32xf32>
    %1005 = vector.extract_strided_slice %938 {offsets = [24, 0], sizes = [8, 64], strides = [1, 1]} : vector<40x64xf32> to vector<8x64xf32>
    %1006 = tpu.concatenate %1005, %1005, %1005, %1005 in 0 : vector<8x64xf32>, vector<8x64xf32>, vector<8x64xf32>, vector<8x64xf32> -> vector<32x64xf32>
    %1007 = arith.mulf %1006, %0 : vector<32x64xf32>
    %1008 = vector.extract_strided_slice %1007 {offsets = [0, 0], sizes = [32, 32], strides = [1, 1]} : vector<32x64xf32> to vector<32x32xf32>
    %1009 = arith.truncf %1004 : vector<8x32xf32> to vector<8x32xbf16>
    %1010 = arith.truncf %1008 : vector<32x32xf32> to vector<32x32xbf16>
    %cst_317 = arith.constant dense<0.000000e+00> : vector<8x32xf32>
    %1011 = tpu.matmul %1009, %1010, %cst_317 {dimension_numbers = #tpu.dot_dimension_numbers<[1], [1], [0], [0], [0, 0, 1, 0], [], []>} : vector<8x32xbf16>, vector<32x32xbf16>, vector<8x32xf32> -> vector<8x32xf32>
    %cst_318 = arith.constant dense<0xFF800000> : vector<8xf32>
    %1012 = vector.multi_reduction <maximumf>, %1011, %cst_318 [1] : vector<8x32xf32> to vector<8xf32>
    %1013 = vector.shape_cast %1012 : vector<8xf32> to vector<8x1xf32>
    %1014 = vector.broadcast %1013 : vector<8x1xf32> to vector<8x32xf32>
    %1015 = arith.subf %1011, %1014 : vector<8x32xf32>
    %1016 = math.exp %1015 : vector<8x32xf32>
    %1017 = arith.truncf %1016 : vector<8x32xf32> to vector<8x32xbf16>
    %cst_319 = arith.constant dense<0.000000e+00> : vector<8x32xf32>
    %1018 = tpu.matmul %1017, %2, %cst_319 {dimension_numbers = #tpu.dot_dimension_numbers<[1], [0], [0], [1], [0, 0, 1, 1], [], []>} : vector<8x32xbf16>, vector<32x32xbf16>, vector<8x32xf32> -> vector<8x32xf32>
    %1019 = tpu.reciprocal %1018 {approx = true} : vector<8x32xf32> -> vector<8x32xf32>
    %1020 = arith.mulf %1016, %1019 : vector<8x32xf32>
    %1021 = vector.extract_strided_slice %1007 {offsets = [0, 32], sizes = [32, 32], strides = [1, 1]} : vector<32x64xf32> to vector<32x32xf32>
    %1022 = arith.truncf %1020 : vector<8x32xf32> to vector<8x32xbf16>
    %1023 = arith.truncf %1021 : vector<32x32xf32> to vector<32x32xbf16>
    %cst_320 = arith.constant dense<0.000000e+00> : vector<8x32xf32>
    %1024 = tpu.matmul %1022, %1023, %cst_320 {dimension_numbers = #tpu.dot_dimension_numbers<[1], [0], [0], [1], [0, 0, 1, 1], [], []>} : vector<8x32xbf16>, vector<32x32xbf16>, vector<8x32xf32> -> vector<8x32xf32>
    %1025 = vector.extract_strided_slice %940 {offsets = [32, 0], sizes = [8, 32], strides = [1, 1]} : vector<40x32xf32> to vector<8x32xf32>
    %1026 = vector.extract_strided_slice %938 {offsets = [32, 0], sizes = [8, 64], strides = [1, 1]} : vector<40x64xf32> to vector<8x64xf32>
    %1027 = tpu.concatenate %1026, %1026, %1026, %1026 in 0 : vector<8x64xf32>, vector<8x64xf32>, vector<8x64xf32>, vector<8x64xf32> -> vector<32x64xf32>
    %1028 = arith.mulf %1027, %0 : vector<32x64xf32>
    %1029 = vector.extract_strided_slice %1028 {offsets = [0, 0], sizes = [32, 32], strides = [1, 1]} : vector<32x64xf32> to vector<32x32xf32>
    %1030 = arith.truncf %1025 : vector<8x32xf32> to vector<8x32xbf16>
    %1031 = arith.truncf %1029 : vector<32x32xf32> to vector<32x32xbf16>
    %cst_321 = arith.constant dense<0.000000e+00> : vector<8x32xf32>
    %1032 = tpu.matmul %1030, %1031, %cst_321 {dimension_numbers = #tpu.dot_dimension_numbers<[1], [1], [0], [0], [0, 0, 1, 0], [], []>} : vector<8x32xbf16>, vector<32x32xbf16>, vector<8x32xf32> -> vector<8x32xf32>
    %cst_322 = arith.constant dense<0xFF800000> : vector<8xf32>
    %1033 = vector.multi_reduction <maximumf>, %1032, %cst_322 [1] : vector<8x32xf32> to vector<8xf32>
    %1034 = vector.shape_cast %1033 : vector<8xf32> to vector<8x1xf32>
    %1035 = vector.broadcast %1034 : vector<8x1xf32> to vector<8x32xf32>
    %1036 = arith.subf %1032, %1035 : vector<8x32xf32>
    %1037 = math.exp %1036 : vector<8x32xf32>
    %1038 = arith.truncf %1037 : vector<8x32xf32> to vector<8x32xbf16>
    %cst_323 = arith.constant dense<0.000000e+00> : vector<8x32xf32>
    %1039 = tpu.matmul %1038, %2, %cst_323 {dimension_numbers = #tpu.dot_dimension_numbers<[1], [0], [0], [1], [0, 0, 1, 1], [], []>} : vector<8x32xbf16>, vector<32x32xbf16>, vector<8x32xf32> -> vector<8x32xf32>
    %1040 = tpu.reciprocal %1039 {approx = true} : vector<8x32xf32> -> vector<8x32xf32>
    %1041 = arith.mulf %1037, %1040 : vector<8x32xf32>
    %1042 = vector.extract_strided_slice %1028 {offsets = [0, 32], sizes = [32, 32], strides = [1, 1]} : vector<32x64xf32> to vector<32x32xf32>
    %1043 = arith.truncf %1041 : vector<8x32xf32> to vector<8x32xbf16>
    %1044 = arith.truncf %1042 : vector<32x32xf32> to vector<32x32xbf16>
    %cst_324 = arith.constant dense<0.000000e+00> : vector<8x32xf32>
    %1045 = tpu.matmul %1043, %1044, %cst_324 {dimension_numbers = #tpu.dot_dimension_numbers<[1], [0], [0], [1], [0, 0, 1, 1], [], []>} : vector<8x32xbf16>, vector<32x32xbf16>, vector<8x32xf32> -> vector<8x32xf32>
    %1046 = tpu.concatenate %961, %982, %1003, %1024, %1045 in 0 : vector<8x32xf32>, vector<8x32xf32>, vector<8x32xf32>, vector<8x32xf32>, vector<8x32xf32> -> vector<40x32xf32>
    %c1_325 = arith.constant 1 : index
    %c0_326 = arith.constant 0 : index
    %c0_327 = arith.constant 0 : index
    %1047 = vector.load %arg20[%c1_325, %c0_326, %c0_327] : memref<2x32x32xbf16, #tpu.memory_space<vmem>>, vector<1x32x32xbf16>
    %1048 = vector.shape_cast %1047 : vector<1x32x32xbf16> to vector<32x32xbf16>
    %1049 = arith.truncf %1046 : vector<40x32xf32> to vector<40x32xbf16>
    %cst_328 = arith.constant dense<0.000000e+00> : vector<40x32xf32>
    %1050 = tpu.matmul %1049, %1048, %cst_328 {dimension_numbers = #tpu.dot_dimension_numbers<[1], [0], [0], [1], [0, 0, 1, 1], [], []>} : vector<40x32xbf16>, vector<32x32xbf16>, vector<40x32xf32> -> vector<40x32xf32>
    %c1_329 = arith.constant 1 : index
    %c0_330 = arith.constant 0 : index
    %c0_331 = arith.constant 0 : index
    %1051 = vector.load %arg21[%c1_329, %c0_330, %c0_331] : memref<2x1x32xf32, #tpu.memory_space<vmem>>, vector<1x1x32xf32>
    %1052 = vector.shape_cast %1051 : vector<1x1x32xf32> to vector<1x32xf32>
    %1053 = vector.broadcast %1052 : vector<1x32xf32> to vector<40x32xf32>
    %1054 = arith.addf %1050, %1053 : vector<40x32xf32>
    %1055 = arith.addf %922, %1054 : vector<40x32xf32>
    %1056 = vector.extract_strided_slice %766 {offsets = [2, 0], sizes = [1, 32], strides = [1, 1]} : vector<6x32xf32> to vector<1x32xf32>
    %1057 = vector.extract_strided_slice %766 {offsets = [3, 0], sizes = [1, 32], strides = [1, 1]} : vector<6x32xf32> to vector<1x32xf32>
    %cst_332 = arith.constant dense<0.000000e+00> : vector<40xf32>
    %1058 = vector.multi_reduction <add>, %1055, %cst_332 [1] : vector<40x32xf32> to vector<40xf32>
    %1059 = vector.shape_cast %1058 : vector<40xf32> to vector<40x1xf32>
    %cst_333 = arith.constant 3.200000e+01 : f32
    %1060 = vector.broadcast %cst_333 : f32 to vector<40x1xf32>
    %1061 = arith.divf %1059, %1060 : vector<40x1xf32>
    %1062 = vector.broadcast %1061 : vector<40x1xf32> to vector<40x32xf32>
    %1063 = arith.subf %1055, %1062 : vector<40x32xf32>
    %1064 = arith.mulf %1063, %1063 : vector<40x32xf32>
    %cst_334 = arith.constant dense<0.000000e+00> : vector<40xf32>
    %1065 = vector.multi_reduction <add>, %1064, %cst_334 [1] : vector<40x32xf32> to vector<40xf32>
    %1066 = vector.shape_cast %1065 : vector<40xf32> to vector<40x1xf32>
    %cst_335 = arith.constant 3.200000e+01 : f32
    %1067 = vector.broadcast %cst_335 : f32 to vector<40x1xf32>
    %1068 = arith.divf %1066, %1067 : vector<40x1xf32>
    %1069 = vector.broadcast %1061 : vector<40x1xf32> to vector<40x32xf32>
    %1070 = arith.subf %1055, %1069 : vector<40x32xf32>
    %cst_336 = arith.constant 9.99999997E-7 : f32
    %1071 = vector.broadcast %cst_336 : f32 to vector<40x1xf32>
    %1072 = arith.addf %1068, %1071 : vector<40x1xf32>
    %1073 = math.rsqrt %1072 : vector<40x1xf32>
    %1074 = vector.broadcast %1073 : vector<40x1xf32> to vector<40x32xf32>
    %1075 = arith.mulf %1070, %1074 : vector<40x32xf32>
    %1076 = vector.broadcast %1056 : vector<1x32xf32> to vector<40x32xf32>
    %1077 = arith.mulf %1075, %1076 : vector<40x32xf32>
    %1078 = vector.broadcast %1057 : vector<1x32xf32> to vector<40x32xf32>
    %1079 = arith.addf %1077, %1078 : vector<40x32xf32>
    %c1_337 = arith.constant 1 : index
    %c0_338 = arith.constant 0 : index
    %c0_339 = arith.constant 0 : index
    %1080 = vector.load %arg23[%c1_337, %c0_338, %c0_339] : memref<2x32x64xbf16, #tpu.memory_space<vmem>>, vector<1x32x64xbf16>
    %1081 = vector.shape_cast %1080 : vector<1x32x64xbf16> to vector<32x64xbf16>
    %1082 = arith.truncf %1079 : vector<40x32xf32> to vector<40x32xbf16>
    %cst_340 = arith.constant dense<0.000000e+00> : vector<40x64xf32>
    %1083 = tpu.matmul %1082, %1081, %cst_340 {dimension_numbers = #tpu.dot_dimension_numbers<[1], [0], [0], [1], [0, 0, 1, 1], [], []>} : vector<40x32xbf16>, vector<32x64xbf16>, vector<40x64xf32> -> vector<40x64xf32>
    %c1_341 = arith.constant 1 : index
    %c0_342 = arith.constant 0 : index
    %c0_343 = arith.constant 0 : index
    %1084 = vector.load %arg24[%c1_341, %c0_342, %c0_343] : memref<2x1x64xf32, #tpu.memory_space<vmem>>, vector<1x1x64xf32>
    %1085 = vector.shape_cast %1084 : vector<1x1x64xf32> to vector<1x64xf32>
    %1086 = vector.broadcast %1085 : vector<1x64xf32> to vector<40x64xf32>
    %1087 = arith.addf %1083, %1086 : vector<40x64xf32>
    %cst_344 = arith.constant 0.000000e+00 : f32
    %1088 = vector.broadcast %cst_344 : f32 to vector<40x64xf32>
    %1089 = arith.maximumf %1087, %1088 : vector<40x64xf32>
    %c1_345 = arith.constant 1 : index
    %c0_346 = arith.constant 0 : index
    %c0_347 = arith.constant 0 : index
    %1090 = vector.load %arg25[%c1_345, %c0_346, %c0_347] : memref<2x64x32xbf16, #tpu.memory_space<vmem>>, vector<1x64x32xbf16>
    %1091 = vector.shape_cast %1090 : vector<1x64x32xbf16> to vector<64x32xbf16>
    %1092 = arith.truncf %1089 : vector<40x64xf32> to vector<40x64xbf16>
    %cst_348 = arith.constant dense<0.000000e+00> : vector<40x32xf32>
    %1093 = tpu.matmul %1092, %1091, %cst_348 {dimension_numbers = #tpu.dot_dimension_numbers<[1], [0], [0], [1], [0, 0, 1, 1], [], []>} : vector<40x64xbf16>, vector<64x32xbf16>, vector<40x32xf32> -> vector<40x32xf32>
    %c1_349 = arith.constant 1 : index
    %c0_350 = arith.constant 0 : index
    %c0_351 = arith.constant 0 : index
    %1094 = vector.load %arg26[%c1_349, %c0_350, %c0_351] : memref<2x1x32xf32, #tpu.memory_space<vmem>>, vector<1x1x32xf32>
    %1095 = vector.shape_cast %1094 : vector<1x1x32xf32> to vector<1x32xf32>
    %1096 = vector.broadcast %1095 : vector<1x32xf32> to vector<40x32xf32>
    %1097 = arith.addf %1093, %1096 : vector<40x32xf32>
    %1098 = arith.addf %1079, %1097 : vector<40x32xf32>
    %1099 = vector.extract_strided_slice %766 {offsets = [4, 0], sizes = [1, 32], strides = [1, 1]} : vector<6x32xf32> to vector<1x32xf32>
    %1100 = vector.extract_strided_slice %766 {offsets = [5, 0], sizes = [1, 32], strides = [1, 1]} : vector<6x32xf32> to vector<1x32xf32>
    %cst_352 = arith.constant dense<0.000000e+00> : vector<40xf32>
    %1101 = vector.multi_reduction <add>, %1098, %cst_352 [1] : vector<40x32xf32> to vector<40xf32>
    %1102 = vector.shape_cast %1101 : vector<40xf32> to vector<40x1xf32>
    %cst_353 = arith.constant 3.200000e+01 : f32
    %1103 = vector.broadcast %cst_353 : f32 to vector<40x1xf32>
    %1104 = arith.divf %1102, %1103 : vector<40x1xf32>
    %1105 = vector.broadcast %1104 : vector<40x1xf32> to vector<40x32xf32>
    %1106 = arith.subf %1098, %1105 : vector<40x32xf32>
    %1107 = arith.mulf %1106, %1106 : vector<40x32xf32>
    %cst_354 = arith.constant dense<0.000000e+00> : vector<40xf32>
    %1108 = vector.multi_reduction <add>, %1107, %cst_354 [1] : vector<40x32xf32> to vector<40xf32>
    %1109 = vector.shape_cast %1108 : vector<40xf32> to vector<40x1xf32>
    %cst_355 = arith.constant 3.200000e+01 : f32
    %1110 = vector.broadcast %cst_355 : f32 to vector<40x1xf32>
    %1111 = arith.divf %1109, %1110 : vector<40x1xf32>
    %1112 = vector.broadcast %1104 : vector<40x1xf32> to vector<40x32xf32>
    %1113 = arith.subf %1098, %1112 : vector<40x32xf32>
    %cst_356 = arith.constant 9.99999997E-7 : f32
    %1114 = vector.broadcast %cst_356 : f32 to vector<40x1xf32>
    %1115 = arith.addf %1111, %1114 : vector<40x1xf32>
    %1116 = math.rsqrt %1115 : vector<40x1xf32>
    %1117 = vector.broadcast %1116 : vector<40x1xf32> to vector<40x32xf32>
    %1118 = arith.mulf %1113, %1117 : vector<40x32xf32>
    %1119 = vector.broadcast %1099 : vector<1x32xf32> to vector<40x32xf32>
    %1120 = arith.mulf %1118, %1119 : vector<40x32xf32>
    %1121 = vector.broadcast %1100 : vector<1x32xf32> to vector<40x32xf32>
    %1122 = arith.addf %1120, %1121 : vector<40x32xf32>
    %1123 = vector.extract_strided_slice %1122 {offsets = [0, 0], sizes = [8, 32], strides = [1, 1]} : vector<40x32xf32> to vector<8x32xf32>
    %1124 = vector.extract_strided_slice %1122 {offsets = [8, 0], sizes = [8, 32], strides = [1, 1]} : vector<40x32xf32> to vector<8x32xf32>
    %1125 = vector.extract_strided_slice %1122 {offsets = [16, 0], sizes = [8, 32], strides = [1, 1]} : vector<40x32xf32> to vector<8x32xf32>
    %1126 = vector.extract_strided_slice %1122 {offsets = [24, 0], sizes = [8, 32], strides = [1, 1]} : vector<40x32xf32> to vector<8x32xf32>
    %1127 = vector.extract_strided_slice %1122 {offsets = [32, 0], sizes = [8, 32], strides = [1, 1]} : vector<40x32xf32> to vector<8x32xf32>
    %1128 = tpu.concatenate %1123, %1124, %1125, %1126, %1127 in 1 : vector<8x32xf32>, vector<8x32xf32>, vector<8x32xf32>, vector<8x32xf32>, vector<8x32xf32> -> vector<8x160xf32>
    %c0_357 = arith.constant 0 : index
    %c0_358 = arith.constant 0 : index
    %1129 = vector.load %arg27[%c0_357, %c0_358] : memref<160x512xbf16, #tpu.memory_space<vmem>>, vector<160x512xbf16>
    %1130 = arith.truncf %1128 : vector<8x160xf32> to vector<8x160xbf16>
    %cst_359 = arith.constant dense<0.000000e+00> : vector<8x512xf32>
    %1131 = tpu.matmul %1130, %1129, %cst_359 {dimension_numbers = #tpu.dot_dimension_numbers<[1], [0], [0], [1], [0, 0, 1, 1], [], []>} : vector<8x160xbf16>, vector<160x512xbf16>, vector<8x512xf32> -> vector<8x512xf32>
    %c0_360 = arith.constant 0 : index
    %c0_361 = arith.constant 0 : index
    %1132 = vector.load %arg28[%c0_360, %c0_361] : memref<1x512xf32, #tpu.memory_space<vmem>>, vector<1x512xf32>
    %1133 = vector.broadcast %1132 : vector<1x512xf32> to vector<8x512xf32>
    %1134 = arith.addf %1131, %1133 : vector<8x512xf32>
    %c0_362 = arith.constant 0 : index
    %c0_363 = arith.constant 0 : index
    %1135 = vector.load %arg32[%c0_362, %c0_363] : memref<4x512xf32, #tpu.memory_space<vmem>>, vector<4x512xf32>
    %1136 = vector.extract_strided_slice %1135 {offsets = [0, 0], sizes = [1, 512], strides = [1, 1]} : vector<4x512xf32> to vector<1x512xf32>
    %1137 = vector.extract_strided_slice %1135 {offsets = [1, 0], sizes = [1, 512], strides = [1, 1]} : vector<4x512xf32> to vector<1x512xf32>
    %1138 = vector.extract_strided_slice %1135 {offsets = [2, 0], sizes = [1, 512], strides = [1, 1]} : vector<4x512xf32> to vector<1x512xf32>
    %1139 = vector.extract_strided_slice %1135 {offsets = [3, 0], sizes = [1, 512], strides = [1, 1]} : vector<4x512xf32> to vector<1x512xf32>
    %1140 = arith.addf %1136, %1137 : vector<1x512xf32>
    %1141 = arith.addf %1140, %1138 : vector<1x512xf32>
    %cst_364 = arith.constant dense<0xFF800000> : vector<8xf32>
    %1142 = vector.multi_reduction <maximumf>, %1134, %cst_364 [1] : vector<8x512xf32> to vector<8xf32>
    %1143 = vector.shape_cast %1142 : vector<8xf32> to vector<8x1xf32>
    %1144 = vector.broadcast %1143 : vector<8x1xf32> to vector<8x512xf32>
    %1145 = arith.subf %1134, %1144 : vector<8x512xf32>
    %1146 = math.exp %1145 : vector<8x512xf32>
    %1147 = vector.broadcast %1136 : vector<1x512xf32> to vector<8x512xf32>
    %1148 = arith.mulf %1146, %1147 : vector<8x512xf32>
    %cst_365 = arith.constant dense<0.000000e+00> : vector<8xf32>
    %1149 = vector.multi_reduction <add>, %1148, %cst_365 [1] : vector<8x512xf32> to vector<8xf32>
    %1150 = vector.shape_cast %1149 : vector<8xf32> to vector<8x1xf32>
    %1151 = vector.broadcast %1137 : vector<1x512xf32> to vector<8x512xf32>
    %1152 = arith.mulf %1146, %1151 : vector<8x512xf32>
    %cst_366 = arith.constant dense<0.000000e+00> : vector<8xf32>
    %1153 = vector.multi_reduction <add>, %1152, %cst_366 [1] : vector<8x512xf32> to vector<8xf32>
    %1154 = vector.shape_cast %1153 : vector<8xf32> to vector<8x1xf32>
    %1155 = vector.broadcast %1138 : vector<1x512xf32> to vector<8x512xf32>
    %1156 = arith.mulf %1146, %1155 : vector<8x512xf32>
    %cst_367 = arith.constant dense<0.000000e+00> : vector<8xf32>
    %1157 = vector.multi_reduction <add>, %1156, %cst_367 [1] : vector<8x512xf32> to vector<8xf32>
    %1158 = vector.shape_cast %1157 : vector<8xf32> to vector<8x1xf32>
    %1159 = vector.broadcast %1136 : vector<1x512xf32> to vector<8x512xf32>
    %1160 = vector.broadcast %1150 : vector<8x1xf32> to vector<8x512xf32>
    %1161 = arith.mulf %1159, %1160 : vector<8x512xf32>
    %1162 = vector.broadcast %1137 : vector<1x512xf32> to vector<8x512xf32>
    %1163 = vector.broadcast %1154 : vector<8x1xf32> to vector<8x512xf32>
    %1164 = arith.mulf %1162, %1163 : vector<8x512xf32>
    %1165 = arith.addf %1161, %1164 : vector<8x512xf32>
    %1166 = vector.broadcast %1138 : vector<1x512xf32> to vector<8x512xf32>
    %1167 = vector.broadcast %1158 : vector<8x1xf32> to vector<8x512xf32>
    %1168 = arith.mulf %1166, %1167 : vector<8x512xf32>
    %1169 = arith.addf %1165, %1168 : vector<8x512xf32>
    %cst_368 = arith.constant 1.000000e+00 : f32
    %1170 = vector.broadcast %cst_368 : f32 to vector<1x512xf32>
    %1171 = arith.subf %1170, %1141 : vector<1x512xf32>
    %1172 = vector.broadcast %1171 : vector<1x512xf32> to vector<8x512xf32>
    %1173 = arith.addf %1169, %1172 : vector<8x512xf32>
    %1174 = arith.divf %1146, %1173 : vector<8x512xf32>
    %cst_369 = arith.constant 5.000000e-01 : f32
    %1175 = vector.broadcast %cst_369 : f32 to vector<1x512xf32>
    %1176 = arith.cmpf ogt, %1139, %1175 : vector<1x512xf32>
    %1177 = arith.negf %1134 : vector<8x512xf32>
    %1178 = math.exp %1177 : vector<8x512xf32>
    %cst_370 = arith.constant 1.000000e+00 : f32
    %1179 = vector.broadcast %cst_370 : f32 to vector<8x512xf32>
    %1180 = arith.addf %1179, %1178 : vector<8x512xf32>
    %1181 = arith.divf %1179, %1180 : vector<8x512xf32>
    %1182 = vector.shape_cast %1176 : vector<1x512xi1> to vector<1x512xi1>
    %1183 = vector.broadcast %1182 : vector<1x512xi1> to vector<8x512xi1>
    %1184 = arith.select %1183, %1181, %1174 : vector<8x512xi1>, vector<8x512xf32>
    %c0_371 = arith.constant 0 : index
    %c0_372 = arith.constant 0 : index
    %1185 = vector.load %arg33[%c0_371, %c0_372] : memref<8x512xf32, #tpu.memory_space<vmem>>, vector<8x512xf32>
    tpu.vector_store %arg33[%c0_371, %c0_372], %1184 {strides = array<i32>} : memref<8x512xf32, #tpu.memory_space<vmem>>, vector<8x512xf32>,
    return
  }
}

</mosaic_0001>

<bundles_post_ra>
// kernel: transformer_forward.1
= control target key start
LH: loop header
LB: loop body
LE: loop exit
PB: predicated region body
PF: predicated region fallthrough
CT: control target
= control target key end

     0   :  { %s12501_s6 = smov 1   ;;  %s12502_s10 = smov 2   ;;  %s15572_s0 = inlined_call_operand.smem [shape: u32[34], index: -1, kind: input, shape index: {}] }
   0x1   :  { %s12566_s5 = sld [smem:[%s15572_s0]]   ;;  %s12503_s14 = smov 3  }
   0x2   :  { %s12571_s9 = sld [smem:[%s15572_s0 + %s12501_s6]]   ;;  %s12504_s18 = smov 4  }
   0x3   :  { %s12576_s13 = sld [smem:[%s15572_s0 + %s12502_s10]]   ;;  %s12505_s22 = smov 5  }
   0x4   :  { %s12581_s17 = sld [smem:[%s15572_s0 + %s12503_s14]]   ;;  %s12506_s26 = smov 6  }
   0x5   :  { %s12586_s21 = sld [smem:[%s15572_s0 + %s12504_s18]]   ;;  %s12507_s30 = smov 7  }
   0x6   :  { %s12591_s25 = sld [smem:[%s15572_s0 + %s12505_s22]]   ;;  %s12508_s4 = smov 8  }
   0x7   :  { %s12596_s29 = sld [smem:[%s15572_s0 + %s12506_s26]]   ;;  %s12509_s10 = smov 9  }
   0x8   :  { %15589 = sst [smem:[#allocation32_spill]] %s12571_s9  ;;  %s12510_s15 = smov 10  }
   0x9   :  { %15590 = sst [smem:[#allocation33_spill]] %s12576_s13  ;;  %s12511_s20 = smov 11  }
   0xa   :  { %15591 = sst [smem:[#allocation34_spill]] %s12581_s17  ;;  %s12512_s26 = smov 12  }
   0xb   :  { %s12601_s3 = sld [smem:[%s15572_s0 + %s12507_s30]]   ;;  %s12513_s1 = smov 13  }
   0xc   :  { %15592 = sst [smem:[#allocation35_spill]] %s12591_s25  ;;  %s12514_s7 = smov 14  }
   0xd   :  { %s12606_s8 = sld [smem:[%s15572_s0 + %s12508_s4]]   ;;  %s12516_s22 = smov 16  }
   0xe   :  { %s12611_s14 = sld [smem:[%s15572_s0 + %s12509_s10]]   ;;  %s12517_s28 = smov 17  }
   0xf   :  { %s12616_s19 = sld [smem:[%s15572_s0 + %s12510_s15]]   ;;  %s12515_s15 = smov 15  }
  0x10   :  { %s12621_s24 = sld [smem:[%s15572_s0 + %s12511_s20]]  }
  0x11   :  { %s12626_s30 = sld [smem:[%s15572_s0 + %s12512_s26]]  }
  0x12   :  { %s12631_s6 = sld [smem:[%s15572_s0 + %s12513_s1]]  }
  0x13   :  { %15593 = sst [smem:[#allocation36_spill]] %s12606_s8 }
  0x14   :  { %s12636_s12 = sld [smem:[%s15572_s0 + %s12514_s7]]   ;;  %s12518_s7 = smov 18  }
  0x15   :  { %15594 = sst [smem:[#allocation37_spill]] %s12616_s19 }
  0x16   :  { %s12641_s20 = sld [smem:[%s15572_s0 + %s12515_s15]]   ;;  %s12519_s15 = smov 19  }
  0x17   :  { %15595 = sst [smem:[#allocation38_spill]] %s12626_s30 }
  0x18   :  { %s12646_s27 = sld [smem:[%s15572_s0 + %s12516_s22]]   ;;  %s12520_s22 = smov 20  }
  0x19   :  { %s12651_s4 = sld [smem:[%s15572_s0 + %s12517_s28]]   ;;  %s12521_s28 = smov 21  }
  0x1a   :  { %15596 = sst [smem:[#allocation39_spill]] %s12636_s12 }
  0x1b   :  { %s12656_s12 = sld [smem:[%s15572_s0 + %s12518_s7]]   ;;  %s12522_s7 = smov 22  }
  0x1c   :  { %s12661_s30 = sld [smem:[%s15572_s0 + %s12519_s15]]   ;;  %s12523_s15 = smov 23  }
  0x1d   :  { %s12671_s19 = sld [smem:[%s15572_s0 + %s12521_s28]]   ;;  %s12525_s28 = smov 25  }
  0x1e   :  { %15597 = sst [smem:[#allocation40_spill]] %s12646_s27 }
  0x1f   :  { %s12666_s27 = sld [smem:[%s15572_s0 + %s12520_s22]]   ;;  %s12524_s22 = smov 24  }
  0x20   :  { %s12681_s8 = sld [smem:[%s15572_s0 + %s12523_s15]]   ;;  %s12527_s15 = smov 27  }
  0x21   :  { %15598 = sst [smem:[#allocation41_spill]] %s12656_s12 }
  0x22   :  { %s12676_s12 = sld [smem:[%s15572_s0 + %s12522_s7]]   ;;  %s12526_s7 = smov 26  }
  0x23   :  { %s12691_s25 = sld [smem:[%s15572_s0 + %s12525_s28]]   ;;  %s12529_s28 = smov 29  }
  0x25   :  { %15599 = sst [smem:[#allocation42_spill]] %s12666_s27 }
  0x26   :  { %15601 = sst [smem:[#allocation44_spill]] %s12681_s8 }
  0x27   :  { %s12686_s27 = sld [smem:[%s15572_s0 + %s12524_s22]]   ;;  %s12528_s22 = smov 28  }
  0x28   :  { %15600 = sst [smem:[#allocation43_spill]] %s12676_s12 }
  0x29   :  { %15602 = sst [smem:[#allocation45_spill]] %s12691_s25 }
  0x2a   :  { %s12696_s12 = sld [smem:[%s15572_s0 + %s12526_s7]]   ;;  %s12530_s7 = smov 30  }
  0x2b   :  { %s12701_s8 = sld [smem:[%s15572_s0 + %s12527_s15]]   ;;  %s12531_s15 = smov 31  }
  0x2c   :  { %s12706_s17 = sld [smem:[%s15572_s0 + %s12528_s22]]   ;;  %s12532_s22 = smov 32  }
  0x2d   :  { %s12711_s25 = sld [smem:[%s15572_s0 + %s12529_s28]]   ;;  %s12533_s28 = smov 33  }
  0x2e   :  { %s12716_s13 = sld [smem:[%s15572_s0 + %s12530_s7]]  }
  0x2f   :  { %s12726_s9 = sld [smem:[%s15572_s0 + %s12532_s22]]  }
  0x31   :  { %15603 = sst [smem:[#allocation46_spill]] %s12701_s8 }
  0x32   :  { %s12721_s8 = sld [smem:[%s15572_s0 + %s12531_s15]]  }
  0x33   :  { %15604 = sst [smem:[#allocation47_spill]] %s12711_s25 }
  0x34   :  { %s12731_s25 = sld [smem:[%s15572_s0 + %s12533_s28]]  }
  0x35   :  { %72 = vsyncpa [#allocation3], 0 }
  0x36   :  { %73 = vsyncpa [#allocation6], 0 }
  0x37   :  { %74 = vsyncpa [#allocation9], 0 }
  0x38   :  { %75 = vsyncpa [#allocation12], 0 }
  0x39   :  { %76 = vsyncpa [#allocation15], 0 }
  0x3a   :  { %77 = vsyncpa [#allocation18], 0 }
  0x3b   :  { %78 = vsyncpa [#allocation21], 0 }
  0x3c   :  { %79 = vsyncpa [#allocation4], 0  ;;  %s12534_s7 = smov [#allocation5]   ;;  %s12535_s11 = smov [#allocation8]  }
  0x3d   :  { %s107_s10 = sshll.u32 %s12534_s7, 4  ;;  %s133_s15 = sshll.u32 %s12535_s11, 4  ;;  %s108_s10 = int_to_ptr.vmem [resolvable:$true] %s107_s10  ;;  %s134_s15 = int_to_ptr.vmem [resolvable:$true] %s133_s15 }
  0x3e   :  { %s12213_s16 = scalar_lea.vmem %s108_s10, 32  ;;  %p12218_p1 = scmp.lt.s32.totalorder %s108_s10, %s108_s10 }
  0x3f   :  { %p12214_p0 = scmp.ne.s32.totalorder %s108_s10, %s12213_s16  ;;  %p12219_p2 = scmp.lt.s32.totalorder %s12213_s16, %s12213_s16 }
  0x41   :  { %p12220_p3 = por %p12219_p2, %p12218_p1 }
  0x43   :  { %p12221_p4 = pnand %p12220_p3, %p12214_p0 }
  0x45   :  { %12224 = shalt.err (!%p12221_p4)
}
  0x46   :  { %s12536_s0 = smov 16   ;;  %s12537_s18 = smov 1  }
  0x47   :  { %113 = dma.hbm_to_vmem [thread:$0]  %s12596_s29, 32, %s108_s10, [#allocation6], %s12536_s0, %s12536_s0, %s12537_s18  }
  0x48   :  { %s12233_s22 = scalar_lea.vmem %s134_s15, 32  ;;  %p12238_p6 = scmp.lt.s32.totalorder %s134_s15, %s134_s15 }
  0x49   :  { %p12234_p5 = scmp.ne.s32.totalorder %s134_s15, %s12233_s22  ;;  %p12239_p7 = scmp.lt.s32.totalorder %s12233_s22, %s12233_s22 }
  0x4b   :  { %p12240_p8 = por %p12239_p7, %p12238_p6 }
  0x4d   :  { %p12241_p9 = pnand %p12240_p8, %p12234_p5 }
  0x4f   :  { %12244 = shalt.err (!%p12241_p9)
}
  0x50   :  { %139 = dma.hbm_to_vmem [thread:$0]  %s12611_s14, 32, %s134_s15, [#allocation9], %s12536_s0, %s12536_s0, %s12537_s18  }
  0x51   :  { %s12538_s23 = smov [#allocation11]   ;;  %s12539_s28 = smov [#allocation14]  }
  0x52   :  { %s161_s26 = sshll.u32 %s12538_s23, 4  ;;  %s189_s1 = sshll.u32 %s12539_s28, 4  ;;  %s162_s26 = int_to_ptr.vmem [resolvable:$true] %s161_s26  ;;  %s190_s1 = int_to_ptr.vmem [resolvable:$true] %s189_s1 }
  0x53   :  { %s12253_s2 = scalar_lea.vmem %s162_s26, 32  ;;  %p12258_p11 = scmp.lt.s32.totalorder %s162_s26, %s162_s26 }
  0x54   :  { %p12254_p10 = scmp.ne.s32.totalorder %s162_s26, %s12253_s2  ;;  %p12259_p12 = scmp.lt.s32.totalorder %s12253_s2, %s12253_s2 }
  0x56   :  { %p12260_p13 = por %p12259_p12, %p12258_p11 }
  0x58   :  { %p12261_p0 = pnand %p12260_p13, %p12254_p10 }
  0x5a   :  { %12264 = shalt.err (!%p12261_p0)
}
  0x5b   :  { %167 = dma.hbm_to_vmem [thread:$0]  %s12631_s6, 32, %s162_s26, [#allocation12], %s12536_s0, %s12536_s0, %s12537_s18  }
  0x5c   :  { %s12273_s29 = scalar_lea.vmem %s190_s1, 32  ;;  %p12278_p2 = scmp.lt.s32.totalorder %s190_s1, %s190_s1 }
  0x5d   :  { %p12274_p1 = scmp.ne.s32.totalorder %s190_s1, %s12273_s29  ;;  %p12279_p3 = scmp.lt.s32.totalorder %s12273_s29, %s12273_s29 }
  0x5f   :  { %p12280_p4 = por %p12279_p3, %p12278_p2 }
  0x61   :  { %p12281_p5 = pnand %p12280_p4, %p12274_p1 }
  0x63   :  { %12284 = shalt.err (!%p12281_p5)
}
  0x64   :  { %195 = dma.hbm_to_vmem [thread:$0]  %s12651_s4, 32, %s190_s1, [#allocation15], %s12536_s0, %s12536_s0, %s12537_s18  }
  0x65   :  { %s12540_s14 = smov [#allocation17]   ;;  %s12541_s10 = smov [#allocation20]  }
  0x66   :  { %s217_s7 = sshll.u32 %s12540_s14, 4  ;;  %s247_s11 = sshll.u32 %s12541_s10, 4  ;;  %s218_s7 = int_to_ptr.vmem [resolvable:$true] %s217_s7  ;;  %s248_s11 = int_to_ptr.vmem [resolvable:$true] %s247_s11 }
  0x67   :  { %s12293_s15 = scalar_lea.vmem %s218_s7, 32  ;;  %p12298_p7 = scmp.lt.s32.totalorder %s218_s7, %s218_s7 }
  0x68   :  { %p12294_p6 = scmp.ne.s32.totalorder %s218_s7, %s12293_s15  ;;  %p12299_p8 = scmp.lt.s32.totalorder %s12293_s15, %s12293_s15 }
  0x6a   :  { %p12300_p9 = por %p12299_p8, %p12298_p7 }
  0x6c   :  { %p12301_p10 = pnand %p12300_p9, %p12294_p6 }
  0x6e   :  { %12304 = shalt.err (!%p12301_p10)
}
  0x6f   :  { %223 = dma.hbm_to_vmem [thread:$0]  %s12671_s19, 32, %s218_s7, [#allocation18], %s12536_s0, %s12536_s0, %s12537_s18  }
  0x70   :  { %s12313_s6 = scalar_lea.vmem %s248_s11, 32  ;;  %p12318_p12 = scmp.lt.s32.totalorder %s248_s11, %s248_s11 }
  0x71   :  { %p12314_p11 = scmp.ne.s32.totalorder %s248_s11, %s12313_s6  ;;  %p12319_p13 = scmp.lt.s32.totalorder %s12313_s6, %s12313_s6 }
  0x73   :  { %p12320_p0 = por %p12319_p13, %p12318_p12 }
  0x75   :  { %p12321_p1 = pnand %p12320_p0, %p12314_p11 }
  0x77   :  { %12324 = shalt.err (!%p12321_p1)
}
  0x78   :  { %253 = dma.hbm_to_vmem [thread:$0]  %s12696_s12, 32, %s248_s11, [#allocation21], %s12536_s0, %s12536_s0, %s12537_s18  }
  0x79   :  { %s12542_s4 = smov [#allocation2]   ;;  %s12543_s22 = smov [#allocation7]  }
  0x7a   :  { %s93_s16 = sshll.u32 %s12542_s4, 4  ;;  %s119_s23 = sshll.u32 %s12543_s22, 4  ;;  %s94_s16 = int_to_ptr.vmem [resolvable:$true] %s93_s16  ;;  %s120_s23 = int_to_ptr.vmem [resolvable:$true] %s119_s23 }
  0x7b   :  { %s12333_s26 = scalar_lea.vmem %s94_s16, 32  ;;  %p12338_p3 = scmp.lt.s32.totalorder %s94_s16, %s94_s16 }
  0x7c   :  { %p12334_p2 = scmp.ne.s32.totalorder %s94_s16, %s12333_s26  ;;  %p12339_p4 = scmp.lt.s32.totalorder %s12333_s26, %s12333_s26 }
  0x7e   :  { %p12340_p5 = por %p12339_p4, %p12338_p3 }
  0x80   :  { %p12341_p6 = pnand %p12340_p5, %p12334_p2 }
  0x82   :  { %12344 = shalt.err (!%p12341_p6)
}
  0x83   :  { %99 = dma.hbm_to_vmem [thread:$0]  %s12586_s21, 32, %s94_s16, [#allocation3], %s12536_s0, %s12536_s0, %s12537_s18  }
  0x84   :  { %s12353_s19 = scalar_lea.vmem %s120_s23, 128  ;;  %p12358_p8 = scmp.lt.s32.totalorder %s120_s23, %s120_s23 }
  0x85   :  { %p12354_p7 = scmp.ne.s32.totalorder %s120_s23, %s12353_s19  ;;  %p12359_p9 = scmp.lt.s32.totalorder %s12353_s19, %s12353_s19 }
  0x87   :  { %p12360_p10 = por %p12359_p9, %p12358_p8 }
  0x89   :  { %p12361_p11 = pnand %p12360_p10, %p12354_p7 }
  0x8b   :  { %12364 = shalt.err (!%p12361_p11)
}
  0x8c   :  { %s12544_s12 = smov 64   ;;  %s12545_s28 = smov 4  }
  0x8d   :  { %125 = dma.hbm_to_vmem [thread:$0]  %s12601_s3, 128, %s120_s23, [#allocation6], %s12544_s12, %s12544_s12, %s12545_s28  }
  0x8e   :  { %s12546_s1 = smov [#allocation10]   ;;  %s12547_s29 = smov [#allocation13]  }
  0x8f   :  { %s147_s2 = sshll.u32 %s12546_s1, 4  ;;  %s175_s14 = sshll.u32 %s12547_s29, 4  ;;  %s148_s2 = int_to_ptr.vmem [resolvable:$true] %s147_s2  ;;  %s176_s14 = int_to_ptr.vmem [resolvable:$true] %s175_s14 }
  0x90   :  { %s12373_s21 = scalar_lea.vmem %s148_s2, 32  ;;  %p12378_p13 = scmp.lt.s32.totalorder %s148_s2, %s148_s2 }
  0x91   :  { %p12374_p12 = scmp.ne.s32.totalorder %s148_s2, %s12373_s21  ;;  %p12379_p0 = scmp.lt.s32.totalorder %s12373_s21, %s12373_s21 }
  0x93   :  { %p12380_p1 = por %p12379_p0, %p12378_p13 }
  0x95   :  { %p12381_p2 = pnand %p12380_p1, %p12374_p12 }
  0x97   :  { %12384 = shalt.err (!%p12381_p2)
}
  0x98   :  { %153 = dma.hbm_to_vmem [thread:$0]  %s12621_s24, 32, %s148_s2, [#allocation9], %s12536_s0, %s12536_s0, %s12537_s18  }
  0x99   :  { %s12393_s7 = scalar_lea.vmem %s176_s14, 32  ;;  %p12398_p4 = scmp.lt.s32.totalorder %s176_s14, %s176_s14 }
  0x9a   :  { %p12394_p3 = scmp.ne.s32.totalorder %s176_s14, %s12393_s7  ;;  %p12399_p5 = scmp.lt.s32.totalorder %s12393_s7, %s12393_s7 }
  0x9c   :  { %p12400_p6 = por %p12399_p5, %p12398_p4 }
  0x9e   :  { %p12401_p7 = pnand %p12400_p6, %p12394_p3 }
  0xa0   :  { %12404 = shalt.err (!%p12401_p7)
}
  0xa1   :  { %181 = dma.hbm_to_vmem [thread:$0]  %s12641_s20, 32, %s176_s14, [#allocation12], %s12536_s0, %s12536_s0, %s12537_s18  }
  0xa2   :  { %s12548_s3 = smov [#allocation16]   ;;  %s12549_s11 = smov [#allocation19]  }
  0xa3   :  { %s203_s10 = sshll.u32 %s12548_s3, 4  ;;  %s233_s15 = sshll.u32 %s12549_s11, 4  ;;  %s204_s10 = int_to_ptr.vmem [resolvable:$true] %s203_s10  ;;  %s234_s15 = int_to_ptr.vmem [resolvable:$true] %s233_s15 }
  0xa4   :  { %s12413_s6 = scalar_lea.vmem %s204_s10, 32  ;;  %p12418_p9 = scmp.lt.s32.totalorder %s204_s10, %s204_s10 }
  0xa5   :  { %p12414_p8 = scmp.ne.s32.totalorder %s204_s10, %s12413_s6  ;;  %p12419_p10 = scmp.lt.s32.totalorder %s12413_s6, %s12413_s6 }
  0xa7   :  { %p12420_p11 = por %p12419_p10, %p12418_p9 }
  0xa9   :  { %p12421_p12 = pnand %p12420_p11, %p12414_p8 }
  0xab   :  { %12424 = shalt.err (!%p12421_p12)
}
  0xac   :  { %209 = dma.hbm_to_vmem [thread:$0]  %s12661_s30, 32, %s204_s10, [#allocation15], %s12536_s0, %s12536_s0, %s12537_s18  }
  0xad   :  { %s12433_s24 = scalar_lea.vmem %s234_s15, 32  ;;  %p12438_p0 = scmp.lt.s32.totalorder %s234_s15, %s234_s15 }
  0xae   :  { %p12434_p13 = scmp.ne.s32.totalorder %s234_s15, %s12433_s24  ;;  %p12439_p1 = scmp.lt.s32.totalorder %s12433_s24, %s12433_s24 }
  0xb0   :  { %p12440_p2 = por %p12439_p1, %p12438_p0 }
  0xb2   :  { %p12441_p3 = pnand %p12440_p2, %p12434_p13 }
  0xb4   :  { %12444 = shalt.err (!%p12441_p3)
}
  0xb5   :  { %239 = dma.hbm_to_vmem [thread:$0]  %s12686_s27, 32, %s234_s15, [#allocation18], %s12536_s0, %s12536_s0, %s12537_s18  }
  0xb6   :  { %s12550_s20 = smov [#allocation22]  }
  0xb7   :  { %s262_s4 = sshll.u32 %s12550_s20, 4  ;;  %s263_s4 = int_to_ptr.vmem [resolvable:$true] %s262_s4 }
  0xb8   :  { %s12453_s16 = scalar_lea.vmem %s263_s4, 64  ;;  %p12458_p5 = scmp.lt.s32.totalorder %s263_s4, %s263_s4 }
  0xb9   :  { %p12454_p4 = scmp.ne.s32.totalorder %s263_s4, %s12453_s16  ;;  %p12459_p6 = scmp.lt.s32.totalorder %s12453_s16, %s12453_s16 }
  0xbb   :  { %p12460_p7 = por %p12459_p6, %p12458_p5 }
  0xbd   :  { %p12461_p8 = pnand %p12460_p7, %p12454_p4 }
  0xbf   :  { %12464 = shalt.err (!%p12461_p8)
}
  0xc0   :  { %265 = dma.hbm_to_vmem [thread:$0]  %s12706_s17, 64, %s263_s4, [#allocation21]  }
  0xc1   :  { %12485 = dma.done.wait [#allocation3], 32  }
  0xc2   :  { %12486 = vsyncadd [#allocation3], 4294967264 }
  0xc3   :  { %12487 = dma.done.wait [#allocation6], 160  }
  0xc4   :  { %12488 = vsyncadd [#allocation6], 4294967136 }
  0xc5   :  { %12489 = dma.done.wait [#allocation9], 64  }
  0xc6   :  { %12490 = vsyncadd [#allocation9], 4294967232 }
  0xc7   :  { %12491 = dma.done.wait [#allocation12], 64  }
  0xc8   :  { %12492 = vsyncadd [#allocation12], 4294967232 }
  0xc9   :  { %12493 = dma.done.wait [#allocation15], 64  }
  0xca   :  { %12494 = vsyncadd [#allocation15], 4294967232 }
  0xcb   :  { %12495 = dma.done.wait [#allocation18], 64  }
  0xcc   :  { %12496 = vsyncadd [#allocation18], 4294967232 }
  0xcd   :  { %12497 = dma.done.wait [#allocation21], 96  }
  0xce   :  { %12498 = vsyncadd [#allocation21], 4294967200  ;;  %s15605_s30 = sld [smem:[#allocation32_spill]]  ;;  %v12551_v0 = vmov 0   ;;  %v328_v1 = vld [vmem:[%s12566_s5] sm:$0xff]  ;;  %v330_v2 = vld [vmem:[%s12566_s5 + $0x10] sm:$0xff]  ;;  %v323_v33 = vlaneseq }
  0xcf   :  { %11765 = vset.pattern.permute.xlu0 %v12551_v0  ;;  %11766 = vset.pattern.permute.xlu1 %v12551_v0  ;;  %v329_v3 = vld [vmem:[%s12566_s5 + $0x8] sm:$0xff]  ;;  %v331_v4 = vld [vmem:[%s12566_s5 + $0x18] sm:$0xff]  ;;  %v332_v7 = vld [vmem:[%s12566_s5 + $0x20] sm:$0xff]  ;;  %s15606_s5 = sld [smem:[#allocation33_spill]]  ;;  %vm629_vm0 = vcmask 1044480   ;;  %vm619_vm3 = vcmask 80896  }
  0xd0   :  { %689 = vmatprep.subr.bf16.mxu1 %v12551_v0  ;;  %334 = vperm.xlu0 %11765, %v328_v1   ;;  %v12826_v34 = vand.u32 127, %v323_v33  ;;  %v12552_v41 = vmov 0.0   ;;  %v12553_v49 = vmov 1.0|1.0   ;;  %s15625_s17 = sld [smem:[#allocation34_spill]]  ;;  %s12555_s0 = smov 32  }
  0xd1   :  { %340 = vperm.xlu1 %11766, %v330_v2   ;;  %s15626_s27 = sld [smem:[#allocation47_spill]]  ;;  %s12556_s18 = smov 96  }
  0xd2   :  { %v327_v35 = vadd.s32 384, %v12826_v34  ;;  %v12830_v37 = vadd.s32 128, %v12826_v34  ;;  %v12833_v39 = vadd.s32 256, %v12826_v34  ;;  %s15627_s22 = sld [smem:[#allocation35_spill]] }
  0xd3   :  { %s15628_s23 = sld [smem:[#allocation36_spill]] }
  0xd4   :  { %v11767_v5 = vld [vmem:[%s15605_s30 + $0xb8] sm:$0xff]   ;;  %337 = vperm.xlu0 %11765, %v329_v3   ;;  %v11770_v9 = vld [vmem:[%s15605_s30 + $0xb0] sm:$0xff]   ;;  %v11773_v12 = vld [vmem:[%s15605_s30 + $0xa8] sm:$0xff]   ;;  %s15629_s26 = sld [smem:[#allocation37_spill]] }
  0xd5   :  { %v11768_v6 = vld [vmem:[%s15605_s30 + $0x78] sm:$0xff]   ;;  %690 = vmatpush1.bf16.msra.mxu1 %v11767_v5  ;;  %343 = vperm.xlu1 %11766, %v331_v4   ;;  %v11771_v10 = vld [vmem:[%s15605_s30 + $0x70] sm:$0xff]   ;;  %v11774_v13 = vld [vmem:[%s15605_s30 + $0x68] sm:$0xff]   ;;  %s15630_s19 = sld [smem:[#allocation38_spill]] }
  0xd6   :  { %v11769_v8 = vld [vmem:[%s15605_s30 + $0x38] sm:$0xff]   ;;  %10164 = vmatprep.subr.bf16.mxu0 %v11768_v6  ;;  %691 = vmatprep.subr.bf16.mxu1 %v12551_v0  ;;  %v11772_v11 = vld [vmem:[%s15605_s30 + $0x30] sm:$0xff]   ;;  %v11775_v14 = vld [vmem:[%s15605_s30 + $0x28] sm:$0xff]   ;;  %s15631_s28 = sld [smem:[#allocation39_spill]] }
  0xd7   :  { %10165 = vmatpush3.bf16.msra.mxu0 %v11769_v8  ;;  %v11776_v15 = vld [vmem:[%s15605_s30 + $0xa0] sm:$0xff]   ;;  %v11779_v18 = vld [vmem:[%s15605_s30 + $0x98] sm:$0xff]   ;;  %v11782_v21 = vld [vmem:[%s15605_s30 + $0x90] sm:$0xff]   ;;  %s15632_s1 = sld [smem:[#allocation40_spill]] }
  0xd8   :  { %10166 = vmatprep.subr.bf16.mxu0 %v11771_v10  ;;  %346 = vperm.xlu0 %11765, %v332_v7   ;;  %v11777_v16 = vld [vmem:[%s15605_s30 + $0x60] sm:$0xff]   ;;  %v11780_v19 = vld [vmem:[%s15605_s30 + $0x58] sm:$0xff]   ;;  %v11783_v22 = vld [vmem:[%s15605_s30 + $0x50] sm:$0xff]   ;;  %s15633_s2 = sld [smem:[#allocation43_spill]] }
  0xd9   :  { %692 = vmatpush1.bf16.msra.mxu1 %v11770_v9  ;;  %v11778_v17 = vld [vmem:[%s15605_s30 + $0x20] sm:$0xff]   ;;  %v11781_v20 = vld [vmem:[%s15605_s30 + $0x18] sm:$0xff]   ;;  %v11784_v23 = vld [vmem:[%s15605_s30 + $0x10] sm:$0xff]   ;;  %s15634_s29 = sld [smem:[#allocation41_spill]] }
  0xda   :  { %693 = vmatprep.subr.bf16.mxu1 %v12551_v0  ;;  %v11785_v24 = vld [vmem:[%s15605_s30 + $0x88] sm:$0xff]   ;;  %v11788_v27 = vld [vmem:[%s15605_s30 + $0x80] sm:$0xff]   ;;  %v11792_v31 = vld [vmem:[%s15606_s5 + $0x78] sm:$0xff]   ;;  %s15635_s14 = sld [smem:[#allocation42_spill]] }
  0xdb   :  { %10167 = vmatpush3.bf16.msra.mxu0 %v11772_v11  ;;  %v11786_v25 = vld [vmem:[%s15605_s30 + $0x48] sm:$0xff]   ;;  %v11789_v28 = vld [vmem:[%s15605_s30 + $0x40] sm:$0xff]   ;;  %v11793_v45 = vld [vmem:[%s15606_s5 + $0x38] sm:$0xff]   ;;  %s15636_s21 = sld [smem:[#allocation44_spill]] }
  0xdc   :  { %10168 = vmatprep.subr.bf16.mxu0 %v11774_v13  ;;  %v11787_v26 = vld [vmem:[%s15605_s30 + $0x8] sm:$0xff]   ;;  %v11791_v29 = vld [vmem:[%s15605_s30 + $0xc0] sm:$0x1f]   ;;  %v11795_v48 = vld [vmem:[%s15606_s5 + $0x70] sm:$0xff]   ;;  %s15637_s7 = sld [smem:[#allocation45_spill]] }
  0xdd   :  { %694 = vmatpush1.bf16.msra.mxu1 %v11773_v12  ;;  %v11790_v30 = vld [vmem:[%s15605_s30] sm:$0xff]   ;;  %v631_v32 = vsel %vm629_vm0, %v11791_v29, 0  ;;  %v11794_v52 = vld [vmem:[%s15606_s5 + $0xb8] sm:$0xff]   ;;  %v11796_v57 = vld [vmem:[%s15606_s5 + $0x30] sm:$0xff]  }
  0xde   :  { %695 = vmatprep.subr.bf16.mxu1 %v12551_v0  ;;  %v11798_v59 = vld [vmem:[%s15606_s5 + $0x68] sm:$0xff]   ;;  %v11797_v60 = vld [vmem:[%s15606_s5 + $0xb0] sm:$0xff]   ;;  %v11801_v1 = vld [vmem:[%s15606_s5 + $0x60] sm:$0xff]  }
  0xdf   :  { %10169 = vmatpush3.bf16.msra.mxu0 %v11775_v14  ;;  %v11799_v62 = vld [vmem:[%s15606_s5 + $0x28] sm:$0xff]   ;;  %v11802_v6 = vld [vmem:[%s15606_s5 + $0x20] sm:$0xff]   ;;  %v11804_v7 = vld [vmem:[%s15606_s5 + $0x58] sm:$0xff]  }
  0xe0   :  { %10170 = vmatprep.subr.bf16.mxu0 %v11777_v16  ;;  %v11800_v3 = vld [vmem:[%s15606_s5 + $0xa8] sm:$0xff]   ;;  %v11803_v8 = vld [vmem:[%s15606_s5 + $0xa0] sm:$0xff]   ;;  %v11805_v9 = vld [vmem:[%s15606_s5 + $0x18] sm:$0xff]  }
  0xe1   :  { %696 = vmatpush1.bf16.msra.mxu1 %v11776_v15  ;;  %v11807_v10 = vld [vmem:[%s15606_s5 + $0x50] sm:$0xff]   ;;  %v11806_v12 = vld [vmem:[%s15606_s5 + $0x98] sm:$0xff]   ;;  %v11810_v15 = vld [vmem:[%s15606_s5 + $0x48] sm:$0xff]  }
  0xe2   :  { %697 = vmatprep.subr.bf16.mxu1 %v12551_v0  ;;  %v11808_v14 = vld [vmem:[%s15606_s5 + $0x10] sm:$0xff]   ;;  %v314_v29 = vld [vmem:[%s15626_s27] sm:$0xff] }
  0xe3   :  { %10171 = vmatpush3.bf16.msra.mxu0 %v11778_v17  ;;  %v11809_v16 = vld [vmem:[%s15606_s5 + $0x90] sm:$0xff]   ;;  %v11811_v17 = vld [vmem:[%s15606_s5 + $0x8] sm:$0xff]  }
  0xe4   :  { %10172 = vmatprep.subr.bf16.mxu0 %v11780_v19  ;;  %v11812_v19 = vld [vmem:[%s15606_s5 + $0x88] sm:$0xff]  }
  0xe5   :  { %698 = vmatpush1.bf16.msra.mxu1 %v11779_v18  ;;  %v11813_v18 = vld [vmem:[%s15606_s5 + $0x40] sm:$0xff]  }
  0xe6   :  { %699 = vmatprep.subr.bf16.mxu1 %v12551_v0 }
  0xe7   :  { %10173 = vmatpush3.bf16.msra.mxu0 %v11781_v20  ;;  %v11814_v20 = vld [vmem:[%s15606_s5] sm:$0xff]  }
  0xe8   :  { %10174 = vmatprep.subr.bf16.mxu0 %v11783_v22  ;;  %v11816_v22 = vld [vmem:[%s15606_s5 + $0xc0] sm:$0x1f]  }
  0xe9   :  { %700 = vmatpush1.bf16.msra.mxu1 %v11782_v21  ;;  %v11815_v21 = vld [vmem:[%s15606_s5 + $0x80] sm:$0xff]  }
  0xea   :  { %701 = vmatprep.subr.bf16.mxu1 %v12551_v0 }
  0xeb   :  { %10175 = vmatpush3.bf16.msra.mxu0 %v11784_v23  ;;  %v11817_v23 = vld [vmem:[%s15625_s17 + $0x8] sm:$0xff]  }
  0xec   :  { %10176 = vmatprep.subr.bf16.mxu0 %v11786_v25  ;;  %v11818_v25 = vld [vmem:[%s15625_s17] sm:$0xff]  }
  0xed   :  { %702 = vmatpush1.bf16.msra.mxu1 %v11785_v24  ;;  %v945_v24 = vsel %vm629_vm0, %v11816_v22, 0  ;;  %vm12554_vm0 = vmmov 0  }
  0xee   :  { %703 = vmatprep.subr.bf16.mxu1 %v12551_v0 }
  0xef   :  { %10177 = vmatpush3.bf16.msra.mxu0 %v11787_v26  ;;  %v317_v26 = vld [vmem:[%s15626_s27 + $0x18] sm:$0xff] }
  0xf0   :  { %10178 = vmatprep.subr.bf16.mxu0 %v11789_v28  ;;  %1166 = vrot.lane.b32.xlu0 %v317_v26, %s12555_s0  ;;  %v315_v28 = vld [vmem:[%s15626_s27 + $0x8] sm:$0xff] }
  0xf1   :  { %704 = vmatpush1.bf16.msra.mxu1 %v11788_v27  ;;  %v316_v27 = vld [vmem:[%s15626_s27 + $0x10] sm:$0xff] }
  0xf2   :  { %719 = vmatprep.subr.bf16.mxu1 %v12551_v0  ;;  %1164 = vrot.lane.b32.xlu1 %v316_v27, %s12555_s0 }
  0xf3   :  { %10179 = vmatpush3.bf16.msra.mxu0 %v11790_v30 }
  0xf4   :  { %10198 = vmatprep.subr.bf16.mxu0 %v11792_v31  ;;  %1162 = vrot.lane.b32.xlu0 %v315_v28, %s12555_s0 }
  0xf5   :  { %720 = vmatpush2.bf16.msra.mxu1 %v631_v32 }
  0xf6   :  { %1003 = vmatprep.subr.bf16.mxu1 %v12551_v0  ;;  %1160 = vrot.lane.b32.xlu1 %v314_v29, %s12555_s0 }
 0x14b   :  { %v335_v36 = vpop.permute.xlu0 %334 }
 0x14c   :  { %v341_v38 = vpop.permute.xlu1 %340  ;;  %vm351_vm2 = vcmp.eq.s32.totalorder %v327_v35, %v335_v36  ;;  %vm349_vm4 = vcmp.eq.s32.totalorder %v12830_v37, %v335_v36  ;;  %vm348_vm5 = vcmp.eq.s32.totalorder %v12826_v34, %v335_v36  ;;  %vm350_vm15 = vcmp.eq.s32.totalorder %v12833_v39, %v335_v36 }
 0x14d   :  { %vm359_vm1 = vcmp.eq.s32.totalorder %v327_v35, %v341_v38  ;;  %v9720_v42 = vsel %vm351_vm2, 1.0, %v12552_v41  ;;  %vm357_vm12 = vcmp.eq.s32.totalorder %v12830_v37, %v341_v38 }
 0x14e   :  { %v9728_v44 = vsel %vm359_vm1, 1.0, %v12552_v41 }
 0x14f   :  { %v338_v40 = vpop.permute.xlu0 %337 }
 0x150   :  { %v344_v43 = vpop.permute.xlu1 %343  ;;  %vm353_vm6 = vcmp.eq.s32.totalorder %v12830_v37, %v338_v40  ;;  %vm352_vm7 = vcmp.eq.s32.totalorder %v12826_v34, %v338_v40  ;;  %vm355_vm8 = vcmp.eq.s32.totalorder %v327_v35, %v338_v40  ;;  %vm354_vm9 = vcmp.eq.s32.totalorder %v12833_v39, %v338_v40 }
 0x151   :  { %vm12843_vm10 = vmpackc.low %vm353_vm6, %vm349_vm4  ;;  %v9724_v47 = vsel %vm355_vm8, 1.0, %v12552_v41  ;;  %vm363_vm11 = vcmp.eq.s32.totalorder %v327_v35, %v344_v43  ;;  %vm361_vm13 = vcmp.eq.s32.totalorder %v12830_v37, %v344_v43  ;;  %vm356_vm4 = vcmp.eq.s32.totalorder %v12826_v34, %v341_v38 }
 0x152   :  { %9763 = vmatprep.mubr.msk.bf16.mxu0 %vm12843_vm10, %v12553_v49  ;;  %vm12856_vm14 = vmpackc.low %vm352_vm7, %vm348_vm5  ;;  %v12860_v51 = vpack.c.bf16 %v9724_v47, %v9720_v42  ;;  %v9732_v53 = vsel %vm363_vm11, 1.0, %v12552_v41  ;;  %vm360_vm5 = vcmp.eq.s32.totalorder %v12826_v34, %v344_v43  ;;  %vm358_vm7 = vcmp.eq.s32.totalorder %v12833_v39, %v341_v38 }
 0x153   :  { %9765 = vmatmul.mubr.msk.bf16.vlgmr.msra.gmra.mxu0 %vm12856_vm14, %v12553_v49  ;;  %v347_v54 = vpop.permute.xlu0 %346  ;;  %vm12870_vm1 = vmpackc.low %vm354_vm9, %vm350_vm15  ;;  %v12874_v56 = vpack.c.bf16 %v9732_v53, %v9728_v44  ;;  %vm362_vm8 = vcmp.eq.s32.totalorder %v12833_v39, %v344_v43 }
 0x154   :  { %10199 = vmatpush3.bf16.msra.mxu0 %v11793_v45  ;;  %9774 = vmatprep.mubr.msk.bf16.mxu1 %vm619_vm3, %v12860_v51  ;;  %vm12883_vm2 = vmpackc.low %vm361_vm13, %vm357_vm12  ;;  %vm367_vm6 = vcmp.eq.s32.totalorder %v327_v35, %v347_v54  ;;  %vm365_vm11 = vcmp.eq.s32.totalorder %v12830_v37, %v347_v54  ;;  %vm364_vm15 = vcmp.eq.s32.totalorder %v12826_v34, %v347_v54 }
 0x155   :  { %9776 = vmatmul.mubr.msk.bf16.vlgmr.msra.gmra.mxu1 %vm12870_vm1, %v12553_v49  ;;  %10200 = vmatprep.subr.bf16.mxu0 %v11795_v48  ;;  %vm12902_vm9 = vmpackc.low %vm360_vm5, %vm356_vm4  ;;  %v9736_v63 = vsel %vm367_vm6, 1.0, %v12552_v41  ;;  %vm366_vm4 = vcmp.eq.s32.totalorder %v12833_v39, %v347_v54 }
 0x156   :  { %1004 = vmatpush1.bf16.msra.mxu1 %v11794_v52  ;;  %9767 = vmatprep.mubr.msk.bf16.mxu0 %vm12883_vm2, %v12553_v49  ;;  %vm12910_vm12 = vmpackc.low %vm362_vm8, %vm358_vm7  ;;  %v469_v5 = vpack.c.bf16 %v9736_v63, %v9736_v63 }
 0x157   :  { %1005 = vmatprep.subr.bf16.mxu1 %v12551_v0  ;;  %9777 = vmatprep.mubr.msk.bf16.mxu1 %vm619_vm3, %v12874_v56  ;;  %vm12918_vm13 = vmpackc.low %vm365_vm11, %vm365_vm11 }
 0x158   :  { %10201 = vmatpush3.bf16.msra.mxu0 %v11796_v57  ;;  %vm12938_vm5 = vmpackc.low %vm364_vm15, %vm364_vm15 }
 0x159   :  { %10202 = vmatprep.subr.bf16.mxu0 %v11798_v59  ;;  %vm12950_vm6 = vmpackc.low %vm366_vm4, %vm366_vm4 }
 0x15a   :  { %1006 = vmatpush1.bf16.msra.mxu1 %v11797_v60 }
 0x15b   :  { %9769 = vmatmul.mubr.msk.bf16.gmra.mxu0 %vm12902_vm9, %v12553_v49  ;;  %1007 = vmatprep.subr.bf16.mxu1 %v12551_v0 }
 0x15c   :  { %10203 = vmatpush3.bf16.msra.mxu0 %v11799_v62  ;;  %9771 = vmatprep.mubr.msk.bf16.mxu0 %vm12918_vm13, %v12553_v49 }
 0x15d   :  { %9779 = vmatmul.mubr.msk.bf16.gmra.mxu1 %vm12910_vm12, %v12553_v49  ;;  %10204 = vmatprep.subr.bf16.mxu0 %v11801_v1 }
 0x15e   :  { %1008 = vmatpush1.bf16.msra.mxu1 %v11800_v3  ;;  %9780 = vmatprep.mubr.msk.bf16.mxu1 %vm619_vm3, %v469_v5 }
 0x15f   :  { %1009 = vmatprep.subr.bf16.mxu1 %v12551_v0 }
 0x160   :  { %10205 = vmatpush3.bf16.msra.mxu0 %v11802_v6 }
 0x161   :  { %10206 = vmatprep.subr.bf16.mxu0 %v11804_v7 }
 0x162   :  { %1010 = vmatpush1.bf16.msra.mxu1 %v11803_v8 }
 0x163   :  { %9773 = vmatmul.mubr.msk.bf16.gmra.mxu0 %vm12938_vm5, %v12553_v49  ;;  %1011 = vmatprep.subr.bf16.mxu1 %v12551_v0 }
 0x164   :  { %10207 = vmatpush3.bf16.msra.mxu0 %v11805_v9  ;;  %9809 = vmatprep.mubr.msk.bf16.mxu0 %vm12843_vm10, %v12553_v49  ;;  %vm2323_vm10 = vcmask 523264  }
 0x165   :  { %9782 = vmatmul.mubr.msk.bf16.gmra.mxu1 %vm12950_vm6, %v12553_v49  ;;  %10208 = vmatprep.subr.bf16.mxu0 %v11807_v10 }
 0x166   :  { %1012 = vmatpush1.bf16.msra.mxu1 %v11806_v12  ;;  %9820 = vmatprep.mubr.msk.bf16.mxu1 %vm619_vm3, %v12860_v51 }
 0x167   :  { %1013 = vmatprep.subr.bf16.mxu1 %v12551_v0 }
 0x168   :  { %10209 = vmatpush3.bf16.msra.mxu0 %v11808_v14 }
 0x169   :  { %10210 = vmatprep.subr.bf16.mxu0 %v11810_v15 }
 0x16a   :  { %1014 = vmatpush1.bf16.msra.mxu1 %v11809_v16 }
 0x16b   :  { %1015 = vmatprep.subr.bf16.mxu1 %v12551_v0 }
 0x16c   :  { %10211 = vmatpush3.bf16.msra.mxu0 %v11811_v17 }
 0x16d   :  { %10212 = vmatprep.subr.bf16.mxu0 %v11813_v18 }
 0x16e   :  { %1016 = vmatpush1.bf16.msra.mxu1 %v11812_v19 }
 0x16f   :  { %1017 = vmatprep.subr.bf16.mxu1 %v12551_v0 }
 0x170   :  { %10213 = vmatpush3.bf16.msra.mxu0 %v11814_v20 }
 0x171   :  { %10620 = vmatprep.subr.bf16.mxu0 %v12552_v41 }
 0x172   :  { %1018 = vmatpush1.bf16.msra.mxu1 %v11815_v21 }
 0x173   :  { %9811 = vmatmul.mubr.msk.bf16.vlgmr.msra.gmra.mxu0 %vm12856_vm14, %v12553_v49  ;;  %1033 = vmatprep.subr.bf16.mxu1 %v12551_v0  ;;  %vm8996_vm14 = vcmask 785408  }
 0x174   :  { %9813 = vmatprep.mubr.msk.bf16.mxu0 %vm12883_vm2, %v12553_v49  ;;  %10621 = vmatpush3.bf16.msra.mxu0 %v11817_v23 }
 0x175   :  { %10622 = vmatprep.subr.bf16.mxu0 %v12552_v41 }
 0x176   :  { %1034 = vmatpush2.bf16.msra.mxu1 %v945_v24 }
 0x177   :  { %10636 = vmatprep.subr.bf16.mxu1 %v12552_v41 }
 0x178   :  { %10623 = vmatpush3.bf16.msra.mxu0 %v11818_v25 }
 0x179   :  { %9822 = vmatmul.mubr.msk.bf16.vlgmr.msra.gmra.mxu1 %vm12870_vm1, %v12553_v49  ;;  %10652 = vmatprep.subr.bf16.mxu0 %v12552_v41 }
 0x17a   :  { %9823 = vmatprep.mubr.msk.bf16.mxu1 %vm619_vm3, %v12874_v56 }
 0x17b   :  { %9815 = vmatmul.mubr.msk.bf16.gmra.mxu0 %vm12902_vm9, %v12553_v49 }
 0x17c   :  { %9817 = vmatprep.mubr.msk.bf16.mxu0 %vm12918_vm13, %v12553_v49 }
 0x181   :  { %9825 = vmatmul.mubr.msk.bf16.gmra.mxu1 %vm12910_vm12, %v12553_v49 }
 0x182   :  { %9826 = vmatprep.mubr.msk.bf16.mxu1 %vm619_vm3, %v469_v5  ;;  %vm1085_vm3 = vcmask 261120  }
 0x183   :  { %9819 = vmatmul.mubr.msk.bf16.gmra.mxu0 %vm12938_vm5, %v12553_v49 }
 0x184   :  { %10624 = vmatprep.mubr.msk.bf16.mxu0 %vm12554_vm0, %v12552_v41 }
 0x189   :  { %9828 = vmatmul.mubr.msk.bf16.gmra.mxu1 %vm12950_vm6, %v12553_v49 }
 0x18a   :  { %10640 = vmatprep.mubr.msk.bf16.mxu1 %vm12554_vm0, %v12552_v41 }
 0x213   :  { %v10180_v30 = vpop.f32.mrf.mxu0 }
 0x215   :  { %v10181_v31 = vpop.f32.mrf.mxu0  ;;  %v723_v32 = vpop.f32.mrf.mxu1 }
 0x216   :  { %v10182_v36 = vadd.f32 %v10181_v31, %v10180_v30 }
 0x217   :  { %v10183_v34 = vpop.f32.mrf.mxu0  ;;  %v725_v35 = vpop.f32.mrf.mxu1 }
 0x218   :  { %v13018_v43 = vadd.f32 %v10182_v36, %v723_v32 }
 0x219   :  { %v10184_v37 = vpop.f32.mrf.mxu0  ;;  %v726_v38 = vpop.f32.mrf.mxu1 }
 0x21a   :  { %v10185_v39 = vadd.f32 %v10184_v37, %v10183_v34 }
 0x21b   :  { %v10186_v40 = vpop.f32.mrf.mxu0  ;;  %v728_v42 = vpop.f32.mrf.mxu1 }
 0x21c   :  { %v13020_v44 = vadd.f32 %v10185_v39, %v726_v38  ;;  %v13053_v42 = vpop.permute.xlu1 %1164 }
 0x21d   :  { %v10187_v45 = vpop.f32.mrf.mxu0  ;;  %v731_v46 = vpop.f32.mrf.mxu1 }
 0x21e   :  { %v1063_v47 = vpack.c.bf16 %v13020_v44, %v13018_v43  ;;  %v10188_v48 = vadd.f32 %v10187_v45, %v10186_v40  ;;  %v13055_v45 = vpop.permute.xlu0 %1166 }
 0x21f   :  { %v10189_v49 = vpop.f32.mrf.mxu0  ;;  %v733_v50 = vpop.f32.mrf.mxu1 }
 0x220   :  { %10625 = vmatmul.mubr.msk.bf16.vlgmr.msra.gmra.mxu0 %vm1085_vm3, %v1063_v47  ;;  %v13027_v53 = vadd.f32 %v10188_v48, %v731_v46  ;;  %v9829_v46 = vld [vmem:[#allocation2] ss:$0 sm:$0xff]  ;;  %v13057_v48 = vpop.permute.xlu1 %1160 }
 0x221   :  { %v10190_v51 = vpop.f32.mrf.mxu0  ;;  %v734_v52 = vpop.f32.mrf.mxu1  ;;  %10628 = vmatprep.mubr.msk.bf16.mxu0 %vm12554_vm0, %v12552_v41 }
 0x222   :  { %v10191_v54 = vadd.f32 %v10190_v51, %v10189_v49  ;;  %v13059_v50 = vpop.permute.xlu0 %1162 }
 0x223   :  { %v10192_v55 = vpop.f32.mrf.mxu0  ;;  %v736_v56 = vpop.f32.mrf.mxu1 }
 0x224   :  { %v13029_v57 = vadd.f32 %v10191_v54, %v734_v52 }
 0x225   :  { %v10193_v58 = vpop.f32.mrf.mxu0  ;;  %v739_v59 = vpop.f32.mrf.mxu1 }
 0x226   :  { %v1064_v60 = vpack.c.bf16 %v13029_v57, %v13027_v53  ;;  %v10194_v61 = vadd.f32 %v10193_v58, %v10192_v55 }
 0x227   :  { %v10195_v62 = vpop.f32.mrf.mxu0  ;;  %v741_v63 = vpop.f32.mrf.mxu1 }
 0x228   :  { %10629 = vmatmul.mubr.msk.bf16.gmra.mxu0 %vm1085_vm3, %v1064_v60  ;;  %v13036_v3 = vadd.f32 %v10194_v61, %v739_v59 }
 0x229   :  { %v10196_v1 = vpop.f32.mrf.mxu0  ;;  %v742_v2 = vpop.f32.mrf.mxu1  ;;  %10632 = vmatprep.mubr.msk.bf16.mxu0 %vm12554_vm0, %v12552_v41 }
 0x22a   :  { %v1065_v5 = vpack.c.bf16 %v13036_v3, %v13036_v3 }
 0x22b   :  { %v743_v4 = vpop.f32.mrf.mxu1 }
 0x230   :  { %10633 = vmatmul.mubr.msk.bf16.gmra.mxu0 %vm1085_vm3, %v1065_v5 }
 0x231   :  { %10656 = vmatprep.mubr.msk.bf16.mxu0 %vm12554_vm0, %v12552_v41 }
 0x233   :  { %v10214_v6 = vpop.f32.mrf.mxu0 }
 0x235   :  { %v10215_v7 = vpop.f32.mrf.mxu0 }
 0x236   :  { %v10216_v8 = vadd.f32 %v10215_v7, %v10214_v6 }
 0x237   :  { %v10217_v9 = vpop.f32.mrf.mxu0 }
 0x239   :  { %v10218_v10 = vpop.f32.mrf.mxu0  ;;  %v1037_v11 = vpop.f32.mrf.mxu1 }
 0x23a   :  { %v13043_v12 = vadd.f32 %v10216_v8, %v1037_v11  ;;  %v10219_v15 = vadd.f32 %v10218_v10, %v10217_v9 }
 0x23b   :  { %v10220_v13 = vpop.f32.mrf.mxu0  ;;  %v1039_v14 = vpop.f32.mrf.mxu1 }
 0x23d   :  { %v10221_v16 = vpop.f32.mrf.mxu0  ;;  %v1040_v17 = vpop.f32.mrf.mxu1 }
 0x23e   :  { %v10222_v18 = vadd.f32 %v10221_v16, %v10220_v13  ;;  %v13045_v19 = vadd.f32 %v10219_v15, %v1040_v17 }
 0x23f   :  { %v10223_v20 = vpop.f32.mrf.mxu0  ;;  %v1042_v21 = vpop.f32.mrf.mxu1 }
 0x241   :  { %v10224_v22 = vpop.f32.mrf.mxu0  ;;  %v1045_v23 = vpop.f32.mrf.mxu1 }
 0x242   :  { %v10225_v24 = vadd.f32 %v10224_v22, %v10223_v20  ;;  %v13047_v25 = vadd.f32 %v10222_v18, %v1045_v23 }
 0x243   :  { %v10226_v26 = vpop.f32.mrf.mxu0  ;;  %v1047_v27 = vpop.f32.mrf.mxu1 }
 0x245   :  { %v10227_v28 = vpop.f32.mrf.mxu0  ;;  %v1048_v29 = vpop.f32.mrf.mxu1 }
 0x246   :  { %v10228_v30 = vadd.f32 %v10227_v28, %v10226_v26  ;;  %v13049_v31 = vadd.f32 %v10225_v24, %v1048_v29 }
 0x247   :  { %v10229_v32 = vpop.f32.mrf.mxu0  ;;  %v1050_v34 = vpop.f32.mrf.mxu1 }
 0x249   :  { %v10230_v35 = vpop.f32.mrf.mxu0  ;;  %v1053_v36 = vpop.f32.mrf.mxu1 }
 0x24a   :  { %v13051_v37 = vadd.f32 %v10228_v30, %v1053_v36 }
 0x24b   :  { %v1055_v38 = vpop.f32.mrf.mxu1 }
 0x24d   :  { %v1056_v39 = vpop.f32.mrf.mxu1 }
 0x24f   :  { %v1057_v40 = vpop.f32.mrf.mxu1 }
 0x2e0   :  { %v1129_v47 = vpop.f32.mrf.mxu0 }
 0x2e1   :  { %v1130_v49 = vadd.f32 %v9829_v46, %v1129_v47 }
 0x2e2   :  { %v10626_v51 = vpop.f32.mrf.mxu0 }
 0x2e3   :  { %v1174_v52 = vmul.f32 %v13053_v42, %v1130_v49  ;;  %v1175_v54 = vmul.f32 %v13055_v45, %v1130_v49  ;;  %v1172_v55 = vmul.f32 %v13057_v48, %v1130_v49  ;;  %v1173_v58 = vmul.f32 %v13059_v50, %v1130_v49 }
 0x2e4   :  { %v1132_v56 = vpop.f32.mrf.mxu0  ;;  %v1151_v32 = vmul.f32 0.35355338, %v1130_v49 }
 0x2e5   :  { %v13065_v59 = vadd.f32 %v9829_v46, %v1132_v56  ;;  %v1178_v60 = vpack.c.bf16 %v1175_v54, %v1174_v52  ;;  %v13067_v62 = vpack.c.bf16 %v1173_v58, %v1172_v55  ;;  %v13132_v54 = vld [vmem:[%s12721_s8 + $0x8] sm:$0xff]   ;;  %v13138_v56 = vld [vmem:[%s12721_s8] sm:$0xff]  }
 0x2e6   :  { %v10627_v61 = vpop.f32.mrf.mxu0  ;;  %v1176_v34 = vpack.c.bf16 %v1151_v32, %v1151_v32 }
 0x2e7   :  { %1183 = vrot.lane.b32.xlu1 %v1178_v60, %s12556_s18  ;;  %v1350_v63 = vmul.f32 %v13053_v42, %v13065_v59  ;;  %v1351_v1 = vmul.f32 %v13055_v45, %v13065_v59  ;;  %1181 = vrot.lane.b32.xlu0 %v13067_v62, %s12556_s18  ;;  %v1348_v7 = vmul.f32 %v13057_v48, %v13065_v59 }
 0x2e8   :  { %v1137_v2 = vpop.f32.mrf.mxu0  ;;  %v1349_v8 = vmul.f32 %v13059_v50, %v13065_v59 }
 0x2e9   :  { %v13076_v4 = vpack.c.bf16 %v1351_v1, %v1350_v63  ;;  %v13078_v5 = vadd.f32 %v9829_v46, %v1137_v2 }
 0x2ea   :  { %v10630_v6 = vpop.f32.mrf.mxu0  ;;  %v13088_v13 = vpack.c.bf16 %v1349_v8, %v1348_v7 }
 0x2eb   :  { %1359 = vrot.lane.b32.xlu0 %v13076_v4, %s12556_s18  ;;  %v1514_v14 = vmul.f32 %v13053_v42, %v13078_v5  ;;  %v1515_v15 = vmul.f32 %v13055_v45, %v13078_v5  ;;  %v1512_v21 = vmul.f32 %v13057_v48, %v13078_v5  ;;  %v1513_v22 = vmul.f32 %v13059_v50, %v13078_v5 }
 0x2ec   :  { %v1140_v9 = vpop.f32.mrf.mxu0 }
 0x2ed   :  { %v13086_v10 = vadd.f32 %v9829_v46, %v1140_v9  ;;  %v13098_v20 = vpack.c.bf16 %v1515_v15, %v1514_v14  ;;  %v13106_v26 = vpack.c.bf16 %v1513_v22, %v1512_v21 }
 0x2ee   :  { %v10631_v11 = vpop.f32.mrf.mxu0 }
 0x2ef   :  { %1357 = vrot.lane.b32.xlu0 %v13088_v13, %s12556_s18  ;;  %v1679_v47 = vmul.f32 %v13055_v45, %v13086_v10  ;;  %v1676_v51 = vmul.f32 %v13057_v48, %v13086_v10  ;;  %v1677_v52 = vmul.f32 %v13059_v50, %v13086_v10  ;;  %v1152_v11 = vmul.f32 0.35355338, %v13065_v59 }
 0x2f0   :  { %v1145_v16 = vpop.f32.mrf.mxu0  ;;  %v1153_v59 = vmul.f32 0.35355338, %v13078_v5  ;;  %v1154_v5 = vmul.f32 0.35355338, %v13086_v10 }
 0x2f1   :  { %v13096_v17 = vadd.f32 %v9829_v46, %v1145_v16  ;;  %v1678_v46 = vmul.f32 %v13053_v42, %v13086_v10  ;;  %v13134_v55 = vpack.c.bf16 %v1677_v52, %v1676_v51  ;;  %v1352_v15 = vpack.c.bf16 %v1152_v11, %v1152_v11 }
 0x2f2   :  { %v10634_v18 = vpop.f32.mrf.mxu0 }
 0x2f3   :  { %1523 = vrot.lane.b32.xlu0 %v13098_v20, %s12556_s18  ;;  %v13123_v49 = vpack.c.bf16 %v1679_v47, %v1678_v46 }
 0x2f4   :  { %v1148_v23 = vpop.f32.mrf.mxu0 }
 0x2f5   :  { %v1516_v23 = vpack.c.bf16 %v1153_v59, %v1153_v59 }
 0x2f6   :  { %v10635_v24 = vpop.f32.mrf.mxu0 }
 0x2f7   :  { %1521 = vrot.lane.b32.xlu0 %v13106_v26, %s12556_s18 }
 0x359   :  { %v1184_v27 = vpop.permute.xlu1 %1183  ;;  %v1182_v29 = vpop.permute.xlu0 %1181 }
 0x35a   :  { %v1192_v28 = vsel %vm1085_vm3, %v1184_v27, 0  ;;  %v1189_v30 = vsel %vm1085_vm3, %v1182_v29, 0  ;;  %v1680_v29 = vpack.c.bf16 %v1154_v5, %v1154_v5 }
 0x35b   :  { %10637 = vmatpush3.bf16.xpose.msra.mxu1 %v1192_v28 }
 0x35c   :  { %10638 = vmatprep.subr.bf16.mxu1 %v12552_v41 }
 0x35d   :  { %v1360_v2 = vpop.permute.xlu0 %1359 }
 0x35e   :  { %v1368_v7 = vsel %vm1085_vm3, %v1360_v2, 0 }
 0x361   :  { %v1358_v8 = vpop.permute.xlu0 %1357 }
 0x362   :  { %v1365_v9 = vsel %vm1085_vm3, %v1358_v8, 0 }
 0x363   :  { %10639 = vmatpush3.bf16.xpose.msra.mxu1 %v1189_v30 }
 0x364   :  { %10644 = vmatprep.subr.bf16.mxu1 %v12552_v41 }
 0x365   :  { %v1524_v14 = vpop.permute.xlu0 %1523 }
 0x366   :  { %v1532_v16 = vsel %vm1085_vm3, %v1524_v14, 0 }
 0x369   :  { %v1522_v18 = vpop.permute.xlu0 %1521 }
 0x36a   :  { %10641 = vmatmul.mubr.msk.bf16.vlgmr.msra.gmra.mxu1 %vm1085_vm3, %v1176_v34  ;;  %v1529_v21 = vsel %vm1085_vm3, %v1522_v18, 0 }
 0x36b   :  { %10648 = vmatprep.mubr.msk.bf16.mxu1 %vm12554_vm0, %v12552_v41  ;;  %10645 = vmatpush3.bf16.msra.mxu1 %v13132_v54 }
 0x36c   :  { %10646 = vmatprep.subr.bf16.mxu1 %v12552_v41 }
 0x36f   :  { %10647 = vmatpush3.bf16.msra.mxu1 %v13138_v56 }
 0x370   :  { %10660 = vmatprep.subr.bf16.mxu1 %v12552_v41 }
 0x42a   :  { %v1228_v35 = vpop.f32.mrf.mxu1 }
 0x42b   :  { %v1234_v36 = vsel %vm1085_vm3, %v1228_v35, -inf }
 0x42c   :  { %1235 = vmax.xlane.f32.xlu1 %v1234_v36  ;;  %v10642_v38 = vpop.f32.mrf.mxu1 }
 0x42e   :  { %v1231_v39 = vpop.f32.mrf.mxu1 }
 0x430   :  { %v10643_v40 = vpop.f32.mrf.mxu1 }
 0x43d   :  { %1301 = vrot.lane.b32.xlu1 %v1178_v60, %s12544_s12 }
 0x441   :  { %1687 = vrot.lane.b32.xlu1 %v13123_v49, %s12556_s18 }
 0x445   :  { %1685 = vrot.lane.b32.xlu1 %v13134_v55, %s12556_s18 }
 0x4b5   :  { %v1236_v58 = vpop.xlane.xlu1 %1235 }
 0x4b6   :  { %v1237_v60 = vsub.f32 %v1228_v35, %v1236_v58 }
 0x4b8   :  { %v1238_v61 = vmul.f32 1.442695, %v1237_v60  ;;  %v1842_v60 = vmul.f32 %v13053_v42, %v13096_v17 }
 0x4b9   :  { %v1302_v63 = vpop.permute.xlu1 %1301 }
 0x4ba   :  { %11931 = vpow2.f32 %v1238_v61  ;;  %10653 = vmatpush3.bf16.msra.mxu0 %v1302_v63  ;;  %v1843_v61 = vmul.f32 %v13055_v45, %v13096_v17 }
 0x4bb   :  { %10654 = vmatprep.subr.bf16.mxu0 %v12552_v41 }
 0x4bd   :  { %v1688_v22 = vpop.permute.xlu1 %1687 }
 0x4be   :  { %v1696_v24 = vsel %vm1085_vm3, %v1688_v22, 0 }
 0x4c1   :  { %v1686_v27 = vpop.permute.xlu1 %1685 }
 0x4c2   :  { %v1693_v28 = vsel %vm1085_vm3, %v1686_v27, 0  ;;  %v1155_v27 = vmul.f32 0.35355338, %v13096_v17 }
 0x4c7   :  { %v13146_v1 = vpop.eup %11931 }
 0x4c8   :  { %v1240_v6 = vpack.c.bf16 %v13146_v1, %v13146_v1 }
 0x4ca   :  { %10649 = vmatmul.mubr.msk.bf16.vlgmr.msra.gmra.mxu1 %vm1085_vm3, %v1240_v6  ;;  %v13194_v6 = vpack.c.bf16 %v1843_v61, %v1842_v60 }
 0x4cb   :  { %10661 = vmatpush3.bf16.xpose.msra.mxu1 %v1368_v7  ;;  %10664 = vmatprep.mubr.msk.bf16.mxu1 %vm12554_vm0, %v12552_v41 }
 0x4cc   :  { %10662 = vmatprep.subr.bf16.mxu1 %v12552_v41 }
 0x4d3   :  { %10663 = vmatpush3.bf16.xpose.msra.mxu1 %v1365_v9 }
 0x4d4   :  { %10684 = vmatprep.subr.bf16.mxu1 %v12552_v41 }
 0x4da   :  { %10665 = vmatmul.mubr.msk.bf16.vlgmr.msra.gmra.mxu1 %vm1085_vm3, %v1352_v15 }
 0x4db   :  { %10685 = vmatpush3.bf16.xpose.msra.mxu1 %v1532_v16  ;;  %10688 = vmatprep.mubr.msk.bf16.mxu1 %vm12554_vm0, %v12552_v41 }
 0x4dc   :  { %10686 = vmatprep.subr.bf16.mxu1 %v12552_v41 }
 0x4e3   :  { %10687 = vmatpush3.bf16.xpose.msra.mxu1 %v1529_v21 }
 0x4e4   :  { %10708 = vmatprep.subr.bf16.mxu1 %v12552_v41 }
 0x4ea   :  { %10689 = vmatmul.mubr.msk.bf16.vlgmr.msra.gmra.mxu1 %vm1085_vm3, %v1516_v23 }
 0x4eb   :  { %10709 = vmatpush3.bf16.xpose.msra.mxu1 %v1696_v24  ;;  %10712 = vmatprep.mubr.msk.bf16.mxu1 %vm12554_vm0, %v12552_v41 }
 0x4ec   :  { %10710 = vmatprep.subr.bf16.mxu1 %v12552_v41 }
 0x4f3   :  { %10711 = vmatpush3.bf16.xpose.msra.mxu1 %v1693_v28  ;;  %v1844_v28 = vpack.c.bf16 %v1155_v27, %v1155_v27 }
 0x4f4   :  { %10732 = vmatprep.subr.bf16.mxu1 %v12552_v41 }
 0x4fa   :  { %10713 = vmatmul.mubr.msk.bf16.vlgmr.msra.gmra.mxu1 %vm1085_vm3, %v1680_v29 }
 0x4fb   :  { %10736 = vmatprep.mubr.msk.bf16.mxu1 %vm12554_vm0, %v12552_v41 }
 0x58a   :  { %v1290_v30 = vpop.f32.mrf.mxu1 }
 0x58b   :  { %11933 = vrcp.f32 %v1290_v30 }
 0x58c   :  { %v10650_v32 = vpop.f32.mrf.mxu1 }
 0x58e   :  { %v1293_v34 = vpop.f32.mrf.mxu1 }
 0x590   :  { %v10651_v35 = vpop.f32.mrf.mxu1 }
 0x59a   :  { %v1404_v36 = vpop.f32.mrf.mxu1 }
 0x59b   :  { %v1410_v38 = vsel %vm1085_vm3, %v1404_v36, -inf }
 0x59c   :  { %1411 = vmax.xlane.f32.xlu0 %v1410_v38  ;;  %v10666_v39 = vpop.f32.mrf.mxu1 }
 0x59e   :  { %v1407_v40 = vpop.f32.mrf.mxu1 }
 0x5a0   :  { %v10667_v46 = vpop.f32.mrf.mxu1 }
 0x5aa   :  { %v13178_v10 = vpop.f32.mrf.mxu1 }
 0x5ab   :  { %v1574_v47 = vsel %vm1085_vm3, %v13178_v10, -inf }
 0x5ac   :  { %1575 = vmax.xlane.f32.xlu1 %v1574_v47  ;;  %v10690_v51 = vpop.f32.mrf.mxu1 }
 0x5ae   :  { %v1571_v52 = vpop.f32.mrf.mxu1 }
 0x5b0   :  { %v10691_v58 = vpop.f32.mrf.mxu1 }
 0x5b2   :  { %1299 = vrot.lane.b32.xlu0 %v13067_v62, %s12544_s12  ;;  %v1840_v62 = vmul.f32 %v13057_v48, %v13096_v17 }
 0x5b6   :  { %1465 = vrot.lane.b32.xlu0 %v13076_v4, %s12544_s12  ;;  %v1841_v4 = vmul.f32 %v13059_v50, %v13096_v17 }
 0x5ba   :  { %1463 = vrot.lane.b32.xlu0 %v13088_v13, %s12544_s12  ;;  %v13192_v63 = vpop.f32.mrf.mxu1  ;;  %v13204_v13 = vpack.c.bf16 %v1841_v4, %v1840_v62 }
 0x5bb   :  { %v1738_v9 = vsel %vm1085_vm3, %v13192_v63, -inf }
 0x5bc   :  { %v10714_v2 = vpop.f32.mrf.mxu1 }
 0x5bd   :  { %1629 = vrot.lane.b32.xlu1 %v13098_v20, %s12544_s12  ;;  %v11934_v20 = vpop.eup %11933 }
 0x5be   :  { %1851 = vrot.lane.b32.xlu0 %v13194_v6, %s12556_s18  ;;  %v1735_v7 = vpop.f32.mrf.mxu1  ;;  %v1297_v15 = vmul.f32 %v11934_v20, %v13146_v1 }
 0x5bf   :  { %v11821_v7 = vld [vmem:[%s15627_s22 + $0x8] sm:$0xff]  }
 0x5c0   :  { %v10715_v8 = vpop.f32.mrf.mxu1  ;;  %v1298_v18 = vpack.c.bf16 %v1297_v15, %v1297_v15 }
 0x5c1   :  { %1627 = vrot.lane.b32.xlu1 %v13106_v26, %s12544_s12 }
 0x5c2   :  { %1849 = vrot.lane.b32.xlu0 %v13204_v13, %s12556_s18 }
 0x5e1   :  { %1739 = vmax.xlane.f32.xlu0 %v1738_v9  ;;  %v11822_v9 = vld [vmem:[%s15627_s22] sm:$0xff]  }
 0x5f7   :  { %1793 = vrot.lane.b32.xlu0 %v13123_v49, %s12544_s12 }
 0x5fb   :  { %1791 = vrot.lane.b32.xlu0 %v13134_v55, %s12544_s12 }
 0x625   :  { %v1412_v11 = vpop.xlane.xlu0 %1411 }
 0x626   :  { %v1413_v14 = vsub.f32 %v1404_v36, %v1412_v11 }
 0x628   :  { %v1414_v26 = vmul.f32 1.442695, %v1413_v14 }
 0x629   :  { %v1300_v16 = vpop.permute.xlu0 %1299 }
 0x62a   :  { %11935 = vpow2.f32 %v1414_v26  ;;  %10655 = vmatpush3.bf16.msra.mxu0 %v1300_v16 }
 0x62b   :  { %10668 = vmatprep.subr.bf16.mxu0 %v12552_v41 }
 0x62d   :  { %10657 = vmatmul.mubr.msk.bf16.vlgmr.msra.gmra.mxu0 %vm1085_vm3, %v1298_v18  ;;  %v1466_v21 = vpop.permute.xlu0 %1465 }
 0x62e   :  { %10669 = vmatpush3.bf16.msra.mxu0 %v13132_v54  ;;  %10672 = vmatprep.mubr.msk.bf16.mxu0 %vm12554_vm0, %v12552_v41 }
 0x62f   :  { %10670 = vmatprep.subr.bf16.mxu0 %v12552_v41 }
 0x631   :  { %v1464_v49 = vpop.permute.xlu0 %1463 }
 0x632   :  { %10671 = vmatpush3.bf16.msra.mxu0 %v13138_v56 }
 0x633   :  { %10676 = vmatprep.subr.bf16.mxu0 %v12552_v41 }
 0x635   :  { %v1852_v55 = vpop.permute.xlu0 %1851  ;;  %v1576_v34 = vpop.xlane.xlu1 %1575 }
 0x636   :  { %v1860_v1 = vsel %vm1085_vm3, %v1852_v55, 0  ;;  %v1577_v36 = vsub.f32 %v13178_v10, %v1576_v34 }
 0x637   :  { %v11936_v59 = vpop.eup %11935  ;;  %10733 = vmatpush3.bf16.xpose.msra.mxu1 %v1860_v1 }
 0x638   :  { %v1416_v22 = vpack.c.bf16 %v11936_v59, %v11936_v59  ;;  %10734 = vmatprep.subr.bf16.mxu1 %v12552_v41  ;;  %v1578_v39 = vmul.f32 1.442695, %v1577_v36 }
 0x639   :  { %v1850_v23 = vpop.permute.xlu0 %1849  ;;  %v1630_v62 = vpop.permute.xlu1 %1629 }
 0x63a   :  { %10673 = vmatmul.mubr.msk.bf16.vlgmr.msra.gmra.mxu0 %vm1085_vm3, %v1416_v22  ;;  %v1857_v24 = vsel %vm1085_vm3, %v1850_v23, 0 }
 0x63b   :  { %10677 = vmatpush3.bf16.msra.mxu0 %v1466_v21  ;;  %10680 = vmatprep.mubr.msk.bf16.mxu0 %vm12554_vm0, %v12552_v41 }
 0x63c   :  { %10678 = vmatprep.subr.bf16.mxu0 %v12552_v41 }
 0x63d   :  { %v1628_v8 = vpop.permute.xlu1 %1627 }
 0x63f   :  { %10679 = vmatpush3.bf16.msra.mxu0 %v1464_v49  ;;  %10735 = vmatpush3.bf16.xpose.msra.mxu1 %v1857_v24 }
 0x640   :  { %10692 = vmatprep.subr.bf16.mxu0 %v12552_v41  ;;  %10756 = vmatprep.subr.bf16.mxu1 %v12552_v41 }
 0x646   :  { %10737 = vmatmul.mubr.msk.bf16.vlgmr.msra.gmra.mxu1 %vm1085_vm3, %v1844_v28 }
 0x647   :  { %10760 = vmatprep.mubr.msk.bf16.mxu1 %vm12554_vm0, %v12552_v41  ;;  %10757 = vmatpush3.bf16.msra.mxu1 %v11821_v7 }
 0x648   :  { %10758 = vmatprep.subr.bf16.mxu1 %v12552_v41 }
 0x64b   :  { %10759 = vmatpush3.bf16.msra.mxu1 %v11822_v9 }
 0x64c   :  { %10788 = vmatprep.subr.bf16.mxu1 %v12552_v41 }
 0x66a   :  { %v1740_v26 = vpop.xlane.xlu0 %1739 }
 0x66b   :  { %v1741_v21 = vsub.f32 %v13192_v63, %v1740_v26 }
 0x66d   :  { %v1742_v1 = vmul.f32 1.442695, %v1741_v21 }
 0x66e   :  { %v1794_v63 = vpop.permute.xlu0 %1793 }
 0x6ed   :  { %v1342_v5 = vpop.f32.mrf.mxu0 }
 0x6ef   :  { %v10658_v29 = vpop.f32.mrf.mxu0 }
 0x6f0   :  { %v13275_v29 = vld [vmem:[#allocation5] ss:$0 sm:$0xff] }
 0x6f1   :  { %v1345_v30 = vpop.f32.mrf.mxu0 }
 0x6f3   :  { %v10659_v32 = vpop.f32.mrf.mxu0 }
 0x6fa   :  { %v1454_v35 = vpop.f32.mrf.mxu0 }
 0x6fb   :  { %11937 = vrcp.f32 %v1454_v35 }
 0x6fc   :  { %v10674_v17 = vpop.f32.mrf.mxu0  ;;  %11939 = vpow2.f32 %v1578_v39 }
 0x6fe   :  { %v1457_v38 = vpop.f32.mrf.mxu0 }
 0x700   :  { %v10675_v40 = vpop.f32.mrf.mxu0 }
 0x706   :  { %v13239_v46 = vpop.f32.mrf.mxu1 }
 0x707   :  { %v1902_v47 = vsel %vm1085_vm3, %v13239_v46, -inf }
 0x708   :  { %v11938_v51 = vpop.eup %11937  ;;  %1903 = vmax.xlane.f32.xlu1 %v1902_v47  ;;  %v10738_v52 = vpop.f32.mrf.mxu1 }
 0x709   :  { %v1461_v58 = vmul.f32 %v11938_v51, %v11936_v59  ;;  %v11940_v10 = vpop.eup %11939 }
 0x70a   :  { %v1899_v60 = vpop.f32.mrf.mxu1  ;;  %v1580_v4 = vpack.c.bf16 %v11940_v10, %v11940_v10 }
 0x70b   :  { %v1462_v61 = vpack.c.bf16 %v1461_v58, %v1461_v58 }
 0x70c   :  { %v10739_v2 = vpop.f32.mrf.mxu1 }
 0x70d   :  { %10681 = vmatmul.mubr.msk.bf16.vlgmr.msra.gmra.mxu0 %vm1085_vm3, %v1462_v61 }
 0x70e   :  { %10693 = vmatpush3.bf16.msra.mxu0 %v13132_v54  ;;  %10696 = vmatprep.mubr.msk.bf16.mxu0 %vm12554_vm0, %v12552_v41 }
 0x70f   :  { %10694 = vmatprep.subr.bf16.mxu0 %v12552_v41 }
 0x712   :  { %10695 = vmatpush3.bf16.msra.mxu0 %v13138_v56 }
 0x713   :  { %10700 = vmatprep.subr.bf16.mxu0 %v12552_v41 }
 0x715   :  { %10697 = vmatmul.mubr.msk.bf16.vlgmr.msra.gmra.mxu0 %vm1085_vm3, %v1580_v4 }
 0x716   :  { %10701 = vmatpush3.bf16.msra.mxu0 %v1630_v62  ;;  %10704 = vmatprep.mubr.msk.bf16.mxu0 %vm12554_vm0, %v12552_v41 }
 0x717   :  { %10702 = vmatprep.subr.bf16.mxu0 %v12552_v41 }
 0x71a   :  { %10703 = vmatpush3.bf16.msra.mxu0 %v1628_v8 }
 0x71b   :  { %10716 = vmatprep.subr.bf16.mxu0 %v12552_v41 }
 0x791   :  { %v1904_v60 = vpop.xlane.xlu1 %1903 }
 0x792   :  { %v1905_v2 = vsub.f32 %v13239_v46, %v1904_v60 }
 0x794   :  { %v1906_v62 = vmul.f32 1.442695, %v1905_v2 }
 0x7cd   :  { %v1506_v20 = vpop.f32.mrf.mxu0 }
 0x7ce   :  { %v2008_v11 = vpack.c.bf16 %v1506_v20, %v1342_v5  ;;  %v1792_v5 = vpop.permute.xlu0 %1791 }
 0x7cf   :  { %v10682_v14 = vpop.f32.mrf.mxu0 }
 0x7d0   :  { %10761 = vmatmul.mubr.msk.bf16.vlgmr.msra.gmra.mxu1 %vm1085_vm3, %v2008_v11 }
 0x7d1   :  { %v1509_v15 = vpop.f32.mrf.mxu0  ;;  %10764 = vmatprep.mubr.msk.bf16.mxu1 %vm12554_vm0, %v12552_v41 }
 0x7d3   :  { %v10683_v16 = vpop.f32.mrf.mxu0 }
 0x7d5   :  { %v1618_v18 = vpop.f32.mrf.mxu0 }
 0x7d6   :  { %11941 = vrcp.f32 %v1618_v18 }
 0x7d7   :  { %v10698_v49 = vpop.f32.mrf.mxu0  ;;  %11943 = vpow2.f32 %v1742_v1 }
 0x7d9   :  { %v1621_v55 = vpop.f32.mrf.mxu0 }
 0x7db   :  { %v10699_v59 = vpop.f32.mrf.mxu0 }
 0x7e3   :  { %v11942_v22 = vpop.eup %11941 }
 0x7e4   :  { %v1625_v23 = vmul.f32 %v11942_v22, %v11940_v10  ;;  %v11944_v27 = vpop.eup %11943 }
 0x7e5   :  { %v1744_v28 = vpack.c.bf16 %v11944_v27, %v11944_v27 }
 0x7e6   :  { %v1626_v24 = vpack.c.bf16 %v1625_v23, %v1625_v23 }
 0x7e8   :  { %10705 = vmatmul.mubr.msk.bf16.vlgmr.msra.gmra.mxu0 %vm1085_vm3, %v1626_v24 }
 0x7e9   :  { %10717 = vmatpush3.bf16.msra.mxu0 %v13132_v54  ;;  %10720 = vmatprep.mubr.msk.bf16.mxu0 %vm12554_vm0, %v12552_v41 }
 0x7ea   :  { %10718 = vmatprep.subr.bf16.mxu0 %v12552_v41 }
 0x7ed   :  { %10719 = vmatpush3.bf16.msra.mxu0 %v13138_v56 }
 0x7ee   :  { %10724 = vmatprep.subr.bf16.mxu0 %v12552_v41 }
 0x7f0   :  { %10721 = vmatmul.mubr.msk.bf16.vlgmr.msra.gmra.mxu0 %vm1085_vm3, %v1744_v28 }
 0x7f1   :  { %10725 = vmatpush3.bf16.msra.mxu0 %v1794_v63  ;;  %10728 = vmatprep.mubr.msk.bf16.mxu0 %vm12554_vm0, %v12552_v41 }
 0x7f2   :  { %10726 = vmatprep.subr.bf16.mxu0 %v12552_v41 }
 0x7f5   :  { %10727 = vmatpush3.bf16.msra.mxu0 %v1792_v5 }
 0x7f6   :  { %10740 = vmatprep.subr.bf16.mxu0 %v12552_v41 }
 0x890   :  { %v2073_v30 = vpop.f32.mrf.mxu1 }
 0x891   :  { %v2074_v32 = vadd.f32 %v13275_v29, %v2073_v30 }
 0x892   :  { %v10762_v34 = vpop.f32.mrf.mxu1 }
 0x893   :  { %v2096_v35 = vadd.f32 %v2074_v32, %v13018_v43  ;;  %v11823_v32 = vld [vmem:[%s15628_s23 + $0x8] sm:$0xff]  }
 0x894   :  { %v2076_v36 = vpop.f32.mrf.mxu1 }
 0x895   :  { %v2077_v17 = vadd.f32 %v13275_v29, %v2076_v36  ;;  %v2101_v38 = vsel %vm1085_vm3, %v2096_v35, 0.0 }
 0x896   :  { %2102 = vadd.xlane.f32.xlu0 %v2101_v38  ;;  %v10763_v39 = vpop.f32.mrf.mxu1 }
 0x897   :  { %v2097_v40 = vadd.f32 %v2077_v17, %v13020_v44 }
 0x899   :  { %v2104_v47 = vsel %vm1085_vm3, %v2097_v40, 0.0 }
 0x89a   :  { %2105 = vadd.xlane.f32.xlu1 %v2104_v47 }
 0x8a8   :  { %v1670_v51 = vpop.f32.mrf.mxu0 }
 0x8aa   :  { %v10706_v52 = vpop.f32.mrf.mxu0 }
 0x8ab   :  { %1957 = vrot.lane.b32.xlu1 %v13194_v6, %s12544_s12 }
 0x8ac   :  { %v1673_v58 = vpop.f32.mrf.mxu0 }
 0x8ad   :  { %v13318_v58 = vld [vmem:[#allocation7] sm:$0xf] }
 0x8ae   :  { %v10707_v43 = vpop.f32.mrf.mxu0 }
 0x8af   :  { %1955 = vrot.lane.b32.xlu1 %v13204_v13, %s12544_s12 }
 0x8b0   :  { %v1782_v61 = vpop.f32.mrf.mxu0 }
 0x8b1   :  { %11945 = vrcp.f32 %v1782_v61 }
 0x8b2   :  { %v10722_v10 = vpop.f32.mrf.mxu0  ;;  %11947 = vpow2.f32 %v1906_v62 }
 0x8b4   :  { %v1785_v44 = vpop.f32.mrf.mxu0 }
 0x8b6   :  { %v10723_v4 = vpop.f32.mrf.mxu0 }
 0x8be   :  { %v11946_v7 = vpop.eup %11945 }
 0x8bf   :  { %v1789_v8 = vmul.f32 %v11946_v7, %v11944_v27  ;;  %v11948_v6 = vpop.eup %11947 }
 0x8c0   :  { %v1908_v13 = vpack.c.bf16 %v11948_v6, %v11948_v6 }
 0x8c1   :  { %v1790_v9 = vpack.c.bf16 %v1789_v8, %v1789_v8 }
 0x8c3   :  { %10729 = vmatmul.mubr.msk.bf16.vlgmr.msra.gmra.mxu0 %vm1085_vm3, %v1790_v9 }
 0x8c4   :  { %10741 = vmatpush3.bf16.msra.mxu0 %v13132_v54  ;;  %10744 = vmatprep.mubr.msk.bf16.mxu0 %vm12554_vm0, %v12552_v41 }
 0x8c5   :  { %10742 = vmatprep.subr.bf16.mxu0 %v12552_v41 }
 0x8c8   :  { %10743 = vmatpush3.bf16.msra.mxu0 %v13138_v56 }
 0x8c9   :  { %10748 = vmatprep.subr.bf16.mxu0 %v12552_v41 }
 0x8cb   :  { %10745 = vmatmul.mubr.msk.bf16.vlgmr.msra.gmra.mxu0 %vm1085_vm3, %v1908_v13  ;;  %v11826_v13 = vld [vmem:[%s15629_s26 + $0x10] sm:$0xff]  }
 0x8cc   :  { %10752 = vmatprep.mubr.msk.bf16.mxu0 %vm12554_vm0, %v12552_v41 }
 0x91f   :  { %v2103_v46 = vpop.xlane.xlu0 %2102 }
 0x920   :  { %v2117_v20 = vmul.f32 0.03125, %v2103_v46  ;;  %v11827_v46 = vld [vmem:[%s15629_s26 + $0x8] sm:$0xff]  }
 0x922   :  { %v2122_v11 = vsub.f32 %v2096_v35, %v2117_v20  ;;  %v11824_v35 = vld [vmem:[%s15628_s23] sm:$0xff]  }
 0x923   :  { %v2106_v54 = vpop.xlane.xlu1 %2105  ;;  %v11828_v20 = vld [vmem:[%s15629_s26] sm:$0xff]  }
 0x924   :  { %v2118_v14 = vmul.f32 0.03125, %v2106_v54  ;;  %v2127_v15 = vmul.f32 %v2122_v11, %v2122_v11 }
 0x926   :  { %v2123_v26 = vsub.f32 %v2097_v40, %v2118_v14  ;;  %v2132_v16 = vsel %vm1085_vm3, %v2127_v15, 0.0 }
 0x927   :  { %2133 = vadd.xlane.f32.xlu0 %v2132_v16  ;;  %v1958_v18 = vpop.permute.xlu1 %1957 }
 0x928   :  { %10749 = vmatpush3.bf16.msra.mxu0 %v1958_v18  ;;  %v2128_v56 = vmul.f32 %v2123_v26, %v2123_v26 }
 0x929   :  { %10750 = vmatprep.subr.bf16.mxu0 %v12552_v41 }
 0x92a   :  { %v2135_v21 = vsel %vm1085_vm3, %v2128_v56, 0.0 }
 0x92b   :  { %2136 = vadd.xlane.f32.xlu1 %v2135_v21  ;;  %v1956_v49 = vpop.permute.xlu1 %1955 }
 0x92c   :  { %10751 = vmatpush3.bf16.msra.mxu0 %v1956_v49 }
 0x92d   :  { %10772 = vmatprep.subr.bf16.mxu0 %v12552_v41 }
 0x983   :  { %v1834_v55 = vpop.f32.mrf.mxu0 }
 0x984   :  { %v2009_v1 = vpack.c.bf16 %v1834_v55, %v1670_v51  ;;  %v13313_v51 = vshrl.u32 %v323_v33, 7 }
 0x985   :  { %v10730_v59 = vpop.f32.mrf.mxu0 }
 0x986   :  { %10765 = vmatmul.mubr.msk.bf16.gmra.mxu1 %vm1085_vm3, %v2009_v1  ;;  %v13316_v52 = vsub.s32 0, %v13313_v51  ;;  %v13321_v43 = vsub.s32 1, %v13313_v51 }
 0x987   :  { %v1837_v22 = vpop.f32.mrf.mxu0  ;;  %10768 = vmatprep.mubr.msk.bf16.mxu1 %vm12554_vm0, %v12552_v41 }
 0x988   :  { %v13325_v2 = vrot.slane %v13318_v58, %v13316_v52  ;;  %v13330_v62 = vrot.slane %v13318_v58, %v13321_v43 }
 0x989   :  { %v10731_v23 = vpop.f32.mrf.mxu0 }
 0x98a   :  { %v13361_v23 = vld [vmem:[#allocation8] ss:$0 sm:$0xff] }
 0x98b   :  { %v1946_v24 = vpop.f32.mrf.mxu0 }
 0x98c   :  { %11949 = vrcp.f32 %v1946_v24 }
 0x98d   :  { %v10746_v27 = vpop.f32.mrf.mxu0 }
 0x98f   :  { %v1949_v63 = vpop.f32.mrf.mxu0 }
 0x991   :  { %v10747_v28 = vpop.f32.mrf.mxu0 }
 0x999   :  { %v11950_v5 = vpop.eup %11949 }
 0x99a   :  { %v1953_v30 = vmul.f32 %v11950_v5, %v11948_v6  ;;  %v11825_v6 = vld [vmem:[%s15629_s26 + $0x18] sm:$0xff]  }
 0x99b   :  { %10789 = vmatpush3.bf16.msra.mxu1 %v11825_v6 }
 0x99c   :  { %v1954_v34 = vpack.c.bf16 %v1953_v30, %v1953_v30  ;;  %10790 = vmatprep.subr.bf16.mxu1 %v12552_v41 }
 0x99e   :  { %10753 = vmatmul.mubr.msk.bf16.vlgmr.msra.gmra.mxu0 %vm1085_vm3, %v1954_v34 }
 0x99f   :  { %10773 = vmatpush3.bf16.msra.mxu0 %v11823_v32  ;;  %10776 = vmatprep.mubr.msk.bf16.mxu0 %vm12554_vm0, %v12552_v41 }
 0x9a0   :  { %10774 = vmatprep.subr.bf16.mxu0 %v12552_v41  ;;  %10791 = vmatpush3.bf16.msra.mxu1 %v11826_v13 }
 0x9a1   :  { %10792 = vmatprep.subr.bf16.mxu1 %v12552_v41 }
 0x9a3   :  { %10775 = vmatpush3.bf16.msra.mxu0 %v11824_v35 }
 0x9a4   :  { %10808 = vmatprep.subr.bf16.mxu0 %v12552_v41  ;;  %10793 = vmatpush3.bf16.msra.mxu1 %v11827_v46 }
 0x9a5   :  { %10794 = vmatprep.subr.bf16.mxu1 %v12552_v41 }
 0x9a8   :  { %10795 = vmatpush3.bf16.msra.mxu1 %v11828_v20 }
 0x9a9   :  { %10824 = vmatprep.subr.bf16.mxu1 %v12552_v41 }
 0x9b0   :  { %v2134_v36 = vpop.xlane.xlu0 %2133 }
 0x9b1   :  { %v2147_v17 = vmul.f32 0.03125, %v2134_v36 }
 0x9b3   :  { %v2152_v38 = vadd.f32 1e-06, %v2147_v17 }
 0x9b4   :  { %v2137_v39 = vpop.xlane.xlu1 %2136 }
 0x9b5   :  { %11951 = vrsqrt.f32 %v2152_v38  ;;  %v2148_v40 = vmul.f32 0.03125, %v2137_v39 }
 0x9b7   :  { %v2153_v47 = vadd.f32 1e-06, %v2148_v40 }
 0x9b9   :  { %11953 = vrsqrt.f32 %v2153_v47 }
 0x9c2   :  { %v11952_v60 = vpop.eup %11951 }
 0x9c3   :  { %v2162_v61 = vmul.f32 %v11952_v60, %v2122_v11 }
 0x9c5   :  { %v2171_v44 = vmul.f32 %v13325_v2, %v2162_v61 }
 0x9c6   :  { %v11954_v10 = vpop.eup %11953 }
 0x9c7   :  { %v2163_v33 = vmul.f32 %v11954_v10, %v2123_v26  ;;  %v13334_v7 = vadd.f32 %v13330_v62, %v2171_v44 }
 0x9c9   :  { %v2172_v4 = vmul.f32 %v13325_v2, %v2163_v33 }
 0x9cb   :  { %v13337_v8 = vadd.f32 %v13330_v62, %v2172_v4 }
 0x9cd   :  { %v2189_v9 = vpack.c.bf16 %v13337_v8, %v13334_v7 }
 0x9cf   :  { %10777 = vmatmul.mubr.msk.bf16.vlgmr.msra.gmra.mxu0 %vm1085_vm3, %v2189_v9 }
 0x9d0   :  { %10780 = vmatprep.mubr.msk.bf16.mxu0 %vm12554_vm0, %v12552_v41 }
 0xa46   :  { %v2081_v11 = vpop.f32.mrf.mxu1 }
 0xa47   :  { %v2082_v54 = vadd.f32 %v13275_v29, %v2081_v11 }
 0xa48   :  { %v10766_v14 = vpop.f32.mrf.mxu1 }
 0xa49   :  { %v2098_v15 = vadd.f32 %v2082_v54, %v13027_v53  ;;  %v13373_v14 = vld [vmem:[#allocation10] ss:$0 sm:$0xff] }
 0xa4a   :  { %v2084_v26 = vpop.f32.mrf.mxu1 }
 0xa4b   :  { %v2085_v16 = vadd.f32 %v13275_v29, %v2084_v26  ;;  %v2107_v18 = vsel %vm1085_vm3, %v2098_v15, 0.0 }
 0xa4c   :  { %2108 = vadd.xlane.f32.xlu0 %v2107_v18  ;;  %v10767_v56 = vpop.f32.mrf.mxu1 }
 0xa4d   :  { %v2099_v21 = vadd.f32 %v2085_v16, %v13029_v57 }
 0xa4f   :  { %v2110_v49 = vsel %vm1085_vm3, %v2099_v21, 0.0 }
 0xa50   :  { %2111 = vadd.xlane.f32.xlu0 %v2110_v49 }
 0xa5e   :  { %v1998_v55 = vpop.f32.mrf.mxu0 }
 0xa5f   :  { %v2010_v1 = vpack.c.bf16 %v1998_v55, %v1998_v55 }
 0xa60   :  { %v10754_v59 = vpop.f32.mrf.mxu0 }
 0xa61   :  { %10769 = vmatmul.mubr.msk.bf16.gmra.mxu1 %vm1085_vm3, %v2010_v1 }
 0xa62   :  { %v2001_v22 = vpop.f32.mrf.mxu0  ;;  %10796 = vmatprep.mubr.msk.bf16.mxu1 %vm12554_vm0, %v12552_v41 }
 0xa64   :  { %v10755_v53 = vpop.f32.mrf.mxu0 }
 0xa8f   :  { %v2254_v24 = vpop.f32.mrf.mxu0 }
 0xa90   :  { %v2255_v63 = vadd.f32 %v13361_v23, %v2254_v24 }
 0xa91   :  { %v10778_v27 = vpop.f32.mrf.mxu0 }
 0xa92   :  { %v2276_v30 = vmax.f32 %v2255_v63, 0.0 }
 0xa93   :  { %v2257_v57 = vpop.f32.mrf.mxu0 }
 0xa94   :  { %v2258_v28 = vadd.f32 %v13361_v23, %v2257_v57 }
 0xa95   :  { %v10779_v5 = vpop.f32.mrf.mxu0 }
 0xa96   :  { %v2277_v32 = vmax.f32 %v2258_v28, 0.0 }
 0xa98   :  { %v2289_v34 = vpack.c.bf16 %v2277_v32, %v2276_v30 }
 0xa9a   :  { %10797 = vmatmul.mubr.msk.bf16.vlgmr.msra.gmra.mxu1 %vm2323_vm10, %v2289_v34 }
 0xa9b   :  { %10800 = vmatprep.mubr.msk.bf16.mxu1 %vm12554_vm0, %v12552_v41 }
 0xad5   :  { %v2109_v35 = vpop.xlane.xlu0 %2108 }
 0xad6   :  { %v2119_v36 = vmul.f32 0.03125, %v2109_v35 }
 0xad8   :  { %v2124_v39 = vsub.f32 %v2098_v15, %v2119_v36 }
 0xad9   :  { %v2112_v17 = vpop.xlane.xlu0 %2111 }
 0xada   :  { %v2120_v40 = vmul.f32 0.03125, %v2112_v17  ;;  %v2129_v4 = vmul.f32 %v2124_v39, %v2124_v39 }
 0xadc   :  { %v2125_v33 = vsub.f32 %v2099_v21, %v2120_v40  ;;  %v2138_v6 = vsel %vm1085_vm3, %v2129_v4, 0.0 }
 0xade   :  { %v2130_v13 = vmul.f32 %v2125_v33, %v2125_v33 }
 0xae0   :  { %v2141_v46 = vsel %vm1085_vm3, %v2130_v13, 0.0 }
 0xb21   :  { %v2089_v38 = vpop.f32.mrf.mxu1 }
 0xb22   :  { %v2090_v47 = vadd.f32 %v13275_v29, %v2089_v38 }
 0xb23   :  { %v10770_v60 = vpop.f32.mrf.mxu1 }
 0xb24   :  { %v2100_v61 = vadd.f32 %v2090_v47, %v13036_v3 }
 0xb25   :  { %v2092_v10 = vpop.f32.mrf.mxu1 }
 0xb26   :  { %v2113_v44 = vsel %vm1085_vm3, %v2100_v61, 0.0 }
 0xb27   :  { %2114 = vadd.xlane.f32.xlu0 %v2113_v44  ;;  %v10771_v9 = vpop.f32.mrf.mxu1 }
 0xb2b   :  { %2139 = vadd.xlane.f32.xlu0 %v2138_v6 }
 0xb2f   :  { %2142 = vadd.xlane.f32.xlu0 %v2141_v46 }
 0xb5a   :  { %v2367_v20 = vpop.f32.mrf.mxu1 }
 0xb5b   :  { %v2368_v26 = vadd.f32 %v13373_v14, %v2367_v20 }
 0xb5c   :  { %v10798_v11 = vpop.f32.mrf.mxu1 }
 0xb5d   :  { %v2389_v59 = vadd.f32 %v2368_v26, %v13334_v7 }
 0xb5e   :  { %v2370_v29 = vpop.f32.mrf.mxu1 }
 0xb5f   :  { %v2371_v49 = vadd.f32 %v13373_v14, %v2370_v29  ;;  %v2394_v27 = vsel %vm1085_vm3, %v2389_v59, 0.0 }
 0xb60   :  { %v10799_v54 = vpop.f32.mrf.mxu1 }
 0xb61   :  { %v2390_v63 = vadd.f32 %v2371_v49, %v13337_v8  ;;  %v11829_v54 = vld [vmem:[%s15625_s17 + $0x18] sm:$0xff]  }
 0xb62   :  { %10809 = vmatpush3.bf16.msra.mxu0 %v11829_v54 }
 0xb63   :  { %v2397_v57 = vsel %vm1085_vm3, %v2390_v63, 0.0  ;;  %10810 = vmatprep.subr.bf16.mxu0 %v12552_v41 }
 0xbb0   :  { %v2115_v3 = vpop.xlane.xlu0 %2114 }
 0xbb1   :  { %v2121_v15 = vmul.f32 0.03125, %v2115_v3  ;;  %v11830_v3 = vld [vmem:[%s15625_s17 + $0x10] sm:$0xff]  }
 0xbb2   :  { %10811 = vmatpush3.bf16.msra.mxu0 %v11830_v3 }
 0xbb3   :  { %v2126_v16 = vsub.f32 %v2100_v61, %v2121_v15  ;;  %10848 = vmatprep.subr.bf16.mxu0 %v12552_v41 }
 0xbb4   :  { %v2140_v18 = vpop.xlane.xlu0 %2139 }
 0xbb5   :  { %v2149_v56 = vmul.f32 0.03125, %v2140_v18  ;;  %v2131_v21 = vmul.f32 %v2126_v16, %v2126_v16 }
 0xbb7   :  { %v2154_v55 = vadd.f32 1e-06, %v2149_v56  ;;  %v2144_v1 = vsel %vm1085_vm3, %v2131_v21, 0.0 }
 0xbb8   :  { %2145 = vadd.xlane.f32.xlu0 %v2144_v1  ;;  %v2143_v22 = vpop.xlane.xlu0 %2142 }
 0xbb9   :  { %11955 = vrsqrt.f32 %v2154_v55  ;;  %v2150_v53 = vmul.f32 0.03125, %v2143_v22 }
 0xbbb   :  { %v2155_v24 = vadd.f32 1e-06, %v2150_v53 }
 0xbbc   :  { %2395 = vadd.xlane.f32.xlu0 %v2394_v27  ;;  %v13416_v27 = vsub.s32 2, %v13313_v51 }
 0xbbd   :  { %11957 = vrsqrt.f32 %v2155_v24 }
 0xbc0   :  { %2398 = vadd.xlane.f32.xlu0 %v2397_v57  ;;  %v13419_v57 = vsub.s32 3, %v13313_v51 }
 0xbc6   :  { %v11956_v28 = vpop.eup %11955 }
 0xbc7   :  { %v2164_v5 = vmul.f32 %v11956_v28, %v2124_v39  ;;  %v13423_v28 = vrot.slane %v13318_v58, %v13416_v27 }
 0xbc9   :  { %v2173_v7 = vmul.f32 %v13325_v2, %v2164_v5 }
 0xbca   :  { %v11958_v30 = vpop.eup %11957 }
 0xbcb   :  { %v2165_v32 = vmul.f32 %v11958_v30, %v2125_v33  ;;  %v13385_v35 = vadd.f32 %v13330_v62, %v2173_v7 }
 0xbcd   :  { %v2174_v34 = vmul.f32 %v13325_v2, %v2165_v32 }
 0xbcf   :  { %v13388_v36 = vadd.f32 %v13330_v62, %v2174_v34  ;;  %v13428_v34 = vrot.slane %v13318_v58, %v13419_v57 }
 0xbd1   :  { %v2190_v8 = vpack.c.bf16 %v13388_v36, %v13385_v35 }
 0xbd3   :  { %10781 = vmatmul.mubr.msk.bf16.gmra.mxu0 %vm1085_vm3, %v2190_v8 }
 0xbd4   :  { %10784 = vmatprep.mubr.msk.bf16.mxu0 %vm12554_vm0, %v12552_v41 }
 0xc41   :  { %v2146_v17 = vpop.xlane.xlu0 %2145 }
 0xc42   :  { %v2151_v38 = vmul.f32 0.03125, %v2146_v17 }
 0xc44   :  { %v2156_v39 = vadd.f32 1e-06, %v2151_v38 }
 0xc45   :  { %v2396_v40 = vpop.xlane.xlu0 %2395 }
 0xc46   :  { %11959 = vrsqrt.f32 %v2156_v39  ;;  %v2409_v47 = vmul.f32 0.03125, %v2396_v40 }
 0xc48   :  { %v2414_v60 = vsub.f32 %v2389_v59, %v2409_v47 }
 0xc49   :  { %v2399_v61 = vpop.xlane.xlu0 %2398 }
 0xc4a   :  { %v2410_v10 = vmul.f32 0.03125, %v2399_v61  ;;  %v2419_v33 = vmul.f32 %v2414_v60, %v2414_v60 }
 0xc4c   :  { %v2415_v44 = vsub.f32 %v2390_v63, %v2410_v10  ;;  %v2424_v4 = vsel %vm1085_vm3, %v2419_v33, 0.0 }
 0xc4d   :  { %2425 = vadd.xlane.f32.xlu0 %v2424_v4 }
 0xc4e   :  { %v2420_v9 = vmul.f32 %v2415_v44, %v2415_v44 }
 0xc50   :  { %v2427_v6 = vsel %vm1085_vm3, %v2420_v9, 0.0 }
 0xc51   :  { %2428 = vadd.xlane.f32.xlu1 %v2427_v6 }
 0xc53   :  { %v11960_v13 = vpop.eup %11959 }
 0xc54   :  { %v2166_v46 = vmul.f32 %v11960_v13, %v2126_v16  ;;  %v13446_v13 = vld [vmem:[#allocation2 + $0x1] ss:$0 sm:$0xff] }
 0xc56   :  { %v2175_v20 = vmul.f32 %v13325_v2, %v2166_v46 }
 0xc58   :  { %v13399_v11 = vadd.f32 %v13330_v62, %v2175_v20 }
 0xc5a   :  { %v2191_v29 = vpack.c.bf16 %v13399_v11, %v13399_v11 }
 0xc5c   :  { %10785 = vmatmul.mubr.msk.bf16.gmra.mxu0 %vm1085_vm3, %v2191_v29 }
 0xc5d   :  { %10812 = vmatprep.mubr.msk.bf16.mxu0 %vm12554_vm0, %v12552_v41 }
 0xc93   :  { %v2262_v2 = vpop.f32.mrf.mxu0 }
 0xc94   :  { %v2263_v62 = vadd.f32 %v13361_v23, %v2262_v2 }
 0xc95   :  { %v10782_v15 = vpop.f32.mrf.mxu0 }
 0xc96   :  { %v2278_v56 = vmax.f32 %v2263_v62, 0.0 }
 0xc97   :  { %v2265_v26 = vpop.f32.mrf.mxu0 }
 0xc98   :  { %v2266_v16 = vadd.f32 %v13361_v23, %v2265_v26 }
 0xc99   :  { %v10783_v18 = vpop.f32.mrf.mxu0 }
 0xc9a   :  { %v2279_v21 = vmax.f32 %v2266_v16, 0.0 }
 0xc9c   :  { %v2290_v49 = vpack.c.bf16 %v2279_v21, %v2278_v56 }
 0xc9e   :  { %10801 = vmatmul.mubr.msk.bf16.gmra.mxu1 %vm2323_vm10, %v2290_v49 }
 0xc9f   :  { %10804 = vmatprep.mubr.msk.bf16.mxu1 %vm12554_vm0, %v12552_v41 }
 0xcd6   :  { %v2426_v55 = vpop.xlane.xlu0 %2425 }
 0xcd7   :  { %v2439_v1 = vmul.f32 0.03125, %v2426_v55 }
 0xcd9   :  { %v2444_v59 = vadd.f32 1e-06, %v2439_v1 }
 0xcda   :  { %v2429_v22 = vpop.xlane.xlu1 %2428 }
 0xcdb   :  { %11961 = vrsqrt.f32 %v2444_v59  ;;  %v2440_v53 = vmul.f32 0.03125, %v2429_v22 }
 0xcdd   :  { %v2445_v24 = vadd.f32 1e-06, %v2440_v53 }
 0xcdf   :  { %11963 = vrsqrt.f32 %v2445_v24 }
 0xce8   :  { %v11962_v63 = vpop.eup %11961 }
 0xce9   :  { %v2454_v5 = vmul.f32 %v11962_v63, %v2414_v60 }
 0xceb   :  { %v2463_v32 = vmul.f32 %v13423_v28, %v2454_v5 }
 0xcec   :  { %v11964_v30 = vpop.eup %11963 }
 0xced   :  { %v2455_v7 = vmul.f32 %v11964_v30, %v2415_v44  ;;  %v13432_v17 = vadd.f32 %v13428_v34, %v2463_v32 }
 0xcef   :  { %v2464_v8 = vmul.f32 %v13423_v28, %v2455_v7 }
 0xcf1   :  { %v13435_v38 = vadd.f32 %v13428_v34, %v2464_v8  ;;  %v13476_v8 = vld [vmem:[%s12721_s8 + $0x8] sm:$0xff]  }
 0xcf3   :  { %v2482_v39 = vpack.c.bf16 %v13435_v38, %v13432_v17 }
 0xcf5   :  { %10813 = vmatmul.mubr.msk.bf16.vlgmr.msra.gmra.mxu0 %vm1085_vm3, %v2482_v39  ;;  %v13483_v39 = vld [vmem:[%s12721_s8] sm:$0xff]  }
 0xcf6   :  { %10816 = vmatprep.mubr.msk.bf16.mxu0 %vm12554_vm0, %v12552_v41 }
 0xd1c   :  { %v2270_v40 = vpop.f32.mrf.mxu0 }
 0xd1d   :  { %v2271_v58 = vadd.f32 %v13361_v23, %v2270_v40 }
 0xd1e   :  { %v10786_v47 = vpop.f32.mrf.mxu0 }
 0xd1f   :  { %v2280_v60 = vmax.f32 %v2271_v58, 0.0 }
 0xd20   :  { %v2273_v61 = vpop.f32.mrf.mxu0 }
 0xd21   :  { %v2291_v10 = vpack.c.bf16 %v2280_v60, %v2280_v60 }
 0xd22   :  { %v10787_v33 = vpop.f32.mrf.mxu0 }
 0xd23   :  { %10805 = vmatmul.mubr.msk.bf16.gmra.mxu1 %vm2323_vm10, %v2291_v10 }
 0xd24   :  { %10828 = vmatprep.mubr.msk.bf16.mxu1 %vm12554_vm0, %v12552_v41 }
 0xd5e   :  { %v2375_v44 = vpop.f32.mrf.mxu1 }
 0xd5f   :  { %v2376_v21 = vadd.f32 %v13373_v14, %v2375_v44 }
 0xd60   :  { %v10802_v4 = vpop.f32.mrf.mxu1 }
 0xd61   :  { %v2391_v55 = vadd.f32 %v2376_v21, %v13385_v35 }
 0xd62   :  { %v2378_v9 = vpop.f32.mrf.mxu1 }
 0xd63   :  { %v2379_v18 = vadd.f32 %v13373_v14, %v2378_v9  ;;  %v2400_v1 = vsel %vm1085_vm3, %v2391_v55, 0.0 }
 0xd64   :  { %v10803_v6 = vpop.f32.mrf.mxu1 }
 0xd65   :  { %v2392_v56 = vadd.f32 %v2379_v18, %v13388_v36 }
 0xd67   :  { %v2403_v49 = vsel %vm1085_vm3, %v2392_v56, 0.0 }
 0xdb5   :  { %v2548_v46 = vpop.f32.mrf.mxu0 }
 0xdb6   :  { %v2549_v20 = vadd.f32 %v13446_v13, %v2548_v46 }
 0xdb7   :  { %v10814_v23 = vpop.f32.mrf.mxu0 }
 0xdb8   :  { %v2577_v29 = vmul.f32 %v2549_v20, %v13053_v42  ;;  %v2578_v54 = vmul.f32 %v2549_v20, %v13055_v45  ;;  %v2575_v3 = vmul.f32 %v2549_v20, %v13057_v48  ;;  %v2576_v15 = vmul.f32 %v2549_v20, %v13059_v50 }
 0xdb9   :  { %v2551_v2 = vpop.f32.mrf.mxu0 }
 0xdba   :  { %v13453_v62 = vpack.c.bf16 %v2578_v54, %v2577_v29  ;;  %v13455_v16 = vpack.c.bf16 %v2576_v15, %v2575_v3  ;;  %v2552_v29 = vadd.f32 %v13446_v13, %v2551_v2 }
 0xdbb   :  { %v10815_v26 = vpop.f32.mrf.mxu0 }
 0xdbc   :  { %2586 = vrot.lane.b32.xlu0 %v13453_v62, %s12556_s18  ;;  %2584 = vrot.lane.b32.xlu1 %v13455_v16, %s12556_s18  ;;  %v2741_v3 = vmul.f32 %v2552_v29, %v13053_v42  ;;  %v2742_v15 = vmul.f32 %v2552_v29, %v13055_v45  ;;  %v2739_v18 = vmul.f32 %v2552_v29, %v13057_v48 }
 0xdbe   :  { %v13493_v26 = vpack.c.bf16 %v2742_v15, %v2741_v3  ;;  %v2571_v3 = vmul.f32 0.35355338, %v2552_v29 }
 0xdc0   :  { %v2743_v15 = vpack.c.bf16 %v2571_v3, %v2571_v3 }
 0xddb   :  { %2404 = vadd.xlane.f32.xlu0 %v2403_v49 }
 0xde0   :  { %2401 = vadd.xlane.f32.xlu1 %v2400_v1 }
 0xde3   :  { %v2383_v59 = vpop.f32.mrf.mxu1 }
 0xde4   :  { %v2384_v22 = vadd.f32 %v13373_v14, %v2383_v59  ;;  %v2570_v14 = vmul.f32 0.35355338, %v2549_v20 }
 0xde5   :  { %v10806_v53 = vpop.f32.mrf.mxu1 }
 0xde6   :  { %v2393_v24 = vadd.f32 %v2384_v22, %v13399_v11  ;;  %v2579_v11 = vpack.c.bf16 %v2570_v14, %v2570_v14 }
 0xde7   :  { %v2386_v63 = vpop.f32.mrf.mxu1 }
 0xde8   :  { %v2406_v36 = vsel %vm1085_vm3, %v2393_v24, 0.0 }
 0xde9   :  { %2407 = vadd.xlane.f32.xlu0 %v2406_v36  ;;  %v10807_v5 = vpop.f32.mrf.mxu1 }
 0xe2e   :  { %v2587_v30 = vpop.permute.xlu0 %2586  ;;  %v2585_v35 = vpop.permute.xlu1 %2584 }
 0xe2f   :  { %v2595_v32 = vsel %vm1085_vm3, %v2587_v30, 0  ;;  %v2592_v7 = vsel %vm1085_vm3, %v2585_v35, 0 }
 0xe30   :  { %10825 = vmatpush3.bf16.xpose.msra.mxu1 %v2595_v32 }
 0xe31   :  { %10826 = vmatprep.subr.bf16.mxu1 %v12552_v41 }
 0xe38   :  { %10827 = vmatpush3.bf16.xpose.msra.mxu1 %v2592_v7 }
 0xe39   :  { %10832 = vmatprep.subr.bf16.mxu1 %v12552_v41 }
 0xe3f   :  { %10829 = vmatmul.mubr.msk.bf16.vlgmr.msra.gmra.mxu1 %vm1085_vm3, %v2579_v11 }
 0xe40   :  { %10833 = vmatpush3.bf16.msra.mxu1 %v13476_v8  ;;  %10836 = vmatprep.mubr.msk.bf16.mxu1 %vm12554_vm0, %v12552_v41 }
 0xe41   :  { %10834 = vmatprep.subr.bf16.mxu1 %v12552_v41 }
 0xe44   :  { %10835 = vmatpush3.bf16.msra.mxu1 %v13483_v39 }
 0xe45   :  { %10840 = vmatprep.subr.bf16.mxu1 %v12552_v41 }
 0xe64   :  { %v2405_v40 = vpop.xlane.xlu0 %2404 }
 0xe65   :  { %v2412_v58 = vmul.f32 0.03125, %v2405_v40 }
 0xe67   :  { %v2417_v47 = vsub.f32 %v2392_v56, %v2412_v58  ;;  %v2740_v56 = vmul.f32 %v2552_v29, %v13059_v50 }
 0xe69   :  { %v2422_v60 = vmul.f32 %v2417_v47, %v2417_v47  ;;  %v2402_v61 = vpop.xlane.xlu1 %2401  ;;  %v13499_v21 = vpack.c.bf16 %v2740_v56, %v2739_v18 }
 0xe6a   :  { %v2411_v10 = vmul.f32 0.03125, %v2402_v61 }
 0xe6b   :  { %v2433_v33 = vsel %vm1085_vm3, %v2422_v60, 0.0 }
 0xe6c   :  { %2434 = vadd.xlane.f32.xlu0 %v2433_v33  ;;  %v2416_v44 = vsub.f32 %v2391_v55, %v2411_v10 }
 0xe6e   :  { %v2421_v4 = vmul.f32 %v2416_v44, %v2416_v44 }
 0xe70   :  { %v2430_v9 = vsel %vm1085_vm3, %v2421_v4, 0.0 }
 0xe71   :  { %2431 = vadd.xlane.f32.xlu1 %v2430_v9 }
 0xe72   :  { %v2408_v6 = vpop.xlane.xlu0 %2407 }
 0xe73   :  { %v2413_v46 = vmul.f32 0.03125, %v2408_v6 }
 0xe75   :  { %v2418_v20 = vsub.f32 %v2393_v24, %v2413_v46 }
 0xe77   :  { %v2423_v23 = vmul.f32 %v2418_v20, %v2418_v20 }
 0xe79   :  { %v2436_v54 = vsel %vm1085_vm3, %v2423_v23, 0.0 }
 0xe7a   :  { %2437 = vadd.xlane.f32.xlu1 %v2436_v54 }
 0xe82   :  { %2750 = vrot.lane.b32.xlu0 %v13493_v26, %s12556_s18 }
 0xe8b   :  { %2748 = vrot.lane.b32.xlu1 %v13499_v21, %s12556_s18 }
 0xef5   :  { %v2435_v2 = vpop.xlane.xlu0 %2434 }
 0xef6   :  { %v2442_v49 = vmul.f32 0.03125, %v2435_v2 }
 0xef8   :  { %v2447_v55 = vadd.f32 1e-06, %v2442_v49 }
 0xef9   :  { %v2751_v1 = vpop.permute.xlu0 %2750 }
 0xefa   :  { %11965 = vrsqrt.f32 %v2447_v55  ;;  %v2759_v59 = vsel %vm1085_vm3, %v2751_v1, 0  ;;  %v2432_v22 = vpop.xlane.xlu1 %2431 }
 0xefb   :  { %10849 = vmatpush3.bf16.xpose.msra.mxu0 %v2759_v59  ;;  %v2441_v53 = vmul.f32 0.03125, %v2432_v22 }
 0xefc   :  { %10850 = vmatprep.subr.bf16.mxu0 %v12552_v41 }
 0xefd   :  { %v2446_v24 = vadd.f32 1e-06, %v2441_v53 }
 0xeff   :  { %v2631_v63 = vpop.f32.mrf.mxu1  ;;  %11967 = vrsqrt.f32 %v2446_v24 }
 0xf00   :  { %v2637_v36 = vsel %vm1085_vm3, %v2631_v63, -inf }
 0xf01   :  { %2638 = vmax.xlane.f32.xlu1 %v2637_v36  ;;  %v10830_v5 = vpop.f32.mrf.mxu1 }
 0xf03   :  { %v2438_v30 = vpop.xlane.xlu1 %2437  ;;  %v2634_v32 = vpop.f32.mrf.mxu1 }
 0xf04   :  { %v2443_v35 = vmul.f32 0.03125, %v2438_v30 }
 0xf05   :  { %v10831_v7 = vpop.f32.mrf.mxu1 }
 0xf06   :  { %v2448_v14 = vadd.f32 1e-06, %v2443_v35 }
 0xf07   :  { %v11966_v11 = vpop.eup %11965  ;;  %v2749_v40 = vpop.permute.xlu1 %2748 }
 0xf08   :  { %11969 = vrsqrt.f32 %v2448_v14  ;;  %v2756_v58 = vsel %vm1085_vm3, %v2749_v40, 0  ;;  %v2457_v60 = vmul.f32 %v11966_v11, %v2417_v47 }
 0xf09   :  { %10851 = vmatpush3.bf16.xpose.msra.mxu0 %v2756_v58 }
 0xf0a   :  { %10872 = vmatprep.subr.bf16.mxu0 %v12552_v41  ;;  %v2466_v33 = vmul.f32 %v13423_v28, %v2457_v60 }
 0xf0c   :  { %v11968_v61 = vpop.eup %11967  ;;  %v13516_v6 = vadd.f32 %v13428_v34, %v2466_v33 }
 0xf0d   :  { %v2456_v10 = vmul.f32 %v11968_v61, %v2416_v44 }
 0xf0f   :  { %v2465_v4 = vmul.f32 %v13423_v28, %v2456_v10 }
 0xf11   :  { %v13513_v9 = vadd.f32 %v13428_v34, %v2465_v4 }
 0xf12   :  { %2692 = vrot.lane.b32.xlu1 %v13453_v62, %s12544_s12 }
 0xf13   :  { %v2483_v47 = vpack.c.bf16 %v13516_v6, %v13513_v9 }
 0xf15   :  { %v11970_v46 = vpop.eup %11969  ;;  %10817 = vmatmul.mubr.msk.bf16.gmra.mxu0 %vm1085_vm3, %v2483_v47 }
 0xf16   :  { %v2458_v44 = vmul.f32 %v11970_v46, %v2418_v20  ;;  %10820 = vmatprep.mubr.msk.bf16.mxu0 %vm12554_vm0, %v12552_v41 }
 0xf18   :  { %v2467_v23 = vmul.f32 %v13423_v28, %v2458_v44 }
 0xf1a   :  { %v13525_v62 = vadd.f32 %v13428_v34, %v2467_v23 }
 0xf1c   :  { %v2484_v54 = vpack.c.bf16 %v13525_v62, %v13525_v62 }
 0xf1e   :  { %10821 = vmatmul.mubr.msk.bf16.gmra.mxu0 %vm1085_vm3, %v2484_v54 }
 0xf1f   :  { %10852 = vmatprep.mubr.msk.bf16.mxu0 %vm12554_vm0, %v12552_v41 }
 0xf26   :  { %10853 = vmatmul.mubr.msk.bf16.vlgmr.msra.gmra.mxu0 %vm1085_vm3, %v2743_v15 }
 0xf27   :  { %10876 = vmatprep.mubr.msk.bf16.mxu0 %vm12554_vm0, %v12552_v41 }
 0xf8a   :  { %v2639_v20 = vpop.xlane.xlu1 %2638 }
 0xf8b   :  { %v2640_v28 = vsub.f32 %v2631_v63, %v2639_v20 }
 0xf8d   :  { %v2641_v18 = vmul.f32 1.442695, %v2640_v28 }
 0xf8e   :  { %v2693_v2 = vpop.permute.xlu1 %2692 }
 0xf8f   :  { %11971 = vpow2.f32 %v2641_v18 }
 0xf9c   :  { %v13535_v34 = vpop.eup %11971 }
 0xf9d   :  { %v2643_v56 = vpack.c.bf16 %v13535_v34, %v13535_v34 }
 0xf9f   :  { %10837 = vmatmul.mubr.msk.bf16.vlgmr.msra.gmra.mxu1 %vm1085_vm3, %v2643_v56 }
 0xfa0   :  { %10841 = vmatpush3.bf16.msra.mxu1 %v2693_v2  ;;  %10844 = vmatprep.mubr.msk.bf16.mxu1 %vm12554_vm0, %v12552_v41 }
 0xfa1   :  { %10842 = vmatprep.subr.bf16.mxu1 %v12552_v41 }
 0xfd5   :  { %v2556_v29 = vpop.f32.mrf.mxu0 }
 0xfd6   :  { %v2557_v49 = vadd.f32 %v13446_v13, %v2556_v29 }
 0xfd7   :  { %v10818_v55 = vpop.f32.mrf.mxu0 }
 0xfd8   :  { %v2905_v1 = vmul.f32 %v2557_v49, %v13053_v42  ;;  %v2906_v59 = vmul.f32 %v2557_v49, %v13055_v45  ;;  %v2903_v63 = vmul.f32 %v2557_v49, %v13057_v48  ;;  %v2904_v36 = vmul.f32 %v2557_v49, %v13059_v50 }
 0xfd9   :  { %v2559_v22 = vpop.f32.mrf.mxu0  ;;  %v2572_v56 = vmul.f32 0.35355338, %v2557_v49 }
 0xfda   :  { %v2560_v53 = vadd.f32 %v13446_v13, %v2559_v22  ;;  %v13547_v24 = vpack.c.bf16 %v2906_v59, %v2905_v1  ;;  %v13555_v7 = vpack.c.bf16 %v2904_v36, %v2903_v63 }
 0xfdb   :  { %v10819_v5 = vpop.f32.mrf.mxu0  ;;  %v2907_v29 = vpack.c.bf16 %v2572_v56, %v2572_v56 }
 0xfdc   :  { %2914 = vrot.lane.b32.xlu0 %v13547_v24, %s12556_s18  ;;  %v3069_v30 = vmul.f32 %v2560_v53, %v13053_v42  ;;  %v3070_v32 = vmul.f32 %v2560_v53, %v13055_v45  ;;  %v3067_v11 = vmul.f32 %v2560_v53, %v13057_v48  ;;  %v3068_v40 = vmul.f32 %v2560_v53, %v13059_v50 }
 0xfdd   :  { %v2573_v5 = vmul.f32 0.35355338, %v2560_v53 }
 0xfde   :  { %v2564_v35 = vpop.f32.mrf.mxu0  ;;  %v13557_v14 = vpack.c.bf16 %v3070_v32, %v3069_v30  ;;  %v13565_v61 = vpack.c.bf16 %v3068_v40, %v3067_v11 }
 0xfdf   :  { %v13573_v23 = vadd.f32 %v13446_v13, %v2564_v35  ;;  %v3071_v30 = vpack.c.bf16 %v2573_v5, %v2573_v5 }
 0xfe0   :  { %v10822_v58 = vpop.f32.mrf.mxu0  ;;  %2912 = vrot.lane.b32.xlu0 %v13555_v7, %s12556_s18  ;;  %3078 = vrot.lane.b32.xlu1 %v13557_v14, %s12556_s18 }
 0xfe1   :  { %v3233_v54 = vmul.f32 %v13573_v23, %v13053_v42  ;;  %v3234_v3 = vmul.f32 %v13573_v23, %v13055_v45  ;;  %v3232_v13 = vmul.f32 %v13573_v23, %v13059_v50 }
 0xfe2   :  { %v2567_v60 = vpop.f32.mrf.mxu0 }
 0xfe3   :  { %v13583_v15 = vpack.c.bf16 %v3234_v3, %v3233_v54  ;;  %v2574_v3 = vmul.f32 0.35355338, %v13573_v23 }
 0xfe4   :  { %v10823_v10 = vpop.f32.mrf.mxu0  ;;  %3076 = vrot.lane.b32.xlu1 %v13565_v61, %s12556_s18 }
 0xfe6   :  { %v2795_v33 = vpop.f32.mrf.mxu0 }
 0xfe7   :  { %v2801_v44 = vsel %vm1085_vm3, %v2795_v33, -inf }
 0xfe8   :  { %v10854_v4 = vpop.f32.mrf.mxu0 }
 0xfea   :  { %v2798_v47 = vpop.f32.mrf.mxu0 }
 0xfec   :  { %v10855_v46 = vpop.f32.mrf.mxu0 }
 0xfff   :  { %2802 = vmax.xlane.f32.xlu0 %v2801_v44 }
0x1015   :  { %2690 = vrot.lane.b32.xlu0 %v13455_v16, %s12544_s12  ;;  %v3231_v16 = vmul.f32 %v13573_v23, %v13057_v48 }
0x1019   :  { %2856 = vrot.lane.b32.xlu0 %v13493_v26, %s12544_s12  ;;  %v13591_v26 = vpack.c.bf16 %v3232_v13, %v3231_v16  ;;  %v3235_v16 = vpack.c.bf16 %v2574_v3, %v2574_v3 }
0x101d   :  { %2854 = vrot.lane.b32.xlu0 %v13499_v21, %s12544_s12 }
0x1021   :  { %3242 = vrot.lane.b32.xlu0 %v13583_v15, %s12556_s18 }
0x1025   :  { %3240 = vrot.lane.b32.xlu0 %v13591_v26, %s12556_s18 }
0x104e   :  { %v2915_v20 = vpop.permute.xlu0 %2914 }
0x104f   :  { %v2923_v28 = vsel %vm1085_vm3, %v2915_v20, 0 }
0x1050   :  { %10873 = vmatpush3.bf16.xpose.msra.mxu0 %v2923_v28 }
0x1051   :  { %10874 = vmatprep.subr.bf16.mxu0 %v12552_v41 }
0x1052   :  { %v2913_v21 = vpop.permute.xlu0 %2912  ;;  %v3079_v2 = vpop.permute.xlu1 %3078 }
0x1053   :  { %v2920_v18 = vsel %vm1085_vm3, %v2913_v21, 0  ;;  %v3087_v1 = vsel %vm1085_vm3, %v3079_v2, 0 }
0x1056   :  { %v3077_v63 = vpop.permute.xlu1 %3076 }
0x1057   :  { %v3084_v49 = vsel %vm1085_vm3, %v3077_v63, 0 }
0x1058   :  { %10875 = vmatpush3.bf16.xpose.msra.mxu0 %v2920_v18 }
0x1059   :  { %10896 = vmatprep.subr.bf16.mxu0 %v12552_v41 }
0x105f   :  { %v2681_v55 = vpop.f32.mrf.mxu1  ;;  %10877 = vmatmul.mubr.msk.bf16.vlgmr.msra.gmra.mxu0 %vm1085_vm3, %v2907_v29 }
0x1060   :  { %10897 = vmatpush3.bf16.xpose.msra.mxu0 %v3087_v1  ;;  %10900 = vmatprep.mubr.msk.bf16.mxu0 %vm12554_vm0, %v12552_v41  ;;  %11973 = vrcp.f32 %v2681_v55 }
0x1061   :  { %v10838_v59 = vpop.f32.mrf.mxu1  ;;  %10898 = vmatprep.subr.bf16.mxu0 %v12552_v41 }
0x1063   :  { %v2684_v22 = vpop.f32.mrf.mxu1 }
0x1065   :  { %v10839_v36 = vpop.f32.mrf.mxu1 }
0x1068   :  { %10899 = vmatpush3.bf16.xpose.msra.mxu0 %v3084_v49 }
0x1069   :  { %10920 = vmatprep.subr.bf16.mxu0 %v12552_v41 }
0x106d   :  { %v11974_v32 = vpop.eup %11973 }
0x106e   :  { %v2688_v40 = vmul.f32 %v11974_v32, %v13535_v34 }
0x106f   :  { %10901 = vmatmul.mubr.msk.bf16.vlgmr.msra.gmra.mxu0 %vm1085_vm3, %v3071_v30 }
0x1070   :  { %10924 = vmatprep.mubr.msk.bf16.mxu0 %vm12554_vm0, %v12552_v41  ;;  %v2689_v10 = vpack.c.bf16 %v2688_v40, %v2688_v40 }
0x1088   :  { %v2803_v35 = vpop.xlane.xlu0 %2802 }
0x1089   :  { %v2804_v11 = vsub.f32 %v2795_v33, %v2803_v35 }
0x108b   :  { %v2805_v58 = vmul.f32 1.442695, %v2804_v11 }
0x108c   :  { %v2691_v60 = vpop.permute.xlu0 %2690 }
0x108d   :  { %11975 = vpow2.f32 %v2805_v58  ;;  %10843 = vmatpush3.bf16.msra.mxu1 %v2691_v60 }
0x108e   :  { %10856 = vmatprep.subr.bf16.mxu1 %v12552_v41 }
0x1090   :  { %v2857_v53 = vpop.permute.xlu0 %2856  ;;  %10845 = vmatmul.mubr.msk.bf16.vlgmr.msra.gmra.mxu1 %vm1085_vm3, %v2689_v10  ;;  %v11832_v10 = vld [vmem:[%s15627_s22 + $0x10] sm:$0xff]  }
0x1091   :  { %10857 = vmatpush3.bf16.msra.mxu1 %v13476_v8  ;;  %10860 = vmatprep.mubr.msk.bf16.mxu1 %vm12554_vm0, %v12552_v41 }
0x1092   :  { %10858 = vmatprep.subr.bf16.mxu1 %v12552_v41 }
0x1094   :  { %v2855_v33 = vpop.permute.xlu0 %2854 }
0x1095   :  { %10859 = vmatpush3.bf16.msra.mxu1 %v13483_v39 }
0x1096   :  { %10864 = vmatprep.subr.bf16.mxu1 %v12552_v41 }
0x1098   :  { %v3243_v34 = vpop.permute.xlu0 %3242 }
0x1099   :  { %v3251_v4 = vsel %vm1085_vm3, %v3243_v34, 0 }
0x109a   :  { %v11976_v47 = vpop.eup %11975  ;;  %10921 = vmatpush3.bf16.xpose.msra.mxu0 %v3251_v4 }
0x109b   :  { %v2807_v46 = vpack.c.bf16 %v11976_v47, %v11976_v47  ;;  %10922 = vmatprep.subr.bf16.mxu0 %v12552_v41 }
0x109c   :  { %v3241_v44 = vpop.permute.xlu0 %3240 }
0x109d   :  { %10861 = vmatmul.mubr.msk.bf16.vlgmr.msra.gmra.mxu1 %vm1085_vm3, %v2807_v46  ;;  %v3248_v54 = vsel %vm1085_vm3, %v3241_v44, 0 }
0x109e   :  { %10865 = vmatpush3.bf16.msra.mxu1 %v2857_v53  ;;  %10868 = vmatprep.mubr.msk.bf16.mxu1 %vm12554_vm0, %v12552_v41 }
0x109f   :  { %10866 = vmatprep.subr.bf16.mxu1 %v12552_v41 }
0x10a2   :  { %10867 = vmatpush3.bf16.msra.mxu1 %v2855_v33  ;;  %10923 = vmatpush3.bf16.xpose.msra.mxu0 %v3248_v54 }
0x10a3   :  { %10880 = vmatprep.subr.bf16.mxu1 %v12552_v41  ;;  %10944 = vmatprep.subr.bf16.mxu0 %v12552_v41 }
0x10a9   :  { %10925 = vmatmul.mubr.msk.bf16.vlgmr.msra.gmra.mxu0 %vm1085_vm3, %v3235_v16 }
0x10aa   :  { %10948 = vmatprep.mubr.msk.bf16.mxu0 %vm12554_vm0, %v12552_v41 }
0x111f   :  { %v2959_v13 = vpop.f32.mrf.mxu0 }
0x1120   :  { %v2965_v20 = vsel %vm1085_vm3, %v2959_v13, -inf }
0x1121   :  { %v10878_v28 = vpop.f32.mrf.mxu0  ;;  %2966 = vmax.xlane.f32.xlu1 %v2965_v20 }
0x1123   :  { %v2962_v21 = vpop.f32.mrf.mxu0 }
0x1125   :  { %v10879_v18 = vpop.f32.mrf.mxu0 }
0x112f   :  { %v13632_v56 = vpop.f32.mrf.mxu0 }
0x1130   :  { %v3129_v23 = vsel %vm1085_vm3, %v13632_v56, -inf }
0x1131   :  { %3130 = vmax.xlane.f32.xlu0 %v3129_v23  ;;  %v10902_v2 = vpop.f32.mrf.mxu0 }
0x1132   :  { %3020 = vrot.lane.b32.xlu1 %v13547_v24, %s12544_s12 }
0x1133   :  { %v3126_v29 = vpop.f32.mrf.mxu0 }
0x1135   :  { %v10903_v55 = vpop.f32.mrf.mxu0 }
0x1147   :  { %3018 = vrot.lane.b32.xlu0 %v13555_v7, %s12544_s12 }
0x114b   :  { %3184 = vrot.lane.b32.xlu0 %v13557_v14, %s12544_s12 }
0x114f   :  { %3182 = vrot.lane.b32.xlu0 %v13565_v61, %s12544_s12 }
0x1150   :  { %v2733_v1 = vpop.f32.mrf.mxu1 }
0x1152   :  { %v10846_v59 = vpop.f32.mrf.mxu1 }
0x1153   :  { %3348 = vrot.lane.b32.xlu0 %v13583_v15, %s12544_s12 }
0x1154   :  { %v2736_v22 = vpop.f32.mrf.mxu1 }
0x1156   :  { %v10847_v63 = vpop.f32.mrf.mxu1 }
0x1157   :  { %3346 = vrot.lane.b32.xlu0 %v13591_v26, %s12544_s12  ;;  %v11831_v26 = vld [vmem:[%s15627_s22 + $0x18] sm:$0xff]   ;;  %v13684_v63 = vld [vmem:[#allocation5 + $0x1] ss:$0 sm:$0xff] }
0x1158   :  { %10945 = vmatpush3.bf16.msra.mxu0 %v11831_v26 }
0x1159   :  { %10946 = vmatprep.subr.bf16.mxu0 %v12552_v41 }
0x115c   :  { %10947 = vmatpush3.bf16.msra.mxu0 %v11832_v10 }
0x115d   :  { %v2845_v24 = vpop.f32.mrf.mxu1  ;;  %10976 = vmatprep.subr.bf16.mxu0 %v12552_v41 }
0x115e   :  { %11977 = vrcp.f32 %v2845_v24 }
0x115f   :  { %v10862_v36 = vpop.f32.mrf.mxu1 }
0x1161   :  { %v2848_v7 = vpop.f32.mrf.mxu1 }
0x1163   :  { %v10863_v49 = vpop.f32.mrf.mxu1 }
0x1169   :  { %v13648_v14 = vpop.f32.mrf.mxu0 }
0x116a   :  { %v3293_v61 = vsel %vm1085_vm3, %v13648_v14, -inf }
0x116b   :  { %v11978_v5 = vpop.eup %11977  ;;  %3294 = vmax.xlane.f32.xlu1 %v3293_v61  ;;  %v10926_v30 = vpop.f32.mrf.mxu0 }
0x116c   :  { %v2852_v15 = vmul.f32 %v11978_v5, %v11976_v47 }
0x116d   :  { %v3290_v32 = vpop.f32.mrf.mxu0 }
0x116e   :  { %v2853_v35 = vpack.c.bf16 %v2852_v15, %v2852_v15 }
0x116f   :  { %v10927_v11 = vpop.f32.mrf.mxu0 }
0x1170   :  { %10869 = vmatmul.mubr.msk.bf16.vlgmr.msra.gmra.mxu1 %vm1085_vm3, %v2853_v35 }
0x1171   :  { %10881 = vmatpush3.bf16.msra.mxu1 %v13476_v8  ;;  %10884 = vmatprep.mubr.msk.bf16.mxu1 %vm12554_vm0, %v12552_v41 }
0x1172   :  { %10882 = vmatprep.subr.bf16.mxu1 %v12552_v41 }
0x1175   :  { %10883 = vmatpush3.bf16.msra.mxu1 %v13483_v39 }
0x1176   :  { %10888 = vmatprep.subr.bf16.mxu1 %v12552_v41 }
0x11aa   :  { %v2967_v40 = vpop.xlane.xlu1 %2966 }
0x11ab   :  { %v2968_v58 = vsub.f32 %v2959_v13, %v2967_v40 }
0x11ad   :  { %v2969_v60 = vmul.f32 1.442695, %v2968_v58 }
0x11ae   :  { %v3021_v4 = vpop.permute.xlu1 %3020 }
0x11af   :  { %11979 = vpow2.f32 %v2969_v60 }
0x11ba   :  { %v3131_v33 = vpop.xlane.xlu0 %3130 }
0x11bb   :  { %v3132_v20 = vsub.f32 %v13632_v56, %v3131_v33 }
0x11bc   :  { %v11980_v53 = vpop.eup %11979 }
0x11bd   :  { %v2971_v34 = vpack.c.bf16 %v11980_v53, %v11980_v53  ;;  %v3133_v18 = vmul.f32 1.442695, %v3132_v20 }
0x11be   :  { %v3019_v47 = vpop.permute.xlu0 %3018 }
0x11bf   :  { %10885 = vmatmul.mubr.msk.bf16.vlgmr.msra.gmra.mxu1 %vm1085_vm3, %v2971_v34 }
0x11c0   :  { %10889 = vmatpush3.bf16.msra.mxu1 %v3021_v4  ;;  %10892 = vmatprep.mubr.msk.bf16.mxu1 %vm12554_vm0, %v12552_v41 }
0x11c1   :  { %10890 = vmatprep.subr.bf16.mxu1 %v12552_v41 }
0x11c2   :  { %v3185_v56 = vpop.permute.xlu0 %3184 }
0x11c4   :  { %10891 = vmatpush3.bf16.msra.mxu1 %v3019_v47 }
0x11c5   :  { %10904 = vmatprep.subr.bf16.mxu1 %v12552_v41 }
0x11c6   :  { %v3183_v22 = vpop.permute.xlu0 %3182 }
0x1230   :  { %v2897_v46 = vpop.f32.mrf.mxu1 }
0x1231   :  { %v3400_v44 = vpack.c.bf16 %v2897_v46, %v2733_v1 }
0x1232   :  { %v10870_v54 = vpop.f32.mrf.mxu1 }
0x1233   :  { %10949 = vmatmul.mubr.msk.bf16.vlgmr.msra.gmra.mxu0 %vm1085_vm3, %v3400_v44 }
0x1234   :  { %v2900_v3 = vpop.f32.mrf.mxu1  ;;  %10952 = vmatprep.mubr.msk.bf16.mxu0 %vm12554_vm0, %v12552_v41 }
0x1236   :  { %v10871_v16 = vpop.f32.mrf.mxu1 }
0x127f   :  { %v3009_v13 = vpop.f32.mrf.mxu1 }
0x1280   :  { %11981 = vrcp.f32 %v3009_v13 }
0x1281   :  { %v10886_v28 = vpop.f32.mrf.mxu1  ;;  %11983 = vpow2.f32 %v3133_v18 }
0x1283   :  { %v3012_v21 = vpop.f32.mrf.mxu1 }
0x1285   :  { %v10887_v23 = vpop.f32.mrf.mxu1 }
0x128d   :  { %v11982_v2 = vpop.eup %11981 }
0x128e   :  { %v3016_v29 = vmul.f32 %v11982_v2, %v11980_v53  ;;  %v11984_v1 = vpop.eup %11983 }
0x128f   :  { %v3135_v59 = vpack.c.bf16 %v11984_v1, %v11984_v1 }
0x1290   :  { %v3017_v55 = vpack.c.bf16 %v3016_v29, %v3016_v29 }
0x1292   :  { %10893 = vmatmul.mubr.msk.bf16.vlgmr.msra.gmra.mxu1 %vm1085_vm3, %v3017_v55 }
0x1293   :  { %10905 = vmatpush3.bf16.msra.mxu1 %v13476_v8  ;;  %10908 = vmatprep.mubr.msk.bf16.mxu1 %vm12554_vm0, %v12552_v41 }
0x1294   :  { %10906 = vmatprep.subr.bf16.mxu1 %v12552_v41 }
0x1297   :  { %10907 = vmatpush3.bf16.msra.mxu1 %v13483_v39 }
0x1298   :  { %10912 = vmatprep.subr.bf16.mxu1 %v12552_v41 }
0x129a   :  { %10909 = vmatmul.mubr.msk.bf16.vlgmr.msra.gmra.mxu1 %vm1085_vm3, %v3135_v59 }
0x129b   :  { %10913 = vmatpush3.bf16.msra.mxu1 %v3185_v56  ;;  %10916 = vmatprep.mubr.msk.bf16.mxu1 %vm12554_vm0, %v12552_v41 }
0x129c   :  { %10914 = vmatprep.subr.bf16.mxu1 %v12552_v41 }
0x129f   :  { %10915 = vmatpush3.bf16.msra.mxu1 %v3183_v22 }
0x12a0   :  { %10928 = vmatprep.subr.bf16.mxu1 %v12552_v41 }
0x12f3   :  { %v3466_v24 = vpop.f32.mrf.mxu0 }
0x12f4   :  { %v3467_v36 = vadd.f32 %v13684_v63, %v3466_v24 }
0x12f5   :  { %v10950_v7 = vpop.f32.mrf.mxu0 }
0x12f6   :  { %v13688_v49 = vadd.f32 %v3467_v36, %v13432_v17  ;;  %v3295_v17 = vpop.xlane.xlu1 %3294 }
0x12f7   :  { %v3469_v61 = vpop.f32.mrf.mxu0  ;;  %v3296_v10 = vsub.f32 %v13648_v14, %v3295_v17  ;;  %v3349_v14 = vpop.permute.xlu0 %3348 }
0x12f8   :  { %v3470_v5 = vadd.f32 %v13684_v63, %v3469_v61  ;;  %v3495_v30 = vsel %vm1085_vm3, %v13688_v49, 0.0 }
0x12f9   :  { %3496 = vadd.xlane.f32.xlu0 %v3495_v30  ;;  %v10951_v15 = vpop.f32.mrf.mxu0  ;;  %v3297_v34 = vmul.f32 1.442695, %v3296_v10 }
0x12fa   :  { %v13694_v32 = vadd.f32 %v3470_v5, %v13435_v38 }
0x12fb   :  { %v3347_v3 = vpop.permute.xlu0 %3346 }
0x12fc   :  { %v3498_v35 = vsel %vm1085_vm3, %v13694_v32, 0.0 }
0x12fd   :  { %3499 = vadd.xlane.f32.xlu1 %v3498_v35 }
0x1352   :  { %v3061_v11 = vpop.f32.mrf.mxu1 }
0x1354   :  { %v10894_v26 = vpop.f32.mrf.mxu1 }
0x1356   :  { %v3064_v40 = vpop.f32.mrf.mxu1 }
0x1358   :  { %v10895_v58 = vpop.f32.mrf.mxu1 }
0x135a   :  { %v3173_v60 = vpop.f32.mrf.mxu1 }
0x135b   :  { %11985 = vrcp.f32 %v3173_v60 }
0x135c   :  { %v10910_v53 = vpop.f32.mrf.mxu1  ;;  %11987 = vpow2.f32 %v3297_v34 }
0x135e   :  { %v3176_v33 = vpop.f32.mrf.mxu1 }
0x1360   :  { %v10911_v4 = vpop.f32.mrf.mxu1 }
0x1368   :  { %v11986_v38 = vpop.eup %11985 }
0x1369   :  { %v3180_v47 = vmul.f32 %v11986_v38, %v11984_v1  ;;  %v11988_v44 = vpop.eup %11987 }
0x136a   :  { %v3299_v54 = vpack.c.bf16 %v11988_v44, %v11988_v44 }
0x136b   :  { %v3181_v46 = vpack.c.bf16 %v3180_v47, %v3180_v47 }
0x136d   :  { %10917 = vmatmul.mubr.msk.bf16.vlgmr.msra.gmra.mxu1 %vm1085_vm3, %v3181_v46 }
0x136e   :  { %10929 = vmatpush3.bf16.msra.mxu1 %v13476_v8  ;;  %10932 = vmatprep.mubr.msk.bf16.mxu1 %vm12554_vm0, %v12552_v41 }
0x136f   :  { %10930 = vmatprep.subr.bf16.mxu1 %v12552_v41 }
0x1372   :  { %10931 = vmatpush3.bf16.msra.mxu1 %v13483_v39 }
0x1373   :  { %10936 = vmatprep.subr.bf16.mxu1 %v12552_v41 }
0x1375   :  { %10933 = vmatmul.mubr.msk.bf16.vlgmr.msra.gmra.mxu1 %vm1085_vm3, %v3299_v54 }
0x1376   :  { %10937 = vmatpush3.bf16.msra.mxu1 %v3349_v14  ;;  %10940 = vmatprep.mubr.msk.bf16.mxu1 %vm12554_vm0, %v12552_v41 }
0x1377   :  { %10938 = vmatprep.subr.bf16.mxu1 %v12552_v41 }
0x137a   :  { %10939 = vmatpush3.bf16.msra.mxu1 %v3347_v3 }
0x137b   :  { %10960 = vmatprep.subr.bf16.mxu1 %v12552_v41 }
0x1382   :  { %v3497_v58 = vpop.xlane.xlu0 %3496 }
0x1383   :  { %v3510_v10 = vmul.f32 0.03125, %v3497_v58  ;;  %v3489_v58 = vld [vmem:[#allocation7 + $0x4] sm:$0xf] }
0x1386   :  { %v3500_v60 = vpop.xlane.xlu1 %3499 }
0x1387   :  { %v3511_v34 = vmul.f32 0.03125, %v3500_v60 }
0x142d   :  { %v3225_v16 = vpop.f32.mrf.mxu1 }
0x142e   :  { %v3401_v13 = vpack.c.bf16 %v3225_v16, %v3061_v11 }
0x142f   :  { %v10918_v20 = vpop.f32.mrf.mxu1 }
0x1430   :  { %10953 = vmatmul.mubr.msk.bf16.gmra.mxu0 %vm1085_vm3, %v3401_v13 }
0x1431   :  { %v3228_v28 = vpop.f32.mrf.mxu1  ;;  %10956 = vmatprep.mubr.msk.bf16.mxu0 %vm12554_vm0, %v12552_v41 }
0x1433   :  { %v10919_v21 = vpop.f32.mrf.mxu1 }
0x1435   :  { %v3337_v18 = vpop.f32.mrf.mxu1 }
0x1436   :  { %11989 = vrcp.f32 %v3337_v18 }
0x1437   :  { %v10934_v23 = vpop.f32.mrf.mxu1 }
0x1439   :  { %v3340_v2 = vpop.f32.mrf.mxu1 }
0x143b   :  { %v10935_v29 = vpop.f32.mrf.mxu1 }
0x143c   :  { %v11833_v29 = vld [vmem:[%s15628_s23 + $0x18] sm:$0xff]  }
0x1443   :  { %v11990_v55 = vpop.eup %11989 }
0x1444   :  { %v3344_v1 = vmul.f32 %v11990_v55, %v11988_v44  ;;  %v3516_v44 = vsub.f32 %v13694_v32, %v3511_v34  ;;  %v11834_v55 = vld [vmem:[%s15628_s23 + $0x10] sm:$0xff]  }
0x1446   :  { %v3345_v56 = vpack.c.bf16 %v3344_v1, %v3344_v1 }
0x1448   :  { %10941 = vmatmul.mubr.msk.bf16.vlgmr.msra.gmra.mxu1 %vm1085_vm3, %v3345_v56 }
0x1449   :  { %10964 = vmatprep.mubr.msk.bf16.mxu1 %vm12554_vm0, %v12552_v41  ;;  %10961 = vmatpush3.bf16.msra.mxu1 %v11833_v29 }
0x144a   :  { %10962 = vmatprep.subr.bf16.mxu1 %v12552_v41 }
0x144d   :  { %10963 = vmatpush3.bf16.msra.mxu1 %v11834_v55 }
0x144e   :  { %10996 = vmatprep.subr.bf16.mxu1 %v12552_v41 }
0x14f0   :  { %v3474_v59 = vpop.f32.mrf.mxu0 }
0x14f1   :  { %v3475_v22 = vadd.f32 %v13684_v63, %v3474_v59 }
0x14f2   :  { %v10954_v24 = vpop.f32.mrf.mxu0 }
0x14f3   :  { %v3492_v36 = vadd.f32 %v3475_v22, %v13513_v9 }
0x14f4   :  { %v3477_v7 = vpop.f32.mrf.mxu0 }
0x14f5   :  { %v3478_v61 = vadd.f32 %v13684_v63, %v3477_v7  ;;  %v3501_v5 = vsel %vm1085_vm3, %v3492_v36, 0.0 }
0x14f6   :  { %3502 = vadd.xlane.f32.xlu1 %v3501_v5  ;;  %v10955_v30 = vpop.f32.mrf.mxu0 }
0x14f7   :  { %v3493_v15 = vadd.f32 %v3478_v61, %v13516_v6  ;;  %v3515_v6 = vsub.f32 %v13688_v49, %v3510_v10  ;;  %v3563_v10 = vrot.slane %v3489_v58, %v13316_v52 }
0x14f9   :  { %v3504_v35 = vsel %vm1085_vm3, %v3493_v15, 0.0  ;;  %v3520_v3 = vmul.f32 %v3515_v6, %v3515_v6 }
0x14fa   :  { %3505 = vadd.xlane.f32.xlu1 %v3504_v35 }
0x14fb   :  { %v3525_v49 = vsel %vm1085_vm3, %v3520_v3, 0.0 }
0x1508   :  { %v3389_v11 = vpop.f32.mrf.mxu1 }
0x1509   :  { %v3402_v26 = vpack.c.bf16 %v3389_v11, %v3389_v11 }
0x150a   :  { %v10942_v40 = vpop.f32.mrf.mxu1 }
0x150b   :  { %10957 = vmatmul.mubr.msk.bf16.gmra.mxu0 %vm1085_vm3, %v3402_v26 }
0x150c   :  { %v3392_v17 = vpop.f32.mrf.mxu1  ;;  %10984 = vmatprep.mubr.msk.bf16.mxu0 %vm12554_vm0, %v12552_v41 }
0x150e   :  { %v10943_v9 = vpop.f32.mrf.mxu1 }
0x157f   :  { %v3503_v53 = vpop.xlane.xlu1 %3502 }
0x1580   :  { %v3512_v14 = vmul.f32 0.03125, %v3503_v53 }
0x1582   :  { %v3517_v20 = vsub.f32 %v3492_v36, %v3512_v14 }
0x1583   :  { %v3506_v16 = vpop.xlane.xlu1 %3505 }
0x1584   :  { %v3513_v28 = vmul.f32 0.03125, %v3506_v16  ;;  %v3522_v18 = vmul.f32 %v3517_v20, %v3517_v20 }
0x1586   :  { %v3518_v21 = vsub.f32 %v3493_v15, %v3513_v28  ;;  %v3531_v32 = vsel %vm1085_vm3, %v3522_v18, 0.0  ;;  %v11837_v18 = vld [vmem:[%s15629_s26 + $0x38] sm:$0xff]  }
0x1587   :  { %10977 = vmatpush3.bf16.msra.mxu0 %v11837_v18 }
0x1588   :  { %v3523_v23 = vmul.f32 %v3518_v21, %v3518_v21  ;;  %10978 = vmatprep.subr.bf16.mxu0 %v12552_v41 }
0x158a   :  { %v3534_v2 = vsel %vm1085_vm3, %v3523_v23, 0.0  ;;  %v11839_v23 = vld [vmem:[%s15629_s26 + $0x28] sm:$0xff]  }
0x15cb   :  { %v3482_v33 = vpop.f32.mrf.mxu0 }
0x15cc   :  { %v3483_v4 = vadd.f32 %v13684_v63, %v3482_v33  ;;  %v3521_v63 = vmul.f32 %v3516_v44, %v3516_v44 }
0x15cd   :  { %v10958_v38 = vpop.f32.mrf.mxu0 }
0x15ce   :  { %v3494_v47 = vadd.f32 %v3483_v4, %v13525_v62  ;;  %v3528_v62 = vsel %vm1085_vm3, %v3521_v63, 0.0  ;;  %v3572_v38 = vrot.slane %v3489_v58, %v13321_v43 }
0x15cf   :  { %v3485_v46 = vpop.f32.mrf.mxu0 }
0x15d0   :  { %v3507_v54 = vsel %vm1085_vm3, %v3494_v47, 0.0 }
0x15d1   :  { %3508 = vadd.xlane.f32.xlu1 %v3507_v54  ;;  %v10959_v13 = vpop.f32.mrf.mxu0 }
0x15d5   :  { %3526 = vadd.xlane.f32.xlu1 %v3525_v49 }
0x15d9   :  { %3529 = vadd.xlane.f32.xlu1 %v3528_v62  ;;  %v11836_v62 = vld [vmem:[%s15630_s19] sm:$0xff]  }
0x15dd   :  { %3532 = vadd.xlane.f32.xlu1 %v3531_v32  ;;  %v11838_v32 = vld [vmem:[%s15629_s26 + $0x30] sm:$0xff]  }
0x15de   :  { %10979 = vmatpush3.bf16.msra.mxu0 %v11838_v32 }
0x15df   :  { %10980 = vmatprep.subr.bf16.mxu0 %v12552_v41 }
0x15e1   :  { %3535 = vadd.xlane.f32.xlu1 %v3534_v2  ;;  %v11840_v2 = vld [vmem:[%s15629_s26 + $0x20] sm:$0xff]  }
0x15e2   :  { %10981 = vmatpush3.bf16.msra.mxu0 %v11839_v23 }
0x15e3   :  { %10982 = vmatprep.subr.bf16.mxu0 %v12552_v41 }
0x15e6   :  { %10983 = vmatpush3.bf16.msra.mxu0 %v11840_v2 }
0x15e7   :  { %11012 = vmatprep.subr.bf16.mxu0 %v12552_v41 }
0x165a   :  { %v3509_v1 = vpop.xlane.xlu1 %3508 }
0x165b   :  { %v3514_v56 = vmul.f32 0.03125, %v3509_v1 }
0x165d   :  { %v13739_v59 = vsub.f32 %v3494_v47, %v3514_v56 }
0x165e   :  { %v3527_v22 = vpop.xlane.xlu1 %3526 }
0x165f   :  { %v3540_v24 = vmul.f32 0.03125, %v3527_v22  ;;  %v3524_v36 = vmul.f32 %v13739_v59, %v13739_v59 }
0x1661   :  { %v3545_v7 = vadd.f32 1e-06, %v3540_v24  ;;  %v3537_v61 = vsel %vm1085_vm3, %v3524_v36, 0.0 }
0x1662   :  { %3538 = vadd.xlane.f32.xlu0 %v3537_v61  ;;  %v3530_v5 = vpop.xlane.xlu1 %3529  ;;  %v3878_v61 = vpack.c.bf16 %v13045_v19, %v13043_v12 }
0x1663   :  { %11991 = vrsqrt.f32 %v3545_v7  ;;  %v3541_v30 = vmul.f32 0.03125, %v3530_v5  ;;  %v3880_v5 = vpack.c.bf16 %v13051_v37, %v13051_v37 }
0x1665   :  { %v3546_v15 = vadd.f32 1e-06, %v3541_v30 }
0x1666   :  { %v3533_v35 = vpop.xlane.xlu1 %3532 }
0x1667   :  { %11993 = vrsqrt.f32 %v3546_v15  ;;  %v3542_v11 = vmul.f32 0.03125, %v3533_v35 }
0x1669   :  { %v3547_v26 = vadd.f32 1e-06, %v3542_v11 }
0x166a   :  { %v3536_v40 = vpop.xlane.xlu1 %3535 }
0x166b   :  { %11995 = vrsqrt.f32 %v3547_v26  ;;  %v3543_v17 = vmul.f32 0.03125, %v3536_v40 }
0x166d   :  { %v3548_v9 = vadd.f32 1e-06, %v3543_v17 }
0x166f   :  { %11997 = vrsqrt.f32 %v3548_v9 }
0x1670   :  { %v11992_v60 = vpop.eup %11991 }
0x1671   :  { %v3555_v53 = vmul.f32 %v11992_v60, %v3515_v6 }
0x1673   :  { %v3564_v34 = vmul.f32 %v3563_v10, %v3555_v53 }
0x1674   :  { %v11994_v33 = vpop.eup %11993 }
0x1675   :  { %v3556_v4 = vmul.f32 %v11994_v33, %v3516_v44  ;;  %v13746_v54 = vadd.f32 %v3572_v38, %v3564_v34  ;;  %v11835_v44 = vld [vmem:[%s15630_s19 + $0x8] sm:$0xff]  }
0x1677   :  { %v3565_v47 = vmul.f32 %v3563_v10, %v3556_v4 }
0x1678   :  { %v11996_v46 = vpop.eup %11995 }
0x1679   :  { %v3557_v14 = vmul.f32 %v11996_v46, %v3517_v20  ;;  %v13748_v3 = vadd.f32 %v3572_v38, %v3565_v47 }
0x167b   :  { %v3583_v16 = vpack.c.bf16 %v13748_v3, %v13746_v54  ;;  %v3566_v6 = vmul.f32 %v3563_v10, %v3557_v14 }
0x167c   :  { %v11998_v13 = vpop.eup %11997 }
0x167d   :  { %v3558_v28 = vmul.f32 %v11998_v13, %v3518_v21  ;;  %10965 = vmatmul.mubr.msk.bf16.vlgmr.msra.gmra.mxu1 %vm1085_vm3, %v3583_v16  ;;  %v13756_v49 = vadd.f32 %v3572_v38, %v3566_v6 }
0x167e   :  { %10968 = vmatprep.mubr.msk.bf16.mxu1 %vm12554_vm0, %v12552_v41  ;;  %10997 = vmatpush3.bf16.msra.mxu1 %v11835_v44 }
0x167f   :  { %v3567_v20 = vmul.f32 %v3563_v10, %v3558_v28  ;;  %10998 = vmatprep.subr.bf16.mxu1 %v12552_v41 }
0x1681   :  { %v13758_v63 = vadd.f32 %v3572_v38, %v3567_v20  ;;  %v9933_v20 = vld [vmem:[#allocation11] ss:$0 sm:$0xff] }
0x1682   :  { %10999 = vmatpush3.bf16.msra.mxu1 %v11836_v62 }
0x1683   :  { %v3584_v21 = vpack.c.bf16 %v13758_v63, %v13756_v49  ;;  %11020 = vmatprep.subr.bf16.mxu1 %v12552_v41 }
0x1685   :  { %10969 = vmatmul.mubr.msk.bf16.gmra.mxu1 %vm1085_vm3, %v3584_v21 }
0x1686   :  { %10972 = vmatprep.mubr.msk.bf16.mxu1 %vm12554_vm0, %v12552_v41 }
0x16eb   :  { %v3539_v29 = vpop.xlane.xlu0 %3538 }
0x16ec   :  { %v3544_v55 = vmul.f32 0.03125, %v3539_v29 }
0x16ee   :  { %v3549_v1 = vadd.f32 1e-06, %v3544_v55 }
0x16f0   :  { %11999 = vrsqrt.f32 %v3549_v1 }
0x16fd   :  { %v12000_v56 = vpop.eup %11999 }
0x16fe   :  { %v3559_v22 = vmul.f32 %v12000_v56, %v13739_v59  ;;  %v3879_v59 = vpack.c.bf16 %v13049_v31, %v13047_v25 }
0x1700   :  { %v3568_v24 = vmul.f32 %v3563_v10, %v3559_v22 }
0x1702   :  { %v13777_v36 = vadd.f32 %v3572_v38, %v3568_v24 }
0x1704   :  { %v3585_v7 = vpack.c.bf16 %v13777_v36, %v13777_v36 }
0x1706   :  { %10973 = vmatmul.mubr.msk.bf16.gmra.mxu1 %vm1085_vm3, %v3585_v7 }
0x1707   :  { %11000 = vmatprep.mubr.msk.bf16.mxu1 %vm12554_vm0, %v12552_v41 }
0x170e   :  { %11001 = vmatmul.mubr.msk.bf16.vlgmr.msra.gmra.mxu1 %vm1085_vm3, %v3878_v61 }
0x170f   :  { %11004 = vmatprep.mubr.msk.bf16.mxu1 %vm12554_vm0, %v12552_v41  ;;  %11021 = vmatpush3.bf16.msra.mxu1 %v13476_v8  ;;  %v9911_v8 = vld [vmem:[#allocation8 + $0x1] ss:$0 sm:$0xff] }
0x1710   :  { %11022 = vmatprep.subr.bf16.mxu1 %v12552_v41 }
0x1713   :  { %11023 = vmatpush3.bf16.msra.mxu1 %v13483_v39 }
0x1714   :  { %11036 = vmatprep.subr.bf16.mxu1 %v12552_v41 }
0x1716   :  { %11005 = vmatmul.mubr.msk.bf16.gmra.mxu1 %vm1085_vm3, %v3879_v59 }
0x1717   :  { %11008 = vmatprep.mubr.msk.bf16.mxu1 %vm12554_vm0, %v12552_v41 }
0x171e   :  { %11009 = vmatmul.mubr.msk.bf16.gmra.mxu1 %vm1085_vm3, %v3880_v5 }
0x171f   :  { %11024 = vmatprep.mubr.msk.bf16.mxu1 %vm12554_vm0, %v12552_v41 }
0x173d   :  { %v3649_v39 = vpop.f32.mrf.mxu1 }
0x173e   :  { %v3650_v15 = vadd.f32 %v9911_v8, %v3649_v39 }
0x173f   :  { %v10966_v30 = vpop.f32.mrf.mxu1 }
0x1740   :  { %v3671_v40 = vmax.f32 %v3650_v15, 0.0 }
0x1741   :  { %v3652_v35 = vpop.f32.mrf.mxu1 }
0x1742   :  { %v3653_v11 = vadd.f32 %v9911_v8, %v3652_v35 }
0x1743   :  { %v10967_v26 = vpop.f32.mrf.mxu1 }
0x1744   :  { %v3672_v17 = vmax.f32 %v3653_v11, 0.0 }
0x1745   :  { %v3657_v9 = vpop.f32.mrf.mxu1 }
0x1746   :  { %v3685_v58 = vpack.c.bf16 %v3672_v17, %v3671_v40  ;;  %v3658_v10 = vadd.f32 %v9911_v8, %v3657_v9 }
0x1747   :  { %v10970_v60 = vpop.f32.mrf.mxu1 }
0x1748   :  { %10985 = vmatmul.mubr.msk.bf16.vlgmr.msra.gmra.mxu0 %vm2323_vm10, %v3685_v58  ;;  %v3673_v4 = vmax.f32 %v3658_v10, 0.0 }
0x1749   :  { %v3660_v53 = vpop.f32.mrf.mxu1  ;;  %10988 = vmatprep.mubr.msk.bf16.mxu0 %vm12554_vm0, %v12552_v41 }
0x174a   :  { %v3661_v33 = vadd.f32 %v9911_v8, %v3660_v53 }
0x174b   :  { %v10971_v34 = vpop.f32.mrf.mxu1 }
0x174c   :  { %v3674_v38 = vmax.f32 %v3661_v33, 0.0 }
0x174e   :  { %v3686_v47 = vpack.c.bf16 %v3674_v38, %v3673_v4 }
0x1750   :  { %10989 = vmatmul.mubr.msk.bf16.gmra.mxu0 %vm2323_vm10, %v3686_v47 }
0x1751   :  { %10992 = vmatprep.mubr.msk.bf16.mxu0 %vm12554_vm0, %v12552_v41 }
0x17c6   :  { %v3665_v46 = vpop.f32.mrf.mxu1 }
0x17c7   :  { %v3666_v14 = vadd.f32 %v9911_v8, %v3665_v46 }
0x17c8   :  { %v10974_v16 = vpop.f32.mrf.mxu1 }
0x17c9   :  { %v3675_v13 = vmax.f32 %v3666_v14, 0.0 }
0x17ca   :  { %v3668_v28 = vpop.f32.mrf.mxu1 }
0x17cb   :  { %v3687_v6 = vpack.c.bf16 %v3675_v13, %v3675_v13 }
0x17cc   :  { %v10975_v44 = vpop.f32.mrf.mxu1 }
0x17cd   :  { %10993 = vmatmul.mubr.msk.bf16.gmra.mxu0 %vm2323_vm10, %v3687_v6 }
0x17ce   :  { %v3943_v21 = vpop.f32.mrf.mxu1  ;;  %11016 = vmatprep.mubr.msk.bf16.mxu0 %vm12554_vm0, %v12552_v41 }
0x17cf   :  { %v3944_v62 = vadd.f32 %v9933_v20, %v3943_v21 }
0x17d0   :  { %v11002_v18 = vpop.f32.mrf.mxu1 }
0x17d1   :  { %v3972_v32 = vmul.f32 %v3944_v62, %v13053_v42  ;;  %v3973_v23 = vmul.f32 %v3944_v62, %v13055_v45  ;;  %v3970_v2 = vmul.f32 %v3944_v62, %v13057_v48  ;;  %v3971_v55 = vmul.f32 %v3944_v62, %v13059_v50 }
0x17d2   :  { %v3946_v29 = vpop.f32.mrf.mxu1 }
0x17d3   :  { %v13816_v1 = vadd.f32 %v9933_v20, %v3946_v29  ;;  %v13818_v56 = vpack.c.bf16 %v3973_v23, %v3972_v32  ;;  %v13820_v24 = vpack.c.bf16 %v3971_v55, %v3970_v2  ;;  %v3965_v2 = vmul.f32 0.35355338, %v3944_v62 }
0x17d4   :  { %v11003_v22 = vpop.f32.mrf.mxu1 }
0x17d5   :  { %3981 = vrot.lane.b32.xlu1 %v13818_v56, %s12556_s18  ;;  %v4136_v7 = vmul.f32 %v13816_v1, %v13053_v42  ;;  %v4137_v61 = vmul.f32 %v13816_v1, %v13055_v45  ;;  %3979 = vrot.lane.b32.xlu0 %v13820_v24, %s12556_s18  ;;  %v4134_v30 = vmul.f32 %v13816_v1, %v13057_v48 }
0x17d6   :  { %v3951_v59 = vpop.f32.mrf.mxu1  ;;  %v4135_v15 = vmul.f32 %v13816_v1, %v13059_v50  ;;  %v3974_v29 = vpack.c.bf16 %v3965_v2, %v3965_v2 }
0x17d7   :  { %v13830_v5 = vpack.c.bf16 %v4137_v61, %v4136_v7  ;;  %v13832_v8 = vadd.f32 %v9933_v20, %v3951_v59  ;;  %v13882_v59 = vld [vmem:[%s12716_s13] sm:$0xff] }
0x17d8   :  { %v11006_v39 = vpop.f32.mrf.mxu1  ;;  %v13842_v40 = vpack.c.bf16 %v4135_v15, %v4134_v30 }
0x17d9   :  { %4145 = vrot.lane.b32.xlu0 %v13830_v5, %s12556_s18  ;;  %v4300_v17 = vmul.f32 %v13832_v8, %v13053_v42  ;;  %v4301_v9 = vmul.f32 %v13832_v8, %v13055_v45  ;;  %v4298_v33 = vmul.f32 %v13832_v8, %v13057_v48  ;;  %v4299_v34 = vmul.f32 %v13832_v8, %v13059_v50 }
0x17da   :  { %v3954_v35 = vpop.f32.mrf.mxu1 }
0x17db   :  { %v13840_v11 = vadd.f32 %v9933_v20, %v3954_v35  ;;  %v13852_v53 = vpack.c.bf16 %v4301_v9, %v4300_v17  ;;  %v13860_v47 = vpack.c.bf16 %v4299_v34, %v4298_v33 }
0x17dc   :  { %v11007_v26 = vpop.f32.mrf.mxu1 }
0x17dd   :  { %4143 = vrot.lane.b32.xlu0 %v13842_v40, %s12556_s18  ;;  %v4462_v17 = vmul.f32 %v13840_v11, %v13057_v48  ;;  %v4463_v9 = vmul.f32 %v13840_v11, %v13059_v50 }
0x17de   :  { %v3959_v58 = vpop.f32.mrf.mxu1 }
0x17df   :  { %v13850_v60 = vadd.f32 %v9933_v20, %v3959_v58  ;;  %v13894_v58 = vpack.c.bf16 %v4463_v9, %v4462_v17 }
0x17e0   :  { %v11010_v10 = vpop.f32.mrf.mxu1 }
0x17e1   :  { %4309 = vrot.lane.b32.xlu0 %v13852_v53, %s12556_s18 }
0x17e2   :  { %v3962_v4 = vpop.f32.mrf.mxu1 }
0x17e4   :  { %v11011_v38 = vpop.f32.mrf.mxu1 }
0x17e5   :  { %4307 = vrot.lane.b32.xlu0 %v13860_v47, %s12556_s18 }
0x1808   :  { %v13864_v46 = vpop.f32.mrf.mxu0 }
0x180a   :  { %v10986_v14 = vpop.f32.mrf.mxu0 }
0x180c   :  { %v13866_v16 = vpop.f32.mrf.mxu0 }
0x180e   :  { %v10987_v13 = vpop.f32.mrf.mxu0 }
0x1810   :  { %v13868_v28 = vpop.f32.mrf.mxu0 }
0x1812   :  { %v10990_v6 = vpop.f32.mrf.mxu0 }
0x1814   :  { %v13870_v44 = vpop.f32.mrf.mxu0 }
0x1816   :  { %v10991_v20 = vpop.f32.mrf.mxu0 }
0x1847   :  { %v3982_v21 = vpop.permute.xlu1 %3981  ;;  %v3980_v32 = vpop.permute.xlu0 %3979 }
0x1848   :  { %v3990_v18 = vsel %vm1085_vm3, %v3982_v21, 0  ;;  %v3987_v23 = vsel %vm1085_vm3, %v3980_v32, 0  ;;  %v3966_v21 = vmul.f32 0.35355338, %v13816_v1  ;;  %v3967_v1 = vmul.f32 0.35355338, %v13832_v8 }
0x1849   :  { %11013 = vmatpush3.bf16.xpose.msra.mxu0 %v3990_v18 }
0x184a   :  { %11014 = vmatprep.subr.bf16.mxu0 %v12552_v41  ;;  %v4138_v32 = vpack.c.bf16 %v3966_v21, %v3966_v21 }
0x184b   :  { %v4146_v14 = vpop.permute.xlu0 %4145 }
0x184c   :  { %v4154_v13 = vsel %vm1085_vm3, %v4146_v14, 0 }
0x184f   :  { %v4144_v6 = vpop.permute.xlu0 %4143 }
0x1850   :  { %v4151_v20 = vsel %vm1085_vm3, %v4144_v6, 0  ;;  %v4464_v6 = vmul.f32 %v13840_v11, %v13053_v42 }
0x1851   :  { %11015 = vmatpush3.bf16.xpose.msra.mxu0 %v3987_v23 }
0x1852   :  { %11028 = vmatprep.subr.bf16.mxu0 %v12552_v41 }
0x1853   :  { %v4310_v18 = vpop.permute.xlu0 %4309 }
0x1854   :  { %v4318_v23 = vsel %vm1085_vm3, %v4310_v18, 0 }
0x1857   :  { %v4308_v2 = vpop.permute.xlu0 %4307 }
0x1858   :  { %11017 = vmatmul.mubr.msk.bf16.vlgmr.msra.gmra.mxu0 %vm1085_vm3, %v3974_v29  ;;  %v4315_v29 = vsel %vm1085_vm3, %v4308_v2, 0 }
0x1859   :  { %11032 = vmatprep.mubr.msk.bf16.mxu0 %vm12554_vm0, %v12552_v41 }
0x188d   :  { %v13879_v55 = vpop.f32.mrf.mxu0 }
0x188f   :  { %v10994_v22 = vpop.f32.mrf.mxu0 }
0x1890   :  { %v4302_v22 = vpack.c.bf16 %v3967_v1, %v3967_v1  ;;  %v4627_v1 = vmul.f32 %v13850_v60, %v13059_v50 }
0x1891   :  { %v3782_v7 = vpop.f32.mrf.mxu0 }
0x1893   :  { %v10995_v61 = vpop.f32.mrf.mxu0 }
0x1918   :  { %v4026_v39 = vpop.f32.mrf.mxu0 }
0x1919   :  { %v4027_v30 = vadd.f32 %v4026_v39, %v13882_v59 }
0x191a   :  { %v11018_v15 = vpop.f32.mrf.mxu0 }
0x191b   :  { %v4032_v62 = vsel %vm1085_vm3, %v4027_v30, -inf }
0x191c   :  { %4033 = vmax.xlane.f32.xlu1 %v4032_v62  ;;  %v4029_v35 = vpop.f32.mrf.mxu0 }
0x191e   :  { %v11019_v26 = vpop.f32.mrf.mxu0 }
0x192d   :  { %4087 = vrot.lane.b32.xlu1 %v13818_v56, %s12544_s12 }
0x1931   :  { %4085 = vrot.lane.b32.xlu1 %v13820_v24, %s12544_s12 }
0x1935   :  { %4471 = vrot.lane.b32.xlu1 %v13894_v58, %s12556_s18 }
0x19a5   :  { %v4034_v10 = vpop.xlane.xlu1 %4033 }
0x19a6   :  { %v4035_v33 = vsub.f32 %v4027_v30, %v4034_v10 }
0x19a8   :  { %v4036_v34 = vmul.f32 1.442695, %v4035_v33  ;;  %v13923_v33 = vld [vmem:[%s12721_s8 + $0x8] sm:$0xff]  }
0x19a9   :  { %v4088_v4 = vpop.permute.xlu1 %4087 }
0x19aa   :  { %12001 = vpow2.f32 %v4036_v34  ;;  %11029 = vmatpush3.bf16.msra.mxu0 %v4088_v4  ;;  %v13930_v4 = vld [vmem:[%s12721_s8] sm:$0xff]  }
0x19ab   :  { %11030 = vmatprep.subr.bf16.mxu0 %v12552_v41 }
0x19ad   :  { %v4086_v56 = vpop.permute.xlu1 %4085 }
0x19ae   :  { %11031 = vmatpush3.bf16.msra.mxu0 %v4086_v56 }
0x19af   :  { %11044 = vmatprep.subr.bf16.mxu0 %v12552_v41 }
0x19b7   :  { %v12002_v38 = vpop.eup %12001 }
0x19b8   :  { %v4038_v24 = vpack.c.bf16 %v12002_v38, %v12002_v38 }
0x19ba   :  { %11025 = vmatmul.mubr.msk.bf16.vlgmr.msra.gmra.mxu1 %vm1085_vm3, %v4038_v24 }
0x19bb   :  { %11037 = vmatpush3.bf16.xpose.msra.mxu1 %v4154_v13  ;;  %11040 = vmatprep.mubr.msk.bf16.mxu1 %vm12554_vm0, %v12552_v41 }
0x19bc   :  { %11038 = vmatprep.subr.bf16.mxu1 %v12552_v41 }
0x19c3   :  { %11039 = vmatpush3.bf16.xpose.msra.mxu1 %v4151_v20  ;;  %v4465_v20 = vmul.f32 %v13840_v11, %v13055_v45 }
0x19c4   :  { %11060 = vmatprep.subr.bf16.mxu1 %v12552_v41 }
0x19c5   :  { %v13943_v18 = vpack.c.bf16 %v4465_v20, %v4464_v6 }
0x19ca   :  { %11041 = vmatmul.mubr.msk.bf16.vlgmr.msra.gmra.mxu1 %vm1085_vm3, %v4138_v32  ;;  %v4628_v32 = vmul.f32 %v13850_v60, %v13053_v42 }
0x19cb   :  { %11061 = vmatpush3.bf16.xpose.msra.mxu1 %v4318_v23  ;;  %11064 = vmatprep.mubr.msk.bf16.mxu1 %vm12554_vm0, %v12552_v41  ;;  %v4629_v23 = vmul.f32 %v13850_v60, %v13055_v45 }
0x19cc   :  { %11062 = vmatprep.subr.bf16.mxu1 %v12552_v41 }
0x19cd   :  { %v13955_v2 = vpack.c.bf16 %v4629_v23, %v4628_v32 }
0x19d3   :  { %11063 = vmatpush3.bf16.xpose.msra.mxu1 %v4315_v29  ;;  %v4626_v29 = vmul.f32 %v13850_v60, %v13057_v48 }
0x19d4   :  { %11084 = vmatprep.subr.bf16.mxu1 %v12552_v41 }
0x19da   :  { %11065 = vmatmul.mubr.msk.bf16.vlgmr.msra.gmra.mxu1 %vm1085_vm3, %v4302_v22 }
0x19db   :  { %11088 = vmatprep.mubr.msk.bf16.mxu1 %vm12554_vm0, %v12552_v41 }
0x1a7a   :  { %v4076_v7 = vpop.f32.mrf.mxu1 }
0x1a7b   :  { %12003 = vrcp.f32 %v4076_v7 }
0x1a7c   :  { %v11026_v61 = vpop.f32.mrf.mxu1 }
0x1a7e   :  { %v4079_v39 = vpop.f32.mrf.mxu1 }
0x1a80   :  { %v11027_v30 = vpop.f32.mrf.mxu1 }
0x1a81   :  { %v4472_v30 = vpop.permute.xlu1 %4471 }
0x1a88   :  { %v12004_v15 = vpop.eup %12003 }
0x1a89   :  { %v4083_v62 = vmul.f32 %v12004_v15, %v12002_v38 }
0x1a8a   :  { %v4190_v35 = vpop.f32.mrf.mxu1 }
0x1a8b   :  { %v4084_v26 = vpack.c.bf16 %v4083_v62, %v4083_v62  ;;  %v4191_v8 = vadd.f32 %v4190_v35, %v13882_v59  ;;  %v4479_v62 = vsel %vm1085_vm3, %v4472_v30, 0  ;;  %v14000_v30 = vld [vmem:[#allocation10 + $0x1] ss:$0 sm:$0xff] }
0x1a8c   :  { %v11042_v17 = vpop.f32.mrf.mxu1 }
0x1a8d   :  { %11033 = vmatmul.mubr.msk.bf16.vlgmr.msra.gmra.mxu0 %vm1085_vm3, %v4084_v26  ;;  %v4196_v9 = vsel %vm1085_vm3, %v4191_v8, -inf }
0x1a8e   :  { %4197 = vmax.xlane.f32.xlu0 %v4196_v9  ;;  %v4193_v10 = vpop.f32.mrf.mxu1  ;;  %11045 = vmatpush3.bf16.msra.mxu0 %v13923_v33 }
0x1a8f   :  { %11046 = vmatprep.subr.bf16.mxu0 %v12552_v41  ;;  %11048 = vmatprep.mubr.msk.bf16.mxu0 %vm12554_vm0, %v12552_v41 }
0x1a90   :  { %v11043_v34 = vpop.f32.mrf.mxu1 }
0x1a91   :  { %v3969_v34 = vmul.f32 0.35355338, %v13850_v60 }
0x1a92   :  { %11047 = vmatpush3.bf16.msra.mxu0 %v13930_v4 }
0x1a93   :  { %11052 = vmatprep.subr.bf16.mxu0 %v12552_v41 }
0x1a9a   :  { %v4354_v56 = vpop.f32.mrf.mxu1 }
0x1a9b   :  { %v13935_v38 = vadd.f32 %v4354_v56, %v13882_v59  ;;  %v4630_v56 = vpack.c.bf16 %v3969_v34, %v3969_v34 }
0x1a9c   :  { %v11066_v14 = vpop.f32.mrf.mxu1 }
0x1a9d   :  { %v4360_v24 = vsel %vm1085_vm3, %v13935_v38, -inf }
0x1a9e   :  { %4361 = vmax.xlane.f32.xlu1 %v4360_v24  ;;  %v4357_v13 = vpop.f32.mrf.mxu1 }
0x1aa0   :  { %v11067_v21 = vpop.f32.mrf.mxu1 }
0x1aa4   :  { %4473 = vrot.lane.b32.xlu0 %v13943_v18, %s12556_s18 }
0x1aa8   :  { %4251 = vrot.lane.b32.xlu0 %v13830_v5, %s12544_s12  ;;  %v13965_v5 = vpack.c.bf16 %v4627_v1, %v4626_v29 }
0x1aac   :  { %4249 = vrot.lane.b32.xlu0 %v13842_v40, %s12544_s12 }
0x1aaf   :  { %4415 = vrot.lane.b32.xlu1 %v13852_v53, %s12544_s12 }
0x1ab0   :  { %4637 = vrot.lane.b32.xlu0 %v13955_v2, %s12556_s18 }
0x1ab3   :  { %4413 = vrot.lane.b32.xlu1 %v13860_v47, %s12544_s12  ;;  %v3968_v47 = vmul.f32 0.35355338, %v13840_v11 }
0x1ab4   :  { %4635 = vrot.lane.b32.xlu0 %v13965_v5, %s12556_s18 }
0x1b17   :  { %v4198_v40 = vpop.xlane.xlu0 %4197 }
0x1b18   :  { %v4199_v22 = vsub.f32 %v4191_v8, %v4198_v40  ;;  %v4466_v8 = vpack.c.bf16 %v3968_v47, %v3968_v47 }
0x1b1a   :  { %v4200_v7 = vmul.f32 1.442695, %v4199_v22 }
0x1b1b   :  { %v4474_v61 = vpop.permute.xlu0 %4473 }
0x1b1c   :  { %12005 = vpow2.f32 %v4200_v7  ;;  %v4482_v39 = vsel %vm1085_vm3, %v4474_v61, 0 }
0x1b1d   :  { %11085 = vmatpush3.bf16.xpose.msra.mxu1 %v4482_v39 }
0x1b1e   :  { %11086 = vmatprep.subr.bf16.mxu1 %v12552_v41 }
0x1b1f   :  { %v4252_v53 = vpop.permute.xlu0 %4251 }
0x1b23   :  { %v4250_v15 = vpop.permute.xlu0 %4249 }
0x1b25   :  { %11087 = vmatpush3.bf16.xpose.msra.mxu1 %v4479_v62 }
0x1b26   :  { %11108 = vmatprep.subr.bf16.mxu1 %v12552_v41 }
0x1b27   :  { %v4638_v26 = vpop.permute.xlu0 %4637  ;;  %v4362_v20 = vpop.xlane.xlu1 %4361 }
0x1b28   :  { %v4646_v9 = vsel %vm1085_vm3, %v4638_v26, 0  ;;  %v4363_v23 = vsub.f32 %v13935_v38, %v4362_v20  ;;  %v3764_v38 = vadd.f32 %v14000_v30, %v13864_v46 }
0x1b29   :  { %v12006_v35 = vpop.eup %12005 }
0x1b2a   :  { %v4202_v17 = vpack.c.bf16 %v12006_v35, %v12006_v35  ;;  %v4364_v61 = vmul.f32 1.442695, %v4363_v23 }
0x1b2b   :  { %v4636_v11 = vpop.permute.xlu0 %4635 }
0x1b2c   :  { %11049 = vmatmul.mubr.msk.bf16.vlgmr.msra.gmra.mxu0 %vm1085_vm3, %v4202_v17  ;;  %11089 = vmatmul.mubr.msk.bf16.vlgmr.msra.gmra.mxu1 %vm1085_vm3, %v4466_v8  ;;  %v4643_v10 = vsel %vm1085_vm3, %v4636_v11, 0  ;;  %v14011_v11 = vadd.f32 %v3764_v38, %v13746_v54  ;;  %v4416_v54 = vpop.permute.xlu1 %4415 }
0x1b2d   :  { %11053 = vmatpush3.bf16.msra.mxu0 %v4252_v53  ;;  %11109 = vmatpush3.bf16.xpose.msra.mxu1 %v4646_v9 }
0x1b2e   :  { %11054 = vmatprep.subr.bf16.mxu0 %v12552_v41  ;;  %11110 = vmatprep.subr.bf16.mxu1 %v12552_v41 }
0x1b2f   :  { %11112 = vmatprep.mubr.msk.bf16.mxu1 %vm12554_vm0, %v12552_v41  ;;  %11056 = vmatprep.mubr.msk.bf16.mxu0 %vm12554_vm0, %v12552_v41 }
0x1b31   :  { %11055 = vmatpush3.bf16.msra.mxu0 %v4250_v15 }
0x1b32   :  { %11068 = vmatprep.subr.bf16.mxu0 %v12552_v41 }
0x1b35   :  { %11111 = vmatpush3.bf16.xpose.msra.mxu1 %v4643_v10 }
0x1b36   :  { %11132 = vmatprep.subr.bf16.mxu1 %v12552_v41 }
0x1b3c   :  { %11113 = vmatmul.mubr.msk.bf16.vlgmr.msra.gmra.mxu1 %vm1085_vm3, %v4630_v56  ;;  %v4414_v56 = vpop.permute.xlu1 %4413 }
0x1b3d   :  { %11136 = vmatprep.mubr.msk.bf16.mxu1 %vm12554_vm0, %v12552_v41 }
0x1b4d   :  { %v13992_v14 = vpop.f32.mrf.mxu0 }
0x1b4f   :  { %v11034_v24 = vpop.f32.mrf.mxu0 }
0x1b51   :  { %v4131_v13 = vpop.f32.mrf.mxu0 }
0x1b53   :  { %v11035_v6 = vpop.f32.mrf.mxu0 }
0x1b54   :  { %v11842_v6 = vld [vmem:[%s15631_s28] sm:$0xff]  }
0x1bec   :  { %v4240_v21 = vpop.f32.mrf.mxu0  ;;  %v4518_v32 = vpop.f32.mrf.mxu1 }
0x1bed   :  { %12007 = vrcp.f32 %v4240_v21  ;;  %v13996_v60 = vadd.f32 %v4518_v32, %v13882_v59 }
0x1bee   :  { %v11050_v29 = vpop.f32.mrf.mxu0  ;;  %v11090_v1 = vpop.f32.mrf.mxu1  ;;  %12009 = vpow2.f32 %v4364_v61 }
0x1bef   :  { %v4524_v40 = vsel %vm1085_vm3, %v13996_v60, -inf }
0x1bf0   :  { %v4243_v22 = vpop.f32.mrf.mxu0  ;;  %4525 = vmax.xlane.f32.xlu0 %v4524_v40  ;;  %v4521_v7 = vpop.f32.mrf.mxu1 }
0x1bf2   :  { %v11051_v39 = vpop.f32.mrf.mxu0  ;;  %v11091_v53 = vpop.f32.mrf.mxu1 }
0x1bfa   :  { %v12008_v15 = vpop.eup %12007 }
0x1bfb   :  { %v4247_v62 = vmul.f32 %v12008_v15, %v12006_v35  ;;  %v12010_v46 = vpop.eup %12009  ;;  %v3790_v35 = vsel %vm1085_vm3, %v14011_v11, 0.0 }
0x1bfc   :  { %v4682_v47 = vpop.f32.mrf.mxu1  ;;  %v4366_v34 = vpack.c.bf16 %v12010_v46, %v12010_v46 }
0x1bfd   :  { %v4248_v26 = vpack.c.bf16 %v4247_v62, %v4247_v62  ;;  %v14005_v8 = vadd.f32 %v4682_v47, %v13882_v59 }
0x1bfe   :  { %v11114_v17 = vpop.f32.mrf.mxu1 }
0x1bff   :  { %11057 = vmatmul.mubr.msk.bf16.vlgmr.msra.gmra.mxu0 %vm1085_vm3, %v4248_v26  ;;  %v4688_v9 = vsel %vm1085_vm3, %v14005_v8, -inf  ;;  %v14062_v17 = vld [vmem:[#allocation13] ss:$0 sm:$0xff] }
0x1c00   :  { %11069 = vmatpush3.bf16.msra.mxu0 %v13923_v33  ;;  %4689 = vmax.xlane.f32.xlu1 %v4688_v9  ;;  %v4685_v10 = vpop.f32.mrf.mxu1 }
0x1c01   :  { %11070 = vmatprep.subr.bf16.mxu0 %v12552_v41  ;;  %11072 = vmatprep.mubr.msk.bf16.mxu0 %vm12554_vm0, %v12552_v41 }
0x1c02   :  { %v11115_v59 = vpop.f32.mrf.mxu1 }
0x1c04   :  { %11071 = vmatpush3.bf16.msra.mxu0 %v13930_v4  ;;  %3791 = vadd.xlane.f32.xlu1 %v3790_v35 }
0x1c05   :  { %11076 = vmatprep.subr.bf16.mxu0 %v12552_v41 }
0x1c06   :  { %4579 = vrot.lane.b32.xlu0 %v13943_v18, %s12544_s12  ;;  %v3767_v18 = vadd.f32 %v14000_v30, %v13866_v16 }
0x1c07   :  { %11073 = vmatmul.mubr.msk.bf16.vlgmr.msra.gmra.mxu0 %vm1085_vm3, %v4366_v34 }
0x1c08   :  { %11077 = vmatpush3.bf16.msra.mxu0 %v4416_v54  ;;  %11080 = vmatprep.mubr.msk.bf16.mxu0 %vm12554_vm0, %v12552_v41  ;;  %v14037_v24 = vadd.f32 %v3767_v18, %v13748_v3 }
0x1c09   :  { %11078 = vmatprep.subr.bf16.mxu0 %v12552_v41 }
0x1c0a   :  { %4577 = vrot.lane.b32.xlu0 %v13894_v58, %s12544_s12  ;;  %v3793_v13 = vsel %vm1085_vm3, %v14037_v24, 0.0  ;;  %v11841_v58 = vld [vmem:[%s15631_s28 + $0x8] sm:$0xff]  }
0x1c0b   :  { %11133 = vmatpush3.bf16.msra.mxu1 %v11841_v58 }
0x1c0c   :  { %11079 = vmatpush3.bf16.msra.mxu0 %v4414_v56  ;;  %11134 = vmatprep.subr.bf16.mxu1 %v12552_v41 }
0x1c0d   :  { %11092 = vmatprep.subr.bf16.mxu0 %v12552_v41 }
0x1c0e   :  { %4743 = vrot.lane.b32.xlu0 %v13955_v2, %s12544_s12 }
0x1c0f   :  { %11135 = vmatpush3.bf16.msra.mxu1 %v11842_v6 }
0x1c10   :  { %11164 = vmatprep.subr.bf16.mxu1 %v12552_v41 }
0x1c12   :  { %4741 = vrot.lane.b32.xlu0 %v13965_v5, %s12544_s12 }
0x1c31   :  { %3794 = vadd.xlane.f32.xlu0 %v3793_v13 }
0x1c79   :  { %v4526_v16 = vpop.xlane.xlu0 %4525 }
0x1c7a   :  { %v4527_v23 = vsub.f32 %v13996_v60, %v4526_v16 }
0x1c7c   :  { %v4528_v40 = vmul.f32 1.442695, %v4527_v23 }
0x1c7d   :  { %v4580_v53 = vpop.permute.xlu0 %4579 }
0x1c81   :  { %v4578_v15 = vpop.permute.xlu0 %4577 }
0x1c85   :  { %v4744_v38 = vpop.permute.xlu0 %4743 }
0x1c89   :  { %v4690_v62 = vpop.xlane.xlu1 %4689  ;;  %v4742_v47 = vpop.permute.xlu0 %4741 }
0x1c8d   :  { %v3792_v26 = vpop.xlane.xlu1 %3791 }
0x1c8e   :  { %v3805_v10 = vmul.f32 0.03125, %v3792_v26 }
0x1c90   :  { %v14067_v56 = vsub.f32 %v14011_v11, %v3805_v10 }
0x1cba   :  { %v3795_v59 = vpop.xlane.xlu0 %3794 }
0x1cbb   :  { %v3806_v18 = vmul.f32 0.03125, %v3795_v59 }
0x1cbf   :  { %v4292_v2 = vpop.f32.mrf.mxu0 }
0x1cc0   :  { %v4794_v5 = vpack.c.bf16 %v4292_v2, %v13992_v14 }
0x1cc1   :  { %v11058_v20 = vpop.f32.mrf.mxu0 }
0x1cc2   :  { %11137 = vmatmul.mubr.msk.bf16.vlgmr.msra.gmra.mxu1 %vm1085_vm3, %v4794_v5  ;;  %v14073_v5 = vsub.f32 %v14037_v24, %v3806_v18 }
0x1cc3   :  { %v4295_v3 = vpop.f32.mrf.mxu0  ;;  %11140 = vmatprep.mubr.msk.bf16.mxu1 %vm12554_vm0, %v12552_v41 }
0x1cc4   :  { %v3816_v3 = vmul.f32 %v14073_v5, %v14073_v5 }
0x1cc5   :  { %v11059_v21 = vpop.f32.mrf.mxu0 }
0x1cc6   :  { %v3823_v16 = vsel %vm1085_vm3, %v3816_v3, 0.0  ;;  %v11843_v3 = vld [vmem:[%s15632_s1 + $0x8] sm:$0xff]  }
0x1cc7   :  { %v4404_v32 = vpop.f32.mrf.mxu0 }
0x1cc8   :  { %12011 = vrcp.f32 %v4404_v32 }
0x1cc9   :  { %v11074_v29 = vpop.f32.mrf.mxu0  ;;  %12013 = vpow2.f32 %v4528_v40 }
0x1cca   :  { %v4691_v29 = vsub.f32 %v14005_v8, %v4690_v62 }
0x1ccb   :  { %v4407_v1 = vpop.f32.mrf.mxu0 }
0x1ccd   :  { %v11075_v22 = vpop.f32.mrf.mxu0 }
0x1cce   :  { %v4692_v22 = vmul.f32 1.442695, %v4691_v29 }
0x1cd5   :  { %v12012_v7 = vpop.eup %12011 }
0x1cd6   :  { %v4411_v14 = vmul.f32 %v12012_v7, %v12010_v46  ;;  %v12014_v39 = vpop.eup %12013 }
0x1cd7   :  { %v4530_v60 = vpack.c.bf16 %v12014_v39, %v12014_v39 }
0x1cd8   :  { %v4412_v61 = vpack.c.bf16 %v4411_v14, %v4411_v14 }
0x1cda   :  { %11081 = vmatmul.mubr.msk.bf16.vlgmr.msra.gmra.mxu0 %vm1085_vm3, %v4412_v61 }
0x1cdb   :  { %11093 = vmatpush3.bf16.msra.mxu0 %v13923_v33  ;;  %11096 = vmatprep.mubr.msk.bf16.mxu0 %vm12554_vm0, %v12552_v41 }
0x1cdc   :  { %11094 = vmatprep.subr.bf16.mxu0 %v12552_v41 }
0x1cdf   :  { %11095 = vmatpush3.bf16.msra.mxu0 %v13930_v4 }
0x1ce0   :  { %11100 = vmatprep.subr.bf16.mxu0 %v12552_v41 }
0x1ce2   :  { %11097 = vmatmul.mubr.msk.bf16.vlgmr.msra.gmra.mxu0 %vm1085_vm3, %v4530_v60 }
0x1ce3   :  { %11101 = vmatpush3.bf16.msra.mxu0 %v4580_v53  ;;  %11104 = vmatprep.mubr.msk.bf16.mxu0 %vm12554_vm0, %v12552_v41 }
0x1ce4   :  { %11102 = vmatprep.subr.bf16.mxu0 %v12552_v41 }
0x1ce7   :  { %11103 = vmatpush3.bf16.msra.mxu0 %v4578_v15 }
0x1ce8   :  { %11116 = vmatprep.subr.bf16.mxu0 %v12552_v41 }
0x1d82   :  { %v4859_v9 = vpop.f32.mrf.mxu1 }
0x1d83   :  { %v4860_v46 = vadd.f32 %v14062_v17, %v4859_v9 }
0x1d84   :  { %v11138_v35 = vpop.f32.mrf.mxu1 }
0x1d85   :  { %v4881_v34 = vadd.f32 %v4860_v46, %v13043_v12  ;;  %v3815_v12 = vmul.f32 %v14067_v56, %v14067_v56 }
0x1d86   :  { %v4862_v54 = vpop.f32.mrf.mxu1 }
0x1d87   :  { %v4863_v13 = vadd.f32 %v14062_v17, %v4862_v54  ;;  %v4886_v58 = vsel %vm1085_vm3, %v4881_v34, 0.0  ;;  %v3820_v11 = vsel %vm1085_vm3, %v3815_v12, 0.0 }
0x1d88   :  { %4887 = vadd.xlane.f32.xlu1 %v4886_v58  ;;  %v11139_v6 = vpop.f32.mrf.mxu1 }
0x1d89   :  { %v4882_v2 = vadd.f32 %v4863_v13, %v13045_v19 }
0x1d8b   :  { %v4889_v20 = vsel %vm1085_vm3, %v4882_v2, 0.0 }
0x1d8c   :  { %4890 = vadd.xlane.f32.xlu1 %v4889_v20 }
0x1d90   :  { %3821 = vadd.xlane.f32.xlu1 %v3820_v11 }
0x1d94   :  { %3824 = vadd.xlane.f32.xlu1 %v3823_v16 }
0x1d9a   :  { %v4456_v21 = vpop.f32.mrf.mxu0 }
0x1d9c   :  { %v11082_v19 = vpop.f32.mrf.mxu0 }
0x1d9e   :  { %v4459_v32 = vpop.f32.mrf.mxu0 }
0x1da0   :  { %v11083_v24 = vpop.f32.mrf.mxu0 }
0x1da2   :  { %v4568_v23 = vpop.f32.mrf.mxu0 }
0x1da3   :  { %12015 = vrcp.f32 %v4568_v23 }
0x1da4   :  { %v11098_v1 = vpop.f32.mrf.mxu0  ;;  %12017 = vpow2.f32 %v4692_v22 }
0x1da6   :  { %v4571_v40 = vpop.f32.mrf.mxu0 }
0x1da8   :  { %v11099_v7 = vpop.f32.mrf.mxu0 }
0x1da9   :  { %v3873_v7 = vld [vmem:[%s15633_s2] sm:$0x3f] }
0x1db0   :  { %v12016_v14 = vpop.eup %12015 }
0x1db1   :  { %v4575_v61 = vmul.f32 %v12016_v14, %v12014_v39  ;;  %v12018_v53 = vpop.eup %12017 }
0x1db2   :  { %v4694_v8 = vpack.c.bf16 %v12018_v53, %v12018_v53 }
0x1db3   :  { %v4576_v60 = vpack.c.bf16 %v4575_v61, %v4575_v61  ;;  %v14109_v61 = vrot.slane %v3873_v7, %v13316_v52 }
0x1db5   :  { %11105 = vmatmul.mubr.msk.bf16.vlgmr.msra.gmra.mxu0 %vm1085_vm3, %v4576_v60 }
0x1db6   :  { %11117 = vmatpush3.bf16.msra.mxu0 %v13923_v33  ;;  %11120 = vmatprep.mubr.msk.bf16.mxu0 %vm12554_vm0, %v12552_v41 }
0x1db7   :  { %11118 = vmatprep.subr.bf16.mxu0 %v12552_v41 }
0x1dba   :  { %11119 = vmatpush3.bf16.msra.mxu0 %v13930_v4 }
0x1dbb   :  { %11124 = vmatprep.subr.bf16.mxu0 %v12552_v41 }
0x1dbd   :  { %11121 = vmatmul.mubr.msk.bf16.vlgmr.msra.gmra.mxu0 %vm1085_vm3, %v4694_v8 }
0x1dbe   :  { %11125 = vmatpush3.bf16.msra.mxu0 %v4744_v38  ;;  %11128 = vmatprep.mubr.msk.bf16.mxu0 %vm12554_vm0, %v12552_v41 }
0x1dbf   :  { %11126 = vmatprep.subr.bf16.mxu0 %v12552_v41 }
0x1dc2   :  { %11127 = vmatpush3.bf16.msra.mxu0 %v4742_v47 }
0x1dc3   :  { %11148 = vmatprep.subr.bf16.mxu0 %v12552_v41 }
0x1e11   :  { %v4888_v39 = vpop.xlane.xlu1 %4887 }
0x1e12   :  { %v4901_v15 = vmul.f32 0.03125, %v4888_v39 }
0x1e14   :  { %v4906_v62 = vsub.f32 %v4881_v34, %v4901_v15  ;;  %v14113_v15 = vrot.slane %v3873_v7, %v13321_v43 }
0x1e15   :  { %v4891_v26 = vpop.xlane.xlu1 %4890 }
0x1e16   :  { %v4902_v9 = vmul.f32 0.03125, %v4891_v26  ;;  %v4911_v10 = vmul.f32 %v4906_v62, %v4906_v62 }
0x1e18   :  { %v4907_v46 = vsub.f32 %v4882_v2, %v4902_v9  ;;  %v4916_v59 = vsel %vm1085_vm3, %v4911_v10, 0.0 }
0x1e19   :  { %4917 = vadd.xlane.f32.xlu1 %v4916_v59  ;;  %v3822_v19 = vpop.xlane.xlu1 %3821 }
0x1e1a   :  { %v4912_v35 = vmul.f32 %v4907_v46, %v4907_v46 }
0x1e1c   :  { %v4919_v38 = vsel %vm1085_vm3, %v4912_v35, 0.0 }
0x1e1d   :  { %4920 = vadd.xlane.f32.xlu1 %v4919_v38  ;;  %v3825_v32 = vpop.xlane.xlu1 %3824  ;;  %v3835_v38 = vmul.f32 0.03125, %v3822_v19 }
0x1e1e   :  { %v3836_v35 = vmul.f32 0.03125, %v3825_v32  ;;  %v12187_v32 = vld [vmem:[#allocation7 + $0x4] sm:$0xf] }
0x1e75   :  { %v4620_v54 = vpop.f32.mrf.mxu0 }
0x1e76   :  { %v4795_v18 = vpack.c.bf16 %v4620_v54, %v4456_v21  ;;  %v11844_v21 = vld [vmem:[%s15632_s1] sm:$0xff]  }
0x1e77   :  { %v11106_v47 = vpop.f32.mrf.mxu0 }
0x1e78   :  { %11141 = vmatmul.mubr.msk.bf16.gmra.mxu1 %vm1085_vm3, %v4795_v18  ;;  %v3841_v18 = vadd.f32 1e-06, %v3836_v35 }
0x1e79   :  { %v4623_v13 = vpop.f32.mrf.mxu0  ;;  %11144 = vmatprep.mubr.msk.bf16.mxu1 %vm12554_vm0, %v12552_v41 }
0x1e7b   :  { %v11107_v34 = vpop.f32.mrf.mxu0 }
0x1e7c   :  { %v3840_v34 = vadd.f32 1e-06, %v3835_v38 }
0x1e7d   :  { %v4732_v58 = vpop.f32.mrf.mxu0 }
0x1e7e   :  { %12019 = vrcp.f32 %v4732_v58 }
0x1e7f   :  { %v11122_v6 = vpop.f32.mrf.mxu0 }
0x1e81   :  { %v4735_v2 = vpop.f32.mrf.mxu0 }
0x1e83   :  { %v11123_v20 = vpop.f32.mrf.mxu0 }
0x1e8b   :  { %v12020_v12 = vpop.eup %12019 }
0x1e8c   :  { %v4739_v11 = vmul.f32 %v12020_v12, %v12018_v53 }
0x1e8e   :  { %v4740_v16 = vpack.c.bf16 %v4739_v11, %v4739_v11 }
0x1e90   :  { %11129 = vmatmul.mubr.msk.bf16.vlgmr.msra.gmra.mxu0 %vm1085_vm3, %v4740_v16 }
0x1e91   :  { %11149 = vmatpush3.bf16.msra.mxu0 %v11843_v3  ;;  %11152 = vmatprep.mubr.msk.bf16.mxu0 %vm12554_vm0, %v12552_v41 }
0x1e92   :  { %11150 = vmatprep.subr.bf16.mxu0 %v12552_v41 }
0x1e95   :  { %11151 = vmatpush3.bf16.msra.mxu0 %v11844_v21 }
0x1e96   :  { %11180 = vmatprep.subr.bf16.mxu0 %v12552_v41 }
0x1ea2   :  { %v4918_v24 = vpop.xlane.xlu1 %4917 }
0x1ea3   :  { %v4931_v23 = vmul.f32 0.03125, %v4918_v24 }
0x1ea5   :  { %v4936_v29 = vadd.f32 1e-06, %v4931_v23 }
0x1ea6   :  { %v4921_v1 = vpop.xlane.xlu1 %4920 }
0x1ea7   :  { %12021 = vrsqrt.f32 %v4936_v29  ;;  %v4932_v40 = vmul.f32 0.03125, %v4921_v1 }
0x1ea9   :  { %v4937_v22 = vadd.f32 1e-06, %v4932_v40 }
0x1eab   :  { %12023 = vrsqrt.f32 %v4937_v22 }
0x1eac   :  { %12025 = vrsqrt.f32 %v3841_v18 }
0x1ead   :  { %12027 = vrsqrt.f32 %v3840_v34 }
0x1eb4   :  { %v12022_v14 = vpop.eup %12021 }
0x1eb5   :  { %v4946_v60 = vmul.f32 %v12022_v14, %v4906_v62  ;;  %v11845_v62 = vld [vmem:[%s15634_s29 + $0x8] sm:$0xff]  }
0x1eb6   :  { %11165 = vmatpush3.bf16.msra.mxu1 %v11845_v62 }
0x1eb7   :  { %v4955_v8 = vmul.f32 %v14109_v61, %v4946_v60  ;;  %11166 = vmatprep.subr.bf16.mxu1 %v12552_v41 }
0x1eb8   :  { %v12024_v53 = vpop.eup %12023 }
0x1eb9   :  { %v4947_v39 = vmul.f32 %v12024_v53, %v4907_v46  ;;  %v14117_v9 = vadd.f32 %v14113_v15, %v4955_v8  ;;  %v11846_v46 = vld [vmem:[%s15634_s29] sm:$0xff]   ;;  %v12026_v16 = vpop.eup %12025 }
0x1eba   :  { %11167 = vmatpush3.bf16.msra.mxu1 %v11846_v46  ;;  %v12028_v21 = vpop.eup %12027  ;;  %v3851_v19 = vmul.f32 %v12026_v16, %v14073_v5 }
0x1ebb   :  { %v4956_v26 = vmul.f32 %v14109_v61, %v4947_v39  ;;  %11204 = vmatprep.subr.bf16.mxu1 %v12552_v41  ;;  %v3850_v24 = vmul.f32 %v12028_v21, %v14067_v56 }
0x1ebd   :  { %v14120_v10 = vadd.f32 %v14113_v15, %v4956_v26 }
0x1ebf   :  { %v4973_v59 = vpack.c.bf16 %v14120_v10, %v14117_v9 }
0x1ec1   :  { %11153 = vmatmul.mubr.msk.bf16.vlgmr.msra.gmra.mxu0 %vm1085_vm3, %v4973_v59 }
0x1ec2   :  { %11156 = vmatprep.mubr.msk.bf16.mxu0 %vm12554_vm0, %v12552_v41 }
0x1f38   :  { %v4867_v54 = vpop.f32.mrf.mxu1 }
0x1f39   :  { %v4868_v47 = vadd.f32 %v14062_v17, %v4867_v54 }
0x1f3a   :  { %v11142_v13 = vpop.f32.mrf.mxu1 }
0x1f3b   :  { %v4883_v58 = vadd.f32 %v4868_v47, %v13047_v25  ;;  %v14139_v25 = vrot.slane %v12187_v32, %v13416_v27 }
0x1f3c   :  { %v4870_v6 = vpop.f32.mrf.mxu1 }
0x1f3d   :  { %v4871_v2 = vadd.f32 %v14062_v17, %v4870_v6  ;;  %v4892_v20 = vsel %vm1085_vm3, %v4883_v58, 0.0  ;;  %v3860_v29 = vmul.f32 %v14139_v25, %v3851_v19  ;;  %v3859_v22 = vmul.f32 %v14139_v25, %v3850_v24  ;;  %v14184_v24 = vld [vmem:[%s15626_s27 + $0x10] sm:$0xff] }
0x1f3e   :  { %4893 = vadd.xlane.f32.xlu1 %v4892_v20  ;;  %v11143_v12 = vpop.f32.mrf.mxu1 }
0x1f3f   :  { %v4884_v11 = vadd.f32 %v4871_v2, %v13049_v31  ;;  %v14144_v31 = vrot.slane %v12187_v32, %v13419_v57 }
0x1f41   :  { %v4895_v3 = vsel %vm1085_vm3, %v4884_v11, 0.0  ;;  %v3869_v5 = vadd.f32 %v14144_v31, %v3860_v29  ;;  %v3868_v56 = vadd.f32 %v14144_v31, %v3859_v22  ;;  %v14188_v29 = vld [vmem:[%s15626_s27 + $0x18] sm:$0xff] }
0x1f42   :  { %4896 = vadd.xlane.f32.xlu1 %v4895_v3 }
0x1f43   :  { %v14152_v60 = vpack.c.bf16 %v3869_v5, %v3868_v56 }
0x1f50   :  { %v4784_v23 = vpop.f32.mrf.mxu0 }
0x1f51   :  { %v4796_v1 = vpack.c.bf16 %v4784_v23, %v4784_v23 }
0x1f52   :  { %v11130_v40 = vpop.f32.mrf.mxu0 }
0x1f53   :  { %11145 = vmatmul.mubr.msk.bf16.gmra.mxu1 %vm1085_vm3, %v4796_v1 }
0x1f54   :  { %v4787_v7 = vpop.f32.mrf.mxu0  ;;  %11168 = vmatprep.mubr.msk.bf16.mxu1 %vm12554_vm0, %v12552_v41 }
0x1f56   :  { %v11131_v14 = vpop.f32.mrf.mxu0 }
0x1f57   :  { %v14197_v14 = vld [vmem:[%s15626_s27] sm:$0xff] }
0x1f5b   :  { %11169 = vmatmul.mubr.msk.bf16.vlgmr.msra.gmra.mxu1 %vm1085_vm3, %v14152_v60 }
0x1f5c   :  { %11172 = vmatprep.mubr.msk.bf16.mxu1 %vm12554_vm0, %v12552_v41 }
0x1f81   :  { %v14158_v53 = vpop.f32.mrf.mxu0 }
0x1f83   :  { %v11154_v8 = vpop.f32.mrf.mxu0 }
0x1f85   :  { %v14160_v39 = vpop.f32.mrf.mxu0 }
0x1f87   :  { %v11155_v26 = vpop.f32.mrf.mxu0 }
0x1fc7   :  { %v4894_v59 = vpop.xlane.xlu1 %4893 }
0x1fc8   :  { %v4903_v62 = vmul.f32 0.03125, %v4894_v59 }
0x1fca   :  { %v14162_v46 = vsub.f32 %v4883_v58, %v4903_v62  ;;  %v3772_v58 = vadd.f32 %v14000_v30, %v13868_v28 }
0x1fcb   :  { %v4897_v54 = vpop.xlane.xlu1 %4896 }
0x1fcc   :  { %v4913_v35 = vmul.f32 %v14162_v46, %v14162_v46  ;;  %v4904_v18 = vmul.f32 0.03125, %v4897_v54 }
0x1fce   :  { %v4922_v38 = vsel %vm1085_vm3, %v4913_v35, 0.0  ;;  %v14167_v13 = vsub.f32 %v4884_v11, %v4904_v18  ;;  %v14176_v11 = vld [vmem:[#allocation16] ss:$0 sm:$0xff] }
0x1fcf   :  { %4923 = vadd.xlane.f32.xlu1 %v4922_v38 }
0x1fd0   :  { %v4914_v3 = vmul.f32 %v14167_v13, %v14167_v13 }
0x1fd2   :  { %v4925_v28 = vsel %vm1085_vm3, %v4914_v3, 0.0 }
0x2013   :  { %v4875_v47 = vpop.f32.mrf.mxu1 }
0x2014   :  { %v4876_v34 = vadd.f32 %v14062_v17, %v4875_v47  ;;  %v3787_v17 = vadd.f32 %v3772_v58, %v13756_v49 }
0x2015   :  { %v11146_v6 = vpop.f32.mrf.mxu1 }
0x2016   :  { %v4885_v2 = vadd.f32 %v4876_v34, %v13051_v37  ;;  %v3780_v37 = vadd.f32 %v14000_v30, %v13879_v55  ;;  %v3796_v22 = vsel %vm1085_vm3, %v3787_v17, 0.0 }
0x2017   :  { %v4878_v20 = vpop.f32.mrf.mxu1 }
0x2018   :  { %v4898_v12 = vsel %vm1085_vm3, %v4885_v2, 0.0  ;;  %v3789_v40 = vadd.f32 %v3780_v37, %v13777_v36  ;;  %v14205_v36 = vld [vmem:[%s15626_s27 + $0x8] sm:$0xff] }
0x2019   :  { %4899 = vadd.xlane.f32.xlu0 %v4898_v12  ;;  %v11147_v16 = vpop.f32.mrf.mxu1 }
0x201a   :  { %v3802_v35 = vsel %vm1085_vm3, %v3789_v40, 0.0 }
0x201b   :  { %v5129_v21 = vpop.f32.mrf.mxu1 }
0x201c   :  { %v5130_v19 = vadd.f32 %v14176_v11, %v5129_v21 }
0x201d   :  { %4926 = vadd.xlane.f32.xlu0 %v4925_v28  ;;  %v11170_v32 = vpop.f32.mrf.mxu1 }
0x201e   :  { %v5158_v23 = vmul.f32 %v14184_v24, %v5130_v19  ;;  %v5159_v1 = vmul.f32 %v14188_v29, %v5130_v19  ;;  %v5156_v56 = vmul.f32 %v14197_v14, %v5130_v19  ;;  %v5157_v62 = vmul.f32 %v14205_v36, %v5130_v19 }
0x201f   :  { %v5132_v49 = vpop.f32.mrf.mxu1  ;;  %v3775_v19 = vadd.f32 %v14000_v30, %v13870_v44 }
0x2020   :  { %v5133_v55 = vadd.f32 %v14176_v11, %v5132_v49  ;;  %v14194_v7 = vpack.c.bf16 %v5159_v1, %v5158_v23  ;;  %v14214_v18 = vpack.c.bf16 %v5157_v62, %v5156_v56 }
0x2021   :  { %3797 = vadd.xlane.f32.xlu0 %v3796_v22  ;;  %v11171_v5 = vpop.f32.mrf.mxu1  ;;  %v3788_v49 = vadd.f32 %v3775_v19, %v13758_v63 }
0x2022   :  { %v5170_v8 = vsel %vm1085_vm3, %v14194_v7, 0  ;;  %v5318_v26 = vmul.f32 %v14184_v24, %v5133_v55  ;;  %v5319_v59 = vmul.f32 %v14188_v29, %v5133_v55  ;;  %v5316_v47 = vmul.f32 %v14197_v14, %v5133_v55 }
0x2023   :  { %11181 = vmatpush3.bf16.xpose.msra.mxu0 %v5170_v8  ;;  %v5317_v34 = vmul.f32 %v14205_v36, %v5133_v55  ;;  %v5167_v6 = vsel %vm1085_vm3, %v14214_v18, 0 }
0x2024   :  { %v14209_v38 = vpack.c.bf16 %v5319_v59, %v5318_v26  ;;  %11182 = vmatprep.subr.bf16.mxu0 %v12552_v41  ;;  %v3799_v26 = vsel %vm1085_vm3, %v3788_v49, 0.0 }
0x2025   :  { %3803 = vadd.xlane.f32.xlu0 %v3802_v35  ;;  %v14221_v20 = vpack.c.bf16 %v5317_v34, %v5316_v47 }
0x2026   :  { %v5330_v54 = vsel %vm1085_vm3, %v14209_v38, 0 }
0x2027   :  { %11205 = vmatpush3.bf16.xpose.msra.mxu1 %v5330_v54  ;;  %v5327_v58 = vsel %vm1085_vm3, %v14221_v20, 0 }
0x2028   :  { %11206 = vmatprep.subr.bf16.mxu1 %v12552_v41 }
0x202b   :  { %11183 = vmatpush3.bf16.xpose.msra.mxu0 %v5167_v6 }
0x202c   :  { %11188 = vmatprep.subr.bf16.mxu0 %v12552_v41 }
0x202f   :  { %11207 = vmatpush3.bf16.xpose.msra.mxu1 %v5327_v58 }
0x2030   :  { %11220 = vmatprep.subr.bf16.mxu1 %v12552_v41 }
0x2058   :  { %v4924_v12 = vpop.xlane.xlu1 %4923 }
0x2059   :  { %v4933_v3 = vmul.f32 0.03125, %v4924_v12 }
0x205b   :  { %v4938_v16 = vadd.f32 1e-06, %v4933_v3 }
0x205d   :  { %12029 = vrsqrt.f32 %v4938_v16 }
0x206a   :  { %v12030_v62 = vpop.eup %12029 }
0x20a2   :  { %v4900_v21 = vpop.xlane.xlu0 %4899 }
0x20a3   :  { %v4905_v37 = vmul.f32 0.03125, %v4900_v21 }
0x20a5   :  { %v4910_v28 = vsub.f32 %v4885_v2, %v4905_v37 }
0x20a6   :  { %v4927_v32 = vpop.xlane.xlu0 %4926 }
0x20a7   :  { %v4934_v23 = vmul.f32 0.03125, %v4927_v32  ;;  %v4915_v1 = vmul.f32 %v4910_v28, %v4910_v28 }
0x20a9   :  { %v4939_v55 = vadd.f32 1e-06, %v4934_v23  ;;  %v4928_v22 = vsel %vm1085_vm3, %v4915_v1, 0.0 }
0x20aa   :  { %4929 = vadd.xlane.f32.xlu1 %v4928_v22  ;;  %v3798_v5 = vpop.xlane.xlu0 %3797 }
0x20ab   :  { %12031 = vrsqrt.f32 %v4939_v55  ;;  %v3807_v56 = vmul.f32 0.03125, %v3798_v5  ;;  %v14259_v5 = vld [vmem:[#allocation14] ss:$0 sm:$0xff] }
0x20ad   :  { %v14231_v8 = vsub.f32 %v3787_v17, %v3807_v56  ;;  %v4948_v17 = vmul.f32 %v12030_v62, %v14162_v46 }
0x20ae   :  { %3800 = vadd.xlane.f32.xlu1 %v3799_v26  ;;  %v3804_v44 = vpop.xlane.xlu0 %3803  ;;  %v5039_v26 = vadd.f32 %v14259_v5, %v14158_v53 }
0x20af   :  { %v3809_v30 = vmul.f32 0.03125, %v3804_v44  ;;  %v3817_v2 = vmul.f32 %v14231_v8, %v14231_v8  ;;  %v4957_v6 = vmul.f32 %v14109_v61, %v4948_v17 }
0x20b1   :  { %v14236_v59 = vsub.f32 %v3789_v40, %v3809_v30  ;;  %v3826_v63 = vsel %vm1085_vm3, %v3817_v2, 0.0  ;;  %v14247_v58 = vadd.f32 %v14113_v15, %v4957_v6 }
0x20b2   :  { %3827 = vadd.xlane.f32.xlu1 %v3826_v63 }
0x20b3   :  { %v3819_v35 = vmul.f32 %v14236_v59, %v14236_v59 }
0x20b5   :  { %v3832_v54 = vsel %vm1085_vm3, %v3819_v35, 0.0 }
0x20b6   :  { %3833 = vadd.xlane.f32.xlu1 %v3832_v54 }
0x20b8   :  { %v12032_v47 = vpop.eup %12031 }
0x20b9   :  { %v4949_v34 = vmul.f32 %v12032_v47, %v14167_v13 }
0x20bb   :  { %v4958_v40 = vmul.f32 %v14109_v61, %v4949_v34 }
0x20bd   :  { %v14250_v12 = vadd.f32 %v14113_v15, %v4958_v40 }
0x20bf   :  { %v4974_v3 = vpack.c.bf16 %v14250_v12, %v14247_v58 }
0x20c1   :  { %11157 = vmatmul.mubr.msk.bf16.gmra.mxu0 %vm1085_vm3, %v4974_v3 }
0x20c2   :  { %11160 = vmatprep.mubr.msk.bf16.mxu0 %vm12554_vm0, %v12552_v41 }
0x2133   :  { %v4930_v46 = vpop.xlane.xlu1 %4929 }
0x2134   :  { %v4935_v13 = vmul.f32 0.03125, %v4930_v46 }
0x2136   :  { %v4940_v16 = vadd.f32 1e-06, %v4935_v13 }
0x2137   :  { %v3801_v21 = vpop.xlane.xlu1 %3800 }
0x2138   :  { %12033 = vrsqrt.f32 %v4940_v16  ;;  %v3808_v37 = vmul.f32 0.03125, %v3801_v21 }
0x213a   :  { %v3813_v19 = vsub.f32 %v3788_v49, %v3808_v37  ;;  %v5151_v49 = vmul.f32 0.35355338, %v5039_v26 }
0x213b   :  { %v3828_v2 = vpop.xlane.xlu1 %3827 }
0x213c   :  { %v3818_v32 = vmul.f32 %v3813_v19, %v3813_v19  ;;  %v3837_v63 = vmul.f32 0.03125, %v3828_v2 }
0x213e   :  { %v3829_v23 = vsel %vm1085_vm3, %v3818_v32, 0.0  ;;  %v3842_v35 = vadd.f32 1e-06, %v3837_v63 }
0x213f   :  { %3830 = vadd.xlane.f32.xlu0 %v3829_v23  ;;  %v3834_v62 = vpop.xlane.xlu1 %3833 }
0x2140   :  { %12035 = vrsqrt.f32 %v3842_v35 }
0x2145   :  { %v12034_v1 = vpop.eup %12033 }
0x2146   :  { %v4950_v55 = vmul.f32 %v12034_v1, %v4910_v28  ;;  %v5160_v28 = vpack.c.bf16 %v5151_v49, %v5151_v49 }
0x2148   :  { %v4959_v22 = vmul.f32 %v14109_v61, %v4950_v55 }
0x214a   :  { %v14262_v56 = vadd.f32 %v14113_v15, %v4959_v22 }
0x214c   :  { %v4975_v44 = vpack.c.bf16 %v14262_v56, %v14262_v56 }
0x214e   :  { %11161 = vmatmul.mubr.msk.bf16.gmra.mxu0 %vm1085_vm3, %v4975_v44 }
0x214f   :  { %11184 = vmatprep.mubr.msk.bf16.mxu0 %vm12554_vm0, %v12552_v41 }
0x2156   :  { %11185 = vmatmul.mubr.msk.bf16.vlgmr.msra.gmra.mxu0 %vm1085_vm3, %v5160_v28 }
0x2157   :  { %11189 = vmatpush3.bf16.msra.mxu0 %v13923_v33  ;;  %11192 = vmatprep.mubr.msk.bf16.mxu0 %vm12554_vm0, %v12552_v41  ;;  %v3839_v33 = vmul.f32 0.03125, %v3834_v62 }
0x2158   :  { %11190 = vmatprep.subr.bf16.mxu0 %v12552_v41 }
0x2159   :  { %v3844_v17 = vadd.f32 1e-06, %v3839_v33 }
0x215b   :  { %11191 = vmatpush3.bf16.msra.mxu0 %v13930_v4  ;;  %12037 = vrsqrt.f32 %v3844_v17  ;;  %v12036_v4 = vpop.eup %12035 }
0x215c   :  { %11196 = vmatprep.subr.bf16.mxu0 %v12552_v41  ;;  %v3852_v6 = vmul.f32 %v12036_v4, %v14231_v8 }
0x215e   :  { %v3861_v13 = vmul.f32 %v14139_v25, %v3852_v6 }
0x2160   :  { %v3870_v37 = vadd.f32 %v14144_v31, %v3861_v13 }
0x2168   :  { %v12038_v40 = vpop.eup %12037 }
0x2169   :  { %v3854_v21 = vmul.f32 %v12038_v40, %v14236_v59 }
0x216b   :  { %v3863_v1 = vmul.f32 %v14139_v25, %v3854_v21 }
0x216d   :  { %v3872_v8 = vadd.f32 %v14144_v31, %v3863_v1 }
0x216f   :  { %v14298_v59 = vpack.c.bf16 %v3872_v8, %v3872_v8 }
0x2181   :  { %v14278_v61 = vpop.f32.mrf.mxu0 }
0x2183   :  { %v11158_v15 = vpop.f32.mrf.mxu0 }
0x2185   :  { %v14280_v53 = vpop.f32.mrf.mxu0 }
0x2187   :  { %v11159_v30 = vpop.f32.mrf.mxu0 }
0x21c8   :  { %v3831_v54 = vpop.xlane.xlu0 %3830 }
0x21c9   :  { %v3838_v47 = vmul.f32 0.03125, %v3831_v54 }
0x21cb   :  { %v3843_v34 = vadd.f32 1e-06, %v3838_v47 }
0x21cd   :  { %12039 = vrsqrt.f32 %v3843_v34 }
0x21da   :  { %v12040_v3 = vpop.eup %12039 }
0x21db   :  { %v3853_v46 = vmul.f32 %v12040_v3, %v3813_v19  ;;  %v5042_v19 = vadd.f32 %v14259_v5, %v14160_v39 }
0x21dd   :  { %v3862_v16 = vmul.f32 %v14139_v25, %v3853_v46  ;;  %v5152_v25 = vmul.f32 0.35355338, %v5042_v19 }
0x21df   :  { %v3871_v32 = vadd.f32 %v14144_v31, %v3862_v16  ;;  %v5320_v55 = vpack.c.bf16 %v5152_v25, %v5152_v25 }
0x21e1   :  { %v14288_v23 = vpack.c.bf16 %v3871_v32, %v3870_v37 }
0x21e3   :  { %11173 = vmatmul.mubr.msk.bf16.gmra.mxu1 %vm1085_vm3, %v14288_v23 }
0x21e4   :  { %11176 = vmatprep.mubr.msk.bf16.mxu1 %vm12554_vm0, %v12552_v41 }
0x21eb   :  { %11177 = vmatmul.mubr.msk.bf16.gmra.mxu1 %vm1085_vm3, %v14298_v59 }
0x21ec   :  { %11208 = vmatprep.mubr.msk.bf16.mxu1 %vm12554_vm0, %v12552_v41 }
0x21f3   :  { %11209 = vmatmul.mubr.msk.bf16.vlgmr.msra.gmra.mxu1 %vm1085_vm3, %v5320_v55 }
0x21f4   :  { %11224 = vmatprep.mubr.msk.bf16.mxu1 %vm12554_vm0, %v12552_v41 }
0x220e   :  { %v14307_v22 = vpop.f32.mrf.mxu0 }
0x2210   :  { %v11162_v31 = vpop.f32.mrf.mxu0 }
0x2212   :  { %v5057_v26 = vpop.f32.mrf.mxu0 }
0x2214   :  { %v11163_v39 = vpop.f32.mrf.mxu0 }
0x2216   :  { %v5206_v44 = vpop.f32.mrf.mxu0 }
0x2217   :  { %v5212_v49 = vsel %vm1085_vm3, %v5206_v44, -inf }
0x2218   :  { %5213 = vmax.xlane.f32.xlu0 %v5212_v49  ;;  %v11186_v28 = vpop.f32.mrf.mxu0 }
0x221a   :  { %v5209_v15 = vpop.f32.mrf.mxu0 }
0x221c   :  { %v11187_v30 = vpop.f32.mrf.mxu0 }
0x221d   :  { %v14333_v30 = vld [vmem:[%s12721_s8 + $0x8] sm:$0xff]  }
0x222e   :  { %5269 = vrot.lane.b32.xlu0 %v14194_v7, %s12556_s18 }
0x2232   :  { %5429 = vrot.lane.b32.xlu0 %v14209_v38, %s12556_s18 }
0x2236   :  { %5427 = vrot.lane.b32.xlu0 %v14221_v20, %s12556_s18 }
0x22a1   :  { %v5214_v2 = vpop.xlane.xlu0 %5213 }
0x22a2   :  { %v5215_v63 = vsub.f32 %v5206_v44, %v5214_v2 }
0x22a3   :  { %v5137_v62 = vpop.f32.mrf.mxu1 }
0x22a4   :  { %v5216_v35 = vmul.f32 1.442695, %v5215_v63  ;;  %v5138_v44 = vadd.f32 %v14176_v11, %v5137_v62  ;;  %v14344_v62 = vld [vmem:[%s12721_s8] sm:$0xff]  }
0x22a5   :  { %v5270_v33 = vpop.permute.xlu0 %5269  ;;  %v11174_v17 = vpop.f32.mrf.mxu1 }
0x22a6   :  { %12041 = vpow2.f32 %v5216_v35  ;;  %v5478_v28 = vmul.f32 %v14184_v24, %v5138_v44  ;;  %v5479_v15 = vmul.f32 %v14188_v29, %v5138_v44  ;;  %v5476_v17 = vmul.f32 %v14197_v14, %v5138_v44 }
0x22a7   :  { %v5140_v54 = vpop.f32.mrf.mxu1 }
0x22a8   :  { %v14341_v63 = vpack.c.bf16 %v5479_v15, %v5478_v28 }
0x22a9   :  { %v5430_v47 = vpop.permute.xlu0 %5429  ;;  %v11175_v34 = vpop.f32.mrf.mxu1 }
0x22aa   :  { %11221 = vmatpush3.bf16.msra.mxu1 %v5430_v47  ;;  %v5477_v47 = vmul.f32 %v14205_v36, %v5138_v44  ;;  %v5141_v34 = vadd.f32 %v14176_v11, %v5140_v54 }
0x22ab   :  { %v14316_v4 = vpop.f32.mrf.mxu1  ;;  %11222 = vmatprep.subr.bf16.mxu1 %v12552_v41 }
0x22ad   :  { %v5428_v7 = vpop.permute.xlu0 %5427  ;;  %v11178_v38 = vpop.f32.mrf.mxu1 }
0x22ae   :  { %11223 = vmatpush3.bf16.msra.mxu1 %v5428_v7  ;;  %v14359_v7 = vpack.c.bf16 %v5477_v47, %v5476_v17  ;;  %v5047_v38 = vadd.f32 %v14259_v5, %v14278_v61  ;;  %v5636_v61 = vmul.f32 %v14197_v14, %v5141_v34 }
0x22af   :  { %v5148_v6 = vpop.f32.mrf.mxu1  ;;  %11236 = vmatprep.subr.bf16.mxu1 %v12552_v41 }
0x22b0   :  { %v5487_v6 = vsel %vm1085_vm3, %v14359_v7, 0 }
0x22b1   :  { %v11179_v20 = vpop.f32.mrf.mxu1 }
0x22b2   :  { %v5638_v20 = vmul.f32 %v14184_v24, %v5141_v34 }
0x22b3   :  { %v12042_v40 = vpop.eup %12041  ;;  %v5366_v3 = vpop.f32.mrf.mxu1 }
0x22b4   :  { %v5218_v46 = vpack.c.bf16 %v12042_v40, %v12042_v40  ;;  %v5372_v13 = vsel %vm1085_vm3, %v5366_v3, -inf }
0x22b5   :  { %5373 = vmax.xlane.f32.xlu1 %v5372_v13  ;;  %v11210_v16 = vpop.f32.mrf.mxu1 }
0x22b6   :  { %11193 = vmatmul.mubr.msk.bf16.vlgmr.msra.gmra.mxu0 %vm1085_vm3, %v5218_v46  ;;  %v5637_v16 = vmul.f32 %v14205_v36, %v5141_v34 }
0x22b7   :  { %11197 = vmatpush3.bf16.msra.mxu0 %v5270_v33  ;;  %v5369_v21 = vpop.f32.mrf.mxu1  ;;  %11200 = vmatprep.mubr.msk.bf16.mxu0 %vm12554_vm0, %v12552_v41  ;;  %v5490_v33 = vsel %vm1085_vm3, %v14341_v63, 0 }
0x22b8   :  { %11198 = vmatprep.subr.bf16.mxu0 %v12552_v41  ;;  %v5146_v21 = vadd.f32 %v14176_v11, %v14316_v4 }
0x22b9   :  { %v11211_v37 = vpop.f32.mrf.mxu1 }
0x22ba   :  { %v14380_v37 = vpack.c.bf16 %v5637_v16, %v5636_v61  ;;  %v5797_v4 = vmul.f32 %v14205_v36, %v5146_v21 }
0x22c6   :  { %5267 = vrot.lane.b32.xlu1 %v14214_v18, %s12556_s18 }
0x233e   :  { %v5374_v32 = vpop.xlane.xlu1 %5373 }
0x233f   :  { %v5375_v19 = vsub.f32 %v5366_v3, %v5374_v32  ;;  %v5153_v3 = vmul.f32 0.35355338, %v5047_v38  ;;  %v5050_v32 = vadd.f32 %v14259_v5, %v14280_v53  ;;  %v5796_v53 = vmul.f32 %v14197_v14, %v5146_v21 }
0x2341   :  { %v5376_v31 = vmul.f32 1.442695, %v5375_v19  ;;  %v5480_v13 = vpack.c.bf16 %v5153_v3, %v5153_v3  ;;  %v5799_v19 = vmul.f32 %v14188_v29, %v5146_v21 }
0x2342   :  { %v5268_v1 = vpop.permute.xlu1 %5267 }
0x2343   :  { %11199 = vmatpush3.bf16.msra.mxu0 %v5268_v1  ;;  %v5647_v1 = vsel %vm1085_vm3, %v14380_v37, 0 }
0x2344   :  { %11212 = vmatprep.subr.bf16.mxu0 %v12552_v41 }
0x2376   :  { %v5256_v8 = vpop.f32.mrf.mxu0 }
0x2377   :  { %12043 = vrcp.f32 %v5256_v8  ;;  %v5798_v8 = vmul.f32 %v14184_v24, %v5146_v21  ;;  %v14399_v24 = vpack.c.bf16 %v5797_v4, %v5796_v53 }
0x2378   :  { %v11194_v25 = vpop.f32.mrf.mxu0  ;;  %12045 = vpow2.f32 %v5376_v31 }
0x2379   :  { %v5154_v25 = vmul.f32 0.35355338, %v5050_v32 }
0x237a   :  { %v5259_v55 = vpop.f32.mrf.mxu0 }
0x237b   :  { %v14389_v55 = vpack.c.bf16 %v5799_v19, %v5798_v8  ;;  %v5640_v31 = vpack.c.bf16 %v5154_v25, %v5154_v25  ;;  %v11848_v8 = vld [vmem:[%s15635_s14] sm:$0xff]  }
0x237c   :  { %v11195_v26 = vpop.f32.mrf.mxu0 }
0x237d   :  { %v5810_v11 = vsel %vm1085_vm3, %v14389_v55, 0  ;;  %v5807_v26 = vsel %vm1085_vm3, %v14399_v24, 0 }
0x2384   :  { %v12044_v39 = vpop.eup %12043 }
0x2385   :  { %v5263_v49 = vmul.f32 %v12044_v39, %v12042_v40  ;;  %v14339_v2 = vpop.eup %12045  ;;  %v5639_v40 = vmul.f32 %v14188_v29, %v5141_v34  ;;  %v5055_v29 = vadd.f32 %v14259_v5, %v14307_v22 }
0x2386   :  { %v5378_v35 = vpack.c.bf16 %v14339_v2, %v14339_v2 }
0x2387   :  { %v5264_v18 = vpack.c.bf16 %v5263_v49, %v5263_v49  ;;  %v14368_v46 = vpack.c.bf16 %v5639_v40, %v5638_v20  ;;  %v5155_v39 = vmul.f32 0.35355338, %v5055_v29 }
0x2389   :  { %11201 = vmatmul.mubr.msk.bf16.vlgmr.msra.gmra.mxu0 %vm1085_vm3, %v5264_v18  ;;  %v5650_v54 = vsel %vm1085_vm3, %v14368_v46, 0  ;;  %v5800_v14 = vpack.c.bf16 %v5155_v39, %v5155_v39 }
0x238a   :  { %11213 = vmatpush3.bf16.msra.mxu0 %v14333_v30  ;;  %11216 = vmatprep.mubr.msk.bf16.mxu0 %vm12554_vm0, %v12552_v41 }
0x238b   :  { %11214 = vmatprep.subr.bf16.mxu0 %v12552_v41 }
0x238e   :  { %11215 = vmatpush3.bf16.msra.mxu0 %v14344_v62 }
0x238f   :  { %11228 = vmatprep.subr.bf16.mxu0 %v12552_v41 }
0x2391   :  { %11217 = vmatmul.mubr.msk.bf16.vlgmr.msra.gmra.mxu0 %vm1085_vm3, %v5378_v35 }
0x2392   :  { %11229 = vmatpush3.bf16.xpose.msra.mxu0 %v5490_v33  ;;  %11232 = vmatprep.mubr.msk.bf16.mxu0 %vm12554_vm0, %v12552_v41 }
0x2393   :  { %11230 = vmatprep.subr.bf16.mxu0 %v12552_v41 }
0x239a   :  { %11231 = vmatpush3.bf16.xpose.msra.mxu0 %v5487_v6 }
0x239b   :  { %11252 = vmatprep.subr.bf16.mxu0 %v12552_v41 }
0x23a1   :  { %11233 = vmatmul.mubr.msk.bf16.vlgmr.msra.gmra.mxu0 %vm1085_vm3, %v5480_v13 }
0x23a2   :  { %11253 = vmatpush3.bf16.xpose.msra.mxu0 %v5650_v54  ;;  %11256 = vmatprep.mubr.msk.bf16.mxu0 %vm12554_vm0, %v12552_v41 }
0x23a3   :  { %11254 = vmatprep.subr.bf16.mxu0 %v12552_v41 }
0x23aa   :  { %11255 = vmatpush3.bf16.xpose.msra.mxu0 %v5647_v1  ;;  %v11847_v1 = vld [vmem:[%s15635_s14 + $0x8] sm:$0xff]  }
0x23ab   :  { %11276 = vmatprep.subr.bf16.mxu0 %v12552_v41 }
0x23b1   :  { %11257 = vmatmul.mubr.msk.bf16.vlgmr.msra.gmra.mxu0 %vm1085_vm3, %v5640_v31 }
0x23b2   :  { %11277 = vmatpush3.bf16.xpose.msra.mxu0 %v5810_v11  ;;  %11280 = vmatprep.mubr.msk.bf16.mxu0 %vm12554_vm0, %v12552_v41 }
0x23b3   :  { %11278 = vmatprep.subr.bf16.mxu0 %v12552_v41 }
0x23ba   :  { %11279 = vmatpush3.bf16.xpose.msra.mxu0 %v5807_v26 }
0x23bb   :  { %11300 = vmatprep.subr.bf16.mxu0 %v12552_v41 }
0x23c1   :  { %11281 = vmatmul.mubr.msk.bf16.vlgmr.msra.gmra.mxu0 %vm1085_vm3, %v5800_v14 }
0x23c2   :  { %11304 = vmatprep.mubr.msk.bf16.mxu0 %vm12554_vm0, %v12552_v41  ;;  %11301 = vmatpush3.bf16.msra.mxu0 %v11847_v1 }
0x23c3   :  { %11302 = vmatprep.subr.bf16.mxu0 %v12552_v41 }
0x23c6   :  { %11303 = vmatpush3.bf16.msra.mxu0 %v11848_v8 }
0x23c7   :  { %11332 = vmatprep.subr.bf16.mxu0 %v12552_v41 }
0x2449   :  { %v14409_v36 = vpop.f32.mrf.mxu0 }
0x244b   :  { %v11202_v44 = vpop.f32.mrf.mxu0 }
0x244d   :  { %v5313_v49 = vpop.f32.mrf.mxu0 }
0x244f   :  { %v11203_v18 = vpop.f32.mrf.mxu0 }
0x2451   :  { %v5416_v28 = vpop.f32.mrf.mxu0 }
0x2452   :  { %12047 = vrcp.f32 %v5416_v28 }
0x2453   :  { %v11218_v5 = vpop.f32.mrf.mxu0 }
0x2455   :  { %v5419_v22 = vpop.f32.mrf.mxu0 }
0x2457   :  { %v11219_v15 = vpop.f32.mrf.mxu0 }
0x245f   :  { %v12048_v35 = vpop.eup %12047 }
0x2460   :  { %v5423_v33 = vmul.f32 %v12048_v35, %v14339_v2 }
0x2461   :  { %v5526_v17 = vpop.f32.mrf.mxu0 }
0x2462   :  { %v5424_v47 = vpack.c.bf16 %v5423_v33, %v5423_v33  ;;  %v5532_v34 = vsel %vm1085_vm3, %v5526_v17, -inf }
0x2463   :  { %5533 = vmax.xlane.f32.xlu1 %v5532_v34  ;;  %v11234_v38 = vpop.f32.mrf.mxu0 }
0x2464   :  { %11225 = vmatmul.mubr.msk.bf16.vlgmr.msra.gmra.mxu1 %vm1085_vm3, %v5424_v47  ;;  %v14458_v38 = vld [vmem:[#allocation17] ss:$0 sm:$0xff] }
0x2465   :  { %v5529_v6 = vpop.f32.mrf.mxu0  ;;  %11237 = vmatpush3.bf16.msra.mxu1 %v14333_v30  ;;  %11240 = vmatprep.mubr.msk.bf16.mxu1 %vm12554_vm0, %v12552_v41 }
0x2466   :  { %11238 = vmatprep.subr.bf16.mxu1 %v12552_v41 }
0x2467   :  { %v11235_v20 = vpop.f32.mrf.mxu0 }
0x2469   :  { %11239 = vmatpush3.bf16.msra.mxu1 %v14344_v62 }
0x246a   :  { %11244 = vmatprep.subr.bf16.mxu1 %v12552_v41 }
0x2471   :  { %v5686_v2 = vpop.f32.mrf.mxu0 }
0x2472   :  { %v5692_v40 = vsel %vm1085_vm3, %v5686_v2, -inf }
0x2473   :  { %5693 = vmax.xlane.f32.xlu0 %v5692_v40  ;;  %v11258_v3 = vpop.f32.mrf.mxu0 }
0x2474   :  { %5589 = vrot.lane.b32.xlu1 %v14341_v63, %s12556_s18 }
0x2475   :  { %v5689_v13 = vpop.f32.mrf.mxu0 }
0x2477   :  { %v11259_v54 = vpop.f32.mrf.mxu0 }
0x2481   :  { %v14423_v61 = vpop.f32.mrf.mxu0 }
0x2482   :  { %v5852_v63 = vsel %vm1085_vm3, %v14423_v61, -inf }
0x2483   :  { %v11282_v16 = vpop.f32.mrf.mxu0 }
0x2485   :  { %v5849_v21 = vpop.f32.mrf.mxu0 }
0x2487   :  { %v11283_v32 = vpop.f32.mrf.mxu0 }
0x2489   :  { %5587 = vrot.lane.b32.xlu0 %v14359_v7, %s12556_s18 }
0x248d   :  { %5749 = vrot.lane.b32.xlu0 %v14368_v46, %s12556_s18 }
0x2491   :  { %5747 = vrot.lane.b32.xlu0 %v14380_v37, %s12556_s18 }
0x2498   :  { %5853 = vmax.xlane.f32.xlu1 %v5852_v63 }
0x24ec   :  { %v5534_v19 = vpop.xlane.xlu1 %5533 }
0x24ed   :  { %v5535_v7 = vsub.f32 %v5526_v17, %v5534_v19 }
0x24ef   :  { %v5536_v25 = vmul.f32 1.442695, %v5535_v7 }
0x24f0   :  { %v5590_v53 = vpop.permute.xlu1 %5589 }
0x24f1   :  { %12049 = vpow2.f32 %v5536_v25 }
0x24fc   :  { %v5694_v11 = vpop.xlane.xlu0 %5693 }
0x24fd   :  { %v5695_v49 = vsub.f32 %v5686_v2, %v5694_v11 }
0x24fe   :  { %v12050_v46 = vpop.eup %12049 }
0x24ff   :  { %v5538_v31 = vpack.c.bf16 %v12050_v46, %v12050_v46  ;;  %v5696_v5 = vmul.f32 1.442695, %v5695_v49 }
0x2500   :  { %v5588_v37 = vpop.permute.xlu0 %5587 }
0x2501   :  { %11241 = vmatmul.mubr.msk.bf16.vlgmr.msra.gmra.mxu1 %vm1085_vm3, %v5538_v31 }
0x2502   :  { %11245 = vmatpush3.bf16.msra.mxu1 %v5590_v53  ;;  %11248 = vmatprep.mubr.msk.bf16.mxu1 %vm12554_vm0, %v12552_v41 }
0x2503   :  { %11246 = vmatprep.subr.bf16.mxu1 %v12552_v41 }
0x2504   :  { %v5750_v47 = vpop.permute.xlu0 %5749 }
0x2506   :  { %11247 = vmatpush3.bf16.msra.mxu1 %v5588_v37 }
0x2507   :  { %11260 = vmatprep.subr.bf16.mxu1 %v12552_v41 }
0x2508   :  { %v5748_v34 = vpop.permute.xlu0 %5747 }
0x2521   :  { %v5854_v1 = vpop.xlane.xlu1 %5853 }
0x2524   :  { %v5470_v4 = vpop.f32.mrf.mxu1 }
0x2525   :  { %v5960_v29 = vpack.c.bf16 %v5470_v4, %v14409_v36 }
0x2526   :  { %v11226_v26 = vpop.f32.mrf.mxu1 }
0x2527   :  { %11305 = vmatmul.mubr.msk.bf16.vlgmr.msra.gmra.mxu0 %vm1085_vm3, %v5960_v29  ;;  %v5855_v26 = vsub.f32 %v14423_v61, %v5854_v1 }
0x2528   :  { %v5473_v39 = vpop.f32.mrf.mxu1  ;;  %11308 = vmatprep.mubr.msk.bf16.mxu0 %vm12554_vm0, %v12552_v41 }
0x252a   :  { %v11227_v14 = vpop.f32.mrf.mxu1 }
0x25c1   :  { %v5576_v44 = vpop.f32.mrf.mxu1 }
0x25c2   :  { %12051 = vrcp.f32 %v5576_v44  ;;  %v5856_v44 = vmul.f32 1.442695, %v5855_v26  ;;  %v11851_v26 = vld [vmem:[%s15637_s7 + $0x18] sm:$0xff]  }
0x25c3   :  { %v11242_v18 = vpop.f32.mrf.mxu1  ;;  %12053 = vpow2.f32 %v5696_v5  ;;  %11333 = vmatpush3.bf16.msra.mxu0 %v11851_v26 }
0x25c4   :  { %11334 = vmatprep.subr.bf16.mxu0 %v12552_v41 }
0x25c5   :  { %v5579_v28 = vpop.f32.mrf.mxu1 }
0x25c7   :  { %v11243_v22 = vpop.f32.mrf.mxu1 }
0x25cf   :  { %v12052_v15 = vpop.eup %12051 }
0x25d0   :  { %v5583_v35 = vmul.f32 %v12052_v15, %v12050_v46  ;;  %v12054_v36 = vpop.eup %12053 }
0x25d1   :  { %v5698_v17 = vpack.c.bf16 %v12054_v36, %v12054_v36 }
0x25d2   :  { %v5584_v33 = vpack.c.bf16 %v5583_v35, %v5583_v35 }
0x25d4   :  { %11249 = vmatmul.mubr.msk.bf16.vlgmr.msra.gmra.mxu1 %vm1085_vm3, %v5584_v33 }
0x25d5   :  { %11261 = vmatpush3.bf16.msra.mxu1 %v14333_v30  ;;  %11264 = vmatprep.mubr.msk.bf16.mxu1 %vm12554_vm0, %v12552_v41 }
0x25d6   :  { %11262 = vmatprep.subr.bf16.mxu1 %v12552_v41 }
0x25d9   :  { %11263 = vmatpush3.bf16.msra.mxu1 %v14344_v62 }
0x25da   :  { %11268 = vmatprep.subr.bf16.mxu1 %v12552_v41 }
0x25dc   :  { %11265 = vmatmul.mubr.msk.bf16.vlgmr.msra.gmra.mxu1 %vm1085_vm3, %v5698_v17 }
0x25dd   :  { %11269 = vmatpush3.bf16.msra.mxu1 %v5750_v47  ;;  %11272 = vmatprep.mubr.msk.bf16.mxu1 %vm12554_vm0, %v12552_v41 }
0x25de   :  { %11270 = vmatprep.subr.bf16.mxu1 %v12552_v41 }
0x25e1   :  { %11271 = vmatpush3.bf16.msra.mxu1 %v5748_v34 }
0x25e2   :  { %11284 = vmatprep.subr.bf16.mxu1 %v12552_v41 }
0x25e7   :  { %v6025_v6 = vpop.f32.mrf.mxu0 }
0x25e8   :  { %v6026_v20 = vadd.f32 %v14458_v38, %v6025_v6 }
0x25e9   :  { %v11306_v2 = vpop.f32.mrf.mxu0 }
0x25ea   :  { %v6047_v40 = vadd.f32 %v6026_v20, %v14117_v9 }
0x25eb   :  { %v6028_v3 = vpop.f32.mrf.mxu0 }
0x25ec   :  { %v6029_v13 = vadd.f32 %v14458_v38, %v6028_v3  ;;  %v6052_v54 = vsel %vm1085_vm3, %v6047_v40, 0.0 }
0x25ed   :  { %6053 = vadd.xlane.f32.xlu0 %v6052_v54  ;;  %v11307_v16 = vpop.f32.mrf.mxu0 }
0x25ee   :  { %v6048_v21 = vadd.f32 %v6029_v13, %v14120_v10 }
0x25f0   :  { %v6055_v32 = vsel %vm1085_vm3, %v6048_v21, 0.0 }
0x25f1   :  { %6056 = vadd.xlane.f32.xlu1 %v6055_v32 }
0x2603   :  { %5907 = vrot.lane.b32.xlu0 %v14399_v24, %s12556_s18 }
0x2676   :  { %v6054_v63 = vpop.xlane.xlu0 %6053 }
0x2677   :  { %v6067_v8 = vmul.f32 0.03125, %v6054_v63 }
0x2679   :  { %v14468_v19 = vsub.f32 %v6047_v40, %v6067_v8 }
0x267a   :  { %v6057_v9 = vpop.xlane.xlu1 %6056  ;;  %v5908_v33 = vpop.permute.xlu0 %5907 }
0x267b   :  { %v6068_v7 = vmul.f32 0.03125, %v6057_v9  ;;  %v6077_v25 = vmul.f32 %v14468_v19, %v14468_v19  ;;  %v14493_v9 = vld [vmem:[%s15633_s2] sm:$0x3f] }
0x267d   :  { %v6073_v46 = vsub.f32 %v6048_v21, %v6068_v7  ;;  %v6082_v31 = vsel %vm1085_vm3, %v6077_v25, 0.0  ;;  %v14497_v7 = vrot.slane %v14493_v9, %v13416_v27 }
0x267e   :  { %6083 = vadd.xlane.f32.xlu1 %v6082_v31 }
0x267f   :  { %v6078_v10 = vmul.f32 %v6073_v46, %v6073_v46 }
0x2681   :  { %v6085_v11 = vsel %vm1085_vm3, %v6078_v10, 0.0  ;;  %v11849_v10 = vld [vmem:[%s15636_s21 + $0x8] sm:$0xff]  }
0x2682   :  { %6086 = vadd.xlane.f32.xlu1 %v6085_v11 }
0x2693   :  { %5909 = vrot.lane.b32.xlu1 %v14389_v55, %s12556_s18 }
0x2694   :  { %v5630_v24 = vpop.f32.mrf.mxu1 }
0x2696   :  { %v11250_v53 = vpop.f32.mrf.mxu1 }
0x2698   :  { %v5633_v37 = vpop.f32.mrf.mxu1 }
0x2699   :  { %v11850_v37 = vld [vmem:[%s15636_s21] sm:$0xff]  }
0x269a   :  { %v11251_v4 = vpop.f32.mrf.mxu1 }
0x269c   :  { %v5736_v29 = vpop.f32.mrf.mxu1 }
0x269d   :  { %12055 = vrcp.f32 %v5736_v29 }
0x269e   :  { %v11266_v39 = vpop.f32.mrf.mxu1  ;;  %12057 = vpow2.f32 %v5856_v44  ;;  %v11854_v44 = vld [vmem:[%s15637_s7] sm:$0xff]  }
0x269f   :  { %v11852_v39 = vld [vmem:[%s15637_s7 + $0x10] sm:$0xff]  }
0x26a0   :  { %v5739_v14 = vpop.f32.mrf.mxu1  ;;  %11335 = vmatpush3.bf16.msra.mxu0 %v11852_v39 }
0x26a1   :  { %11336 = vmatprep.subr.bf16.mxu0 %v12552_v41  ;;  %v11853_v14 = vld [vmem:[%s15637_s7 + $0x8] sm:$0xff]  }
0x26a2   :  { %v11267_v49 = vpop.f32.mrf.mxu1 }
0x26a4   :  { %11337 = vmatpush3.bf16.msra.mxu0 %v11853_v14 }
0x26a5   :  { %11338 = vmatprep.subr.bf16.mxu0 %v12552_v41 }
0x26a8   :  { %11339 = vmatpush3.bf16.msra.mxu0 %v11854_v44 }
0x26a9   :  { %11368 = vmatprep.subr.bf16.mxu0 %v12552_v41 }
0x26aa   :  { %v12056_v18 = vpop.eup %12055 }
0x26ab   :  { %v5743_v28 = vmul.f32 %v12056_v18, %v12054_v36  ;;  %v12058_v55 = vpop.eup %12057 }
0x26ac   :  { %v5858_v61 = vpack.c.bf16 %v12058_v55, %v12058_v55 }
0x26ad   :  { %v5744_v5 = vpack.c.bf16 %v5743_v28, %v5743_v28 }
0x26af   :  { %11273 = vmatmul.mubr.msk.bf16.vlgmr.msra.gmra.mxu1 %vm1085_vm3, %v5744_v5 }
0x26b0   :  { %11285 = vmatpush3.bf16.msra.mxu1 %v14333_v30  ;;  %11288 = vmatprep.mubr.msk.bf16.mxu1 %vm12554_vm0, %v12552_v41 }
0x26b1   :  { %11286 = vmatprep.subr.bf16.mxu1 %v12552_v41 }
0x26b4   :  { %11287 = vmatpush3.bf16.msra.mxu1 %v14344_v62 }
0x26b5   :  { %11292 = vmatprep.subr.bf16.mxu1 %v12552_v41 }
0x26b7   :  { %11289 = vmatmul.mubr.msk.bf16.vlgmr.msra.gmra.mxu1 %vm1085_vm3, %v5858_v61 }
0x26b8   :  { %11296 = vmatprep.mubr.msk.bf16.mxu1 %vm12554_vm0, %v12552_v41 }
0x2707   :  { %v6084_v22 = vpop.xlane.xlu1 %6083 }
0x2708   :  { %v6097_v17 = vmul.f32 0.03125, %v6084_v22 }
0x270a   :  { %v6102_v2 = vadd.f32 1e-06, %v6097_v17 }
0x270b   :  { %v6087_v15 = vpop.xlane.xlu1 %6086 }
0x270c   :  { %v6098_v36 = vmul.f32 0.03125, %v6087_v15 }
0x270e   :  { %v6103_v34 = vadd.f32 1e-06, %v6098_v36 }
0x270f   :  { %v5910_v35 = vpop.permute.xlu1 %5909 }
0x2710   :  { %11293 = vmatpush3.bf16.msra.mxu1 %v5910_v35  ;;  %12059 = vrsqrt.f32 %v6103_v34 }
0x2711   :  { %11294 = vmatprep.subr.bf16.mxu1 %v12552_v41  ;;  %12061 = vrsqrt.f32 %v6102_v2 }
0x2714   :  { %11295 = vmatpush3.bf16.msra.mxu1 %v5908_v33 }
0x2715   :  { %11316 = vmatprep.subr.bf16.mxu1 %v12552_v41 }
0x271d   :  { %v12060_v32 = vpop.eup %12059 }
0x271e   :  { %v12062_v1 = vpop.eup %12061  ;;  %v6113_v63 = vmul.f32 %v12060_v32, %v6073_v46  ;;  %v14506_v46 = vrot.slane %v14493_v9, %v13419_v57 }
0x271f   :  { %v6112_v25 = vmul.f32 %v12062_v1, %v14468_v19 }
0x2720   :  { %v6122_v11 = vmul.f32 %v14497_v7, %v6113_v63 }
0x2721   :  { %v6121_v53 = vmul.f32 %v14497_v7, %v6112_v25 }
0x2722   :  { %v14513_v19 = vadd.f32 %v14506_v46, %v6122_v11 }
0x2723   :  { %v14516_v4 = vadd.f32 %v14506_v46, %v6121_v53 }
0x2725   :  { %v6139_v29 = vpack.c.bf16 %v14513_v19, %v14516_v4 }
0x276f   :  { %v5790_v47 = vpop.f32.mrf.mxu1 }
0x2770   :  { %v5961_v6 = vpack.c.bf16 %v5790_v47, %v5630_v24 }
0x2771   :  { %v11274_v20 = vpop.f32.mrf.mxu1 }
0x2772   :  { %11309 = vmatmul.mubr.msk.bf16.gmra.mxu0 %vm1085_vm3, %v5961_v6  ;;  %v14541_v6 = vld [vmem:[#allocation19] ss:$0 sm:$0xff] }
0x2773   :  { %v5793_v40 = vpop.f32.mrf.mxu1  ;;  %11312 = vmatprep.mubr.msk.bf16.mxu0 %vm12554_vm0, %v12552_v41 }
0x2775   :  { %v11275_v3 = vpop.f32.mrf.mxu1 }
0x2777   :  { %v5896_v13 = vpop.f32.mrf.mxu1 }
0x2778   :  { %12063 = vrcp.f32 %v5896_v13 }
0x2779   :  { %v11290_v54 = vpop.f32.mrf.mxu1 }
0x277b   :  { %v5899_v16 = vpop.f32.mrf.mxu1 }
0x277d   :  { %v11291_v21 = vpop.f32.mrf.mxu1 }
0x2785   :  { %v12064_v8 = vpop.eup %12063 }
0x2786   :  { %v5903_v31 = vmul.f32 %v12064_v8, %v12058_v55 }
0x2788   :  { %v5904_v24 = vpack.c.bf16 %v5903_v31, %v5903_v31 }
0x278a   :  { %11297 = vmatmul.mubr.msk.bf16.vlgmr.msra.gmra.mxu1 %vm1085_vm3, %v5904_v24 }
0x278b   :  { %11317 = vmatpush3.bf16.msra.mxu1 %v11849_v10  ;;  %11320 = vmatprep.mubr.msk.bf16.mxu1 %vm12554_vm0, %v12552_v41 }
0x278c   :  { %11318 = vmatprep.subr.bf16.mxu1 %v12552_v41 }
0x278f   :  { %11319 = vmatpush3.bf16.msra.mxu1 %v11850_v37  ;;  %v14551_v37 = vld [vmem:[#allocation20] ss:$0 sm:$0xff] }
0x2790   :  { %11352 = vmatprep.subr.bf16.mxu1 %v12552_v41 }
0x2792   :  { %11321 = vmatmul.mubr.msk.bf16.vlgmr.msra.gmra.mxu1 %vm1085_vm3, %v6139_v29 }
0x2793   :  { %11324 = vmatprep.mubr.msk.bf16.mxu1 %vm12554_vm0, %v12552_v41 }
0x2832   :  { %v6033_v49 = vpop.f32.mrf.mxu0 }
0x2833   :  { %v6034_v18 = vadd.f32 %v14458_v38, %v6033_v49 }
0x2834   :  { %v11310_v28 = vpop.f32.mrf.mxu0 }
0x2835   :  { %v6049_v5 = vadd.f32 %v6034_v18, %v14247_v58 }
0x2836   :  { %v6036_v55 = vpop.f32.mrf.mxu0 }
0x2837   :  { %v6037_v61 = vadd.f32 %v14458_v38, %v6036_v55  ;;  %v6058_v22 = vsel %vm1085_vm3, %v6049_v5, 0.0 }
0x2838   :  { %6059 = vadd.xlane.f32.xlu1 %v6058_v22  ;;  %v11311_v15 = vpop.f32.mrf.mxu0 }
0x2839   :  { %v6050_v35 = vadd.f32 %v6037_v61, %v14250_v12 }
0x283b   :  { %v6061_v33 = vsel %vm1085_vm3, %v6050_v35, 0.0 }
0x283c   :  { %6062 = vadd.xlane.f32.xlu0 %v6061_v33 }
0x284a   :  { %v5950_v36 = vpop.f32.mrf.mxu1 }
0x284b   :  { %v5962_v17 = vpack.c.bf16 %v5950_v36, %v5950_v36 }
0x284c   :  { %v11298_v47 = vpop.f32.mrf.mxu1 }
0x284d   :  { %11313 = vmatmul.mubr.msk.bf16.gmra.mxu0 %vm1085_vm3, %v5962_v17 }
0x284e   :  { %v5953_v34 = vpop.f32.mrf.mxu1  ;;  %11340 = vmatprep.mubr.msk.bf16.mxu0 %vm12554_vm0, %v12552_v41 }
0x2850   :  { %v11299_v58 = vpop.f32.mrf.mxu1 }
0x2852   :  { %v6204_v20 = vpop.f32.mrf.mxu1 }
0x2853   :  { %v6205_v40 = vadd.f32 %v14541_v6, %v6204_v20 }
0x2854   :  { %v11322_v2 = vpop.f32.mrf.mxu1 }
0x2855   :  { %v6226_v54 = vmax.f32 %v6205_v40, 0.0 }
0x2856   :  { %v6207_v12 = vpop.f32.mrf.mxu1 }
0x2857   :  { %v6208_v3 = vadd.f32 %v14541_v6, %v6207_v12 }
0x2858   :  { %v11323_v13 = vpop.f32.mrf.mxu1 }
0x2859   :  { %v6227_v16 = vmax.f32 %v6208_v3, 0.0 }
0x285b   :  { %v6239_v21 = vpack.c.bf16 %v6227_v16, %v6226_v54 }
0x285d   :  { %11341 = vmatmul.mubr.msk.bf16.vlgmr.msra.gmra.mxu0 %vm2323_vm10, %v6239_v21 }
0x285e   :  { %11344 = vmatprep.mubr.msk.bf16.mxu0 %vm12554_vm0, %v12552_v41 }
0x28c1   :  { %v6060_v11 = vpop.xlane.xlu1 %6059 }
0x28c2   :  { %v6069_v24 = vmul.f32 0.03125, %v6060_v11 }
0x28c4   :  { %v6074_v26 = vsub.f32 %v6049_v5, %v6069_v24 }
0x28c5   :  { %v6063_v53 = vpop.xlane.xlu0 %6062 }
0x28c6   :  { %v6070_v39 = vmul.f32 0.03125, %v6063_v53  ;;  %v6079_v55 = vmul.f32 %v6074_v26, %v6074_v26 }
0x28c8   :  { %v6088_v15 = vsel %vm1085_vm3, %v6079_v55, 0.0 }
0x290d   :  { %v6041_v32 = vpop.f32.mrf.mxu0 }
0x290e   :  { %v6042_v1 = vadd.f32 %v14458_v38, %v6041_v32 }
0x290f   :  { %v11314_v63 = vpop.f32.mrf.mxu0 }
0x2910   :  { %v6051_v8 = vadd.f32 %v6042_v1, %v14262_v56  ;;  %v6075_v56 = vsub.f32 %v6050_v35, %v6070_v39 }
0x2911   :  { %v6044_v25 = vpop.f32.mrf.mxu0 }
0x2912   :  { %v6064_v31 = vsel %vm1085_vm3, %v6051_v8, 0.0  ;;  %v6080_v33 = vmul.f32 %v6075_v56, %v6075_v56 }
0x2913   :  { %6065 = vadd.xlane.f32.xlu1 %v6064_v31  ;;  %v11315_v10 = vpop.f32.mrf.mxu0 }
0x291d   :  { %v6316_v29 = vpop.f32.mrf.mxu0 }
0x291e   :  { %v6317_v14 = vadd.f32 %v14551_v37, %v6316_v29 }
0x291f   :  { %v11342_v44 = vpop.f32.mrf.mxu0 }
0x2920   :  { %v6338_v38 = vadd.f32 %v6317_v14, %v14516_v4  ;;  %v6091_v4 = vsel %vm1085_vm3, %v6080_v33, 0.0 }
0x2921   :  { %v6319_v49 = vpop.f32.mrf.mxu0 }
0x2922   :  { %v6320_v18 = vadd.f32 %v14551_v37, %v6319_v49  ;;  %v6343_v28 = vsel %vm1085_vm3, %v6338_v38, 0.0 }
0x2923   :  { %6344 = vadd.xlane.f32.xlu0 %v6343_v28  ;;  %v11343_v61 = vpop.f32.mrf.mxu0 }
0x2924   :  { %v6339_v22 = vadd.f32 %v6320_v18, %v14513_v19 }
0x2926   :  { %v6346_v5 = vsel %vm1085_vm3, %v6339_v22, 0.0 }
0x2927   :  { %6089 = vadd.xlane.f32.xlu0 %v6088_v15  ;;  %6347 = vadd.xlane.f32.xlu1 %v6346_v5 }
0x292b   :  { %6092 = vadd.xlane.f32.xlu1 %v6091_v4 }
0x299c   :  { %v6066_v35 = vpop.xlane.xlu1 %6065 }
0x299d   :  { %v6071_v36 = vmul.f32 0.03125, %v6066_v35 }
0x299f   :  { %v6076_v17 = vsub.f32 %v6051_v8, %v6071_v36 }
0x29a1   :  { %v6081_v47 = vmul.f32 %v6076_v17, %v6076_v17 }
0x29a3   :  { %v6094_v34 = vsel %vm1085_vm3, %v6081_v47, 0.0 }
0x29a4   :  { %6095 = vadd.xlane.f32.xlu0 %v6094_v34 }
0x29ac   :  { %v6345_v58 = vpop.xlane.xlu0 %6344 }
0x29ad   :  { %v6358_v20 = vmul.f32 0.03125, %v6345_v58 }
0x29af   :  { %v6363_v19 = vsub.f32 %v6338_v38, %v6358_v20  ;;  %v11856_v38 = vld [vmem:[%s15630_s19 + $0x10] sm:$0xff]  }
0x29b0   :  { %v6090_v2 = vpop.xlane.xlu0 %6089  ;;  %v6348_v40 = vpop.xlane.xlu1 %6347 }
0x29b1   :  { %v6099_v12 = vmul.f32 0.03125, %v6090_v2  ;;  %v6359_v3 = vmul.f32 0.03125, %v6348_v40  ;;  %v6368_v13 = vmul.f32 %v6363_v19, %v6363_v19 }
0x29b3   :  { %v6104_v54 = vadd.f32 1e-06, %v6099_v12  ;;  %v6364_v16 = vsub.f32 %v6339_v22, %v6359_v3  ;;  %v6373_v21 = vsel %vm1085_vm3, %v6368_v13, 0.0 }
0x29b4   :  { %6374 = vadd.xlane.f32.xlu1 %v6373_v21  ;;  %v6093_v32 = vpop.xlane.xlu1 %6092 }
0x29b5   :  { %12065 = vrsqrt.f32 %v6104_v54  ;;  %v6100_v1 = vmul.f32 0.03125, %v6093_v32  ;;  %v6369_v63 = vmul.f32 %v6364_v16, %v6364_v16 }
0x29b7   :  { %v6105_v8 = vadd.f32 1e-06, %v6100_v1  ;;  %v6376_v25 = vsel %vm1085_vm3, %v6369_v63, 0.0 }
0x29b8   :  { %6377 = vadd.xlane.f32.xlu0 %v6376_v25 }
0x29b9   :  { %12067 = vrsqrt.f32 %v6105_v8 }
0x29c2   :  { %v12066_v31 = vpop.eup %12065 }
0x29c3   :  { %v6114_v10 = vmul.f32 %v12066_v31, %v6074_v26  ;;  %v11855_v26 = vld [vmem:[%s15630_s19 + $0x18] sm:$0xff]  }
0x29c4   :  { %11353 = vmatpush3.bf16.msra.mxu1 %v11855_v26 }
0x29c5   :  { %v6123_v53 = vmul.f32 %v14497_v7, %v6114_v10  ;;  %11354 = vmatprep.subr.bf16.mxu1 %v12552_v41 }
0x29c6   :  { %v12068_v11 = vpop.eup %12067 }
0x29c7   :  { %v6115_v24 = vmul.f32 %v12068_v11, %v6075_v56  ;;  %v14567_v39 = vadd.f32 %v14506_v46, %v6123_v53 }
0x29c8   :  { %11355 = vmatpush3.bf16.msra.mxu1 %v11856_v38 }
0x29c9   :  { %v6124_v29 = vmul.f32 %v14497_v7, %v6115_v24  ;;  %11376 = vmatprep.subr.bf16.mxu1 %v12552_v41 }
0x29cb   :  { %v14570_v14 = vadd.f32 %v14506_v46, %v6124_v29 }
0x29cd   :  { %v6140_v44 = vpack.c.bf16 %v14570_v14, %v14567_v39 }
0x29cf   :  { %11325 = vmatmul.mubr.msk.bf16.gmra.mxu1 %vm1085_vm3, %v6140_v44  ;;  %v14630_v44 = vld [vmem:[#allocation11 + $0x1] ss:$0 sm:$0xff] }
0x29d0   :  { %11328 = vmatprep.mubr.msk.bf16.mxu1 %vm12554_vm0, %v12552_v41 }
0x2a2d   :  { %v6096_v49 = vpop.xlane.xlu0 %6095 }
0x2a2e   :  { %v6101_v56 = vmul.f32 0.03125, %v6096_v49 }
0x2a30   :  { %v6106_v18 = vadd.f32 1e-06, %v6101_v56 }
0x2a32   :  { %12069 = vrsqrt.f32 %v6106_v18 }
0x2a3d   :  { %v6375_v28 = vpop.xlane.xlu1 %6374 }
0x2a3e   :  { %v6388_v55 = vmul.f32 0.03125, %v6375_v28 }
0x2a3f   :  { %v12070_v61 = vpop.eup %12069 }
0x2a40   :  { %v6116_v22 = vmul.f32 %v12070_v61, %v6076_v17  ;;  %v6393_v15 = vadd.f32 1e-06, %v6388_v55  ;;  %v14591_v17 = vsub.s32 4, %v13313_v51 }
0x2a41   :  { %v6378_v5 = vpop.xlane.xlu0 %6377 }
0x2a42   :  { %12071 = vrsqrt.f32 %v6393_v15  ;;  %v6389_v33 = vmul.f32 0.03125, %v6378_v5  ;;  %v6125_v4 = vmul.f32 %v14497_v7, %v6116_v22  ;;  %v14595_v7 = vrot.slane %v14493_v9, %v14591_v17 }
0x2a44   :  { %v6394_v35 = vadd.f32 1e-06, %v6389_v33  ;;  %v14583_v36 = vadd.f32 %v14506_v46, %v6125_v4  ;;  %v14598_v46 = vsub.s32 5, %v13313_v51 }
0x2a46   :  { %12073 = vrsqrt.f32 %v6394_v35  ;;  %v6141_v47 = vpack.c.bf16 %v14583_v36, %v14583_v36  ;;  %v14602_v2 = vrot.slane %v14493_v9, %v14598_v46 }
0x2a48   :  { %11329 = vmatmul.mubr.msk.bf16.gmra.mxu1 %vm1085_vm3, %v6141_v47 }
0x2a49   :  { %11356 = vmatprep.mubr.msk.bf16.mxu1 %vm12554_vm0, %v12552_v41 }
0x2a4f   :  { %v12072_v34 = vpop.eup %12071 }
0x2a50   :  { %v6403_v58 = vmul.f32 %v12072_v34, %v6363_v19 }
0x2a52   :  { %v6412_v40 = vmul.f32 %v14595_v7, %v6403_v58 }
0x2a53   :  { %v12074_v20 = vpop.eup %12073 }
0x2a54   :  { %v6404_v12 = vmul.f32 %v12074_v20, %v6364_v16  ;;  %v14607_v13 = vadd.f32 %v14602_v2, %v6412_v40 }
0x2a56   :  { %v6413_v3 = vmul.f32 %v14595_v7, %v6404_v12 }
0x2a58   :  { %v14610_v54 = vadd.f32 %v14602_v2, %v6413_v3 }
0x2a5a   :  { %v6433_v21 = vpack.c.bf16 %v14610_v54, %v14607_v13 }
0x2a5c   :  { %11357 = vmatmul.mubr.msk.bf16.vlgmr.msra.gmra.mxu1 %vm1085_vm3, %v6433_v21 }
0x2a5d   :  { %11360 = vmatprep.mubr.msk.bf16.mxu1 %vm12554_vm0, %v12552_v41  ;;  %11377 = vmatpush3.bf16.msra.mxu1 %v14333_v30 }
0x2a5e   :  { %11378 = vmatprep.subr.bf16.mxu1 %v12552_v41 }
0x2a61   :  { %11379 = vmatpush3.bf16.msra.mxu1 %v14344_v62 }
0x2a62   :  { %11392 = vmatprep.subr.bf16.mxu1 %v12552_v41 }
0x2a8f   :  { %v6212_v9 = vpop.f32.mrf.mxu1 }
0x2a90   :  { %v6213_v16 = vadd.f32 %v14541_v6, %v6212_v9 }
0x2a91   :  { %v11326_v19 = vpop.f32.mrf.mxu1 }
0x2a92   :  { %v6228_v8 = vmax.f32 %v6213_v16, 0.0 }
0x2a93   :  { %v6215_v32 = vpop.f32.mrf.mxu1 }
0x2a94   :  { %v6216_v1 = vadd.f32 %v14541_v6, %v6215_v32 }
0x2a95   :  { %v11327_v63 = vpop.f32.mrf.mxu1 }
0x2a96   :  { %v6229_v25 = vmax.f32 %v6216_v1, 0.0 }
0x2a98   :  { %v6240_v31 = vpack.c.bf16 %v6229_v25, %v6228_v8 }
0x2a9a   :  { %11345 = vmatmul.mubr.msk.bf16.gmra.mxu0 %vm2323_vm10, %v6240_v31 }
0x2a9b   :  { %11348 = vmatprep.mubr.msk.bf16.mxu0 %vm12554_vm0, %v12552_v41 }
0x2b08   :  { %v6220_v30 = vpop.f32.mrf.mxu1 }
0x2b09   :  { %v6221_v62 = vadd.f32 %v14541_v6, %v6220_v30 }
0x2b0a   :  { %v11330_v10 = vpop.f32.mrf.mxu1 }
0x2b0b   :  { %v6230_v11 = vmax.f32 %v6221_v62, 0.0 }
0x2b0c   :  { %v6223_v24 = vpop.f32.mrf.mxu1 }
0x2b0d   :  { %v6241_v53 = vpack.c.bf16 %v6230_v11, %v6230_v11 }
0x2b0e   :  { %v11331_v29 = vpop.f32.mrf.mxu1 }
0x2b0f   :  { %11349 = vmatmul.mubr.msk.bf16.gmra.mxu0 %vm2323_vm10, %v6241_v53 }
0x2b10   :  { %11372 = vmatprep.mubr.msk.bf16.mxu0 %vm12554_vm0, %v12552_v41 }
0x2b1c   :  { %v6499_v26 = vpop.f32.mrf.mxu1 }
0x2b1d   :  { %v6500_v38 = vadd.f32 %v14630_v44, %v6499_v26 }
0x2b1e   :  { %v11358_v49 = vpop.f32.mrf.mxu1 }
0x2b1f   :  { %v6528_v56 = vmul.f32 %v6500_v38, %v13053_v42  ;;  %v6529_v6 = vmul.f32 %v6500_v38, %v13055_v45  ;;  %v6526_v18 = vmul.f32 %v6500_v38, %v13057_v48  ;;  %v6527_v55 = vmul.f32 %v6500_v38, %v13059_v50 }
0x2b20   :  { %v14636_v28 = vpop.f32.mrf.mxu1  ;;  %v6521_v19 = vmul.f32 0.35355338, %v6500_v38 }
0x2b21   :  { %v14639_v61 = vpack.c.bf16 %v6529_v6, %v6528_v56  ;;  %v14641_v15 = vpack.c.bf16 %v6527_v55, %v6526_v18 }
0x2b22   :  { %v11359_v22 = vpop.f32.mrf.mxu1  ;;  %v6530_v16 = vpack.c.bf16 %v6521_v19, %v6521_v19 }
0x2b23   :  { %6537 = vrot.lane.b32.xlu1 %v14639_v61, %s12556_s18  ;;  %6535 = vrot.lane.b32.xlu0 %v14641_v15, %s12556_s18  ;;  %v14667_v22 = vld [vmem:[%s12716_s13] sm:$0xff]  ;;  %s15638_s13 = sld [smem:[#allocation46_spill]] }
0x2b5a   :  { %v6324_v5 = vpop.f32.mrf.mxu0 }
0x2b5b   :  { %v6325_v33 = vadd.f32 %v14551_v37, %v6324_v5 }
0x2b5c   :  { %v11346_v4 = vpop.f32.mrf.mxu0 }
0x2b5d   :  { %v6340_v35 = vadd.f32 %v6325_v33, %v14567_v39 }
0x2b5e   :  { %v6327_v47 = vpop.f32.mrf.mxu0 }
0x2b5f   :  { %v6328_v34 = vadd.f32 %v14551_v37, %v6327_v47  ;;  %v6349_v58 = vsel %vm1085_vm3, %v6340_v35, 0.0 }
0x2b60   :  { %v11347_v20 = vpop.f32.mrf.mxu0  ;;  %6350 = vadd.xlane.f32.xlu1 %v6349_v58 }
0x2b61   :  { %v6341_v40 = vadd.f32 %v6328_v34, %v14570_v14  ;;  %v6503_v34 = vadd.f32 %v14630_v44, %v14636_v28 }
0x2b63   :  { %v6352_v12 = vsel %vm1085_vm3, %v6341_v40, 0.0  ;;  %v6690_v58 = vmul.f32 %v6503_v34, %v13057_v48  ;;  %v6691_v20 = vmul.f32 %v6503_v34, %v13059_v50 }
0x2b64   :  { %6353 = vadd.xlane.f32.xlu0 %v6352_v12  ;;  %v6693_v12 = vmul.f32 %v6503_v34, %v13055_v45 }
0x2b95   :  { %v6538_v3 = vpop.permute.xlu1 %6537  ;;  %v6536_v9 = vpop.permute.xlu0 %6535 }
0x2b96   :  { %v6546_v21 = vsel %vm1085_vm3, %v6538_v3, 0  ;;  %v6543_v39 = vsel %vm1085_vm3, %v6536_v9, 0  ;;  %v14677_v3 = vpack.c.bf16 %v6691_v20, %v6690_v58 }
0x2b97   :  { %11369 = vmatpush3.bf16.xpose.msra.mxu0 %v6546_v21 }
0x2b98   :  { %11370 = vmatprep.subr.bf16.mxu0 %v12552_v41 }
0x2b9f   :  { %11371 = vmatpush3.bf16.xpose.msra.mxu0 %v6543_v39 }
0x2ba0   :  { %11384 = vmatprep.subr.bf16.mxu0 %v12552_v41 }
0x2ba6   :  { %11373 = vmatmul.mubr.msk.bf16.vlgmr.msra.gmra.mxu0 %vm1085_vm3, %v6530_v16 }
0x2ba7   :  { %11388 = vmatprep.mubr.msk.bf16.mxu0 %vm12554_vm0, %v12552_v41 }
0x2bcf   :  { %v6332_v14 = vpop.f32.mrf.mxu0 }
0x2bd0   :  { %v6333_v32 = vadd.f32 %v14551_v37, %v6332_v14 }
0x2bd1   :  { %v11350_v1 = vpop.f32.mrf.mxu0 }
0x2bd2   :  { %v6342_v63 = vadd.f32 %v6333_v32, %v14583_v36 }
0x2bd3   :  { %v6335_v8 = vpop.f32.mrf.mxu0 }
0x2bd4   :  { %v6355_v25 = vsel %vm1085_vm3, %v6342_v63, 0.0 }
0x2bd5   :  { %v11351_v31 = vpop.f32.mrf.mxu0  ;;  %6356 = vadd.xlane.f32.xlu1 %v6355_v25 }
0x2be9   :  { %v6351_v30 = vpop.xlane.xlu1 %6350 }
0x2bea   :  { %v6360_v62 = vmul.f32 0.03125, %v6351_v30 }
0x2bec   :  { %v6365_v10 = vsub.f32 %v6340_v35, %v6360_v62 }
0x2bed   :  { %v6354_v11 = vpop.xlane.xlu0 %6353 }
0x2bee   :  { %v6361_v24 = vmul.f32 0.03125, %v6354_v11  ;;  %v6370_v53 = vmul.f32 %v6365_v10, %v6365_v10 }
0x2bf0   :  { %v6366_v29 = vsub.f32 %v6341_v40, %v6361_v24  ;;  %v6379_v26 = vsel %vm1085_vm3, %v6370_v53, 0.0  ;;  %v6692_v40 = vmul.f32 %v6503_v34, %v13053_v42 }
0x2bf1   :  { %6380 = vadd.xlane.f32.xlu0 %v6379_v26 }
0x2bf2   :  { %v6371_v37 = vmul.f32 %v6366_v29, %v6366_v29  ;;  %v14679_v9 = vpack.c.bf16 %v6693_v12, %v6692_v40 }
0x2bf4   :  { %v6382_v38 = vsel %vm1085_vm3, %v6371_v37, 0.0 }
0x2bf5   :  { %6383 = vadd.xlane.f32.xlu1 %v6382_v38 }
0x2c5e   :  { %v6357_v36 = vpop.xlane.xlu1 %6356 }
0x2c5f   :  { %v6362_v49 = vmul.f32 0.03125, %v6357_v36 }
0x2c61   :  { %v6367_v56 = vsub.f32 %v6342_v63, %v6362_v49 }
0x2c63   :  { %v6372_v6 = vmul.f32 %v6367_v56, %v6367_v56 }
0x2c65   :  { %v6385_v18 = vsel %vm1085_vm3, %v6372_v6, 0.0 }
0x2c66   :  { %6386 = vadd.xlane.f32.xlu0 %v6385_v18  ;;  %v6582_v55 = vpop.f32.mrf.mxu0 }
0x2c67   :  { %v6583_v5 = vadd.f32 %v14667_v22, %v6582_v55 }
0x2c68   :  { %v11374_v33 = vpop.f32.mrf.mxu0 }
0x2c69   :  { %v6588_v4 = vsel %vm1085_vm3, %v6583_v5, -inf }
0x2c6a   :  { %6589 = vmax.xlane.f32.xlu1 %v6588_v4  ;;  %v6585_v35 = vpop.f32.mrf.mxu0  ;;  %v6522_v4 = vmul.f32 0.35355338, %v6503_v34 }
0x2c6c   :  { %v11375_v47 = vpop.f32.mrf.mxu0  ;;  %v6694_v35 = vpack.c.bf16 %v6522_v4, %v6522_v4 }
0x2c7a   :  { %v6381_v21 = vpop.xlane.xlu0 %6380 }
0x2c7b   :  { %v6390_v39 = vmul.f32 0.03125, %v6381_v21  ;;  %6699 = vrot.lane.b32.xlu1 %v14677_v3, %s12556_s18 }
0x2c7c   :  { %6701 = vrot.lane.b32.xlu0 %v14679_v9, %s12556_s18 }
0x2c7d   :  { %v6395_v28 = vadd.f32 1e-06, %v6390_v39 }
0x2c7e   :  { %v6384_v19 = vpop.xlane.xlu1 %6383 }
0x2c7f   :  { %12075 = vrsqrt.f32 %v6395_v28  ;;  %v6391_v16 = vmul.f32 0.03125, %v6384_v19 }
0x2c81   :  { %v6396_v14 = vadd.f32 1e-06, %v6391_v16 }
0x2c83   :  { %12077 = vrsqrt.f32 %v6396_v14 }
0x2c8c   :  { %v12076_v32 = vpop.eup %12075 }
0x2c8d   :  { %v6405_v1 = vmul.f32 %v12076_v32, %v6365_v10 }
0x2c8f   :  { %v6414_v25 = vmul.f32 %v14595_v7, %v6405_v1 }
0x2c90   :  { %v12078_v63 = vpop.eup %12077 }
0x2c91   :  { %v6406_v8 = vmul.f32 %v12078_v63, %v6366_v29  ;;  %v14688_v30 = vadd.f32 %v14602_v2, %v6414_v25 }
0x2c93   :  { %v6415_v31 = vmul.f32 %v14595_v7, %v6406_v8 }
0x2c95   :  { %v14691_v62 = vadd.f32 %v14602_v2, %v6415_v31 }
0x2c97   :  { %v6434_v11 = vpack.c.bf16 %v14691_v62, %v14688_v30 }
0x2c99   :  { %11361 = vmatmul.mubr.msk.bf16.gmra.mxu1 %vm1085_vm3, %v6434_v11 }
0x2c9a   :  { %11364 = vmatprep.mubr.msk.bf16.mxu1 %vm12554_vm0, %v12552_v41 }
0x2cef   :  { %v6387_v10 = vpop.xlane.xlu0 %6386 }
0x2cf0   :  { %v6392_v24 = vmul.f32 0.03125, %v6387_v10 }
0x2cf2   :  { %v6397_v53 = vadd.f32 1e-06, %v6392_v24 }
0x2cf3   :  { %v6590_v29 = vpop.xlane.xlu1 %6589 }
0x2cf4   :  { %12079 = vrsqrt.f32 %v6397_v53  ;;  %v6591_v26 = vsub.f32 %v6583_v5, %v6590_v29  ;;  %v6702_v5 = vpop.permute.xlu0 %6701 }
0x2cf6   :  { %v6592_v37 = vmul.f32 1.442695, %v6591_v26 }
0x2cf8   :  { %12081 = vpow2.f32 %v6592_v37 }
0x2d01   :  { %v12080_v38 = vpop.eup %12079 }
0x2d02   :  { %v6407_v36 = vmul.f32 %v12080_v38, %v6367_v56  ;;  %v6710_v56 = vsel %vm1085_vm3, %v6702_v5, 0 }
0x2d04   :  { %v6416_v49 = vmul.f32 %v14595_v7, %v6407_v36  ;;  %v6700_v7 = vpop.permute.xlu1 %6699 }
0x2d05   :  { %v14707_v55 = vpop.eup %12081 }
0x2d06   :  { %v14700_v6 = vadd.f32 %v14602_v2, %v6416_v49  ;;  %v6594_v33 = vpack.c.bf16 %v14707_v55, %v14707_v55  ;;  %v6707_v2 = vsel %vm1085_vm3, %v6700_v7, 0 }
0x2d08   :  { %v6435_v18 = vpack.c.bf16 %v14700_v6, %v14700_v6 }
0x2d0a   :  { %11365 = vmatmul.mubr.msk.bf16.gmra.mxu1 %vm1085_vm3, %v6435_v18 }
0x2d0b   :  { %11380 = vmatprep.mubr.msk.bf16.mxu1 %vm12554_vm0, %v12552_v41 }
0x2d12   :  { %11381 = vmatmul.mubr.msk.bf16.vlgmr.msra.gmra.mxu1 %vm1085_vm3, %v6594_v33 }
0x2d13   :  { %11393 = vmatpush3.bf16.xpose.msra.mxu1 %v6710_v56  ;;  %11396 = vmatprep.mubr.msk.bf16.mxu1 %vm12554_vm0, %v12552_v41 }
0x2d14   :  { %11394 = vmatprep.subr.bf16.mxu1 %v12552_v41 }
0x2d1b   :  { %11395 = vmatpush3.bf16.xpose.msra.mxu1 %v6707_v2 }
0x2d1c   :  { %11416 = vmatprep.subr.bf16.mxu1 %v12552_v41 }
0x2d22   :  { %11397 = vmatmul.mubr.msk.bf16.vlgmr.msra.gmra.mxu1 %vm1085_vm3, %v6694_v35 }
0x2d23   :  { %11420 = vmatprep.mubr.msk.bf16.mxu1 %vm12554_vm0, %v12552_v41 }
0x2d59   :  { %v6507_v47 = vpop.f32.mrf.mxu1 }
0x2d5a   :  { %v6508_v58 = vadd.f32 %v14630_v44, %v6507_v47 }
0x2d5b   :  { %v11362_v20 = vpop.f32.mrf.mxu1 }
0x2d5c   :  { %v6856_v40 = vmul.f32 %v6508_v58, %v13053_v42  ;;  %v6857_v12 = vmul.f32 %v6508_v58, %v13055_v45  ;;  %v6854_v21 = vmul.f32 %v6508_v58, %v13057_v48  ;;  %v6855_v34 = vmul.f32 %v6508_v58, %v13059_v50 }
0x2d5d   :  { %v6510_v39 = vpop.f32.mrf.mxu1  ;;  %v6523_v33 = vmul.f32 0.35355338, %v6508_v58 }
0x2d5e   :  { %v14726_v28 = vpack.c.bf16 %v6857_v12, %v6856_v40  ;;  %v14728_v16 = vpack.c.bf16 %v6855_v34, %v6854_v21  ;;  %v6511_v14 = vadd.f32 %v14630_v44, %v6510_v39  ;;  %v14767_v21 = vld [vmem:[%s12721_s8 + $0x8] sm:$0xff]  }
0x2d5f   :  { %v11363_v19 = vpop.f32.mrf.mxu1  ;;  %v6858_v2 = vpack.c.bf16 %v6523_v33, %v6523_v33 }
0x2d60   :  { %6865 = vrot.lane.b32.xlu1 %v14726_v28, %s12556_s18  ;;  %6863 = vrot.lane.b32.xlu0 %v14728_v16, %s12556_s18  ;;  %v7020_v32 = vmul.f32 %v6511_v14, %v13053_v42  ;;  %v7021_v1 = vmul.f32 %v6511_v14, %v13055_v45  ;;  %v7018_v8 = vmul.f32 %v6511_v14, %v13057_v48  ;;  %v14774_v19 = vld [vmem:[%s12721_s8] sm:$0xff]  }
0x2d61   :  { %v7019_v25 = vmul.f32 %v6511_v14, %v13059_v50 }
0x2d62   :  { %v14741_v63 = vpack.c.bf16 %v7021_v1, %v7020_v32  ;;  %v6524_v1 = vmul.f32 0.35355338, %v6511_v14 }
0x2d63   :  { %v14747_v31 = vpack.c.bf16 %v7019_v25, %v7018_v8 }
0x2d64   :  { %6643 = vrot.lane.b32.xlu0 %v14639_v61, %s12544_s12  ;;  %v7022_v8 = vpack.c.bf16 %v6524_v1, %v6524_v1 }
0x2d68   :  { %6641 = vrot.lane.b32.xlu0 %v14641_v15, %s12544_s12 }
0x2d6c   :  { %7029 = vrot.lane.b32.xlu0 %v14741_v63, %s12556_s18 }
0x2d70   :  { %7027 = vrot.lane.b32.xlu0 %v14747_v31, %s12556_s18 }
0x2dca   :  { %v6515_v61 = vpop.f32.mrf.mxu1 }
0x2dcb   :  { %v6516_v25 = vadd.f32 %v14630_v44, %v6515_v61 }
0x2dcc   :  { %v11366_v11 = vpop.f32.mrf.mxu1 }
0x2dcd   :  { %v7184_v11 = vmul.f32 %v6516_v25, %v13053_v42  ;;  %v7182_v14 = vmul.f32 %v6516_v25, %v13057_v48 }
0x2dce   :  { %v6518_v10 = vpop.f32.mrf.mxu1 }
0x2dcf   :  { %v7185_v10 = vmul.f32 %v6516_v25, %v13055_v45 }
0x2dd0   :  { %v11367_v24 = vpop.f32.mrf.mxu1 }
0x2dd1   :  { %v7188_v24 = vpack.c.bf16 %v7185_v10, %v7184_v11 }
0x2dd2   :  { %v6866_v53 = vpop.permute.xlu1 %6865  ;;  %v6632_v15 = vpop.f32.mrf.mxu1 }
0x2dd3   :  { %v6874_v29 = vsel %vm1085_vm3, %v6866_v53, 0  ;;  %v6864_v26 = vpop.permute.xlu0 %6863  ;;  %12083 = vrcp.f32 %v6632_v15  ;;  %v7183_v53 = vmul.f32 %v6516_v25, %v13059_v50 }
0x2dd4   :  { %v11382_v37 = vpop.f32.mrf.mxu1  ;;  %11417 = vmatpush3.bf16.xpose.msra.mxu1 %v6874_v29  ;;  %v6871_v18 = vsel %vm1085_vm3, %v6864_v26, 0 }
0x2dd5   :  { %11418 = vmatprep.subr.bf16.mxu1 %v12552_v41  ;;  %v7187_v44 = vpack.c.bf16 %v7183_v53, %v7182_v14  ;;  %v6525_v37 = vmul.f32 0.35355338, %v6516_v25 }
0x2dd6   :  { %v6635_v38 = vpop.f32.mrf.mxu1 }
0x2dd7   :  { %v6644_v36 = vpop.permute.xlu0 %6643 }
0x2dd8   :  { %11385 = vmatpush3.bf16.msra.mxu0 %v6644_v36  ;;  %v11383_v49 = vpop.f32.mrf.mxu1  ;;  %v7186_v36 = vpack.c.bf16 %v6525_v37, %v6525_v37 }
0x2dd9   :  { %11386 = vmatprep.subr.bf16.mxu0 %v12552_v41 }
0x2ddb   :  { %v6642_v5 = vpop.permute.xlu0 %6641 }
0x2ddc   :  { %11387 = vmatpush3.bf16.msra.mxu0 %v6642_v5  ;;  %11419 = vmatpush3.bf16.xpose.msra.mxu1 %v6871_v18 }
0x2ddd   :  { %11440 = vmatprep.subr.bf16.mxu1 %v12552_v41  ;;  %11400 = vmatprep.subr.bf16.mxu0 %v12552_v41 }
0x2ddf   :  { %v7030_v7 = vpop.permute.xlu0 %7029 }
0x2de0   :  { %v12084_v56 = vpop.eup %12083  ;;  %v7038_v20 = vsel %vm1085_vm3, %v7030_v7, 0 }
0x2de1   :  { %v6639_v4 = vmul.f32 %v12084_v56, %v14707_v55 }
0x2de2   :  { %v6746_v35 = vpop.f32.mrf.mxu1 }
0x2de3   :  { %v6640_v47 = vpack.c.bf16 %v6639_v4, %v6639_v4  ;;  %v6747_v40 = vadd.f32 %v14667_v22, %v6746_v35  ;;  %11421 = vmatmul.mubr.msk.bf16.vlgmr.msra.gmra.mxu1 %vm1085_vm3, %v6858_v2  ;;  %v7028_v39 = vpop.permute.xlu0 %7027 }
0x2de4   :  { %v11398_v58 = vpop.f32.mrf.mxu1  ;;  %11441 = vmatpush3.bf16.xpose.msra.mxu1 %v7038_v20  ;;  %11444 = vmatprep.mubr.msk.bf16.mxu1 %vm12554_vm0, %v12552_v41  ;;  %v7035_v32 = vsel %vm1085_vm3, %v7028_v39, 0 }
0x2de5   :  { %11389 = vmatmul.mubr.msk.bf16.vlgmr.msra.gmra.mxu0 %vm1085_vm3, %v6640_v47  ;;  %v6752_v12 = vsel %vm1085_vm3, %v6747_v40, -inf  ;;  %11442 = vmatprep.subr.bf16.mxu1 %v12552_v41 }
0x2de6   :  { %6753 = vmax.xlane.f32.xlu1 %v6752_v12  ;;  %v6749_v55 = vpop.f32.mrf.mxu1  ;;  %11401 = vmatpush3.bf16.msra.mxu0 %v14767_v21 }
0x2de7   :  { %11402 = vmatprep.subr.bf16.mxu0 %v12552_v41  ;;  %11404 = vmatprep.mubr.msk.bf16.mxu0 %vm12554_vm0, %v12552_v41 }
0x2de8   :  { %v11399_v34 = vpop.f32.mrf.mxu1 }
0x2dea   :  { %11403 = vmatpush3.bf16.msra.mxu0 %v14774_v19 }
0x2deb   :  { %11408 = vmatprep.subr.bf16.mxu0 %v12552_v41 }
0x2dec   :  { %11443 = vmatpush3.bf16.xpose.msra.mxu1 %v7035_v32 }
0x2ded   :  { %11464 = vmatprep.subr.bf16.mxu1 %v12552_v41 }
0x2df3   :  { %11445 = vmatmul.mubr.msk.bf16.vlgmr.msra.gmra.mxu1 %vm1085_vm3, %v7022_v8 }
0x2df4   :  { %11468 = vmatprep.mubr.msk.bf16.mxu1 %vm12554_vm0, %v12552_v41 }
0x2df7   :  { %6807 = vrot.lane.b32.xlu1 %v14679_v9, %s12544_s12 }
0x2dfb   :  { %7193 = vrot.lane.b32.xlu1 %v7188_v24, %s12556_s18 }
0x2dff   :  { %7191 = vrot.lane.b32.xlu1 %v7187_v44, %s12556_s18 }
0x2e6f   :  { %v6754_v61 = vpop.xlane.xlu1 %6753 }
0x2e70   :  { %v6755_v15 = vsub.f32 %v6747_v40, %v6754_v61 }
0x2e72   :  { %v6756_v29 = vmul.f32 1.442695, %v6755_v15 }
0x2e73   :  { %v6808_v26 = vpop.permute.xlu1 %6807 }
0x2e74   :  { %12085 = vpow2.f32 %v6756_v29 }
0x2e77   :  { %v7194_v42 = vpop.permute.xlu1 %7193 }
0x2e78   :  { %v7202_v45 = vsel %vm1085_vm3, %v7194_v42, 0 }
0x2e79   :  { %11465 = vmatpush3.bf16.xpose.msra.mxu1 %v7202_v45  ;;  %v11857_v45 = vld [vmem:[%s15631_s28 + $0x18] sm:$0xff]  }
0x2e7a   :  { %11466 = vmatprep.subr.bf16.mxu1 %v12552_v41 }
0x2e7b   :  { %v7192_v9 = vpop.permute.xlu1 %7191 }
0x2e7c   :  { %v7199_v48 = vsel %vm1085_vm3, %v7192_v9, 0  ;;  %v11858_v9 = vld [vmem:[%s15631_s28 + $0x10] sm:$0xff]  }
0x2e81   :  { %v12086_v50 = vpop.eup %12085  ;;  %11467 = vmatpush3.bf16.xpose.msra.mxu1 %v7199_v48 }
0x2e82   :  { %v6758_v38 = vpack.c.bf16 %v12086_v50, %v12086_v50  ;;  %11488 = vmatprep.subr.bf16.mxu1 %v12552_v41 }
0x2e84   :  { %11405 = vmatmul.mubr.msk.bf16.vlgmr.msra.gmra.mxu0 %vm1085_vm3, %v6758_v38 }
0x2e85   :  { %11409 = vmatpush3.bf16.msra.mxu0 %v6808_v26  ;;  %11412 = vmatprep.mubr.msk.bf16.mxu0 %vm12554_vm0, %v12552_v41 }
0x2e86   :  { %11410 = vmatprep.subr.bf16.mxu0 %v12552_v41 }
0x2e88   :  { %11469 = vmatmul.mubr.msk.bf16.vlgmr.msra.gmra.mxu1 %vm1085_vm3, %v7186_v36 }
0x2e89   :  { %11492 = vmatprep.mubr.msk.bf16.mxu1 %vm12554_vm0, %v12552_v41  ;;  %11489 = vmatpush3.bf16.msra.mxu1 %v11857_v45 }
0x2e8a   :  { %11490 = vmatprep.subr.bf16.mxu1 %v12552_v41 }
0x2e8d   :  { %11491 = vmatpush3.bf16.msra.mxu1 %v11858_v9 }
0x2e8e   :  { %11520 = vmatprep.subr.bf16.mxu1 %v12552_v41 }
0x2ea3   :  { %v6910_v49 = vpop.f32.mrf.mxu1 }
0x2ea4   :  { %v6911_v18 = vadd.f32 %v14667_v22, %v6910_v49 }
0x2ea5   :  { %v14804_v5 = vpop.f32.mrf.mxu0  ;;  %v11422_v33 = vpop.f32.mrf.mxu1 }
0x2ea6   :  { %v6916_v56 = vsel %vm1085_vm3, %v6911_v18, -inf }
0x2ea7   :  { %v11390_v7 = vpop.f32.mrf.mxu0  ;;  %6917 = vmax.xlane.f32.xlu0 %v6916_v56  ;;  %v6913_v2 = vpop.f32.mrf.mxu1 }
0x2ea9   :  { %v6687_v4 = vpop.f32.mrf.mxu0  ;;  %v11423_v35 = vpop.f32.mrf.mxu1 }
0x2eab   :  { %v11391_v47 = vpop.f32.mrf.mxu0 }
0x2eb3   :  { %v7074_v20 = vpop.f32.mrf.mxu1 }
0x2eb4   :  { %v14808_v40 = vadd.f32 %v14667_v22, %v7074_v20 }
0x2eb5   :  { %v11446_v58 = vpop.f32.mrf.mxu1 }
0x2eb6   :  { %v7080_v12 = vsel %vm1085_vm3, %v14808_v40, -inf }
0x2eb7   :  { %7081 = vmax.xlane.f32.xlu1 %v7080_v12  ;;  %v7077_v55 = vpop.f32.mrf.mxu1 }
0x2eb8   :  { %v14863_v55 = vld [vmem:[#allocation13 + $0x1] ss:$0 sm:$0xff] }
0x2eb9   :  { %v11447_v39 = vpop.f32.mrf.mxu1 }
0x2ebd   :  { %6805 = vrot.lane.b32.xlu0 %v14677_v3, %s12544_s12 }
0x2ec1   :  { %6971 = vrot.lane.b32.xlu0 %v14726_v28, %s12544_s12 }
0x2ec5   :  { %6969 = vrot.lane.b32.xlu0 %v14728_v16, %s12544_s12 }
0x2ec8   :  { %7135 = vrot.lane.b32.xlu1 %v14741_v63, %s12544_s12 }
0x2ecc   :  { %7299 = vrot.lane.b32.xlu1 %v7188_v24, %s12544_s12 }
0x2ed0   :  { %7297 = vrot.lane.b32.xlu1 %v7187_v44, %s12544_s12 }
0x2f30   :  { %v6918_v34 = vpop.xlane.xlu0 %6917 }
0x2f31   :  { %v6919_v3 = vsub.f32 %v6911_v18, %v6918_v34 }
0x2f33   :  { %v6920_v11 = vmul.f32 1.442695, %v6919_v3 }
0x2f34   :  { %v6806_v32 = vpop.permute.xlu0 %6805 }
0x2f35   :  { %11411 = vmatpush3.bf16.msra.mxu0 %v6806_v32 }
0x2f36   :  { %11424 = vmatprep.subr.bf16.mxu0 %v12552_v41 }
0x2f38   :  { %v6972_v26 = vpop.permute.xlu0 %6971 }
0x2f3c   :  { %v6970_v42 = vpop.permute.xlu0 %6969 }
0x2f44   :  { %v6796_v1 = vpop.f32.mrf.mxu0 }
0x2f45   :  { %12087 = vrcp.f32 %v6796_v1 }
0x2f46   :  { %v11406_v8 = vpop.f32.mrf.mxu0  ;;  %12089 = vpow2.f32 %v6920_v11 }
0x2f48   :  { %v6799_v28 = vpop.f32.mrf.mxu0  ;;  %v7238_v25 = vpop.f32.mrf.mxu1 }
0x2f49   :  { %v14824_v16 = vadd.f32 %v14667_v22, %v7238_v25 }
0x2f4a   :  { %v11407_v63 = vpop.f32.mrf.mxu0  ;;  %v11470_v10 = vpop.f32.mrf.mxu1 }
0x2f4b   :  { %v7244_v24 = vsel %vm1085_vm3, %v14824_v16, -inf }
0x2f4c   :  { %7245 = vmax.xlane.f32.xlu0 %v7244_v24  ;;  %v7241_v14 = vpop.f32.mrf.mxu1 }
0x2f4e   :  { %v11471_v53 = vpop.f32.mrf.mxu1 }
0x2f52   :  { %v12088_v44 = vpop.eup %12087 }
0x2f53   :  { %v6803_v61 = vmul.f32 %v12088_v44, %v12086_v50  ;;  %v12090_v22 = vpop.eup %12089 }
0x2f54   :  { %v6922_v29 = vpack.c.bf16 %v12090_v22, %v12090_v22 }
0x2f55   :  { %v6804_v15 = vpack.c.bf16 %v6803_v61, %v6803_v61 }
0x2f57   :  { %11413 = vmatmul.mubr.msk.bf16.vlgmr.msra.gmra.mxu0 %vm1085_vm3, %v6804_v15 }
0x2f58   :  { %11425 = vmatpush3.bf16.msra.mxu0 %v14767_v21  ;;  %11428 = vmatprep.mubr.msk.bf16.mxu0 %vm12554_vm0, %v12552_v41 }
0x2f59   :  { %11426 = vmatprep.subr.bf16.mxu0 %v12552_v41 }
0x2f5c   :  { %11427 = vmatpush3.bf16.msra.mxu0 %v14774_v19 }
0x2f5d   :  { %11432 = vmatprep.subr.bf16.mxu0 %v12552_v41 }
0x2f5f   :  { %11429 = vmatmul.mubr.msk.bf16.vlgmr.msra.gmra.mxu0 %vm1085_vm3, %v6922_v29 }
0x2f60   :  { %11433 = vmatpush3.bf16.msra.mxu0 %v6972_v26  ;;  %11436 = vmatprep.mubr.msk.bf16.mxu0 %vm12554_vm0, %v12552_v41 }
0x2f61   :  { %11434 = vmatprep.subr.bf16.mxu0 %v12552_v41 }
0x2f62   :  { %7133 = vrot.lane.b32.xlu0 %v14747_v31, %s12544_s12  ;;  %v7082_v31 = vpop.xlane.xlu1 %7081 }
0x2f63   :  { %v7083_v18 = vsub.f32 %v14808_v40, %v7082_v31 }
0x2f64   :  { %11435 = vmatpush3.bf16.msra.mxu0 %v6970_v42 }
0x2f65   :  { %11448 = vmatprep.subr.bf16.mxu0 %v12552_v41  ;;  %v7084_v7 = vmul.f32 1.442695, %v7083_v18 }
0x2f66   :  { %v7136_v58 = vpop.permute.xlu1 %7135 }
0x2fd5   :  { %v7246_v40 = vpop.xlane.xlu0 %7245 }
0x2fd6   :  { %v7247_v61 = vsub.f32 %v14824_v16, %v7246_v40  ;;  %v7300_v16 = vpop.permute.xlu1 %7299 }
0x2fd9   :  { %v7134_v12 = vpop.permute.xlu0 %7133 }
0x3017   :  { %v6848_v48 = vpop.f32.mrf.mxu0 }
0x3018   :  { %v7351_v50 = vpack.c.bf16 %v6848_v48, %v14804_v5  ;;  %v7298_v48 = vpop.permute.xlu1 %7297 }
0x3019   :  { %v11414_v37 = vpop.f32.mrf.mxu0 }
0x301a   :  { %11493 = vmatmul.mubr.msk.bf16.vlgmr.msra.gmra.mxu1 %vm1085_vm3, %v7351_v50 }
0x301b   :  { %v6851_v38 = vpop.f32.mrf.mxu0  ;;  %11496 = vmatprep.mubr.msk.bf16.mxu1 %vm12554_vm0, %v12552_v41 }
0x301d   :  { %v11415_v36 = vpop.f32.mrf.mxu0 }
0x301f   :  { %v6960_v49 = vpop.f32.mrf.mxu0 }
0x3020   :  { %12091 = vrcp.f32 %v6960_v49 }
0x3021   :  { %v11430_v33 = vpop.f32.mrf.mxu0  ;;  %12093 = vpow2.f32 %v7084_v7 }
0x3023   :  { %v6963_v56 = vpop.f32.mrf.mxu0 }
0x3025   :  { %v11431_v2 = vpop.f32.mrf.mxu0 }
0x302d   :  { %v12092_v4 = vpop.eup %12091 }
0x302e   :  { %v6967_v5 = vmul.f32 %v12092_v4, %v12090_v22  ;;  %v12094_v47 = vpop.eup %12093  ;;  %v7248_v22 = vmul.f32 1.442695, %v7247_v61 }
0x302f   :  { %v7086_v20 = vpack.c.bf16 %v12094_v47, %v12094_v47 }
0x3030   :  { %v6968_v35 = vpack.c.bf16 %v6967_v5, %v6967_v5 }
0x3032   :  { %11437 = vmatmul.mubr.msk.bf16.vlgmr.msra.gmra.mxu0 %vm1085_vm3, %v6968_v35 }
0x3033   :  { %11449 = vmatpush3.bf16.msra.mxu0 %v14767_v21  ;;  %11452 = vmatprep.mubr.msk.bf16.mxu0 %vm12554_vm0, %v12552_v41 }
0x3034   :  { %11450 = vmatprep.subr.bf16.mxu0 %v12552_v41 }
0x3037   :  { %11451 = vmatpush3.bf16.msra.mxu0 %v14774_v19 }
0x3038   :  { %11456 = vmatprep.subr.bf16.mxu0 %v12552_v41 }
0x303a   :  { %11453 = vmatmul.mubr.msk.bf16.vlgmr.msra.gmra.mxu0 %vm1085_vm3, %v7086_v20 }
0x303b   :  { %11457 = vmatpush3.bf16.msra.mxu0 %v7136_v58  ;;  %11460 = vmatprep.mubr.msk.bf16.mxu0 %vm12554_vm0, %v12552_v41 }
0x303c   :  { %11458 = vmatprep.subr.bf16.mxu0 %v12552_v41 }
0x303f   :  { %11459 = vmatpush3.bf16.msra.mxu0 %v7134_v12 }
0x3040   :  { %11472 = vmatprep.subr.bf16.mxu0 %v12552_v41 }
0x30da   :  { %v7417_v39 = vpop.f32.mrf.mxu1 }
0x30db   :  { %v7418_v34 = vadd.f32 %v14863_v55, %v7417_v39 }
0x30dc   :  { %v11494_v32 = vpop.f32.mrf.mxu1 }
0x30dd   :  { %v7439_v1 = vadd.f32 %v7418_v34, %v14607_v13  ;;  %v11859_v32 = vld [vmem:[%s15632_s1 + $0x18] sm:$0xff]  }
0x30de   :  { %v7420_v3 = vpop.f32.mrf.mxu1 }
0x30df   :  { %v7421_v8 = vadd.f32 %v14863_v55, %v7420_v3  ;;  %v7444_v28 = vsel %vm1085_vm3, %v7439_v1, 0.0  ;;  %v11860_v3 = vld [vmem:[%s15632_s1 + $0x10] sm:$0xff]  }
0x30e0   :  { %7445 = vadd.xlane.f32.xlu1 %v7444_v28  ;;  %v11495_v25 = vpop.f32.mrf.mxu1 }
0x30e1   :  { %v7440_v11 = vadd.f32 %v7421_v8, %v14610_v54 }
0x30e3   :  { %v7447_v63 = vsel %vm1085_vm3, %v7440_v11, 0.0 }
0x30e4   :  { %7448 = vadd.xlane.f32.xlu0 %v7447_v63 }
0x30f2   :  { %v7012_v10 = vpop.f32.mrf.mxu0 }
0x30f4   :  { %v11438_v24 = vpop.f32.mrf.mxu0 }
0x30f5   :  { %v10007_v24 = vld [vmem:[%s15633_s2 + $0x8] sm:$0x3f] }
0x30f6   :  { %v7015_v14 = vpop.f32.mrf.mxu0 }
0x30f8   :  { %v11439_v53 = vpop.f32.mrf.mxu0 }
0x30f9   :  { %v14898_v53 = vrot.slane %v10007_v24, %v13316_v52 }
0x30fa   :  { %v7124_v44 = vpop.f32.mrf.mxu0 }
0x30fb   :  { %12095 = vrcp.f32 %v7124_v44 }
0x30fc   :  { %v11454_v13 = vpop.f32.mrf.mxu0  ;;  %12097 = vpow2.f32 %v7248_v22  ;;  %v14902_v22 = vrot.slane %v10007_v24, %v13321_v43 }
0x30fe   :  { %v7127_v15 = vpop.f32.mrf.mxu0 }
0x3100   :  { %v11455_v29 = vpop.f32.mrf.mxu0 }
0x3108   :  { %v12096_v26 = vpop.eup %12095 }
0x3109   :  { %v7131_v42 = vmul.f32 %v12096_v26, %v12094_v47  ;;  %v12098_v54 = vpop.eup %12097 }
0x310a   :  { %v7250_v9 = vpack.c.bf16 %v12098_v54, %v12098_v54 }
0x310b   :  { %v7132_v45 = vpack.c.bf16 %v7131_v42, %v7131_v42 }
0x310d   :  { %11461 = vmatmul.mubr.msk.bf16.vlgmr.msra.gmra.mxu0 %vm1085_vm3, %v7132_v45 }
0x310e   :  { %11473 = vmatpush3.bf16.msra.mxu0 %v14767_v21  ;;  %11476 = vmatprep.mubr.msk.bf16.mxu0 %vm12554_vm0, %v12552_v41 }
0x310f   :  { %11474 = vmatprep.subr.bf16.mxu0 %v12552_v41 }
0x3112   :  { %11475 = vmatpush3.bf16.msra.mxu0 %v14774_v19 }
0x3113   :  { %11480 = vmatprep.subr.bf16.mxu0 %v12552_v41 }
0x3115   :  { %11477 = vmatmul.mubr.msk.bf16.vlgmr.msra.gmra.mxu0 %vm1085_vm3, %v7250_v9 }
0x3116   :  { %11481 = vmatpush3.bf16.msra.mxu0 %v7300_v16  ;;  %11484 = vmatprep.mubr.msk.bf16.mxu0 %vm12554_vm0, %v12552_v41  ;;  %v11862_v16 = vld [vmem:[%s15634_s29 + $0x10] sm:$0xff]  }
0x3117   :  { %11482 = vmatprep.subr.bf16.mxu0 %v12552_v41 }
0x311a   :  { %11483 = vmatpush3.bf16.msra.mxu0 %v7298_v48 }
0x311b   :  { %11504 = vmatprep.subr.bf16.mxu0 %v12552_v41 }
0x3169   :  { %v7446_v50 = vpop.xlane.xlu1 %7445 }
0x316a   :  { %v7459_v37 = vmul.f32 0.03125, %v7446_v50 }
0x316c   :  { %v7464_v38 = vsub.f32 %v7439_v1, %v7459_v37 }
0x316d   :  { %v7449_v31 = vpop.xlane.xlu0 %7448 }
0x316e   :  { %v7460_v36 = vmul.f32 0.03125, %v7449_v31  ;;  %v7469_v49 = vmul.f32 %v7464_v38, %v7464_v38 }
0x3170   :  { %v7465_v18 = vsub.f32 %v7440_v11, %v7460_v36  ;;  %v7474_v33 = vsel %vm1085_vm3, %v7469_v49, 0.0 }
0x3171   :  { %7475 = vadd.xlane.f32.xlu1 %v7474_v33 }
0x3172   :  { %v7470_v56 = vmul.f32 %v7465_v18, %v7465_v18 }
0x3174   :  { %v7477_v7 = vsel %vm1085_vm3, %v7470_v56, 0.0 }
0x3175   :  { %7478 = vadd.xlane.f32.xlu1 %v7477_v7 }
0x31cd   :  { %v7176_v2 = vpop.f32.mrf.mxu0 }
0x31ce   :  { %v7352_v4 = vpack.c.bf16 %v7176_v2, %v7012_v10 }
0x31cf   :  { %v11462_v5 = vpop.f32.mrf.mxu0 }
0x31d0   :  { %11497 = vmatmul.mubr.msk.bf16.gmra.mxu1 %vm1085_vm3, %v7352_v4 }
0x31d1   :  { %v7179_v35 = vpop.f32.mrf.mxu0  ;;  %11500 = vmatprep.mubr.msk.bf16.mxu1 %vm12554_vm0, %v12552_v41 }
0x31d3   :  { %v11463_v47 = vpop.f32.mrf.mxu0 }
0x31d5   :  { %v7288_v20 = vpop.f32.mrf.mxu0 }
0x31d6   :  { %12099 = vrcp.f32 %v7288_v20 }
0x31d7   :  { %v11478_v40 = vpop.f32.mrf.mxu0 }
0x31d9   :  { %v7291_v58 = vpop.f32.mrf.mxu0 }
0x31db   :  { %v11479_v12 = vpop.f32.mrf.mxu0 }
0x31e3   :  { %v12100_v39 = vpop.eup %12099 }
0x31e4   :  { %v7295_v34 = vmul.f32 %v12100_v39, %v12098_v54  ;;  %v11861_v54 = vld [vmem:[%s15634_s29 + $0x18] sm:$0xff]  }
0x31e5   :  { %11521 = vmatpush3.bf16.msra.mxu1 %v11861_v54 }
0x31e6   :  { %v7296_v1 = vpack.c.bf16 %v7295_v34, %v7295_v34  ;;  %11522 = vmatprep.subr.bf16.mxu1 %v12552_v41 }
0x31e8   :  { %11485 = vmatmul.mubr.msk.bf16.vlgmr.msra.gmra.mxu0 %vm1085_vm3, %v7296_v1 }
0x31e9   :  { %11505 = vmatpush3.bf16.msra.mxu0 %v11859_v32  ;;  %11508 = vmatprep.mubr.msk.bf16.mxu0 %vm12554_vm0, %v12552_v41 }
0x31ea   :  { %11506 = vmatprep.subr.bf16.mxu0 %v12552_v41  ;;  %11523 = vmatpush3.bf16.msra.mxu1 %v11862_v16  ;;  %v14970_v16 = vld [vmem:[%s15626_s27] sm:$0xff] }
0x31eb   :  { %11560 = vmatprep.subr.bf16.mxu1 %v12552_v41 }
0x31ed   :  { %11507 = vmatpush3.bf16.msra.mxu0 %v11860_v3 }
0x31ee   :  { %11536 = vmatprep.subr.bf16.mxu0 %v12552_v41 }
0x31fa   :  { %v7476_v8 = vpop.xlane.xlu1 %7475 }
0x31fb   :  { %v7489_v28 = vmul.f32 0.03125, %v7476_v8 }
0x31fd   :  { %v7494_v25 = vadd.f32 1e-06, %v7489_v28 }
0x31fe   :  { %v7479_v11 = vpop.xlane.xlu1 %7478 }
0x31ff   :  { %12101 = vrsqrt.f32 %v7494_v25  ;;  %v7490_v63 = vmul.f32 0.03125, %v7479_v11 }
0x3201   :  { %v7495_v10 = vadd.f32 1e-06, %v7490_v63  ;;  %v10057_v63 = vld [vmem:[#allocation16 + $0x1] ss:$0 sm:$0xff] }
0x3203   :  { %12103 = vrsqrt.f32 %v7495_v10 }
0x320c   :  { %v12102_v14 = vpop.eup %12101 }
0x320d   :  { %v7504_v44 = vmul.f32 %v12102_v14, %v7464_v38 }
0x320f   :  { %v7513_v13 = vmul.f32 %v14898_v53, %v7504_v44 }
0x3210   :  { %v12104_v61 = vpop.eup %12103 }
0x3211   :  { %v7505_v15 = vmul.f32 %v12104_v61, %v7465_v18  ;;  %v14906_v26 = vadd.f32 %v14902_v22, %v7513_v13  ;;  %v14964_v61 = vld [vmem:[%s15626_s27 + $0x18] sm:$0xff] }
0x3213   :  { %v7514_v29 = vmul.f32 %v14898_v53, %v7505_v15 }
0x3215   :  { %v14909_v42 = vadd.f32 %v14902_v22, %v7514_v29 }
0x3217   :  { %v7532_v45 = vpack.c.bf16 %v14909_v42, %v14906_v26 }
0x3219   :  { %11509 = vmatmul.mubr.msk.bf16.vlgmr.msra.gmra.mxu0 %vm1085_vm3, %v7532_v45 }
0x321a   :  { %11512 = vmatprep.mubr.msk.bf16.mxu0 %vm12554_vm0, %v12552_v41 }
0x3290   :  { %v7425_v9 = vpop.f32.mrf.mxu1 }
0x3291   :  { %v7426_v48 = vadd.f32 %v14863_v55, %v7425_v9 }
0x3292   :  { %v11498_v50 = vpop.f32.mrf.mxu1 }
0x3293   :  { %v7441_v37 = vadd.f32 %v7426_v48, %v14688_v30 }
0x3294   :  { %v7428_v38 = vpop.f32.mrf.mxu1 }
0x3295   :  { %v7429_v31 = vadd.f32 %v14863_v55, %v7428_v38  ;;  %v7450_v36 = vsel %vm1085_vm3, %v7441_v37, 0.0  ;;  %v14978_v38 = vld [vmem:[%s15626_s27 + $0x8] sm:$0xff] }
0x3296   :  { %7451 = vadd.xlane.f32.xlu0 %v7450_v36  ;;  %v11499_v49 = vpop.f32.mrf.mxu1 }
0x3297   :  { %v7442_v18 = vadd.f32 %v7429_v31, %v14691_v62 }
0x3299   :  { %v7453_v33 = vsel %vm1085_vm3, %v7442_v18, 0.0 }
0x329a   :  { %7454 = vadd.xlane.f32.xlu1 %v7453_v33 }
0x32a8   :  { %v7340_v56 = vpop.f32.mrf.mxu0 }
0x32a9   :  { %v7353_v7 = vpack.c.bf16 %v7340_v56, %v7340_v56 }
0x32aa   :  { %v11486_v2 = vpop.f32.mrf.mxu0 }
0x32ab   :  { %11501 = vmatmul.mubr.msk.bf16.gmra.mxu1 %vm1085_vm3, %v7353_v7 }
0x32ac   :  { %v7343_v4 = vpop.f32.mrf.mxu0  ;;  %11524 = vmatprep.mubr.msk.bf16.mxu1 %vm12554_vm0, %v12552_v41 }
0x32ae   :  { %v11487_v30 = vpop.f32.mrf.mxu0 }
0x32b3   :  { %11525 = vmatmul.mubr.msk.bf16.vlgmr.msra.gmra.mxu1 %vm1085_vm3, %v14152_v60 }
0x32b4   :  { %11528 = vmatprep.mubr.msk.bf16.mxu1 %vm12554_vm0, %v12552_v41 }
0x32bb   :  { %11529 = vmatmul.mubr.msk.bf16.gmra.mxu1 %vm1085_vm3, %v14288_v23 }
0x32bc   :  { %11532 = vmatprep.mubr.msk.bf16.mxu1 %vm12554_vm0, %v12552_v41 }
0x32c3   :  { %11533 = vmatmul.mubr.msk.bf16.gmra.mxu1 %vm1085_vm3, %v14298_v59 }
0x32c4   :  { %11564 = vmatprep.mubr.msk.bf16.mxu1 %vm12554_vm0, %v12552_v41 }
0x32d9   :  { %v14941_v62 = vpop.f32.mrf.mxu0 }
0x32db   :  { %v11510_v5 = vpop.f32.mrf.mxu0 }
0x32dd   :  { %v7601_v35 = vpop.f32.mrf.mxu0 }
0x32df   :  { %v11511_v60 = vpop.f32.mrf.mxu0 }
0x331f   :  { %v7452_v47 = vpop.xlane.xlu0 %7451 }
0x3320   :  { %v7461_v20 = vmul.f32 0.03125, %v7452_v47 }
0x3322   :  { %v14943_v40 = vsub.f32 %v7441_v37, %v7461_v20 }
0x3323   :  { %v7455_v12 = vpop.xlane.xlu1 %7454 }
0x3324   :  { %v7471_v23 = vmul.f32 %v14943_v40, %v14943_v40  ;;  %v7462_v59 = vmul.f32 0.03125, %v7455_v12 }
0x3326   :  { %v7480_v58 = vsel %vm1085_vm3, %v7471_v23, 0.0  ;;  %v14948_v34 = vsub.f32 %v7442_v18, %v7462_v59  ;;  %v14996_v23 = vld [vmem:[#allocation14 + $0x1] ss:$0 sm:$0xff] }
0x3327   :  { %7481 = vadd.xlane.f32.xlu1 %v7480_v58  ;;  %v7602_v12 = vadd.f32 %v14996_v23, %v7601_v35 }
0x3328   :  { %v7472_v25 = vmul.f32 %v14948_v34, %v14948_v34 }
0x336b   :  { %v7433_v39 = vpop.f32.mrf.mxu1 }
0x336c   :  { %v7434_v32 = vadd.f32 %v14863_v55, %v7433_v39  ;;  %v7483_v55 = vsel %vm1085_vm3, %v7472_v25, 0.0 }
0x336d   :  { %v11502_v1 = vpop.f32.mrf.mxu1 }
0x336e   :  { %v14952_v3 = vadd.f32 %v7434_v32, %v14700_v6  ;;  %v14960_v6 = vld [vmem:[%s15626_s27 + $0x10] sm:$0xff] }
0x336f   :  { %v7436_v8 = vpop.f32.mrf.mxu1 }
0x3370   :  { %v7456_v28 = vsel %vm1085_vm3, %v14952_v3, 0.0  ;;  %v7702_v8 = vmul.f32 0.35355338, %v7602_v12 }
0x3371   :  { %7457 = vadd.xlane.f32.xlu0 %v7456_v28  ;;  %v11503_v11 = vpop.f32.mrf.mxu1 }
0x3372   :  { %v7870_v25 = vpack.c.bf16 %v7702_v8, %v7702_v8 }
0x3373   :  { %v7679_v10 = vpop.f32.mrf.mxu1 }
0x3374   :  { %v7680_v24 = vadd.f32 %v10057_v63, %v7679_v10 }
0x3375   :  { %7484 = vadd.xlane.f32.xlu0 %v7483_v55  ;;  %v11526_v14 = vpop.f32.mrf.mxu1 }
0x3376   :  { %v7708_v44 = vmul.f32 %v14960_v6, %v7680_v24  ;;  %v7709_v13 = vmul.f32 %v14964_v61, %v7680_v24  ;;  %v7706_v9 = vmul.f32 %v14970_v16, %v7680_v24  ;;  %v7707_v31 = vmul.f32 %v14978_v38, %v7680_v24 }
0x3377   :  { %v7682_v15 = vpop.f32.mrf.mxu1 }
0x3378   :  { %v7683_v29 = vadd.f32 %v10057_v63, %v7682_v15  ;;  %v14967_v45 = vpack.c.bf16 %v7709_v13, %v7708_v44  ;;  %v7711_v7 = vpack.c.bf16 %v7707_v31, %v7706_v9 }
0x3379   :  { %v11527_v54 = vpop.f32.mrf.mxu1 }
0x337a   :  { %v7720_v48 = vsel %vm1085_vm3, %v14967_v45, 0  ;;  %v7868_v50 = vmul.f32 %v14960_v6, %v7683_v29  ;;  %v7869_v37 = vmul.f32 %v14964_v61, %v7683_v29  ;;  %v7866_v2 = vmul.f32 %v14970_v16, %v7683_v29 }
0x337b   :  { %v7687_v36 = vpop.f32.mrf.mxu1  ;;  %11537 = vmatpush3.bf16.xpose.msra.mxu0 %v7720_v48  ;;  %v7867_v4 = vmul.f32 %v14978_v38, %v7683_v29  ;;  %v7717_v47 = vsel %vm1085_vm3, %v7711_v7, 0 }
0x337c   :  { %v14981_v49 = vadd.f32 %v10057_v63, %v7687_v36  ;;  %v14983_v18 = vpack.c.bf16 %v7869_v37, %v7868_v50  ;;  %11538 = vmatprep.subr.bf16.mxu0 %v12552_v41 }
0x337d   :  { %v11530_v33 = vpop.f32.mrf.mxu1  ;;  %v14994_v20 = vpack.c.bf16 %v7867_v4, %v7866_v2 }
0x337e   :  { %v7880_v56 = vsel %vm1085_vm3, %v14983_v18, 0 }
0x337f   :  { %v7690_v30 = vpop.f32.mrf.mxu1  ;;  %11561 = vmatpush3.bf16.xpose.msra.mxu1 %v7880_v56  ;;  %v7877_v32 = vsel %vm1085_vm3, %v14994_v20, 0 }
0x3380   :  { %v14990_v5 = vadd.f32 %v10057_v63, %v7690_v30  ;;  %11562 = vmatprep.subr.bf16.mxu1 %v12552_v41 }
0x3381   :  { %v11531_v60 = vpop.f32.mrf.mxu1 }
0x3383   :  { %v7695_v58 = vpop.f32.mrf.mxu1  ;;  %11539 = vmatpush3.bf16.xpose.msra.mxu0 %v7717_v47 }
0x3384   :  { %v14999_v59 = vadd.f32 %v10057_v63, %v7695_v58  ;;  %11544 = vmatprep.subr.bf16.mxu0 %v12552_v41 }
0x3385   :  { %v11534_v39 = vpop.f32.mrf.mxu1 }
0x3387   :  { %v7698_v1 = vpop.f32.mrf.mxu1  ;;  %11563 = vmatpush3.bf16.xpose.msra.mxu1 %v7877_v32 }
0x3388   :  { %11576 = vmatprep.subr.bf16.mxu1 %v12552_v41  ;;  %v7599_v1 = vadd.f32 %v14996_v23, %v14941_v62 }
0x3389   :  { %v11535_v28 = vpop.f32.mrf.mxu1 }
0x338e   :  { %11565 = vmatmul.mubr.msk.bf16.vlgmr.msra.gmra.mxu1 %vm1085_vm3, %v7870_v25 }
0x338f   :  { %11580 = vmatprep.mubr.msk.bf16.mxu1 %vm12554_vm0, %v12552_v41 }
0x33b0   :  { %v7482_v35 = vpop.xlane.xlu1 %7481 }
0x33b1   :  { %v7491_v11 = vmul.f32 0.03125, %v7482_v35 }
0x33b3   :  { %v7496_v63 = vadd.f32 1e-06, %v7491_v11 }
0x33b5   :  { %12105 = vrsqrt.f32 %v7496_v63 }
0x33c2   :  { %v12106_v54 = vpop.eup %12105 }
0x33c3   :  { %v7506_v9 = vmul.f32 %v12106_v54, %v14943_v40 }
0x33c5   :  { %v7515_v37 = vmul.f32 %v14898_v53, %v7506_v9 }
0x33fa   :  { %v7458_v10 = vpop.xlane.xlu0 %7457 }
0x33fb   :  { %v7463_v24 = vmul.f32 0.03125, %v7458_v10 }
0x33fd   :  { %v7468_v55 = vsub.f32 %v14952_v3, %v7463_v24  ;;  %v15015_v3 = vadd.f32 %v14902_v22, %v7515_v37 }
0x33fe   :  { %v7485_v14 = vpop.xlane.xlu0 %7484 }
0x33ff   :  { %v7492_v44 = vmul.f32 0.03125, %v7485_v14  ;;  %v7473_v13 = vmul.f32 %v7468_v55, %v7468_v55 }
0x3401   :  { %v7497_v15 = vadd.f32 1e-06, %v7492_v44  ;;  %v7486_v29 = vsel %vm1085_vm3, %v7473_v13, 0.0 }
0x3402   :  { %7487 = vadd.xlane.f32.xlu1 %v7486_v29 }
0x3403   :  { %12107 = vrsqrt.f32 %v7497_v15 }
0x3410   :  { %v12108_v48 = vpop.eup %12107 }
0x3411   :  { %v7507_v50 = vmul.f32 %v12108_v48, %v14948_v34 }
0x3413   :  { %v7516_v31 = vmul.f32 %v14898_v53, %v7507_v50 }
0x3415   :  { %v15018_v36 = vadd.f32 %v14902_v22, %v7516_v31 }
0x3417   :  { %v7533_v33 = vpack.c.bf16 %v15018_v36, %v15015_v3 }
0x3419   :  { %11513 = vmatmul.mubr.msk.bf16.gmra.mxu0 %vm1085_vm3, %v7533_v33 }
0x341a   :  { %11516 = vmatprep.mubr.msk.bf16.mxu0 %vm12554_vm0, %v12552_v41 }
0x344e   :  { %v15025_v40 = vpop.f32.mrf.mxu1 }
0x344f   :  { %v7922_v34 = vsel %vm1085_vm3, %v15025_v40, -inf }
0x3450   :  { %7923 = vmax.xlane.f32.xlu1 %v7922_v34  ;;  %v11566_v56 = vpop.f32.mrf.mxu1 }
0x3452   :  { %v7919_v2 = vpop.f32.mrf.mxu1 }
0x3454   :  { %v11567_v4 = vpop.f32.mrf.mxu1 }
0x3461   :  { %7817 = vrot.lane.b32.xlu1 %v7711_v7, %s12556_s18  ;;  %v7701_v7 = vmul.f32 0.35355338, %v7599_v1 }
0x3463   :  { %v7710_v28 = vpack.c.bf16 %v7701_v7, %v7701_v7  ;;  %v8027_v7 = vmul.f32 %v14978_v38, %v14981_v49 }
0x348b   :  { %v7488_v30 = vpop.xlane.xlu1 %7487 }
0x348c   :  { %v7493_v60 = vmul.f32 0.03125, %v7488_v30 }
0x348e   :  { %v7498_v47 = vadd.f32 1e-06, %v7493_v60 }
0x3490   :  { %12109 = vrsqrt.f32 %v7498_v47 }
0x349d   :  { %v12110_v58 = vpop.eup %12109 }
0x349e   :  { %v7508_v12 = vmul.f32 %v12110_v58, %v7468_v55  ;;  %v8028_v58 = vmul.f32 %v14960_v6, %v14981_v49 }
0x34a0   :  { %v7517_v39 = vmul.f32 %v14898_v53, %v7508_v12  ;;  %v8029_v12 = vmul.f32 %v14964_v61, %v14981_v49 }
0x34a2   :  { %v15032_v32 = vadd.f32 %v14902_v22, %v7517_v39  ;;  %v15080_v39 = vpack.c.bf16 %v8029_v12, %v8028_v58  ;;  %v15152_v58 = vld [vmem:[%s12721_s8 + $0x8] sm:$0xff]  }
0x34a4   :  { %v7534_v8 = vpack.c.bf16 %v15032_v32, %v15032_v32 }
0x34a6   :  { %11517 = vmatmul.mubr.msk.bf16.gmra.mxu0 %vm1085_vm3, %v7534_v8  ;;  %v8026_v8 = vmul.f32 %v14970_v16, %v14981_v49  ;;  %v8189_v49 = vmul.f32 %v14964_v61, %v14990_v5 }
0x34a7   :  { %11540 = vmatprep.mubr.msk.bf16.mxu0 %vm12554_vm0, %v12552_v41 }
0x34ae   :  { %11541 = vmatmul.mubr.msk.bf16.vlgmr.msra.gmra.mxu0 %vm1085_vm3, %v7710_v28 }
0x34af   :  { %11545 = vmatpush3.bf16.msra.mxu0 %v14767_v21  ;;  %11548 = vmatprep.mubr.msk.bf16.mxu0 %vm12554_vm0, %v12552_v41 }
0x34b0   :  { %11546 = vmatprep.subr.bf16.mxu0 %v12552_v41 }
0x34b3   :  { %11547 = vmatpush3.bf16.msra.mxu0 %v14774_v19 }
0x34b4   :  { %11552 = vmatprep.subr.bf16.mxu0 %v12552_v41 }
0x34d9   :  { %v15048_v53 = vpop.f32.mrf.mxu0  ;;  %v7924_v37 = vpop.xlane.xlu1 %7923 }
0x34da   :  { %v7925_v33 = vsub.f32 %v15025_v40, %v7924_v37  ;;  %v7607_v28 = vadd.f32 %v14996_v23, %v15048_v53 }
0x34db   :  { %v11514_v22 = vpop.f32.mrf.mxu0 }
0x34dc   :  { %v7926_v2 = vmul.f32 1.442695, %v7925_v33 }
0x34dd   :  { %v15050_v62 = vpop.f32.mrf.mxu0 }
0x34df   :  { %v11515_v25 = vpop.f32.mrf.mxu0 }
0x34e0   :  { %v8188_v25 = vmul.f32 %v14960_v6, %v14990_v5 }
0x3566   :  { %v15052_v35 = vpop.f32.mrf.mxu0 }
0x3568   :  { %v11518_v11 = vpop.f32.mrf.mxu0 }
0x3569   :  { %v7703_v11 = vmul.f32 0.35355338, %v7607_v28 }
0x356a   :  { %v7617_v63 = vpop.f32.mrf.mxu0 }
0x356b   :  { %v15107_v63 = vpack.c.bf16 %v8189_v49, %v8188_v25 }
0x356c   :  { %v11519_v10 = vpop.f32.mrf.mxu0 }
0x356d   :  { %v8030_v10 = vpack.c.bf16 %v7703_v11, %v7703_v11  ;;  %v8200_v53 = vsel %vm1085_vm3, %v15107_v63, 0 }
0x356e   :  { %v7756_v24 = vpop.f32.mrf.mxu0 }
0x356f   :  { %v7762_v55 = vsel %vm1085_vm3, %v7756_v24, -inf }
0x3570   :  { %7763 = vmax.xlane.f32.xlu0 %v7762_v55  ;;  %v11542_v14 = vpop.f32.mrf.mxu0  ;;  %v8187_v55 = vmul.f32 %v14978_v38, %v14990_v5 }
0x3572   :  { %v7759_v44 = vpop.f32.mrf.mxu0 }
0x3573   :  { %v7610_v44 = vadd.f32 %v14996_v23, %v15050_v62  ;;  %v8346_v62 = vmul.f32 %v14970_v16, %v14999_v59 }
0x3574   :  { %v11543_v13 = vpop.f32.mrf.mxu0 }
0x3586   :  { %7819 = vrot.lane.b32.xlu0 %v14967_v45, %s12556_s18 }
0x358a   :  { %7979 = vrot.lane.b32.xlu0 %v14983_v18, %s12556_s18  ;;  %v7818_v18 = vpop.permute.xlu1 %7817 }
0x358e   :  { %7977 = vrot.lane.b32.xlu0 %v14994_v20, %s12556_s18 }
0x35f9   :  { %v7764_v15 = vpop.xlane.xlu0 %7763 }
0x35fa   :  { %v7765_v29 = vsub.f32 %v7756_v24, %v7764_v15  ;;  %v8186_v24 = vmul.f32 %v14970_v16, %v14990_v5  ;;  %v8348_v15 = vmul.f32 %v14960_v6, %v14999_v59  ;;  %v8349_v5 = vmul.f32 %v14964_v61, %v14999_v59 }
0x35fb   :  { %v7615_v61 = vadd.f32 %v14996_v23, %v15052_v35 }
0x35fc   :  { %v7766_v54 = vmul.f32 1.442695, %v7765_v29  ;;  %v15119_v14 = vpack.c.bf16 %v8187_v55, %v8186_v24  ;;  %v7704_v29 = vmul.f32 0.35355338, %v7610_v44 }
0x35fd   :  { %v7820_v9 = vpop.permute.xlu0 %7819  ;;  %v7705_v37 = vmul.f32 0.35355338, %v7615_v61 }
0x35fe   :  { %12111 = vpow2.f32 %v7766_v54  ;;  %v8197_v13 = vsel %vm1085_vm3, %v15119_v14, 0  ;;  %v8352_v54 = vpack.c.bf16 %v8349_v5, %v8348_v15 }
0x35ff   :  { %v8350_v16 = vpack.c.bf16 %v7705_v37, %v7705_v37 }
0x3601   :  { %v7980_v48 = vpop.permute.xlu0 %7979 }
0x3602   :  { %11577 = vmatpush3.bf16.msra.mxu1 %v7980_v48  ;;  %v8360_v48 = vsel %vm1085_vm3, %v8352_v54, 0 }
0x3603   :  { %11578 = vmatprep.subr.bf16.mxu1 %v12552_v41 }
0x3605   :  { %v7978_v50 = vpop.permute.xlu0 %7977 }
0x3606   :  { %11579 = vmatpush3.bf16.msra.mxu1 %v7978_v50  ;;  %v8347_v50 = vmul.f32 %v14978_v38, %v14999_v59 }
0x3607   :  { %11592 = vmatprep.subr.bf16.mxu1 %v12552_v41 }
0x3608   :  { %v8351_v6 = vpack.c.bf16 %v8347_v50, %v8346_v62 }
0x360b   :  { %v12112_v45 = vpop.eup %12111 }
0x360c   :  { %v7768_v31 = vpack.c.bf16 %v12112_v45, %v12112_v45 }
0x360e   :  { %11549 = vmatmul.mubr.msk.bf16.vlgmr.msra.gmra.mxu0 %vm1085_vm3, %v7768_v31 }
0x360f   :  { %11553 = vmatpush3.bf16.msra.mxu0 %v7820_v9  ;;  %11556 = vmatprep.mubr.msk.bf16.mxu0 %vm12554_vm0, %v12552_v41  ;;  %v8190_v9 = vpack.c.bf16 %v7704_v29, %v7704_v29 }
0x3610   :  { %11554 = vmatprep.subr.bf16.mxu0 %v12552_v41 }
0x3613   :  { %11555 = vmatpush3.bf16.msra.mxu0 %v7818_v18 }
0x3614   :  { %11568 = vmatprep.subr.bf16.mxu0 %v12552_v41 }
0x36ce   :  { %v7806_v20 = vpop.f32.mrf.mxu0 }
0x36cf   :  { %12113 = vrcp.f32 %v7806_v20 }
0x36d0   :  { %v11550_v34 = vpop.f32.mrf.mxu0  ;;  %12115 = vpow2.f32 %v7926_v2 }
0x36d2   :  { %v7809_v56 = vpop.f32.mrf.mxu0 }
0x36d4   :  { %v11551_v4 = vpop.f32.mrf.mxu0 }
0x36dc   :  { %v12114_v30 = vpop.eup %12113 }
0x36dd   :  { %v7813_v60 = vmul.f32 %v12114_v30, %v12112_v45  ;;  %v15078_v40 = vpop.eup %12115  ;;  %v8357_v45 = vsel %vm1085_vm3, %v8351_v6, 0 }
0x36de   :  { %v7928_v1 = vpack.c.bf16 %v15078_v40, %v15078_v40 }
0x36df   :  { %v7814_v47 = vpack.c.bf16 %v7813_v60, %v7813_v60 }
0x36e1   :  { %11557 = vmatmul.mubr.msk.bf16.vlgmr.msra.gmra.mxu0 %vm1085_vm3, %v7814_v47 }
0x36e2   :  { %11569 = vmatpush3.bf16.msra.mxu0 %v14767_v21  ;;  %11572 = vmatprep.mubr.msk.bf16.mxu0 %vm12554_vm0, %v12552_v41  ;;  %v8040_v21 = vsel %vm1085_vm3, %v15080_v39, 0 }
0x36e3   :  { %11570 = vmatprep.subr.bf16.mxu0 %v12552_v41 }
0x36e6   :  { %11571 = vmatpush3.bf16.msra.mxu0 %v14774_v19  ;;  %v15096_v19 = vpack.c.bf16 %v8027_v7, %v8026_v8 }
0x36e7   :  { %11584 = vmatprep.subr.bf16.mxu0 %v12552_v41 }
0x36e8   :  { %v8037_v22 = vsel %vm1085_vm3, %v15096_v19, 0 }
0x36e9   :  { %11573 = vmatmul.mubr.msk.bf16.vlgmr.msra.gmra.mxu0 %vm1085_vm3, %v7928_v1 }
0x36ea   :  { %11585 = vmatpush3.bf16.xpose.msra.mxu0 %v8040_v21  ;;  %11588 = vmatprep.mubr.msk.bf16.mxu0 %vm12554_vm0, %v12552_v41 }
0x36eb   :  { %11586 = vmatprep.subr.bf16.mxu0 %v12552_v41 }
0x36f2   :  { %11587 = vmatpush3.bf16.xpose.msra.mxu0 %v8037_v22 }
0x36f3   :  { %11608 = vmatprep.subr.bf16.mxu0 %v12552_v41 }
0x36f9   :  { %11589 = vmatmul.mubr.msk.bf16.vlgmr.msra.gmra.mxu0 %vm1085_vm3, %v8030_v10  ;;  %v11863_v10 = vld [vmem:[%s15635_s14 + $0x18] sm:$0xff]  }
0x36fa   :  { %11609 = vmatpush3.bf16.xpose.msra.mxu0 %v8200_v53  ;;  %11612 = vmatprep.mubr.msk.bf16.mxu0 %vm12554_vm0, %v12552_v41  ;;  %v11864_v53 = vld [vmem:[%s15635_s14 + $0x10] sm:$0xff]  }
0x36fb   :  { %11610 = vmatprep.subr.bf16.mxu0 %v12552_v41 }
0x3702   :  { %11611 = vmatpush3.bf16.xpose.msra.mxu0 %v8197_v13 }
0x3703   :  { %11632 = vmatprep.subr.bf16.mxu0 %v12552_v41 }
0x3709   :  { %11613 = vmatmul.mubr.msk.bf16.vlgmr.msra.gmra.mxu0 %vm1085_vm3, %v8190_v9 }
0x370a   :  { %11633 = vmatpush3.bf16.xpose.msra.mxu0 %v8360_v48  ;;  %11636 = vmatprep.mubr.msk.bf16.mxu0 %vm12554_vm0, %v12552_v41 }
0x370b   :  { %11634 = vmatprep.subr.bf16.mxu0 %v12552_v41 }
0x3712   :  { %11635 = vmatpush3.bf16.xpose.msra.mxu0 %v8357_v45 }
0x3713   :  { %11656 = vmatprep.subr.bf16.mxu0 %v12552_v41 }
0x3719   :  { %11637 = vmatmul.mubr.msk.bf16.vlgmr.msra.gmra.mxu0 %vm1085_vm3, %v8350_v16 }
0x371a   :  { %11660 = vmatprep.mubr.msk.bf16.mxu0 %vm12554_vm0, %v12552_v41  ;;  %11657 = vmatpush3.bf16.msra.mxu0 %v11863_v10 }
0x371b   :  { %11658 = vmatprep.subr.bf16.mxu0 %v12552_v41 }
0x371e   :  { %11659 = vmatpush3.bf16.msra.mxu0 %v11864_v53 }
0x371f   :  { %11688 = vmatprep.subr.bf16.mxu0 %v12552_v41 }
0x37a1   :  { %v15146_v38 = vpop.f32.mrf.mxu0 }
0x37a3   :  { %v11558_v59 = vpop.f32.mrf.mxu0 }
0x37a5   :  { %v7863_v31 = vpop.f32.mrf.mxu0 }
0x37a7   :  { %v11559_v18 = vpop.f32.mrf.mxu0 }
0x37a9   :  { %v7966_v20 = vpop.f32.mrf.mxu0 }
0x37aa   :  { %12117 = vrcp.f32 %v7966_v20 }
0x37ab   :  { %v11574_v23 = vpop.f32.mrf.mxu0 }
0x37ad   :  { %v7969_v35 = vpop.f32.mrf.mxu0 }
0x37ae   :  { %v15203_v35 = vld [vmem:[#allocation17 + $0x1] ss:$0 sm:$0xff] }
0x37af   :  { %v11575_v33 = vpop.f32.mrf.mxu0 }
0x37b7   :  { %v12118_v34 = vpop.eup %12117 }
0x37b8   :  { %v7973_v56 = vmul.f32 %v12118_v34, %v15078_v40  ;;  %v15159_v40 = vld [vmem:[%s12721_s8] sm:$0xff]  }
0x37b9   :  { %v8076_v2 = vpop.f32.mrf.mxu0 }
0x37ba   :  { %v7974_v4 = vpack.c.bf16 %v7973_v56, %v7973_v56  ;;  %v8082_v30 = vsel %vm1085_vm3, %v8076_v2, -inf }
0x37bb   :  { %8083 = vmax.xlane.f32.xlu1 %v8082_v30  ;;  %v11590_v60 = vpop.f32.mrf.mxu0 }
0x37bc   :  { %11581 = vmatmul.mubr.msk.bf16.vlgmr.msra.gmra.mxu1 %vm1085_vm3, %v7974_v4 }
0x37bd   :  { %v8079_v47 = vpop.f32.mrf.mxu0  ;;  %11593 = vmatpush3.bf16.msra.mxu1 %v15152_v58  ;;  %11596 = vmatprep.mubr.msk.bf16.mxu1 %vm12554_vm0, %v12552_v41 }
0x37be   :  { %11594 = vmatprep.subr.bf16.mxu1 %v12552_v41 }
0x37bf   :  { %v11591_v12 = vpop.f32.mrf.mxu0 }
0x37c1   :  { %11595 = vmatpush3.bf16.msra.mxu1 %v15159_v40 }
0x37c2   :  { %11600 = vmatprep.subr.bf16.mxu1 %v12552_v41 }
0x37c9   :  { %v8236_v1 = vpop.f32.mrf.mxu0 }
0x37ca   :  { %v8242_v21 = vsel %vm1085_vm3, %v8236_v1, -inf }
0x37cb   :  { %8243 = vmax.xlane.f32.xlu0 %v8242_v21  ;;  %v11614_v8 = vpop.f32.mrf.mxu0 }
0x37cc   :  { %8139 = vrot.lane.b32.xlu1 %v15080_v39, %s12556_s18 }
0x37cd   :  { %v8239_v7 = vpop.f32.mrf.mxu0 }
0x37cf   :  { %v11615_v28 = vpop.f32.mrf.mxu0 }
0x37d9   :  { %v15166_v22 = vpop.f32.mrf.mxu0 }
0x37da   :  { %v8402_v39 = vsel %vm1085_vm3, %v15166_v22, -inf }
0x37db   :  { %v11638_v25 = vpop.f32.mrf.mxu0 }
0x37dd   :  { %v8399_v49 = vpop.f32.mrf.mxu0 }
0x37df   :  { %v11639_v11 = vpop.f32.mrf.mxu0 }
0x37e1   :  { %8137 = vrot.lane.b32.xlu0 %v15096_v19, %s12556_s18 }
0x37e5   :  { %8299 = vrot.lane.b32.xlu0 %v15107_v63, %s12556_s18 }
0x37e9   :  { %8297 = vrot.lane.b32.xlu0 %v15119_v14, %s12556_s18 }
0x37ed   :  { %8459 = vrot.lane.b32.xlu0 %v8352_v54, %s12556_s18 }
0x37f0   :  { %8403 = vmax.xlane.f32.xlu1 %v8402_v39 }
0x37f1   :  { %8457 = vrot.lane.b32.xlu0 %v8351_v6, %s12556_s18 }
0x3844   :  { %v8084_v19 = vpop.xlane.xlu1 %8083 }
0x3845   :  { %v8085_v63 = vsub.f32 %v8076_v2, %v8084_v19 }
0x3847   :  { %v8086_v24 = vmul.f32 1.442695, %v8085_v63 }
0x3848   :  { %v8140_v13 = vpop.permute.xlu1 %8139 }
0x3849   :  { %12119 = vpow2.f32 %v8086_v24 }
0x3854   :  { %v8244_v44 = vpop.xlane.xlu0 %8243 }
0x3855   :  { %v8245_v50 = vsub.f32 %v8236_v1, %v8244_v44 }
0x3856   :  { %v12120_v55 = vpop.eup %12119 }
0x3857   :  { %v8088_v14 = vpack.c.bf16 %v12120_v55, %v12120_v55  ;;  %v8246_v45 = vmul.f32 1.442695, %v8245_v50 }
0x3858   :  { %v8138_v15 = vpop.permute.xlu0 %8137 }
0x3859   :  { %11597 = vmatmul.mubr.msk.bf16.vlgmr.msra.gmra.mxu1 %vm1085_vm3, %v8088_v14 }
0x385a   :  { %11601 = vmatpush3.bf16.msra.mxu1 %v8140_v13  ;;  %11604 = vmatprep.mubr.msk.bf16.mxu1 %vm12554_vm0, %v12552_v41 }
0x385b   :  { %11602 = vmatprep.subr.bf16.mxu1 %v12552_v41 }
0x385c   :  { %v8300_v20 = vpop.permute.xlu0 %8299 }
0x385e   :  { %11603 = vmatpush3.bf16.msra.mxu1 %v8138_v15 }
0x385f   :  { %11616 = vmatprep.subr.bf16.mxu1 %v12552_v41 }
0x3860   :  { %v8298_v23 = vpop.permute.xlu0 %8297 }
0x387c   :  { %v8020_v5 = vpop.f32.mrf.mxu1 }
0x387d   :  { %v8511_v29 = vpack.c.bf16 %v8020_v5, %v15146_v38 }
0x387e   :  { %v11582_v54 = vpop.f32.mrf.mxu1 }
0x387f   :  { %11661 = vmatmul.mubr.msk.bf16.vlgmr.msra.gmra.mxu0 %vm1085_vm3, %v8511_v29 }
0x3880   :  { %v8023_v9 = vpop.f32.mrf.mxu1  ;;  %11664 = vmatprep.mubr.msk.bf16.mxu0 %vm12554_vm0, %v12552_v41 }
0x3882   :  { %v11583_v48 = vpop.f32.mrf.mxu1 }
0x3919   :  { %v8126_v62 = vpop.f32.mrf.mxu1 }
0x391a   :  { %12121 = vrcp.f32 %v8126_v62 }
0x391b   :  { %v11598_v6 = vpop.f32.mrf.mxu1  ;;  %12123 = vpow2.f32 %v8246_v45 }
0x391d   :  { %v8129_v61 = vpop.f32.mrf.mxu1 }
0x391f   :  { %v11599_v37 = vpop.f32.mrf.mxu1 }
0x3927   :  { %v12122_v16 = vpop.eup %12121 }
0x3928   :  { %v8133_v59 = vmul.f32 %v12122_v16, %v12120_v55  ;;  %v12124_v38 = vpop.eup %12123 }
0x3929   :  { %v8248_v18 = vpack.c.bf16 %v12124_v38, %v12124_v38 }
0x392a   :  { %v8134_v31 = vpack.c.bf16 %v8133_v59, %v8133_v59 }
0x392c   :  { %11605 = vmatmul.mubr.msk.bf16.vlgmr.msra.gmra.mxu1 %vm1085_vm3, %v8134_v31 }
0x392d   :  { %11617 = vmatpush3.bf16.msra.mxu1 %v15152_v58  ;;  %11620 = vmatprep.mubr.msk.bf16.mxu1 %vm12554_vm0, %v12552_v41 }
0x392e   :  { %11618 = vmatprep.subr.bf16.mxu1 %v12552_v41 }
0x3931   :  { %11619 = vmatpush3.bf16.msra.mxu1 %v15159_v40 }
0x3932   :  { %11624 = vmatprep.subr.bf16.mxu1 %v12552_v41 }
0x3934   :  { %11621 = vmatmul.mubr.msk.bf16.vlgmr.msra.gmra.mxu1 %vm1085_vm3, %v8248_v18 }
0x3935   :  { %11625 = vmatpush3.bf16.msra.mxu1 %v8300_v20  ;;  %11628 = vmatprep.mubr.msk.bf16.mxu1 %vm12554_vm0, %v12552_v41 }
0x3936   :  { %11626 = vmatprep.subr.bf16.mxu1 %v12552_v41 }
0x3939   :  { %11627 = vmatpush3.bf16.msra.mxu1 %v8298_v23 }
0x393a   :  { %11640 = vmatprep.subr.bf16.mxu1 %v12552_v41 }
0x393f   :  { %v8577_v33 = vpop.f32.mrf.mxu0 }
0x3940   :  { %v8578_v34 = vadd.f32 %v15203_v35, %v8577_v33 }
0x3941   :  { %v11662_v56 = vpop.f32.mrf.mxu0 }
0x3942   :  { %v15207_v2 = vadd.f32 %v8578_v34, %v14906_v26  ;;  %v8404_v26 = vpop.xlane.xlu1 %8403 }
0x3943   :  { %v8580_v4 = vpop.f32.mrf.mxu0  ;;  %v8405_v49 = vsub.f32 %v15166_v22, %v8404_v26  ;;  %v8460_v22 = vpop.permute.xlu0 %8459 }
0x3944   :  { %v8581_v30 = vadd.f32 %v15203_v35, %v8580_v4  ;;  %v8604_v60 = vsel %vm1085_vm3, %v15207_v2, 0.0 }
0x3945   :  { %8605 = vadd.xlane.f32.xlu0 %v8604_v60  ;;  %v11663_v47 = vpop.f32.mrf.mxu0  ;;  %v8406_v39 = vmul.f32 1.442695, %v8405_v49 }
0x3946   :  { %v15213_v12 = vadd.f32 %v8581_v30, %v14909_v42 }
0x3948   :  { %v8607_v1 = vsel %vm1085_vm3, %v15213_v12, 0.0 }
0x3949   :  { %8608 = vadd.xlane.f32.xlu1 %v8607_v1 }
0x39ec   :  { %v8180_v21 = vpop.f32.mrf.mxu1 }
0x39ee   :  { %v11606_v8 = vpop.f32.mrf.mxu1 }
0x39f0   :  { %v8183_v7 = vpop.f32.mrf.mxu1 }
0x39f2   :  { %v11607_v28 = vpop.f32.mrf.mxu1 }
0x39f4   :  { %v8286_v25 = vpop.f32.mrf.mxu1 }
0x39f5   :  { %12125 = vrcp.f32 %v8286_v25 }
0x39f6   :  { %v11622_v11 = vpop.f32.mrf.mxu1  ;;  %12127 = vpow2.f32 %v8406_v39 }
0x39f8   :  { %v8289_v10 = vpop.f32.mrf.mxu1 }
0x39fa   :  { %v11623_v53 = vpop.f32.mrf.mxu1 }
0x3a02   :  { %v12126_v42 = vpop.eup %12125 }
0x3a03   :  { %v8293_v19 = vmul.f32 %v12126_v42, %v12124_v38  ;;  %v12128_v24 = vpop.eup %12127 }
0x3a04   :  { %v8408_v55 = vpack.c.bf16 %v12128_v24, %v12128_v24 }
0x3a05   :  { %v8294_v63 = vpack.c.bf16 %v8293_v19, %v8293_v19 }
0x3a07   :  { %11629 = vmatmul.mubr.msk.bf16.vlgmr.msra.gmra.mxu1 %vm1085_vm3, %v8294_v63 }
0x3a08   :  { %11641 = vmatpush3.bf16.msra.mxu1 %v15152_v58  ;;  %11644 = vmatprep.mubr.msk.bf16.mxu1 %vm12554_vm0, %v12552_v41  ;;  %v8458_v58 = vpop.permute.xlu0 %8457 }
0x3a09   :  { %11642 = vmatprep.subr.bf16.mxu1 %v12552_v41 }
0x3a0c   :  { %11643 = vmatpush3.bf16.msra.mxu1 %v15159_v40  ;;  %v8606_v6 = vpop.xlane.xlu0 %8605 }
0x3a0d   :  { %11648 = vmatprep.subr.bf16.mxu1 %v12552_v41  ;;  %v8619_v45 = vmul.f32 0.03125, %v8606_v6 }
0x3a0f   :  { %11645 = vmatmul.mubr.msk.bf16.vlgmr.msra.gmra.mxu1 %vm1085_vm3, %v8408_v55  ;;  %v15239_v38 = vsub.f32 %v15207_v2, %v8619_v45 }
0x3a10   :  { %11649 = vmatpush3.bf16.msra.mxu1 %v8460_v22  ;;  %11652 = vmatprep.mubr.msk.bf16.mxu1 %vm12554_vm0, %v12552_v41 }
0x3a11   :  { %11650 = vmatprep.subr.bf16.mxu1 %v12552_v41  ;;  %v8629_v56 = vmul.f32 %v15239_v38, %v15239_v38 }
0x3a14   :  { %11651 = vmatpush3.bf16.msra.mxu1 %v8458_v58 }
0x3a15   :  { %11672 = vmatprep.subr.bf16.mxu1 %v12552_v41 }
0x3ac7   :  { %v8340_v14 = vpop.f32.mrf.mxu1 }
0x3ac8   :  { %v8512_v44 = vpack.c.bf16 %v8340_v14, %v8180_v21 }
0x3ac9   :  { %v11630_v13 = vpop.f32.mrf.mxu1 }
0x3aca   :  { %11665 = vmatmul.mubr.msk.bf16.gmra.mxu0 %vm1085_vm3, %v8512_v44  ;;  %v11865_v44 = vld [vmem:[%s15636_s21 + $0x18] sm:$0xff]  }
0x3acb   :  { %v8343_v40 = vpop.f32.mrf.mxu1  ;;  %11668 = vmatprep.mubr.msk.bf16.mxu0 %vm12554_vm0, %v12552_v41 }
0x3acd   :  { %v11631_v15 = vpop.f32.mrf.mxu1 }
0x3acf   :  { %v8446_v5 = vpop.f32.mrf.mxu1 }
0x3ad0   :  { %12129 = vrcp.f32 %v8446_v5 }
0x3ad1   :  { %v11646_v29 = vpop.f32.mrf.mxu1 }
0x3ad3   :  { %v8449_v54 = vpop.f32.mrf.mxu1 }
0x3ad5   :  { %v11647_v9 = vpop.f32.mrf.mxu1 }
0x3add   :  { %v12130_v48 = vpop.eup %12129 }
0x3ade   :  { %v8453_v62 = vmul.f32 %v12130_v48, %v12128_v24 }
0x3ae0   :  { %v8454_v50 = vpack.c.bf16 %v8453_v62, %v8453_v62 }
0x3ae2   :  { %11653 = vmatmul.mubr.msk.bf16.vlgmr.msra.gmra.mxu1 %vm1085_vm3, %v8454_v50 }
0x3ae3   :  { %11676 = vmatprep.mubr.msk.bf16.mxu1 %vm12554_vm0, %v12552_v41  ;;  %11673 = vmatpush3.bf16.msra.mxu1 %v11865_v44 }
0x3ae4   :  { %11674 = vmatprep.subr.bf16.mxu1 %v12552_v41 }
0x3b8a   :  { %v8585_v61 = vpop.f32.mrf.mxu0 }
0x3b8b   :  { %v8586_v37 = vadd.f32 %v15203_v35, %v8585_v61 }
0x3b8c   :  { %v11666_v16 = vpop.f32.mrf.mxu0 }
0x3b8d   :  { %v8601_v59 = vadd.f32 %v8586_v37, %v15015_v3  ;;  %v8634_v3 = vsel %vm1085_vm3, %v8629_v56, 0.0 }
0x3b8e   :  { %v8588_v31 = vpop.f32.mrf.mxu0 }
0x3b8f   :  { %v8589_v18 = vadd.f32 %v15203_v35, %v8588_v31  ;;  %v8610_v20 = vsel %vm1085_vm3, %v8601_v59, 0.0 }
0x3b90   :  { %8611 = vadd.xlane.f32.xlu1 %v8610_v20  ;;  %v11667_v23 = vpop.f32.mrf.mxu0 }
0x3b91   :  { %v8602_v33 = vadd.f32 %v8589_v18, %v15018_v36  ;;  %v8609_v36 = vpop.xlane.xlu1 %8608  ;;  %v15263_v18 = vld [vmem:[%s15633_s2 + $0x8] sm:$0x3f] }
0x3b92   :  { %v8620_v28 = vmul.f32 0.03125, %v8609_v36  ;;  %v8672_v20 = vrot.slane %v15263_v18, %v13416_v27 }
0x3b93   :  { %v8613_v34 = vsel %vm1085_vm3, %v8602_v33, 0.0 }
0x3b94   :  { %8614 = vadd.xlane.f32.xlu1 %v8613_v34  ;;  %v8625_v11 = vsub.f32 %v15213_v12, %v8620_v28 }
0x3b96   :  { %v8630_v22 = vmul.f32 %v8625_v11, %v8625_v11 }
0x3b98   :  { %8635 = vadd.xlane.f32.xlu1 %v8634_v3  ;;  %v8637_v58 = vsel %vm1085_vm3, %v8630_v22, 0.0  ;;  %v8681_v3 = vrot.slane %v15263_v18, %v13419_v57 }
0x3ba2   :  { %v8500_v4 = vpop.f32.mrf.mxu1 }
0x3ba3   :  { %v8513_v2 = vpack.c.bf16 %v8500_v4, %v8500_v4 }
0x3ba4   :  { %v11654_v30 = vpop.f32.mrf.mxu1 }
0x3ba5   :  { %11669 = vmatmul.mubr.msk.bf16.gmra.mxu0 %vm1085_vm3, %v8513_v2 }
0x3ba6   :  { %v8503_v60 = vpop.f32.mrf.mxu1  ;;  %11696 = vmatprep.mubr.msk.bf16.mxu0 %vm12554_vm0, %v12552_v41 }
0x3ba8   :  { %v11655_v47 = vpop.f32.mrf.mxu1 }
0x3c19   :  { %v8612_v1 = vpop.xlane.xlu1 %8611 }
0x3c1a   :  { %v8621_v21 = vmul.f32 0.03125, %v8612_v1 }
0x3c1c   :  { %v8626_v8 = vsub.f32 %v8601_v59, %v8621_v21 }
0x3c1d   :  { %v8615_v25 = vpop.xlane.xlu1 %8614 }
0x3c1e   :  { %v8631_v7 = vmul.f32 %v8626_v8, %v8626_v8  ;;  %v8622_v10 = vmul.f32 0.03125, %v8615_v25  ;;  %v11867_v25 = vld [vmem:[%s15637_s7 + $0x38] sm:$0xff]  }
0x3c1f   :  { %11689 = vmatpush3.bf16.msra.mxu0 %v11867_v25 }
0x3c20   :  { %v8640_v26 = vsel %vm1085_vm3, %v8631_v7, 0.0  ;;  %v8627_v63 = vsub.f32 %v8602_v33, %v8622_v10  ;;  %11690 = vmatprep.subr.bf16.mxu0 %v12552_v41  ;;  %v11870_v10 = vld [vmem:[%s15637_s7 + $0x20] sm:$0xff]  }
0x3c21   :  { %8641 = vadd.xlane.f32.xlu0 %v8640_v26 }
0x3c22   :  { %v8632_v14 = vmul.f32 %v8627_v63, %v8627_v63 }
0x3c24   :  { %v8643_v12 = vsel %vm1085_vm3, %v8632_v14, 0.0 }
0x3c65   :  { %v8593_v49 = vpop.f32.mrf.mxu0 }
0x3c66   :  { %v8594_v39 = vadd.f32 %v15203_v35, %v8593_v49  ;;  %v11866_v35 = vld [vmem:[%s15636_s21 + $0x10] sm:$0xff]  }
0x3c67   :  { %v11670_v53 = vpop.f32.mrf.mxu0  ;;  %11675 = vmatpush3.bf16.msra.mxu1 %v11866_v35  ;;  %v11868_v49 = vld [vmem:[%s15637_s7 + $0x30] sm:$0xff]  }
0x3c68   :  { %v8603_v42 = vadd.f32 %v8594_v39, %v15032_v32  ;;  %v8636_v32 = vpop.xlane.xlu1 %8635  ;;  %11691 = vmatpush3.bf16.msra.mxu0 %v11868_v49 }
0x3c69   :  { %v8596_v19 = vpop.f32.mrf.mxu0  ;;  %v8649_v13 = vmul.f32 0.03125, %v8636_v32  ;;  %11692 = vmatprep.subr.bf16.mxu0 %v12552_v41 }
0x3c6a   :  { %v8616_v24 = vsel %vm1085_vm3, %v8603_v42, 0.0 }
0x3c6b   :  { %8617 = vadd.xlane.f32.xlu1 %v8616_v24  ;;  %v11671_v55 = vpop.f32.mrf.mxu0  ;;  %v8654_v40 = vadd.f32 1e-06, %v8649_v13 }
0x3c6d   :  { %12131 = vrsqrt.f32 %v8654_v40 }
0x3c6f   :  { %8638 = vadd.xlane.f32.xlu1 %v8637_v58  ;;  %v10092_v58 = vld [vmem:[#allocation19 + $0x1] ss:$0 sm:$0xff] }
0x3c73   :  { %8644 = vadd.xlane.f32.xlu1 %v8643_v12 }
0x3c7a   :  { %v12132_v31 = vpop.eup %12131 }
0x3c7b   :  { %v8664_v23 = vmul.f32 %v12132_v31, %v15239_v38 }
0x3c7d   :  { %v8673_v34 = vmul.f32 %v8672_v20, %v8664_v23 }
0x3c7f   :  { %v15270_v36 = vadd.f32 %v8681_v3, %v8673_v34 }
0x3caa   :  { %v8642_v15 = vpop.xlane.xlu0 %8641 }
0x3cab   :  { %v8651_v54 = vmul.f32 0.03125, %v8642_v15 }
0x3cad   :  { %v8656_v6 = vadd.f32 1e-06, %v8651_v54 }
0x3cf4   :  { %v8618_v5 = vpop.xlane.xlu1 %8617 }
0x3cf5   :  { %v8623_v29 = vmul.f32 0.03125, %v8618_v5 }
0x3cf7   :  { %v8628_v9 = vsub.f32 %v8603_v42, %v8623_v29 }
0x3cf8   :  { %v8639_v48 = vpop.xlane.xlu1 %8638 }
0x3cf9   :  { %v8650_v62 = vmul.f32 0.03125, %v8639_v48  ;;  %v8633_v50 = vmul.f32 %v8628_v9, %v8628_v9 }
0x3cfb   :  { %v8655_v61 = vadd.f32 1e-06, %v8650_v62  ;;  %v8646_v45 = vsel %vm1085_vm3, %v8633_v50, 0.0 }
0x3cfc   :  { %8647 = vadd.xlane.f32.xlu0 %v8646_v45  ;;  %v8645_v37 = vpop.xlane.xlu1 %8644 }
0x3cfd   :  { %12133 = vrsqrt.f32 %v8655_v61  ;;  %v8652_v16 = vmul.f32 0.03125, %v8645_v37 }
0x3cfe   :  { %12135 = vrsqrt.f32 %v8656_v6 }
0x3cff   :  { %v8657_v59 = vadd.f32 1e-06, %v8652_v16 }
0x3d01   :  { %12137 = vrsqrt.f32 %v8657_v59 }
0x3d0a   :  { %v12134_v33 = vpop.eup %12133 }
0x3d0b   :  { %v8665_v56 = vmul.f32 %v12134_v33, %v8625_v11  ;;  %v12136_v4 = vpop.eup %12135  ;;  %v11869_v11 = vld [vmem:[%s15637_s7 + $0x28] sm:$0xff]  }
0x3d0c   :  { %v8666_v60 = vmul.f32 %v12136_v4, %v8626_v8  ;;  %11693 = vmatpush3.bf16.msra.mxu0 %v11869_v11 }
0x3d0d   :  { %v8674_v2 = vmul.f32 %v8672_v20, %v8665_v56  ;;  %11694 = vmatprep.subr.bf16.mxu0 %v12552_v41 }
0x3d0e   :  { %v12138_v30 = vpop.eup %12137  ;;  %v8675_v7 = vmul.f32 %v8672_v20, %v8666_v60 }
0x3d0f   :  { %v8667_v47 = vmul.f32 %v12138_v30, %v8627_v63  ;;  %v15272_v1 = vadd.f32 %v8681_v3, %v8674_v2 }
0x3d10   :  { %v15281_v8 = vadd.f32 %v8681_v3, %v8675_v7  ;;  %11695 = vmatpush3.bf16.msra.mxu0 %v11870_v10 }
0x3d11   :  { %v8692_v38 = vpack.c.bf16 %v15272_v1, %v15270_v36  ;;  %v8676_v21 = vmul.f32 %v8672_v20, %v8667_v47 }
0x3d13   :  { %11677 = vmatmul.mubr.msk.bf16.vlgmr.msra.gmra.mxu1 %vm1085_vm3, %v8692_v38  ;;  %v15279_v26 = vadd.f32 %v8681_v3, %v8676_v21 }
0x3d14   :  { %11680 = vmatprep.mubr.msk.bf16.mxu1 %vm12554_vm0, %v12552_v41 }
0x3d15   :  { %v8693_v28 = vpack.c.bf16 %v15279_v26, %v15281_v8 }
0x3d1b   :  { %11681 = vmatmul.mubr.msk.bf16.gmra.mxu1 %vm1085_vm3, %v8693_v28 }
0x3d1c   :  { %11684 = vmatprep.mubr.msk.bf16.mxu1 %vm12554_vm0, %v12552_v41 }
0x3d85   :  { %v8648_v39 = vpop.xlane.xlu0 %8647 }
0x3d86   :  { %v8653_v53 = vmul.f32 0.03125, %v8648_v39 }
0x3d88   :  { %v8658_v42 = vadd.f32 1e-06, %v8653_v53 }
0x3d8a   :  { %12139 = vrsqrt.f32 %v8658_v42 }
0x3d97   :  { %v12140_v19 = vpop.eup %12139 }
0x3d98   :  { %v8668_v63 = vmul.f32 %v12140_v19, %v8628_v9 }
0x3d9a   :  { %v8677_v24 = vmul.f32 %v8672_v20, %v8668_v63 }
0x3d9c   :  { %v8686_v22 = vadd.f32 %v8681_v3, %v8677_v24  ;;  %v10106_v3 = vld [vmem:[#allocation20 + $0x1] ss:$0 sm:$0xff] }
0x3d9e   :  { %v8694_v55 = vpack.c.bf16 %v8686_v22, %v8686_v22 }
0x3da0   :  { %11685 = vmatmul.mubr.msk.bf16.gmra.mxu1 %vm1085_vm3, %v8694_v55 }
0x3dd3   :  { %v8758_v14 = vpop.f32.mrf.mxu1 }
0x3dd4   :  { %v8759_v44 = vadd.f32 %v10092_v58, %v8758_v14 }
0x3dd5   :  { %v11678_v12 = vpop.f32.mrf.mxu1 }
0x3dd6   :  { %v8780_v40 = vmax.f32 %v8759_v44, 0.0 }
0x3dd7   :  { %v8761_v35 = vpop.f32.mrf.mxu1 }
0x3dd8   :  { %v8762_v32 = vadd.f32 %v10092_v58, %v8761_v35 }
0x3dd9   :  { %v11679_v13 = vpop.f32.mrf.mxu1 }
0x3dda   :  { %v8781_v15 = vmax.f32 %v8762_v32, 0.0 }
0x3ddb   :  { %v8766_v5 = vpop.f32.mrf.mxu1 }
0x3ddc   :  { %v8794_v29 = vpack.c.bf16 %v8781_v15, %v8780_v40  ;;  %v8767_v48 = vadd.f32 %v10092_v58, %v8766_v5 }
0x3ddd   :  { %v11682_v54 = vpop.f32.mrf.mxu1 }
0x3dde   :  { %11697 = vmatmul.mubr.msk.bf16.vlgmr.msra.gmra.mxu0 %vm2323_vm10, %v8794_v29  ;;  %v8782_v6 = vmax.f32 %v8767_v48, 0.0 }
0x3ddf   :  { %v8769_v9 = vpop.f32.mrf.mxu1  ;;  %11700 = vmatprep.mubr.msk.bf16.mxu0 %vm12554_vm0, %v12552_v41 }
0x3de0   :  { %v8770_v62 = vadd.f32 %v10092_v58, %v8769_v9 }
0x3de1   :  { %v11683_v50 = vpop.f32.mrf.mxu1 }
0x3de2   :  { %v8783_v61 = vmax.f32 %v8770_v62, 0.0 }
0x3de4   :  { %v8795_v45 = vpack.c.bf16 %v8783_v61, %v8782_v6 }
0x3de6   :  { %11701 = vmatmul.mubr.msk.bf16.gmra.mxu0 %vm2323_vm10, %v8795_v45 }
0x3de7   :  { %11704 = vmatprep.mubr.msk.bf16.mxu0 %vm12554_vm0, %v12552_v41 }
0x3e60   :  { %v8774_v37 = vpop.f32.mrf.mxu1 }
0x3e61   :  { %v8775_v16 = vadd.f32 %v10092_v58, %v8774_v37  ;;  %v11871_v37 = vld [vmem:[%s15638_s13 + $0xe0] ss:$16 sps:$4 sm:$0xff]  }
0x3e62   :  { %v11686_v59 = vpop.f32.mrf.mxu1 }
0x3e63   :  { %v8784_v31 = vmax.f32 %v8775_v16, 0.0  ;;  %v11873_v16 = vld [vmem:[%s15638_s13 + $0xe4] ss:$16 sps:$4 sm:$0xff]   ;;  %v11874_v59 = vld [vmem:[%s15638_s13 + $0xe8] ss:$16 sps:$4 sm:$0xff]  }
0x3e64   :  { %v8777_v20 = vpop.f32.mrf.mxu1  ;;  %9265 = vmatprep.subr.bf16.mxu1 %v11873_v16  ;;  %v11924_v16 = vld [vmem:[%s15638_s13 + $0x12c] ss:$16 sps:$4 sm:$0xff]  }
0x3e65   :  { %v8796_v23 = vpack.c.bf16 %v8784_v31, %v8784_v31  ;;  %v11876_v31 = vld [vmem:[%s15638_s13 + $0xec] ss:$16 sps:$4 sm:$0xff]   ;;  %v11879_v20 = vld [vmem:[%s15638_s13 + $0xc4] ss:$16 sps:$4 sm:$0xff]   ;;  %9266 = vmatpush1.bf16.msra.mxu1 %v11871_v37 }
0x3e66   :  { %v11687_v33 = vpop.f32.mrf.mxu1  ;;  %9306 = vmatprep.subr.bf16.mxu0 %v11876_v31  ;;  %9267 = vmatprep.subr.bf16.mxu1 %v11879_v20  ;;  %v11919_v31 = vld [vmem:[%s15638_s13 + $0x120] ss:$16 sps:$4 sm:$0xff]   ;;  %v11922_v20 = vld [vmem:[%s15638_s13 + $0x128] ss:$16 sps:$4 sm:$0xff]  }
0x3e67   :  { %11705 = vmatmul.mubr.msk.bf16.gmra.mxu0 %vm2323_vm10, %v8796_v23  ;;  %v11882_v23 = vld [vmem:[%s15638_s13 + $0xcc] ss:$16 sps:$4 sm:$0xff]   ;;  %v11877_v33 = vld [vmem:[%s15638_s13 + $0xc0] ss:$16 sps:$4 sm:$0xff]  }
0x3e68   :  { %9307 = vmatpush1.bf16.msra.mxu0 %v11874_v59 }
0x3e69   :  { %9308 = vmatprep.subr.bf16.mxu0 %v11882_v23  ;;  %9268 = vmatpush1.bf16.msra.mxu1 %v11877_v33  ;;  %v11927_v23 = vld [vmem:[%s15638_s13 + $0x104] ss:$16 sps:$4 sm:$0xff]  }
0x3e9e   :  { %v8872_v34 = vpop.f32.mrf.mxu0 }
0x3e9f   :  { %v8873_v38 = vadd.f32 %v10106_v3, %v8872_v34  ;;  %v11880_v34 = vld [vmem:[%s15638_s13 + $0xc8] ss:$16 sps:$4 sm:$0xff]  }
0x3ea0   :  { %v11698_v56 = vpop.f32.mrf.mxu0  ;;  %9309 = vmatpush1.bf16.msra.mxu0 %v11880_v34  ;;  %v11930_v34 = vld [vmem:[%s15638_s13 + $0x10c] ss:$16 sps:$4 sm:$0xff]  }
0x3ea1   :  { %v8894_v49 = vadd.f32 %v8873_v38, %v15270_v36  ;;  %v11885_v56 = vld [vmem:[%s15638_s13 + $0xa4] ss:$16 sps:$4 sm:$0xff]   ;;  %v11892_v38 = vld [vmem:[%s15638_s13 + $0x88] ss:$16 sps:$4 sm:$0xff]  }
0x3ea2   :  { %v8875_v4 = vpop.f32.mrf.mxu0  ;;  %9269 = vmatprep.subr.bf16.mxu1 %v11885_v56 }
0x3ea3   :  { %v8876_v2 = vadd.f32 %v10106_v3, %v8875_v4  ;;  %v11883_v4 = vld [vmem:[%s15638_s13 + $0xa0] ss:$16 sps:$4 sm:$0xff]  }
0x3ea4   :  { %v11699_v30 = vpop.f32.mrf.mxu0  ;;  %9270 = vmatpush1.bf16.msra.mxu1 %v11883_v4 }
0x3ea5   :  { %v8895_v60 = vadd.f32 %v8876_v2, %v15272_v1  ;;  %v8899_v1 = vsel %vm1085_vm3, %v8894_v49, 0.0  ;;  %v11886_v2 = vld [vmem:[%s15638_s13 + $0xa8] ss:$16 sps:$4 sm:$0xff]   ;;  %v11891_v30 = vld [vmem:[%s15638_s13 + $0x84] ss:$16 sps:$4 sm:$0xff]  }
0x3ea6   :  { %v8880_v47 = vpop.f32.mrf.mxu0  ;;  %9271 = vmatprep.subr.bf16.mxu1 %v11891_v30 }
0x3ea7   :  { %v8881_v41 = vadd.f32 %v10106_v3, %v8880_v47  ;;  %v8902_v21 = vsel %vm1085_vm3, %v8895_v60, 0.0  ;;  %v11889_v47 = vld [vmem:[%s15638_s13 + $0x80] ss:$16 sps:$4 sm:$0xff]  }
0x3ea8   :  { %8903 = vadd.xlane.f32.xlu1 %v8902_v21  ;;  %v11702_v7 = vpop.f32.mrf.mxu0  ;;  %9272 = vmatpush1.bf16.msra.mxu1 %v11889_v47 }
0x3ea9   :  { %v8896_v28 = vadd.f32 %v8881_v41, %v15281_v8 }
0x3eaa   :  { %v8883_v25 = vpop.f32.mrf.mxu0 }
0x3eab   :  { %v8884_v11 = vadd.f32 %v10106_v3, %v8883_v25  ;;  %v8905_v10 = vsel %vm1085_vm3, %v8896_v28, 0.0 }
0x3eac   :  { %8906 = vadd.xlane.f32.xlu0 %v8905_v10  ;;  %v11703_v39 = vpop.f32.mrf.mxu0 }
0x3ead   :  { %v8897_v53 = vadd.f32 %v8884_v11, %v15279_v26 }
0x3eaf   :  { %v8908_v42 = vsel %vm1085_vm3, %v8897_v53, 0.0 }
0x3eb0   :  { %8900 = vadd.xlane.f32.xlu0 %v8899_v1  ;;  %8909 = vadd.xlane.f32.xlu1 %v8908_v42 }
0x3f27   :  { %v8888_v19 = vpop.f32.mrf.mxu0 }
0x3f28   :  { %v8889_v63 = vadd.f32 %v10106_v3, %v8888_v19  ;;  %v11888_v3 = vld [vmem:[%s15638_s13 + $0xac] ss:$16 sps:$4 sm:$0xff]   ;;  %v11897_v19 = vld [vmem:[%s15638_s13 + $0x64] ss:$16 sps:$4 sm:$0xff]  }
0x3f29   :  { %v11706_v24 = vpop.f32.mrf.mxu0  ;;  %9310 = vmatprep.subr.bf16.mxu0 %v11888_v3  ;;  %9273 = vmatprep.subr.bf16.mxu1 %v11897_v19 }
0x3f2a   :  { %v15311_v8 = vadd.f32 %v8889_v63, %v8686_v22  ;;  %9311 = vmatpush1.bf16.msra.mxu0 %v11886_v2  ;;  %v11900_v63 = vld [vmem:[%s15638_s13 + $0x6c] ss:$16 sps:$4 sm:$0xff]   ;;  %v11928_v2 = vld [vmem:[%s15638_s13 + $0x108] ss:$16 sps:$4 sm:$0xff]  }
0x3f2b   :  { %v8891_v55 = vpop.f32.mrf.mxu0 }
0x3f2c   :  { %v8911_v36 = vsel %vm1085_vm3, %v15311_v8, 0.0  ;;  %v11898_v55 = vld [vmem:[%s15638_s13 + $0x68] ss:$16 sps:$4 sm:$0xff]  }
0x3f2d   :  { %8912 = vadd.xlane.f32.xlu1 %v8911_v36  ;;  %v11707_v58 = vpop.f32.mrf.mxu0 }
0x3f2e   :  { %v11901_v58 = vld [vmem:[%s15638_s13 + $0x40] ss:$16 sps:$4 sm:$0xff]  }
0x3f31   :  { %v8904_v14 = vpop.xlane.xlu1 %8903 }
0x3f32   :  { %v8915_v12 = vmul.f32 0.03125, %v8904_v14  ;;  %v11903_v14 = vld [vmem:[%s15638_s13 + $0x44] ss:$16 sps:$4 sm:$0xff]  }
0x3f34   :  { %v15315_v26 = vsub.f32 %v8895_v60, %v8915_v12  ;;  %v11894_v60 = vld [vmem:[%s15638_s13 + $0x8c] ss:$16 sps:$4 sm:$0xff]   ;;  %v11904_v12 = vld [vmem:[%s15638_s13 + $0x48] ss:$16 sps:$4 sm:$0xff]  }
0x3f35   :  { %v8907_v44 = vpop.xlane.xlu0 %8906  ;;  %9312 = vmatprep.subr.bf16.mxu0 %v11894_v60 }
0x3f36   :  { %v8916_v35 = vmul.f32 0.03125, %v8907_v44  ;;  %v8925_v32 = vmul.f32 %v15315_v26, %v15315_v26  ;;  %9313 = vmatpush1.bf16.msra.mxu0 %v11892_v38  ;;  %v11906_v44 = vld [vmem:[%s15638_s13 + $0x4c] ss:$16 sps:$4 sm:$0xff]  }
0x3f37   :  { %9314 = vmatprep.subr.bf16.mxu0 %v11900_v63 }
0x3f38   :  { %v15319_v13 = vsub.f32 %v8896_v28, %v8916_v35  ;;  %v8932_v22 = vsel %vm1085_vm3, %v8925_v32, 0.0  ;;  %v11907_v35 = vld [vmem:[%s15638_s13 + $0x20] ss:$16 sps:$4 sm:$0xff]   ;;  %v11909_v32 = vld [vmem:[%s15638_s13 + $0x24] ss:$16 sps:$4 sm:$0xff]  }
0x3f39   :  { %8933 = vadd.xlane.f32.xlu0 %v8932_v22  ;;  %v8901_v40 = vpop.xlane.xlu0 %8900  ;;  %v8910_v15 = vpop.xlane.xlu1 %8909  ;;  %v11910_v22 = vld [vmem:[%s15638_s13 + $0x28] ss:$16 sps:$4 sm:$0xff]  }
0x3f3a   :  { %v8914_v5 = vmul.f32 0.03125, %v8901_v40  ;;  %v8917_v29 = vmul.f32 0.03125, %v8910_v15  ;;  %v8926_v54 = vmul.f32 %v15319_v13, %v15319_v13  ;;  %9315 = vmatpush1.bf16.msra.mxu0 %v11898_v55  ;;  %v15370_v40 = vrot.slane %v15263_v18, %v14591_v17  ;;  %v11912_v15 = vld [vmem:[%s15638_s13 + $0x2c] ss:$16 sps:$4 sm:$0xff]  }
0x3f3b   :  { %9316 = vmatprep.subr.bf16.mxu0 %v11906_v44 }
0x3f3c   :  { %v15324_v48 = vsub.f32 %v8894_v49, %v8914_v5  ;;  %v15326_v9 = vsub.f32 %v8897_v53, %v8917_v29  ;;  %v8935_v62 = vsel %vm1085_vm3, %v8926_v54, 0.0  ;;  %v15376_v54 = vrot.slane %v15263_v18, %v14598_v46 }
0x3f3d   :  { %8936 = vadd.xlane.f32.xlu1 %v8935_v62  ;;  %v11915_v62 = vld [vmem:[%s15638_s13 + $0x4] ss:$16 sps:$4 sm:$0xff]  }
0x3f3e   :  { %v8927_v50 = vmul.f32 %v15326_v9, %v15326_v9  ;;  %v8924_v6 = vmul.f32 %v15324_v48, %v15324_v48  ;;  %9317 = vmatpush1.bf16.msra.mxu0 %v11904_v12 }
0x3f3f   :  { %9318 = vmatprep.subr.bf16.mxu0 %v11912_v15 }
0x3f40   :  { %v8938_v61 = vsel %vm1085_vm3, %v8927_v50, 0.0  ;;  %v8929_v45 = vsel %vm1085_vm3, %v8924_v6, 0.0  ;;  %v11918_v50 = vld [vmem:[%s15638_s13 + $0xc] ss:$16 sps:$4 sm:$0xff]  }
0x3f41   :  { %8939 = vadd.xlane.f32.xlu0 %v8938_v61  ;;  %8930 = vadd.xlane.f32.xlu1 %v8929_v45  ;;  %v11913_v61 = vld [vmem:[%s15638_s13] ss:$16 sps:$4 sm:$0xff]   ;;  %v11916_v45 = vld [vmem:[%s15638_s13 + $0x8] ss:$16 sps:$4 sm:$0xff]  }
0x3f42   :  { %9319 = vmatpush1.bf16.msra.mxu0 %v11910_v22 }
0x3f43   :  { %9320 = vmatprep.subr.bf16.mxu0 %v11918_v50 }
0x3f46   :  { %9321 = vmatpush1.bf16.msra.mxu0 %v11916_v45 }
0x3f47   :  { %9334 = vmatprep.subr.bf16.mxu0 %v11924_v16 }
0x3f4a   :  { %9335 = vmatpush2.bf16.msra.mxu0 %v11922_v20 }
0x3f4b   :  { %9336 = vmatprep.subr.bf16.mxu0 %v11930_v34 }
0x3f4e   :  { %9337 = vmatpush2.bf16.msra.mxu0 %v11928_v2  ;;  %v15436_v2 = vld [vmem:[%s12726_s9 + $0x8] sm:$0xff] }
0x3f4f   :  { %vm9592_vm2 = vcmp.gt.f32.partialorder %v15436_v2, 0.5 }
0x3fb6   :  { %v8913_v41 = vpop.xlane.xlu1 %8912 }
0x3fb7   :  { %v8918_v21 = vmul.f32 0.03125, %v8913_v41 }
0x3fb9   :  { %v15352_v7 = vsub.f32 %v15311_v8, %v8918_v21  ;;  %v11895_v8 = vld [vmem:[%s15638_s13 + $0x60] ss:$16 sps:$4 sm:$0xff]  }
0x3fba   :  { %9274 = vmatpush1.bf16.msra.mxu1 %v11895_v8 }
0x3fbb   :  { %v8928_v28 = vmul.f32 %v15352_v7, %v15352_v7  ;;  %9275 = vmatprep.subr.bf16.mxu1 %v11903_v14 }
0x3fbd   :  { %v8941_v25 = vsel %vm1085_vm3, %v8928_v28, 0.0 }
0x3fbe   :  { %8942 = vadd.xlane.f32.xlu0 %v8941_v25  ;;  %9276 = vmatpush1.bf16.msra.mxu1 %v11901_v58 }
0x3fbf   :  { %9277 = vmatprep.subr.bf16.mxu1 %v11909_v32 }
0x3fc2   :  { %v8934_v49 = vpop.xlane.xlu0 %8933  ;;  %9278 = vmatpush1.bf16.msra.mxu1 %v11907_v35 }
0x3fc3   :  { %v8945_v11 = vmul.f32 0.03125, %v8934_v49  ;;  %9279 = vmatprep.subr.bf16.mxu1 %v11915_v62 }
0x3fc5   :  { %v8950_v10 = vadd.f32 1e-06, %v8945_v11 }
0x3fc6   :  { %v8937_v39 = vpop.xlane.xlu1 %8936  ;;  %9280 = vmatpush1.bf16.msra.mxu1 %v11913_v61 }
0x3fc7   :  { %12141 = vrsqrt.f32 %v8950_v10  ;;  %v8946_v53 = vmul.f32 0.03125, %v8937_v39 }
0x3fc9   :  { %v8951_v1 = vadd.f32 1e-06, %v8946_v53 }
0x3fca   :  { %v8940_v42 = vpop.xlane.xlu0 %8939  ;;  %v8931_v47 = vpop.xlane.xlu1 %8930 }
0x3fcb   :  { %12143 = vrsqrt.f32 %v8951_v1  ;;  %v8947_v24 = vmul.f32 0.03125, %v8940_v42  ;;  %v8944_v38 = vmul.f32 0.03125, %v8931_v47 }
0x3fcd   :  { %v8952_v36 = vadd.f32 1e-06, %v8947_v24  ;;  %v8949_v41 = vadd.f32 1e-06, %v8944_v38 }
0x3fcf   :  { %12145 = vrsqrt.f32 %v8952_v36 }
0x3fd0   :  { %12147 = vrsqrt.f32 %v8949_v41 }
0x3fd4   :  { %v12142_v5 = vpop.eup %12141 }
0x3fd5   :  { %v8960_v29 = vmul.f32 %v12142_v5, %v15315_v26  ;;  %v11921_v26 = vld [vmem:[%s15638_s13 + $0x124] ss:$16 sps:$4 sm:$0xff]  }
0x3fd6   :  { %9293 = vmatprep.subr.bf16.mxu1 %v11921_v26 }
0x3fd7   :  { %v8969_v6 = vmul.f32 %v15370_v40, %v8960_v29  ;;  %9294 = vmatpush2.bf16.msra.mxu1 %v11919_v31 }
0x3fd8   :  { %v12144_v37 = vpop.eup %12143  ;;  %9295 = vmatprep.subr.bf16.mxu1 %v11927_v23 }
0x3fd9   :  { %v8978_v18 = vadd.f32 %v15376_v54, %v8969_v6  ;;  %v8961_v59 = vmul.f32 %v12144_v37, %v15319_v13  ;;  %v11925_v13 = vld [vmem:[%s15638_s13 + $0x100] ss:$16 sps:$4 sm:$0xff]  }
0x3fdb   :  { %8983 = vrot.lane.b32.xlu1 %v8978_v18, %s12555_s0  ;;  %v8970_v33 = vmul.f32 %v15370_v40, %v8961_v59  ;;  %9296 = vmatpush2.bf16.msra.mxu1 %v11925_v13  ;;  %v9480_v13 = vsub.s32 6, %v13313_v51 }
0x3fdc   :  { %v12146_v56 = vpop.eup %12145 }
0x3fdd   :  { %v8979_v3 = vadd.f32 %v15376_v54, %v8970_v33  ;;  %v8962_v4 = vmul.f32 %v12146_v56, %v15326_v9  ;;  %v12148_v25 = vpop.eup %12147 }
0x3fde   :  { %v8959_v49 = vmul.f32 %v12148_v25, %v15324_v48  ;;  %v9395_v25 = vrot.slane %v15436_v2, %v13316_v52 }
0x3fdf   :  { %8987 = vrot.lane.b32.xlu0 %v8979_v3, %s12544_s12  ;;  %v8971_v30 = vmul.f32 %v15370_v40, %v8962_v4  ;;  %v15432_v4 = vld [vmem:[%s12726_s9] sm:$0xff]  ;;  %s12557_s9 = smov [#allocation23]  }
0x3fe0   :  { %v8968_v11 = vmul.f32 %v15370_v40, %v8959_v49  ;;  %v9432_v47 = vrot.slane %v15432_v4, %v13321_v43  ;;  %v9481_v38 = vrot.slane %v15432_v4, %v9480_v13  ;;  %v9391_v41 = vrot.slane %v15432_v4, %v14591_v17  ;;  %s9669_s8 = sshll.u32 %s12557_s9, 4  ;;  %s9670_s8 = int_to_ptr.vmem [resolvable:$true] %s9669_s8 }
0x3fe1   :  { %v8980_v60 = vadd.f32 %v15376_v54, %v8971_v30  ;;  %v9477_v30 = vrot.slane %v15432_v4, %v13416_v27  ;;  %vm9591_vm1 = vcmp.gt.f32.partialorder %v15432_v4, 0.5  ;;  %s12465_s12 = scalar_lea.vmem %s9670_s8, 512  ;;  %p12470_p10 = scmp.lt.s32.totalorder %s9670_s8, %s9670_s8 }
0x3fe2   :  { %v8977_v53 = vadd.f32 %v15376_v54, %v8968_v11  ;;  %p12466_p9 = scmp.ne.s32.totalorder %s9670_s8, %s12465_s12  ;;  %p12471_p11 = scmp.lt.s32.totalorder %s12465_s12, %s12465_s12 }
0x3fe3   :  { %8991 = vrot.lane.b32.xlu1 %v8980_v60, %s12556_s18  ;;  %v9387_v60 = vrot.slane %v15432_v4, %v13316_v52  ;;  %v15455_v49 = vrot.slane %v9477_v30, %v13416_v27 }
0x3fe4   :  { %p12472_p12 = por %p12471_p11, %p12470_p10 }
0x3fe5   :  { %v15458_v11 = vrot.slane %v9387_v60, %v13316_v52  ;;  %v10158_v60 = vrot.slane %v15432_v4, 10 }
0x3fe6   :  { %p12473_p13 = pnand %p12472_p12, %p12466_p9 }
0x4047   :  { %v8943_v9 = vpop.xlane.xlu0 %8942 }
0x4048   :  { %v8948_v21 = vmul.f32 0.03125, %v8943_v9  ;;  %v9436_v9 = vrot.slane %v15432_v4, %v14598_v46 }
0x404a   :  { %v8953_v28 = vadd.f32 1e-06, %v8948_v21  ;;  %v9485_v21 = vrot.slane %v15436_v2, %v13416_v27 }
0x404c   :  { %12149 = vrsqrt.f32 %v8953_v28  ;;  %v9489_v28 = vrot.slane %v15436_v2, %v9480_v13 }
0x404d   :  { %v8984_v10 = vpop.permute.xlu1 %8983 }
0x404e   :  { %v8994_v63 = vsel %vm1085_vm3, %v8977_v53, %v8984_v10  ;;  %v9440_v10 = vrot.slane %v15436_v2, %v13321_v43  ;;  %v15466_v53 = vrot.slane %v9481_v38, %v13416_v27 }
0x4051   :  { %v8988_v1 = vpop.permute.xlu0 %8987 }
0x4052   :  { %v8995_v8 = vsel %vm2323_vm10, %v8994_v63, %v8988_v1  ;;  %v9399_v1 = vrot.slane %v15436_v2, %v14591_v17 }
0x4055   :  { %v8992_v19 = vpop.permute.xlu1 %8991 }
0x4056   :  { %v8997_v55 = vsel %vm8996_vm14, %v8995_v8, %v8992_v19  ;;  %v15474_v19 = vrot.slane %v9436_v9, %v13321_v43  ;;  %v15482_v8 = vrot.slane %v9489_v28, %v13416_v27 }
0x4057   :  { %v9038_v58 = vpack.c.bf16 %v8997_v55, %v8997_v55  ;;  %v15485_v55 = vrot.slane %v9395_v25, %v13316_v52 }
0x4059   :  { %v12150_v39 = vpop.eup %12149 }
0x405a   :  { %v8963_v42 = vmul.f32 %v12150_v39, %v15352_v7  ;;  %v9040_v7 = vld [vmem:[#allocation22] sm:$0xf]  ;;  %v15463_v39 = vrot.slane %v9432_v47, %v13321_v43  ;;  %v10159_v47 = vrot.slane %v15436_v2, 10 }
0x405b   :  { %v9045_v14 = vrot.slane %v9040_v7, %v13316_v52  ;;  %v9053_v12 = vrot.slane %v9040_v7, %v13416_v27  ;;  %v9049_v44 = vrot.slane %v9040_v7, %v13321_v43  ;;  %v9057_v35 = vrot.slane %v9040_v7, %v13419_v57 }
0x405c   :  { %v8972_v24 = vmul.f32 %v15370_v40, %v8963_v42  ;;  %v15471_v42 = vrot.slane %v9391_v41, %v13316_v52 }
0x405e   :  { %v8981_v48 = vadd.f32 %v15376_v54, %v8972_v24  ;;  %v15479_v24 = vrot.slane %v9485_v21, %v13416_v27 }
0x4060   :  { %v9039_v36 = vpack.c.bf16 %v8981_v48, %v8981_v48  ;;  %v9444_v48 = vrot.slane %v15436_v2, %v14598_v46  ;;  %v9419_v46 = vrot.slane %v9399_v1, %v13316_v52 }
0x4062   :  { %10154 = vmatprep.mubr.msk.bf16.mxu1 %vm1085_vm3, %v9039_v36  ;;  %10155 = vmatprep.mubr.msk.bf16.mxu0 %vm1085_vm3, %v9039_v36 }
0x4063   :  { %9298 = vmatmul.mubr.bf16.vlgmr.msra.gmra.mxu1 %v9038_v58  ;;  %9339 = vmatmul.mubr.bf16.vlgmr.msra.gmra.mxu0 %v9038_v58 }
0x4123   :  { %v9299_v32 = vpop.f32.mrf.mxu1  ;;  %v9340_v22 = vpop.f32.mrf.mxu0 }
0x4124   :  { %v15415_v5 = vadd.f32 %v9299_v32, %v9045_v14  ;;  %v15417_v29 = vadd.f32 %v9340_v22, %v9053_v12  ;;  %v15496_v14 = vrot.slane %v9440_v10, %v13321_v43 }
0x4125   :  { %v9301_v40 = vpop.f32.mrf.mxu1  ;;  %v9342_v15 = vpop.f32.mrf.mxu0 }
0x4126   :  { %v15419_v54 = vadd.f32 %v9301_v40, %v9049_v44  ;;  %v15421_v62 = vadd.f32 %v9342_v15, %v9057_v35 }
0x4127   :  { %v9303_v50 = vpop.f32.mrf.mxu1  ;;  %v9344_v6 = vpop.f32.mrf.mxu0 }
0x4128   :  { %v9367_v61 = vmax.f32 %v15415_v5, %v15419_v54  ;;  %v9368_v45 = vmax.f32 %v15417_v29, %v15421_v62  ;;  %v10161_v38 = vmul.f32 -1.442695, %v15419_v54  ;;  %v10163_v21 = vmul.f32 -1.442695, %v15421_v62 }
0x4129   :  { %v9304_v37 = vpop.f32.mrf.mxu1  ;;  %v9345_v26 = vpop.f32.mrf.mxu0 }
0x412a   :  { %v9369_v16 = vmax.f32 %v9367_v61, %v9368_v45  ;;  %v9464_v61 = vrot.slane %v9444_v48, %v13321_v43  ;;  %v10160_v43 = vmul.f32 -1.442695, %v15415_v5 }
0x412c   :  { %9370 = vmax.xlane.f32.xlu1 %v9369_v16 }
0x41b5   :  { %v9371_v18 = vpop.xlane.xlu1 %9370 }
0x41b6   :  { %v9372_v59 = vsub.f32 %v15415_v5, %v9371_v18  ;;  %v9373_v31 = vsub.f32 %v15419_v54, %v9371_v18  ;;  %v9374_v20 = vsub.f32 %v15417_v29, %v9371_v18  ;;  %v9375_v23 = vsub.f32 %v15421_v62, %v9371_v18 }
0x41b7   :  { %v10162_v5 = vmul.f32 -1.442695, %v15417_v29 }
0x41b8   :  { %v9376_v33 = vmul.f32 1.442695, %v9372_v59  ;;  %v9378_v34 = vmul.f32 1.442695, %v9373_v31  ;;  %v9380_v56 = vmul.f32 1.442695, %v9374_v20 }
0x41b9   :  { %v9382_v3 = vmul.f32 1.442695, %v9375_v23 }
0x41ba   :  { %12151 = vpow2.f32 %v9376_v33 }
0x41bb   :  { %12153 = vpow2.f32 %v9378_v34 }
0x41bc   :  { %12155 = vpow2.f32 %v9380_v56  ;;  %v10156_v56 = vrot.slane %v15432_v4, 9 }
0x41bd   :  { %12157 = vpow2.f32 %v9382_v3  ;;  %v10157_v3 = vrot.slane %v15436_v2, 9 }
0x41be   :  { %12159 = vpow2.f32 %v10160_v43  ;;  %v9357_v13 = vadd.f32 %v10156_v56, %v15432_v4 }
0x41bf   :  { %v9358_v30 = vadd.f32 %v10157_v3, %v15436_v2  ;;  %12161 = vpow2.f32 %v10161_v38 }
0x41c0   :  { %v9365_v41 = vadd.f32 %v10158_v60, %v9357_v13  ;;  %12163 = vpow2.f32 %v10162_v5  ;;  %v9625_v13 = vsub.s32 7, %v13313_v51 }
0x41c1   :  { %v9366_v9 = vadd.f32 %v10159_v47, %v9358_v30  ;;  %12165 = vpow2.f32 %v10163_v21  ;;  %v9618_v30 = vsel %vm9592_vm2, 1, %v12551_v0 }
0x41c2   :  { %v9539_v28 = vsub.f32 1.0, %v9365_v41  ;;  %v9630_v4 = vrot.slane %v9618_v30, %v13419_v57  ;;  %v9634_v38 = vrot.slane %v9618_v30, %v9625_v13 }
0x41c3   :  { %v9540_v25 = vsub.f32 1.0, %v9366_v9 }
0x41c4   :  { %v9546_v1 = vrot.slane %v9539_v28, %v13316_v52  ;;  %v9550_v48 = vrot.slane %v9539_v28, %v14591_v17  ;;  %v9646_v5 = vrot.slane %v9630_v4, %v13419_v57  ;;  %v9650_v51 = vrot.slane %v9634_v38, %v13419_v57 }
0x41c6   :  { %v9566_v29 = vrot.slane %v9546_v1, %v13316_v52  ;;  %v9570_v62 = vrot.slane %v9550_v48, %v13316_v52  ;;  %vm9653_vm9 = vcmp.eq.s32.totalorder %v9646_v5, 1  ;;  %vm9654_vm11 = vcmp.eq.s32.totalorder %v9650_v51, 1 }
0x41c7   :  { %v15476_v63 = vpop.eup %12151 }
0x41c8   :  { %v15489_v36 = vpop.eup %12153  ;;  %v9510_v58 = vmul.f32 %v15476_v63, %v15455_v49  ;;  %v9420_v7 = vmul.f32 %v15476_v63, %v15458_v11  ;;  %v9465_v27 = vmul.f32 %v15476_v63, %v15463_v39 }
0x41c9   :  { %v15500_v12 = vpop.eup %12155  ;;  %v9511_v44 = vmul.f32 %v15489_v36, %v15466_v53  ;;  %v9421_v35 = vmul.f32 %v15489_v36, %v15471_v42  ;;  %v9466_v32 = vmul.f32 %v15489_v36, %v15474_v19 }
0x41ca   :  { %v15509_v22 = vpop.eup %12157  ;;  %v9512_v40 = vmul.f32 %v15500_v12, %v15479_v24  ;;  %v9422_v50 = vmul.f32 %v15500_v12, %v15485_v55  ;;  %v9467_v45 = vmul.f32 %v15500_v12, %v15496_v14 }
0x41cb   :  { %v9514_v15 = vadd.f32 %v9511_v44, %v9510_v58  ;;  %v9424_v6 = vadd.f32 %v9421_v35, %v9420_v7  ;;  %v9469_v37 = vadd.f32 %v9466_v32, %v9465_v27  ;;  %v9513_v26 = vmul.f32 %v15509_v22, %v15482_v8  ;;  %v12160_v10 = vpop.eup %12159 }
0x41cc   :  { %v9423_v18 = vmul.f32 %v15509_v22, %v9419_v46  ;;  %v9468_v33 = vmul.f32 %v15509_v22, %v9464_v61  ;;  %v9554_v58 = vrot.slane %v9540_v25, %v13316_v52  ;;  %v9605_v54 = vadd.f32 1.0, %v12160_v10 }
0x41cd   :  { %v9515_v16 = vadd.f32 %v9514_v15, %v9512_v40  ;;  %v9425_v59 = vadd.f32 %v9424_v6, %v9422_v50  ;;  %v9470_v23 = vadd.f32 %v9469_v37, %v9467_v45  ;;  %v9558_v44 = vrot.slane %v9540_v25, %v14591_v17  ;;  %v12162_v45 = vpop.eup %12161 }
0x41ce   :  { %v9574_v35 = vrot.slane %v9554_v58, %v13316_v52  ;;  %12167 = vrcp.f32 %v9605_v54 }
0x41cf   :  { %v9516_v31 = vadd.f32 %v9515_v16, %v9513_v26  ;;  %v9426_v20 = vadd.f32 %v9425_v59, %v9423_v18  ;;  %v9471_v34 = vadd.f32 %v9470_v23, %v9468_v33  ;;  %v9606_v23 = vadd.f32 1.0, %v12162_v45 }
0x41d1   :  { %9517 = vadd.xlane.f32.xlu1 %v9516_v31  ;;  %9427 = vadd.xlane.f32.xlu0 %v9426_v20  ;;  %12169 = vrcp.f32 %v9606_v23 }
0x41d5   :  { %9472 = vadd.xlane.f32.xlu0 %v9471_v34 }
0x425a   :  { %v9428_v7 = vpop.xlane.xlu0 %9427  ;;  %v9518_v27 = vpop.xlane.xlu1 %9517 }
0x425b   :  { %v9519_v32 = vmul.f32 %v9428_v7, %v15458_v11  ;;  %v9520_v40 = vmul.f32 %v9428_v7, %v15471_v42  ;;  %v9521_v15 = vmul.f32 %v9428_v7, %v15485_v55  ;;  %v9522_v50 = vmul.f32 %v9428_v7, %v9419_v46 }
0x425c   :  { %v9531_v18 = vmul.f32 %v9518_v27, %v15455_v49  ;;  %v9532_v59 = vmul.f32 %v9518_v27, %v15466_v53  ;;  %v9533_v11 = vmul.f32 %v9518_v27, %v15479_v24  ;;  %v9534_v42 = vmul.f32 %v9518_v27, %v15482_v8 }
0x425e   :  { %v9473_v6 = vpop.xlane.xlu0 %9472 }
0x425f   :  { %v9523_v37 = vmul.f32 %v9473_v6, %v15463_v39  ;;  %v9524_v26 = vmul.f32 %v9473_v6, %v15474_v19  ;;  %v9525_v17 = vmul.f32 %v9473_v6, %v15496_v14  ;;  %v9526_v16 = vmul.f32 %v9473_v6, %v9464_v61  ;;  %v12164_v61 = vpop.eup %12163 }
0x4260   :  { %v9578_v39 = vrot.slane %v9558_v44, %v13316_v52  ;;  %v12166_v43 = vpop.eup %12165  ;;  %v9607_v8 = vadd.f32 1.0, %v12164_v61  ;;  %v9617_v52 = vsel %vm9591_vm1, 1, %v12551_v0 }
0x4261   :  { %v9527_v31 = vadd.f32 %v9523_v37, %v9519_v32  ;;  %v9528_v55 = vadd.f32 %v9524_v26, %v9520_v40  ;;  %v9529_v46 = vadd.f32 %v9525_v17, %v9521_v15  ;;  %v9530_v20 = vadd.f32 %v9526_v16, %v9522_v50  ;;  %v12168_v9 = vpop.eup %12167 }
0x4262   :  { %v9608_v3 = vadd.f32 1.0, %v12166_v43  ;;  %v9622_v60 = vrot.slane %v9617_v52, %v13419_v57  ;;  %v9626_v47 = vrot.slane %v9617_v52, %v9625_v13  ;;  %v12170_v21 = vpop.eup %12169 }
0x4263   :  { %v9535_v33 = vadd.f32 %v9531_v18, %v9527_v31  ;;  %v9536_v19 = vadd.f32 %v9532_v59, %v9528_v55  ;;  %v9537_v34 = vadd.f32 %v9533_v11, %v9529_v46  ;;  %v9538_v14 = vadd.f32 %v9534_v42, %v9530_v20 }
0x4264   :  { %v9638_v41 = vrot.slane %v9622_v60, %v13419_v57  ;;  %v9642_v2 = vrot.slane %v9626_v47, %v13419_v57 }
0x4265   :  { %v9579_v49 = vadd.f32 %v9566_v29, %v9535_v33  ;;  %v9580_v53 = vadd.f32 %v9570_v62, %v9536_v19  ;;  %v9581_v56 = vadd.f32 %v9574_v35, %v9537_v34  ;;  %v9582_v24 = vadd.f32 %v9578_v39, %v9538_v14 }
0x4266   :  { %vm9651_vm7 = vcmp.eq.s32.totalorder %v9638_v41, 1  ;;  %vm15562_vm8 = vcmp.eq.s32.totalorder %v9642_v2, 1 }
0x4267   :  { %12171 = vrcp.f32 %v9579_v49 }
0x4268   :  { %12173 = vrcp.f32 %v9580_v53 }
0x4269   :  { %12175 = vrcp.f32 %v9581_v56 }
0x426a   :  { %12177 = vrcp.f32 %v9582_v24 }
0x426b   :  { %12179 = vrcp.f32 %v9607_v8 }
0x426c   :  { %12181 = vrcp.f32 %v9608_v3 }
0x4274   :  { %v12172_v28 = vpop.eup %12171 }
0x4275   :  { %v12174_v0 = vpop.eup %12173  ;;  %v9584_v25 = vmul.f32 %v12172_v28, %v15476_v63 }
0x4276   :  { %v12176_v1 = vpop.eup %12175  ;;  %v9586_v48 = vmul.f32 %v12174_v0, %v15489_v36 }
0x4277   :  { %v12178_v58 = vpop.eup %12177  ;;  %v9588_v7 = vmul.f32 %v12176_v1, %v15500_v12  ;;  %v9655_v57 = vsel %vm9651_vm7, %v12168_v9, %v9584_v25 }
0x4278   :  { %v12180_v54 = vpop.eup %12179  ;;  %v9590_v27 = vmul.f32 %v12178_v58, %v15509_v22  ;;  %v9656_v63 = vsel %vm15562_vm8, %v12170_v21, %v9586_v48  ;;  %9659 = vst [vmem:[#allocation23] sm:$0xff] %v9655_v57 }
0x4279   :  { %v12182_v44 = vpop.eup %12181  ;;  %v9657_v29 = vsel %vm9653_vm9, %v12180_v54, %v9588_v7  ;;  %9660 = vst [vmem:[#allocation23 + $0x8] sm:$0xff] %v9656_v63 }
0x427a   :  { %v9658_v36 = vsel %vm9654_vm11, %v12182_v44, %v9590_v27  ;;  %9661 = vst [vmem:[#allocation23 + $0x10] sm:$0xff] %v9657_v29 }
0x427b   :  { %9662 = vst [vmem:[#allocation23 + $0x18] sm:$0xff] %v9658_v36 }
0x427c   :  { %12476 = shalt.err (!%p12473_p13)
}
0x427d   :  { %9672 = dma.vmem_to_hbm [thread:$0]  %s9670_s8, 512, %s12731_s25, [#allocation4]  }
0x427e   :  { %12499 = dma.done.wait [#allocation4], 512  }
0x427f   :  { %12500 = vsyncadd [#allocation4], 4294966784 }
0x4280   :  { %9676 = vsyncpa [#allocation3], 1 }
0x4281   :  { %9677 = vsyncpa [#allocation6], 1 }
0x4282   :  { %9678 = vsyncpa [#allocation9], 1 }
0x4283   :  { %9679 = vsyncpa [#allocation12], 1 }
0x4284   :  { %9680 = vsyncpa [#allocation15], 1 }
0x4285   :  { %9681 = vsyncpa [#allocation18], 1 }
0x4286   :  { %9682 = vsyncpa [#allocation21], 1 }
0x4287   :  { %9683 = vsyncpa [#allocation4], 1 }

</bundles_post_ra>
